<compile_context>
chip_gen: v6e
topology: v6e:2x2x1
jax: 0.10.0
libtpu: 0.0.40
codegen_flags: <defaults>
</compile_context>

<pallas_src>
import functools

import jax
import jax.numpy as jnp
from jax.experimental import pallas as pl
from jax.experimental.pallas import tpu as pltpu


# Tile caps.  Double-buffered footprint at the caps:
#   2*TM*TK*2B + 2*TK*TN*2B + 2*TM*TN*4B ~= 7 MiB  -> fits the 16 MiB scoped
# VMEM default on v5e and is comfortably inside v6e/v7x budgets.
_TM_CAP = 256
_TN_CAP = 512
_TK_CAP = 2048


def _round_up(x, m):
    return (x + m - 1) // m * m


def _pad_dim(dim, base, cap):
    d = _round_up(dim, base)
    if d <= cap:
        return d
    return _round_up(dim, cap)


def _tile_of(padded, cap):
    return padded if padded <= cap else cap


# ---------------------------------------------------------------------------
# Pallas kernels: fused GEMM (bf16 x bf16 -> f32) + bias + activation.
# ---------------------------------------------------------------------------
def _apply_act(y, act, neg_slope):
    if act == "leaky":
        return jnp.where(y > 0, y, neg_slope * y)
    if act == "tanh":
        return jnp.tanh(y)
    return y


def _gemm_single_k_kernel(a_ref, b_ref, bias_ref, o_ref, *, act, neg_slope):
    # Whole K reduction fits one block: no accumulator, no output revisits.
    y = jnp.dot(a_ref[...], b_ref[...], preferred_element_type=jnp.float32)
    y = _apply_act(y + bias_ref[...], act, neg_slope)
    o_ref[...] = y.astype(o_ref.dtype)


def _gemm_multi_k_kernel(a_ref, b_ref, bias_ref, o_ref, acc_ref, *, act,
                         neg_slope):
    k = pl.program_id(2)

    @pl.when(k == 0)
    def _():
        acc_ref[...] = jnp.zeros_like(acc_ref)

    acc_ref[...] += jnp.dot(a_ref[...], b_ref[...],
                            preferred_element_type=jnp.float32)

    @pl.when(k == pl.num_programs(2) - 1)
    def _():
        y = _apply_act(acc_ref[...] + bias_ref[...], act, neg_slope)
        o_ref[...] = y.astype(o_ref.dtype)


def fused_matmul(a, b_p, bias_p, n_out, act="none", neg_slope=0.2,
                 out_dtype=jnp.float32):
    """act(a @ b + bias).  b_p (Kp,Np) bf16 and bias_p (1,Np) f32 are pre-padded."""
    M, K = a.shape
    Kp, Np = b_p.shape
    Mp = _pad_dim(M, 16, _TM_CAP)
    TM = _tile_of(Mp, _TM_CAP)
    TN = _tile_of(Np, _TN_CAP)
    TK = _tile_of(Kp, _TK_CAP)

    a = a.astype(jnp.bfloat16)
    if (Mp, Kp) != (M, K):
        a = jnp.zeros((Mp, Kp), jnp.bfloat16).at[:M, :K].set(a)

    nk = Kp // TK
    if nk == 1:
        kernel = functools.partial(_gemm_single_k_kernel, act=act,
                                   neg_slope=neg_slope)
        grid_spec = pltpu.PrefetchScalarGridSpec(
            num_scalar_prefetch=0,
            grid=(Mp // TM, Np // TN),
            in_specs=[
                pl.BlockSpec((TM, TK), lambda i, j: (i, 0)),
                pl.BlockSpec((TK, TN), lambda i, j: (0, j)),
                pl.BlockSpec((1, TN), lambda i, j: (0, j)),
            ],
            out_specs=pl.BlockSpec((TM, TN), lambda i, j: (i, j)),
        )
        dims = ("parallel", "parallel")
    else:
        kernel = functools.partial(_gemm_multi_k_kernel, act=act,
                                   neg_slope=neg_slope)
        grid_spec = pltpu.PrefetchScalarGridSpec(
            num_scalar_prefetch=0,
            grid=(Mp // TM, Np // TN, nk),
            in_specs=[
                pl.BlockSpec((TM, TK), lambda i, j, k: (i, k)),
                pl.BlockSpec((TK, TN), lambda i, j, k: (k, j)),
                pl.BlockSpec((1, TN), lambda i, j, k: (0, j)),
            ],
            out_specs=pl.BlockSpec((TM, TN), lambda i, j, k: (i, j)),
            scratch_shapes=[pltpu.VMEM((TM, TN), jnp.float32)],
        )
        dims = ("parallel", "parallel", "arbitrary")

    out = pl.pallas_call(
        kernel,
        out_shape=jax.ShapeDtypeStruct((Mp, Np), out_dtype),
        grid_spec=grid_spec,
        compiler_params=pltpu.CompilerParams(dimension_semantics=dims),
    )(a, b_p, bias_p)
    return out[:M, :n_out]


# ---------------------------------------------------------------------------
# Glue: im2col, weight layout, BN folding, sub-pixel ConvTranspose rewrite
# ---------------------------------------------------------------------------
def _im2col(x_nhwc, k, stride, pad):
    x = jnp.pad(x_nhwc, ((0, 0), (pad, pad), (pad, pad), (0, 0)))
    n, h, w, c = x.shape
    ho = (h - k) // stride + 1
    wo = (w - k) // stride + 1
    cols = []
    for i in range(k):
        for j in range(k):
            cols.append(x[:, i:i + stride * ho:stride,
                           j:j + stride * wo:stride, :])
    patches = jnp.concatenate(cols, axis=-1)       # (n,ho,wo,k*k*c), (kh,kw,c)
    return patches.reshape(n * ho * wo, k * k * c), (n, ho, wo)


def _bn_fold(conv_bias, gamma, beta, running_mean, running_var, eps=1e-5):
    s = gamma / jnp.sqrt(running_var + eps)
    b = beta + (conv_bias - running_mean) * s
    return s, b


def _conv_weight_to_gemm(w_oihw, scale):
    # Conv2d weight (O, C, kH, kW) -> (kH*kW*C, O), BN scale folded per column.
    o, c, kh, kw = w_oihw.shape
    b = jnp.transpose(w_oihw, (2, 3, 1, 0)).reshape(kh * kw * c, o)
    return b * scale[None, :]


def _deconv_to_subpixel_gemm(w_iohw, scale):
    # ConvTranspose2d(k=4,s=2,p=1) weight (Cin, Cout, 4, 4) -> sub-pixel GEMM
    # weight (2*2*Cin, 4*Cout).  Output phase (r,c) at spatial (m,n) reads the
    # 2x2 window of the pad-1 input at (m+r, n+c) with kernel taps
    # kh = (3 - r) - 2*wr, kw = (3 - c) - 2*wc.
    cin, cout, _, _ = w_iohw.shape
    kidx = jnp.array([[3, 1], [2, 0]], dtype=jnp.int32)    # [phase, window_pos]
    sub = w_iohw[:, :, kidx, :]        # (cin, cout, r, wr, kw)
    sub = sub[:, :, :, :, kidx]        # (cin, cout, r, wr, c, wc)
    sub = jnp.transpose(sub, (3, 5, 0, 2, 4, 1))           # (wr, wc, cin, r, c, cout)
    b = sub.reshape(4 * cin, 4 * cout)
    return b * jnp.tile(scale, 4)[None, :]


def _pack_gemm(b, bias):
    k, n = b.shape
    kp = _pad_dim(k, 128, _TK_CAP)
    np_ = _pad_dim(n, 128, _TN_CAP)
    w_p = jnp.zeros((kp, np_), jnp.bfloat16).at[:k, :n].set(b.astype(jnp.bfloat16))
    bias_p = jnp.zeros((1, np_), jnp.float32).at[0, :n].set(bias.astype(jnp.float32))
    return w_p, bias_p


# ---------------------------------------------------------------------------
# Layer blocks
# ---------------------------------------------------------------------------
def conv2d_block(x_nhwc, w_p, bias_p, cout, k=4, stride=2, pad=1):
    patches, (n, ho, wo) = _im2col(x_nhwc, k, stride, pad)
    out = fused_matmul(patches, w_p, bias_p, cout, act="leaky",
                       out_dtype=jnp.bfloat16)
    return out.reshape(n, ho, wo, cout)


def deconv4x4s2_block(x_nhwc, w_p, bias_p, cout):
    # Sub-pixel rewrite of ConvTranspose2d(k=4, s=2, p=1): a stride-1 2x2 conv
    # over the pad-1 input producing 4*cout phase channels, then pixel-shuffle.
    patches, (n, hp, wp) = _im2col(x_nhwc, 2, 1, 1)     # hp = H+1, wp = W+1
    h, w = hp - 1, wp - 1
    out = fused_matmul(patches, w_p, bias_p, 4 * cout, act="leaky",
                       out_dtype=jnp.bfloat16)
    y = out.reshape(n, hp, wp, 2, 2, cout)
    # out[:, 2m+r, 2q+c, :] = y[:, m+r, q+c, r, c, :]
    phases = jnp.stack(
        [jnp.stack([y[:, r:r + h, c:c + w, r, c, :] for c in range(2)], axis=0)
         for r in range(2)], axis=0)                    # (r, c, n, h, w, cout)
    z = jnp.transpose(phases, (2, 3, 0, 4, 1, 5))       # (n, h, r, w, c, cout)
    return z.reshape(n, 2 * h, 2 * w, cout)


def final_1x1_tanh_block(x_nhwc, w_p, bias_p):
    n, h, w, c = x_nhwc.shape
    out = fused_matmul(x_nhwc.reshape(n * h * w, c), w_p, bias_p, 3, act="tanh",
                       out_dtype=jnp.float32)
    return out.reshape(n, h, w, 3)


# ---------------------------------------------------------------------------
# Parameters (deterministic synthetic init, PyTorch layout) + one-time prepare
# ---------------------------------------------------------------------------
def init_generator_params(key):
    enc_cfg = [(4, 64), (64, 128), (128, 256)]      # Conv2d (in, out)
    dec_cfg = [(256, 256), (256, 128), (128, 64)]   # ConvTranspose2d (in, out)

    keys = list(jax.random.split(key, 16))
    kit = iter(keys)

    def bn(c):
        return dict(gamma=jnp.ones((c,), jnp.float32),
                    beta=jnp.zeros((c,), jnp.float32),
                    mean=jnp.zeros((c,), jnp.float32),
                    var=jnp.ones((c,), jnp.float32))

    enc = []
    for cin, cout in enc_cfg:
        enc.append(dict(
            w=jax.random.normal(next(kit), (cout, cin, 4, 4), jnp.float32) * 0.05,
            b=jax.random.normal(next(kit), (cout,), jnp.float32) * 0.05,
            **bn(cout)))

    dec = []
    for cin, cout in dec_cfg:
        dec.append(dict(
            w=jax.random.normal(next(kit), (cin, cout, 4, 4), jnp.float32) * 0.05,
            b=jax.random.normal(next(kit), (cout,), jnp.float32) * 0.05,
            **bn(cout)))

    final = dict(
        w=jax.random.normal(next(kit), (64, 3, 1, 1), jnp.float32) * 0.05,
        b=jax.random.normal(next(kit), (3,), jnp.float32) * 0.05)

    return dict(enc=enc, dec=dec, final=final)


def prepare_generator_params(raw):
    """Fold eval-mode BN into the GEMM weights, pad + cast to bf16 once."""
    prep = dict(enc=[], dec=[])
    for layer in raw["enc"]:
        s, bias = _bn_fold(layer["b"], layer["gamma"], layer["beta"],
                           layer["mean"], layer["var"])
        w_p, bias_p = _pack_gemm(_conv_weight_to_gemm(layer["w"], s), bias)
        prep["enc"].append(dict(w=w_p, bias=bias_p, cout=layer["w"].shape[0]))
    for layer in raw["dec"]:
        s, bias = _bn_fold(layer["b"], layer["gamma"], layer["beta"],
                           layer["mean"], layer["var"])
        w_p, bias_p = _pack_gemm(_deconv_to_subpixel_gemm(layer["w"], s),
                                 jnp.tile(bias, 4))
        prep["dec"].append(dict(w=w_p, bias=bias_p, cout=layer["w"].shape[1]))
    f = raw["final"]
    w_p, bias_p = _pack_gemm(f["w"][:, :, 0, 0], f["b"])   # (64, 3) 1x1 conv
    prep["final"] = dict(w=w_p, bias=bias_p)
    return prep


# ---------------------------------------------------------------------------
# Forward (matches PyTorch Generator.forward in eval mode)
# ---------------------------------------------------------------------------
def generator_forward(prep, x_nchw):
    # x = x.float()
    x = jnp.transpose(x_nchw.astype(jnp.float32), (0, 2, 3, 1))  # NCHW -> NHWC

    # Encoder: Conv2d(k4,s2,p1) + BN + LeakyReLU(0.2)  (+ Dropout: identity)
    for layer in prep["enc"]:
        x = conv2d_block(x, layer["w"], layer["bias"], layer["cout"])

    # Decoder: ConvTranspose2d(k4,s2,p1) + BN + LeakyReLU(0.2) (+ Dropout: identity)
    for layer in prep["dec"]:
        x = deconv4x4s2_block(x, layer["w"], layer["bias"], layer["cout"])

    # Final: ConvTranspose2d(64, 3, kernel_size=1) + Tanh  (a plain 1x1 GEMM)
    f = prep["final"]
    x = final_1x1_tanh_block(x, f["w"], f["bias"])

    return jnp.transpose(x, (0, 3, 1, 2))  # NHWC -> NCHW


# ---------------------------------------------------------------------------
# Pure-JAX reference (lax.conv) with the same bf16 operand rounding — used
# only for the in-script correctness check.
# ---------------------------------------------------------------------------
def _ref_leaky(x, s=0.2):
    return jnp.where(x > 0, x, s * x)


def generator_reference(raw, x_nchw, eps=1e-5):
    x = jnp.transpose(x_nchw.astype(jnp.float32), (0, 2, 3, 1))
    for layer in raw["enc"]:
        s = layer["gamma"] / jnp.sqrt(layer["var"] + eps)
        w = jnp.transpose(layer["w"], (2, 3, 1, 0)) * s          # (kh,kw,Cin,Cout)
        y = jax.lax.conv_general_dilated(
            x.astype(jnp.bfloat16), w.astype(jnp.bfloat16),
            window_strides=(2, 2), padding=((1, 1), (1, 1)),
            dimension_numbers=("NHWC", "HWIO", "NHWC"),
            preferred_element_type=jnp.float32)
        b = layer["beta"] + (layer["b"] - layer["mean"]) * s
        x = _ref_leaky(y + b)
    for layer in raw["dec"]:
        s = layer["gamma"] / jnp.sqrt(layer["var"] + eps)
        # ConvTranspose(k4,s2,p1) == corr(dilate(x,2) pad 2, flip(w))
        w = jnp.transpose(layer["w"][:, :, ::-1, ::-1], (2, 3, 0, 1)) * s
        y = jax.lax.conv_general_dilated(
            x.astype(jnp.bfloat16), w.astype(jnp.bfloat16),
            window_strides=(1, 1), padding=((2, 2), (2, 2)),
            lhs_dilation=(2, 2),
            dimension_numbers=("NHWC", "HWIO", "NHWC"),
            preferred_element_type=jnp.float32)
        b = layer["beta"] + (layer["b"] - layer["mean"]) * s
        x = _ref_leaky(y + b)
    f = raw["final"]
    w = f["w"][:, :, 0, 0]                                       # (64, 3)
    y = jnp.dot(x.astype(jnp.bfloat16), w.astype(jnp.bfloat16),
                preferred_element_type=jnp.float32) + f["b"]
    x = jnp.tanh(y)
    return jnp.transpose(x, (0, 3, 1, 2))


if __name__ == "__main__":
    key = jax.random.PRNGKey(0)
    pkey, xkey = jax.random.split(key)
    raw_params = init_generator_params(pkey)
    prep_params = prepare_generator_params(raw_params)   # one-time pad/fold/cast

    # Small NCHW input consistent with the module: (batch=2, ch=4, 16x16).
    x = jax.random.normal(xkey, (2, 4, 16, 16), jnp.float32)

    fwd = jax.jit(functools.partial(generator_forward, prep_params))
    y = fwd(x)
    jax.block_until_ready(y)

    assert y.shape == (2, 3, 16, 16), y.shape
    assert y.dtype == jnp.float32
    assert bool(jnp.all(jnp.isfinite(y)))
    assert bool(jnp.all(jnp.abs(y) <= 1.0 + 1e-6))   # tanh output range

    y_ref = generator_reference(raw_params, x)
    err = float(jnp.max(jnp.abs(y - y_ref)))
    assert err < 2e-2, f"max abs error vs reference: {err}"

    print("KERNEL_OK")
</pallas_src>

<mosaic_0001>
module attributes {stable_mosaic.version = 11 : i64} {
  func.func @_gemm_single_k_kernel(%arg0: i32, %arg1: i32, %arg2: memref<128x128xbf16, #tpu.memory_space<vmem>>, %arg3: memref<128x128xbf16, #tpu.memory_space<vmem>>, %arg4: memref<1x128xf32, #tpu.memory_space<vmem>>, %arg5: memref<128x128xbf16, #tpu.memory_space<vmem>>) attributes {dimension_semantics = [#tpu.dimension_semantics<parallel>, #tpu.dimension_semantics<parallel>], iteration_bounds = array<i64: 1, 1>, scalar_prefetch = 0 : i64, scratch_operands = 0 : i64, tpu.core_type = #tpu.core_type<tc>, window_params = [{transform_indices = @transform_0, window_bounds = array<i64: 128, 128>}, {transform_indices = @transform_1, window_bounds = array<i64: 128, 128>}, {transform_indices = @transform_2, window_bounds = array<i64: 1, 128>}, {transform_indices = @transform_3, window_bounds = array<i64: 128, 128>}]} {
    %c0 = arith.constant 0 : index
    %c0_0 = arith.constant 0 : index
    %0 = vector.load %arg2[%c0, %c0_0] : memref<128x128xbf16, #tpu.memory_space<vmem>>, vector<128x128xbf16>
    %c0_1 = arith.constant 0 : index
    %c0_2 = arith.constant 0 : index
    %1 = vector.load %arg3[%c0_1, %c0_2] : memref<128x128xbf16, #tpu.memory_space<vmem>>, vector<128x128xbf16>
    %cst = arith.constant dense<0.000000e+00> : vector<128x128xf32>
    %2 = tpu.matmul %0, %1, %cst {dimension_numbers = #tpu.dot_dimension_numbers<[1], [0], [0], [1], [0, 0, 1, 1], [], []>} : vector<128x128xbf16>, vector<128x128xbf16>, vector<128x128xf32> -> vector<128x128xf32>
    %c0_3 = arith.constant 0 : index
    %c0_4 = arith.constant 0 : index
    %3 = vector.load %arg4[%c0_3, %c0_4] : memref<1x128xf32, #tpu.memory_space<vmem>>, vector<1x128xf32>
    %4 = vector.broadcast %3 : vector<1x128xf32> to vector<128x128xf32>
    %5 = arith.addf %2, %4 : vector<128x128xf32>
    %cst_5 = arith.constant 0.000000e+00 : f32
    %6 = vector.broadcast %cst_5 : f32 to vector<128x128xf32>
    %7 = arith.cmpf ogt, %5, %6 : vector<128x128xf32>
    %cst_6 = arith.constant 2.000000e-01 : f32
    %8 = vector.broadcast %cst_6 : f32 to vector<128x128xf32>
    %9 = arith.mulf %8, %5 : vector<128x128xf32>
    %10 = arith.select %7, %5, %9 : vector<128x128xi1>, vector<128x128xf32>
    %11 = arith.truncf %10 : vector<128x128xf32> to vector<128x128xbf16>
    %c0_7 = arith.constant 0 : index
    %c0_8 = arith.constant 0 : index
    %12 = vector.load %arg5[%c0_7, %c0_8] : memref<128x128xbf16, #tpu.memory_space<vmem>>, vector<128x128xbf16>
    tpu.vector_store %arg5[%c0_7, %c0_8], %11 {strides = array<i32>} : memref<128x128xbf16, #tpu.memory_space<vmem>>, vector<128x128xbf16>,
    return
  }
  func.func @transform_0(%arg0: i32, %arg1: i32) -> (i32, i32) {
    %c0_i32 = arith.constant 0 : i32
    %c0_i32_0 = arith.constant 0 : i32
    return %arg0, %c0_i32 : i32, i32
  }
  func.func @transform_1(%arg0: i32, %arg1: i32) -> (i32, i32) {
    %c0_i32 = arith.constant 0 : i32
    %c0_i32_0 = arith.constant 0 : i32
    return %c0_i32, %arg1 : i32, i32
  }
  func.func @transform_2(%arg0: i32, %arg1: i32) -> (i32, i32) {
    %c0_i32 = arith.constant 0 : i32
    %c0_i32_0 = arith.constant 0 : i32
    return %c0_i32, %arg1 : i32, i32
  }
  func.func @transform_3(%arg0: i32, %arg1: i32) -> (i32, i32) {
    %c0_i32 = arith.constant 0 : i32
    return %arg0, %arg1 : i32, i32
  }
}

module attributes {stable_mosaic.version = 11 : i64} {
  func.func @_gemm_single_k_kernel(%arg0: i32, %arg1: i32, %arg2: memref<32x1024xbf16, #tpu.memory_space<vmem>>, %arg3: memref<1024x128xbf16, #tpu.memory_space<vmem>>, %arg4: memref<1x128xf32, #tpu.memory_space<vmem>>, %arg5: memref<32x128xbf16, #tpu.memory_space<vmem>>) attributes {dimension_semantics = [#tpu.dimension_semantics<parallel>, #tpu.dimension_semantics<parallel>], iteration_bounds = array<i64: 1, 1>, scalar_prefetch = 0 : i64, scratch_operands = 0 : i64, tpu.core_type = #tpu.core_type<tc>, window_params = [{transform_indices = @transform_0, window_bounds = array<i64: 32, 1024>}, {transform_indices = @transform_1, window_bounds = array<i64: 1024, 128>}, {transform_indices = @transform_2, window_bounds = array<i64: 1, 128>}, {transform_indices = @transform_3, window_bounds = array<i64: 32, 128>}]} {
    %c0 = arith.constant 0 : index
    %c0_0 = arith.constant 0 : index
    %0 = vector.load %arg2[%c0, %c0_0] : memref<32x1024xbf16, #tpu.memory_space<vmem>>, vector<32x1024xbf16>
    %c0_1 = arith.constant 0 : index
    %c0_2 = arith.constant 0 : index
    %1 = vector.load %arg3[%c0_1, %c0_2] : memref<1024x128xbf16, #tpu.memory_space<vmem>>, vector<1024x128xbf16>
    %cst = arith.constant dense<0.000000e+00> : vector<32x128xf32>
    %2 = tpu.matmul %0, %1, %cst {dimension_numbers = #tpu.dot_dimension_numbers<[1], [0], [0], [1], [0, 0, 1, 1], [], []>} : vector<32x1024xbf16>, vector<1024x128xbf16>, vector<32x128xf32> -> vector<32x128xf32>
    %c0_3 = arith.constant 0 : index
    %c0_4 = arith.constant 0 : index
    %3 = vector.load %arg4[%c0_3, %c0_4] : memref<1x128xf32, #tpu.memory_space<vmem>>, vector<1x128xf32>
    %4 = vector.broadcast %3 : vector<1x128xf32> to vector<32x128xf32>
    %5 = arith.addf %2, %4 : vector<32x128xf32>
    %cst_5 = arith.constant 0.000000e+00 : f32
    %6 = vector.broadcast %cst_5 : f32 to vector<32x128xf32>
    %7 = arith.cmpf ogt, %5, %6 : vector<32x128xf32>
    %cst_6 = arith.constant 2.000000e-01 : f32
    %8 = vector.broadcast %cst_6 : f32 to vector<32x128xf32>
    %9 = arith.mulf %8, %5 : vector<32x128xf32>
    %10 = arith.select %7, %5, %9 : vector<32x128xi1>, vector<32x128xf32>
    %11 = arith.truncf %10 : vector<32x128xf32> to vector<32x128xbf16>
    %c0_7 = arith.constant 0 : index
    %c0_8 = arith.constant 0 : index
    %12 = vector.load %arg5[%c0_7, %c0_8] : memref<32x128xbf16, #tpu.memory_space<vmem>>, vector<32x128xbf16>
    tpu.vector_store %arg5[%c0_7, %c0_8], %11 {strides = array<i32>} : memref<32x128xbf16, #tpu.memory_space<vmem>>, vector<32x128xbf16>,
    return
  }
  func.func @transform_0(%arg0: i32, %arg1: i32) -> (i32, i32) {
    %c0_i32 = arith.constant 0 : i32
    %c0_i32_0 = arith.constant 0 : i32
    return %arg0, %c0_i32 : i32, i32
  }
  func.func @transform_1(%arg0: i32, %arg1: i32) -> (i32, i32) {
    %c0_i32 = arith.constant 0 : i32
    %c0_i32_0 = arith.constant 0 : i32
    return %c0_i32, %arg1 : i32, i32
  }
  func.func @transform_2(%arg0: i32, %arg1: i32) -> (i32, i32) {
    %c0_i32 = arith.constant 0 : i32
    %c0_i32_0 = arith.constant 0 : i32
    return %c0_i32, %arg1 : i32, i32
  }
  func.func @transform_3(%arg0: i32, %arg1: i32) -> (i32, i32) {
    %c0_i32 = arith.constant 0 : i32
    return %arg0, %arg1 : i32, i32
  }
}

module attributes {stable_mosaic.version = 11 : i64} {
  func.func @_gemm_single_k_kernel(%arg0: i32, %arg1: i32, %arg2: memref<16x2048xbf16, #tpu.memory_space<vmem>>, %arg3: memref<2048x256xbf16, #tpu.memory_space<vmem>>, %arg4: memref<1x256xf32, #tpu.memory_space<vmem>>, %arg5: memref<16x256xbf16, #tpu.memory_space<vmem>>) attributes {dimension_semantics = [#tpu.dimension_semantics<parallel>, #tpu.dimension_semantics<parallel>], iteration_bounds = array<i64: 1, 1>, scalar_prefetch = 0 : i64, scratch_operands = 0 : i64, tpu.core_type = #tpu.core_type<tc>, window_params = [{transform_indices = @transform_0, window_bounds = array<i64: 16, 2048>}, {transform_indices = @transform_1, window_bounds = array<i64: 2048, 256>}, {transform_indices = @transform_2, window_bounds = array<i64: 1, 256>}, {transform_indices = @transform_3, window_bounds = array<i64: 16, 256>}]} {
    %c0 = arith.constant 0 : index
    %c0_0 = arith.constant 0 : index
    %0 = vector.load %arg2[%c0, %c0_0] : memref<16x2048xbf16, #tpu.memory_space<vmem>>, vector<16x2048xbf16>
    %c0_1 = arith.constant 0 : index
    %c0_2 = arith.constant 0 : index
    %1 = vector.load %arg3[%c0_1, %c0_2] : memref<2048x256xbf16, #tpu.memory_space<vmem>>, vector<2048x256xbf16>
    %cst = arith.constant dense<0.000000e+00> : vector<16x256xf32>
    %2 = tpu.matmul %0, %1, %cst {dimension_numbers = #tpu.dot_dimension_numbers<[1], [0], [0], [1], [0, 0, 1, 1], [], []>} : vector<16x2048xbf16>, vector<2048x256xbf16>, vector<16x256xf32> -> vector<16x256xf32>
    %c0_3 = arith.constant 0 : index
    %c0_4 = arith.constant 0 : index
    %3 = vector.load %arg4[%c0_3, %c0_4] : memref<1x256xf32, #tpu.memory_space<vmem>>, vector<1x256xf32>
    %4 = vector.broadcast %3 : vector<1x256xf32> to vector<16x256xf32>
    %5 = arith.addf %2, %4 : vector<16x256xf32>
    %cst_5 = arith.constant 0.000000e+00 : f32
    %6 = vector.broadcast %cst_5 : f32 to vector<16x256xf32>
    %7 = arith.cmpf ogt, %5, %6 : vector<16x256xf32>
    %cst_6 = arith.constant 2.000000e-01 : f32
    %8 = vector.broadcast %cst_6 : f32 to vector<16x256xf32>
    %9 = arith.mulf %8, %5 : vector<16x256xf32>
    %10 = arith.select %7, %5, %9 : vector<16x256xi1>, vector<16x256xf32>
    %11 = arith.truncf %10 : vector<16x256xf32> to vector<16x256xbf16>
    %c0_7 = arith.constant 0 : index
    %c0_8 = arith.constant 0 : index
    %12 = vector.load %arg5[%c0_7, %c0_8] : memref<16x256xbf16, #tpu.memory_space<vmem>>, vector<16x256xbf16>
    tpu.vector_store %arg5[%c0_7, %c0_8], %11 {strides = array<i32>} : memref<16x256xbf16, #tpu.memory_space<vmem>>, vector<16x256xbf16>,
    return
  }
  func.func @transform_0(%arg0: i32, %arg1: i32) -> (i32, i32) {
    %c0_i32 = arith.constant 0 : i32
    %c0_i32_0 = arith.constant 0 : i32
    return %arg0, %c0_i32 : i32, i32
  }
  func.func @transform_1(%arg0: i32, %arg1: i32) -> (i32, i32) {
    %c0_i32 = arith.constant 0 : i32
    %c0_i32_0 = arith.constant 0 : i32
    return %c0_i32, %arg1 : i32, i32
  }
  func.func @transform_2(%arg0: i32, %arg1: i32) -> (i32, i32) {
    %c0_i32 = arith.constant 0 : i32
    %c0_i32_0 = arith.constant 0 : i32
    return %c0_i32, %arg1 : i32, i32
  }
  func.func @transform_3(%arg0: i32, %arg1: i32) -> (i32, i32) {
    %c0_i32 = arith.constant 0 : i32
    return %arg0, %arg1 : i32, i32
  }
}

module attributes {stable_mosaic.version = 11 : i64} {
  func.func @_gemm_single_k_kernel(%arg0: i32, %arg1: i32, %arg2: memref<32x1024xbf16, #tpu.memory_space<vmem>>, %arg3: memref<1024x512xbf16, #tpu.memory_space<vmem>>, %arg4: memref<1x512xf32, #tpu.memory_space<vmem>>, %arg5: memref<32x512xbf16, #tpu.memory_space<vmem>>) attributes {dimension_semantics = [#tpu.dimension_semantics<parallel>, #tpu.dimension_semantics<parallel>], iteration_bounds = array<i64: 1, 2>, scalar_prefetch = 0 : i64, scratch_operands = 0 : i64, tpu.core_type = #tpu.core_type<tc>, window_params = [{transform_indices = @transform_0, window_bounds = array<i64: 32, 1024>}, {transform_indices = @transform_1, window_bounds = array<i64: 1024, 512>}, {transform_indices = @transform_2, window_bounds = array<i64: 1, 512>}, {transform_indices = @transform_3, window_bounds = array<i64: 32, 512>}]} {
    %c0 = arith.constant 0 : index
    %c0_0 = arith.constant 0 : index
    %0 = vector.load %arg2[%c0, %c0_0] : memref<32x1024xbf16, #tpu.memory_space<vmem>>, vector<32x1024xbf16>
    %c0_1 = arith.constant 0 : index
    %c0_2 = arith.constant 0 : index
    %1 = vector.load %arg3[%c0_1, %c0_2] : memref<1024x512xbf16, #tpu.memory_space<vmem>>, vector<1024x512xbf16>
    %cst = arith.constant dense<0.000000e+00> : vector<32x512xf32>
    %2 = tpu.matmul %0, %1, %cst {dimension_numbers = #tpu.dot_dimension_numbers<[1], [0], [0], [1], [0, 0, 1, 1], [], []>} : vector<32x1024xbf16>, vector<1024x512xbf16>, vector<32x512xf32> -> vector<32x512xf32>
    %c0_3 = arith.constant 0 : index
    %c0_4 = arith.constant 0 : index
    %3 = vector.load %arg4[%c0_3, %c0_4] : memref<1x512xf32, #tpu.memory_space<vmem>>, vector<1x512xf32>
    %4 = vector.broadcast %3 : vector<1x512xf32> to vector<32x512xf32>
    %5 = arith.addf %2, %4 : vector<32x512xf32>
    %cst_5 = arith.constant 0.000000e+00 : f32
    %6 = vector.broadcast %cst_5 : f32 to vector<32x512xf32>
    %7 = arith.cmpf ogt, %5, %6 : vector<32x512xf32>
    %cst_6 = arith.constant 2.000000e-01 : f32
    %8 = vector.broadcast %cst_6 : f32 to vector<32x512xf32>
    %9 = arith.mulf %8, %5 : vector<32x512xf32>
    %10 = arith.select %7, %5, %9 : vector<32x512xi1>, vector<32x512xf32>
    %11 = arith.truncf %10 : vector<32x512xf32> to vector<32x512xbf16>
    %c0_7 = arith.constant 0 : index
    %c0_8 = arith.constant 0 : index
    %12 = vector.load %arg5[%c0_7, %c0_8] : memref<32x512xbf16, #tpu.memory_space<vmem>>, vector<32x512xbf16>
    tpu.vector_store %arg5[%c0_7, %c0_8], %11 {strides = array<i32>} : memref<32x512xbf16, #tpu.memory_space<vmem>>, vector<32x512xbf16>,
    return
  }
  func.func @transform_0(%arg0: i32, %arg1: i32) -> (i32, i32) {
    %c0_i32 = arith.constant 0 : i32
    %c0_i32_0 = arith.constant 0 : i32
    return %arg0, %c0_i32 : i32, i32
  }
  func.func @transform_1(%arg0: i32, %arg1: i32) -> (i32, i32) {
    %c0_i32 = arith.constant 0 : i32
    %c0_i32_0 = arith.constant 0 : i32
    return %c0_i32, %arg1 : i32, i32
  }
  func.func @transform_2(%arg0: i32, %arg1: i32) -> (i32, i32) {
    %c0_i32 = arith.constant 0 : i32
    %c0_i32_0 = arith.constant 0 : i32
    return %c0_i32, %arg1 : i32, i32
  }
  func.func @transform_3(%arg0: i32, %arg1: i32) -> (i32, i32) {
    %c0_i32 = arith.constant 0 : i32
    return %arg0, %arg1 : i32, i32
  }
}

module attributes {stable_mosaic.version = 11 : i64} {
  func.func @_gemm_single_k_kernel(%arg0: i32, %arg1: i32, %arg2: memref<64x1024xbf16, #tpu.memory_space<vmem>>, %arg3: memref<1024x512xbf16, #tpu.memory_space<vmem>>, %arg4: memref<1x512xf32, #tpu.memory_space<vmem>>, %arg5: memref<64x512xbf16, #tpu.memory_space<vmem>>) attributes {dimension_semantics = [#tpu.dimension_semantics<parallel>, #tpu.dimension_semantics<parallel>], iteration_bounds = array<i64: 1, 1>, scalar_prefetch = 0 : i64, scratch_operands = 0 : i64, tpu.core_type = #tpu.core_type<tc>, window_params = [{transform_indices = @transform_0, window_bounds = array<i64: 64, 1024>}, {transform_indices = @transform_1, window_bounds = array<i64: 1024, 512>}, {transform_indices = @transform_2, window_bounds = array<i64: 1, 512>}, {transform_indices = @transform_3, window_bounds = array<i64: 64, 512>}]} {
    %c0 = arith.constant 0 : index
    %c0_0 = arith.constant 0 : index
    %0 = vector.load %arg2[%c0, %c0_0] : memref<64x1024xbf16, #tpu.memory_space<vmem>>, vector<64x1024xbf16>
    %c0_1 = arith.constant 0 : index
    %c0_2 = arith.constant 0 : index
    %1 = vector.load %arg3[%c0_1, %c0_2] : memref<1024x512xbf16, #tpu.memory_space<vmem>>, vector<1024x512xbf16>
    %cst = arith.constant dense<0.000000e+00> : vector<64x512xf32>
    %2 = tpu.matmul %0, %1, %cst {dimension_numbers = #tpu.dot_dimension_numbers<[1], [0], [0], [1], [0, 0, 1, 1], [], []>} : vector<64x1024xbf16>, vector<1024x512xbf16>, vector<64x512xf32> -> vector<64x512xf32>
    %c0_3 = arith.constant 0 : index
    %c0_4 = arith.constant 0 : index
    %3 = vector.load %arg4[%c0_3, %c0_4] : memref<1x512xf32, #tpu.memory_space<vmem>>, vector<1x512xf32>
    %4 = vector.broadcast %3 : vector<1x512xf32> to vector<64x512xf32>
    %5 = arith.addf %2, %4 : vector<64x512xf32>
    %cst_5 = arith.constant 0.000000e+00 : f32
    %6 = vector.broadcast %cst_5 : f32 to vector<64x512xf32>
    %7 = arith.cmpf ogt, %5, %6 : vector<64x512xf32>
    %cst_6 = arith.constant 2.000000e-01 : f32
    %8 = vector.broadcast %cst_6 : f32 to vector<64x512xf32>
    %9 = arith.mulf %8, %5 : vector<64x512xf32>
    %10 = arith.select %7, %5, %9 : vector<64x512xi1>, vector<64x512xf32>
    %11 = arith.truncf %10 : vector<64x512xf32> to vector<64x512xbf16>
    %c0_7 = arith.constant 0 : index
    %c0_8 = arith.constant 0 : index
    %12 = vector.load %arg5[%c0_7, %c0_8] : memref<64x512xbf16, #tpu.memory_space<vmem>>, vector<64x512xbf16>
    tpu.vector_store %arg5[%c0_7, %c0_8], %11 {strides = array<i32>} : memref<64x512xbf16, #tpu.memory_space<vmem>>, vector<64x512xbf16>,
    return
  }
  func.func @transform_0(%arg0: i32, %arg1: i32) -> (i32, i32) {
    %c0_i32 = arith.constant 0 : i32
    %c0_i32_0 = arith.constant 0 : i32
    return %arg0, %c0_i32 : i32, i32
  }
  func.func @transform_1(%arg0: i32, %arg1: i32) -> (i32, i32) {
    %c0_i32 = arith.constant 0 : i32
    %c0_i32_0 = arith.constant 0 : i32
    return %c0_i32, %arg1 : i32, i32
  }
  func.func @transform_2(%arg0: i32, %arg1: i32) -> (i32, i32) {
    %c0_i32 = arith.constant 0 : i32
    %c0_i32_0 = arith.constant 0 : i32
    return %c0_i32, %arg1 : i32, i32
  }
  func.func @transform_3(%arg0: i32, %arg1: i32) -> (i32, i32) {
    %c0_i32 = arith.constant 0 : i32
    return %arg0, %arg1 : i32, i32
  }
}

module attributes {stable_mosaic.version = 11 : i64} {
  func.func @_gemm_single_k_kernel(%arg0: i32, %arg1: i32, %arg2: memref<176x512xbf16, #tpu.memory_space<vmem>>, %arg3: memref<512x256xbf16, #tpu.memory_space<vmem>>, %arg4: memref<1x256xf32, #tpu.memory_space<vmem>>, %arg5: memref<176x256xbf16, #tpu.memory_space<vmem>>) attributes {dimension_semantics = [#tpu.dimension_semantics<parallel>, #tpu.dimension_semantics<parallel>], iteration_bounds = array<i64: 1, 1>, scalar_prefetch = 0 : i64, scratch_operands = 0 : i64, tpu.core_type = #tpu.core_type<tc>, window_params = [{transform_indices = @transform_0, window_bounds = array<i64: 176, 512>}, {transform_indices = @transform_1, window_bounds = array<i64: 512, 256>}, {transform_indices = @transform_2, window_bounds = array<i64: 1, 256>}, {transform_indices = @transform_3, window_bounds = array<i64: 176, 256>}]} {
    %c0 = arith.constant 0 : index
    %c0_0 = arith.constant 0 : index
    %0 = vector.load %arg2[%c0, %c0_0] : memref<176x512xbf16, #tpu.memory_space<vmem>>, vector<176x512xbf16>
    %c0_1 = arith.constant 0 : index
    %c0_2 = arith.constant 0 : index
    %1 = vector.load %arg3[%c0_1, %c0_2] : memref<512x256xbf16, #tpu.memory_space<vmem>>, vector<512x256xbf16>
    %cst = arith.constant dense<0.000000e+00> : vector<176x256xf32>
    %2 = tpu.matmul %0, %1, %cst {dimension_numbers = #tpu.dot_dimension_numbers<[1], [0], [0], [1], [0, 0, 1, 1], [], []>} : vector<176x512xbf16>, vector<512x256xbf16>, vector<176x256xf32> -> vector<176x256xf32>
    %c0_3 = arith.constant 0 : index
    %c0_4 = arith.constant 0 : index
    %3 = vector.load %arg4[%c0_3, %c0_4] : memref<1x256xf32, #tpu.memory_space<vmem>>, vector<1x256xf32>
    %4 = vector.broadcast %3 : vector<1x256xf32> to vector<176x256xf32>
    %5 = arith.addf %2, %4 : vector<176x256xf32>
    %cst_5 = arith.constant 0.000000e+00 : f32
    %6 = vector.broadcast %cst_5 : f32 to vector<176x256xf32>
    %7 = arith.cmpf ogt, %5, %6 : vector<176x256xf32>
    %cst_6 = arith.constant 2.000000e-01 : f32
    %8 = vector.broadcast %cst_6 : f32 to vector<176x256xf32>
    %9 = arith.mulf %8, %5 : vector<176x256xf32>
    %10 = arith.select %7, %5, %9 : vector<176x256xi1>, vector<176x256xf32>
    %11 = arith.truncf %10 : vector<176x256xf32> to vector<176x256xbf16>
    %c0_7 = arith.constant 0 : index
    %c0_8 = arith.constant 0 : index
    %12 = vector.load %arg5[%c0_7, %c0_8] : memref<176x256xbf16, #tpu.memory_space<vmem>>, vector<176x256xbf16>
    tpu.vector_store %arg5[%c0_7, %c0_8], %11 {strides = array<i32>} : memref<176x256xbf16, #tpu.memory_space<vmem>>, vector<176x256xbf16>,
    return
  }
  func.func @transform_0(%arg0: i32, %arg1: i32) -> (i32, i32) {
    %c0_i32 = arith.constant 0 : i32
    %c0_i32_0 = arith.constant 0 : i32
    return %arg0, %c0_i32 : i32, i32
  }
  func.func @transform_1(%arg0: i32, %arg1: i32) -> (i32, i32) {
    %c0_i32 = arith.constant 0 : i32
    %c0_i32_0 = arith.constant 0 : i32
    return %c0_i32, %arg1 : i32, i32
  }
  func.func @transform_2(%arg0: i32, %arg1: i32) -> (i32, i32) {
    %c0_i32 = arith.constant 0 : i32
    %c0_i32_0 = arith.constant 0 : i32
    return %c0_i32, %arg1 : i32, i32
  }
  func.func @transform_3(%arg0: i32, %arg1: i32) -> (i32, i32) {
    %c0_i32 = arith.constant 0 : i32
    return %arg0, %arg1 : i32, i32
  }
}

module attributes {stable_mosaic.version = 11 : i64} {
  func.func @_gemm_single_k_kernel(%arg0: i32, %arg1: i32, %arg2: memref<256x128xbf16, #tpu.memory_space<vmem>>, %arg3: memref<128x128xbf16, #tpu.memory_space<vmem>>, %arg4: memref<1x128xf32, #tpu.memory_space<vmem>>, %arg5: memref<256x128xf32, #tpu.memory_space<vmem>>) attributes {dimension_semantics = [#tpu.dimension_semantics<parallel>, #tpu.dimension_semantics<parallel>], iteration_bounds = array<i64: 2, 1>, scalar_prefetch = 0 : i64, scratch_operands = 0 : i64, tpu.core_type = #tpu.core_type<tc>, window_params = [{transform_indices = @transform_0, window_bounds = array<i64: 256, 128>}, {transform_indices = @transform_1, window_bounds = array<i64: 128, 128>}, {transform_indices = @transform_2, window_bounds = array<i64: 1, 128>}, {transform_indices = @transform_3, window_bounds = array<i64: 256, 128>}]} {
    %c0 = arith.constant 0 : index
    %c0_0 = arith.constant 0 : index
    %0 = vector.load %arg2[%c0, %c0_0] : memref<256x128xbf16, #tpu.memory_space<vmem>>, vector<256x128xbf16>
    %c0_1 = arith.constant 0 : index
    %c0_2 = arith.constant 0 : index
    %1 = vector.load %arg3[%c0_1, %c0_2] : memref<128x128xbf16, #tpu.memory_space<vmem>>, vector<128x128xbf16>
    %cst = arith.constant dense<0.000000e+00> : vector<256x128xf32>
    %2 = tpu.matmul %0, %1, %cst {dimension_numbers = #tpu.dot_dimension_numbers<[1], [0], [0], [1], [0, 0, 1, 1], [], []>} : vector<256x128xbf16>, vector<128x128xbf16>, vector<256x128xf32> -> vector<256x128xf32>
    %c0_3 = arith.constant 0 : index
    %c0_4 = arith.constant 0 : index
    %3 = vector.load %arg4[%c0_3, %c0_4] : memref<1x128xf32, #tpu.memory_space<vmem>>, vector<1x128xf32>
    %4 = vector.broadcast %3 : vector<1x128xf32> to vector<256x128xf32>
    %5 = arith.addf %2, %4 : vector<256x128xf32>
    %6 = math.tanh %5 : vector<256x128xf32>
    %c0_5 = arith.constant 0 : index
    %c0_6 = arith.constant 0 : index
    %7 = vector.load %arg5[%c0_5, %c0_6] : memref<256x128xf32, #tpu.memory_space<vmem>>, vector<256x128xf32>
    tpu.vector_store %arg5[%c0_5, %c0_6], %6 {strides = array<i32>} : memref<256x128xf32, #tpu.memory_space<vmem>>, vector<256x128xf32>,
    return
  }
  func.func @transform_0(%arg0: i32, %arg1: i32) -> (i32, i32) {
    %c0_i32 = arith.constant 0 : i32
    %c0_i32_0 = arith.constant 0 : i32
    return %arg0, %c0_i32 : i32, i32
  }
  func.func @transform_1(%arg0: i32, %arg1: i32) -> (i32, i32) {
    %c0_i32 = arith.constant 0 : i32
    %c0_i32_0 = arith.constant 0 : i32
    return %c0_i32, %arg1 : i32, i32
  }
  func.func @transform_2(%arg0: i32, %arg1: i32) -> (i32, i32) {
    %c0_i32 = arith.constant 0 : i32
    %c0_i32_0 = arith.constant 0 : i32
    return %c0_i32, %arg1 : i32, i32
  }
  func.func @transform_3(%arg0: i32, %arg1: i32) -> (i32, i32) {
    %c0_i32 = arith.constant 0 : i32
    return %arg0, %arg1 : i32, i32
  }
}

</mosaic_0001>

<bundles_post_ra>
// kernel: generator_forward.7
= control target key start
LH: loop header
LB: loop body
LE: loop exit
PB: predicated region body
PF: predicated region fallthrough
CT: control target
= control target key end

     0   :  { %s674_s1 = inlined_call_operand.vmem [shape: bf16[128,128], index: 1, kind: input, shape index: {}]   ;;  %s675_s0 = inlined_call_operand.vmem [shape: bf16[128,128], index: 0, kind: input, shape index: {}]   ;;  %s676_s2 = inlined_call_operand.vmem [shape: f32[1,128], index: 2, kind: input, shape index: {}]   ;;  %s677_s3 = inlined_call_operand.vmem [shape: bf16[128,128], index: 3, kind: output, shape index: {}]  }
   0x1   :  { %v539_v0 = vld [vmem:[%s674_s1 + $0x38] sm:$0xff]   ;;  %v540_v1 = vld [vmem:[%s674_s1 + $0x30] sm:$0xff]   ;;  %v541_v2 = vld [vmem:[%s674_s1 + $0x28] sm:$0xff]  }
   0x2   :  { %491 = vmatprep.subr.bf16.mxu0 %v539_v0  ;;  %523 = vmatprep.subr.bf16.mxu1 %v539_v0  ;;  %v542_v3 = vld [vmem:[%s674_s1 + $0x20] sm:$0xff]   ;;  %v543_v6 = vld [vmem:[%s674_s1 + $0x18] sm:$0xff]   ;;  %v544_v7 = vld [vmem:[%s674_s1 + $0x10] sm:$0xff]  }
   0x3   :  { %492 = vmatpush3.bf16.msra.mxu0 %v539_v0  ;;  %531 = vmatpush3.bf16.msra.mxu1 %v539_v0  ;;  %v547_v4 = vld [vmem:[%s675_s0] sm:$0xff]   ;;  %v545_v8 = vld [vmem:[%s674_s1 + $0x8] sm:$0xff]   ;;  %v551_v12 = vld [vmem:[%s675_s0 + $0x10] sm:$0xff]  }
   0x4   :  { %493 = vmatprep.subr.bf16.mxu0 %v540_v1  ;;  %524 = vmatprep.subr.bf16.mxu1 %v540_v1  ;;  %v548_v5 = vld [vmem:[%s675_s0 + $0x20] sm:$0xff]   ;;  %v549_v10 = vld [vmem:[%s675_s0 + $0x8] sm:$0xff]   ;;  %v552_v13 = vld [vmem:[%s675_s0 + $0x30] sm:$0xff]  }
   0x5   :  { %507 = vmatprep.mubr.bf16.mxu0 %v547_v4  ;;  %515 = vmatprep.mubr.bf16.mxu1 %v548_v5  ;;  %v546_v9 = vld [vmem:[%s674_s1] sm:$0xff]   ;;  %v550_v11 = vld [vmem:[%s675_s0 + $0x28] sm:$0xff]   ;;  %v553_v14 = vld [vmem:[%s675_s0 + $0x18] sm:$0xff]  }
   0x6   :  { %v554_v15 = vld [vmem:[%s675_s0 + $0x38] sm:$0xff]   ;;  %v626_v16 = vld [vmem:[%s676_s2] ss:$0 sm:$0xff] }
   0x7   :  { %494 = vmatpush3.bf16.msra.mxu0 %v540_v1  ;;  %532 = vmatpush3.bf16.msra.mxu1 %v540_v1 }
   0x8   :  { %495 = vmatprep.subr.bf16.mxu0 %v541_v2  ;;  %525 = vmatprep.subr.bf16.mxu1 %v541_v2 }
   0xb   :  { %496 = vmatpush3.bf16.msra.mxu0 %v541_v2  ;;  %533 = vmatpush3.bf16.msra.mxu1 %v541_v2 }
   0xc   :  { %497 = vmatprep.subr.bf16.mxu0 %v542_v3  ;;  %526 = vmatprep.subr.bf16.mxu1 %v542_v3 }
   0xf   :  { %498 = vmatpush3.bf16.msra.mxu0 %v542_v3  ;;  %534 = vmatpush3.bf16.msra.mxu1 %v542_v3 }
  0x10   :  { %499 = vmatprep.subr.bf16.mxu0 %v543_v6  ;;  %527 = vmatprep.subr.bf16.mxu1 %v543_v6 }
  0x13   :  { %500 = vmatpush3.bf16.msra.mxu0 %v543_v6  ;;  %535 = vmatpush3.bf16.msra.mxu1 %v543_v6 }
  0x14   :  { %501 = vmatprep.subr.bf16.mxu0 %v544_v7  ;;  %528 = vmatprep.subr.bf16.mxu1 %v544_v7 }
  0x17   :  { %502 = vmatpush3.bf16.msra.mxu0 %v544_v7  ;;  %536 = vmatpush3.bf16.msra.mxu1 %v544_v7 }
  0x18   :  { %503 = vmatprep.subr.bf16.mxu0 %v545_v8  ;;  %529 = vmatprep.subr.bf16.mxu1 %v545_v8 }
  0x1b   :  { %504 = vmatpush3.bf16.msra.mxu0 %v545_v8  ;;  %537 = vmatpush3.bf16.msra.mxu1 %v545_v8 }
  0x1c   :  { %505 = vmatprep.subr.bf16.mxu0 %v546_v9  ;;  %530 = vmatprep.subr.bf16.mxu1 %v546_v9 }
  0x1f   :  { %506 = vmatpush3.bf16.msra.mxu0 %v546_v9  ;;  %538 = vmatpush3.bf16.msra.mxu1 %v546_v9 }
  0x22   :  { %508 = vmatmul.mubr.bf16.vlgmr.msra.gmra.mxu0 %v549_v10  ;;  %516 = vmatmul.mubr.bf16.vlgmr.msra.gmra.mxu1 %v550_v11 }
  0x23   :  { %511 = vmatprep.mubr.bf16.mxu0 %v551_v12  ;;  %519 = vmatprep.mubr.bf16.mxu1 %v552_v13 }
  0x2a   :  { %512 = vmatmul.mubr.bf16.gmra.mxu0 %v553_v14  ;;  %520 = vmatmul.mubr.bf16.gmra.mxu1 %v554_v15 }
  0xe2   :  { %v509_v17 = vpop.f32.mrf.mxu0  ;;  %v517_v18 = vpop.f32.mrf.mxu1 }
  0xe3   :  { %v193_v19 = vadd.f32 %v509_v17, %v626_v16  ;;  %v225_v20 = vadd.f32 %v517_v18, %v626_v16 }
  0xe4   :  { %v184_v21 = vpop.f32.mrf.mxu0  ;;  %v216_v22 = vpop.f32.mrf.mxu1 }
  0xe5   :  { %vm249_vm0 = vcmp.gt.f32.partialorder %v193_v19, 0.0  ;;  %v265_v23 = vmul.f32 0.2, %v193_v19  ;;  %vm257_vm1 = vcmp.gt.f32.partialorder %v225_v20, 0.0  ;;  %v273_v24 = vmul.f32 0.2, %v225_v20 }
  0xe6   :  { %v185_v25 = vadd.f32 %v626_v16, %v184_v21  ;;  %v217_v26 = vadd.f32 %v626_v16, %v216_v22  ;;  %v510_v27 = vpop.f32.mrf.mxu0  ;;  %v518_v28 = vpop.f32.mrf.mxu1 }
  0xe7   :  { %v196_v29 = vadd.f32 %v510_v27, %v626_v16  ;;  %v228_v30 = vadd.f32 %v518_v28, %v626_v16  ;;  %v281_v31 = vsel %vm249_vm0, %v193_v19, %v265_v23  ;;  %v289_v32 = vsel %vm257_vm1, %v225_v20, %v273_v24 }
  0xe8   :  { %vm247_vm2 = vcmp.gt.f32.partialorder %v185_v25, 0.0  ;;  %v263_v33 = vmul.f32 0.2, %v185_v25  ;;  %v187_v34 = vpop.f32.mrf.mxu0  ;;  %v219_v35 = vpop.f32.mrf.mxu1  ;;  %vm255_vm5 = vcmp.gt.f32.partialorder %v217_v26, 0.0  ;;  %v271_v38 = vmul.f32 0.2, %v217_v26 }
  0xe9   :  { %vm250_vm3 = vcmp.gt.f32.partialorder %v196_v29, 0.0  ;;  %v266_v36 = vmul.f32 0.2, %v196_v29  ;;  %vm258_vm4 = vcmp.gt.f32.partialorder %v228_v30, 0.0  ;;  %v274_v37 = vmul.f32 0.2, %v228_v30 }
  0xea   :  { %v188_v39 = vadd.f32 %v626_v16, %v187_v34  ;;  %v220_v40 = vadd.f32 %v626_v16, %v219_v35  ;;  %v513_v41 = vpop.f32.mrf.mxu0  ;;  %v521_v42 = vpop.f32.mrf.mxu1  ;;  %v279_v53 = vsel %vm247_vm2, %v185_v25, %v263_v33  ;;  %v287_v58 = vsel %vm255_vm5, %v217_v26, %v271_v38 }
  0xeb   :  { %v282_v43 = vsel %vm250_vm3, %v196_v29, %v266_v36  ;;  %v290_v44 = vsel %vm258_vm4, %v228_v30, %v274_v37  ;;  %v209_v45 = vadd.f32 %v513_v41, %v626_v16  ;;  %v241_v46 = vadd.f32 %v521_v42, %v626_v16 }
  0xec   :  { %v436_v47 = vpack.c.bf16 %v282_v43, %v281_v31  ;;  %v456_v48 = vpack.c.bf16 %v290_v44, %v289_v32  ;;  %vm248_vm6 = vcmp.gt.f32.partialorder %v188_v39, 0.0  ;;  %v264_v49 = vmul.f32 0.2, %v188_v39  ;;  %v200_v50 = vpop.f32.mrf.mxu0  ;;  %v232_v51 = vpop.f32.mrf.mxu1 }
  0xed   :  { %vm256_vm7 = vcmp.gt.f32.partialorder %v220_v40, 0.0  ;;  %v272_v52 = vmul.f32 0.2, %v220_v40  ;;  %v201_v55 = vadd.f32 %v626_v16, %v200_v50  ;;  %v233_v61 = vadd.f32 %v626_v16, %v232_v51 }
  0xee   :  { %468 = vst [vmem:[%s677_s3 + $0x8] sm:$0xff] %v436_v47   ;;  %472 = vst [vmem:[%s677_s3 + $0x28] sm:$0xff] %v456_v48   ;;  %v280_v54 = vsel %vm248_vm6, %v188_v39, %v264_v49  ;;  %v514_v56 = vpop.f32.mrf.mxu0  ;;  %v522_v57 = vpop.f32.mrf.mxu1  ;;  %vm253_vm8 = vcmp.gt.f32.partialorder %v209_v45, 0.0  ;;  %v269_v63 = vmul.f32 0.2, %v209_v45  ;;  %vm261_vm9 = vcmp.gt.f32.partialorder %v241_v46, 0.0 }
  0xef   :  { %v431_v59 = vpack.c.bf16 %v280_v54, %v279_v53  ;;  %v288_v60 = vsel %vm256_vm7, %v220_v40, %v272_v52  ;;  %v277_v2 = vmul.f32 0.2, %v241_v46  ;;  %vm251_vm10 = vcmp.gt.f32.partialorder %v201_v55, 0.0 }
  0xf0   :  { %v451_v62 = vpack.c.bf16 %v288_v60, %v287_v58  ;;  %v203_v0 = vpop.f32.mrf.mxu0  ;;  %v235_v1 = vpop.f32.mrf.mxu1  ;;  %v212_v3 = vadd.f32 %v514_v56, %v626_v16  ;;  %v244_v4 = vadd.f32 %v522_v57, %v626_v16  ;;  %v267_v5 = vmul.f32 0.2, %v201_v55 }
  0xf1   :  { %432 = vst [vmem:[%s677_s3] sm:$0xff] %v431_v59   ;;  %vm259_vm11 = vcmp.gt.f32.partialorder %v233_v61, 0.0  ;;  %v204_v6 = vadd.f32 %v626_v16, %v203_v0  ;;  %v236_v7 = vadd.f32 %v626_v16, %v235_v1  ;;  %v275_v8 = vmul.f32 0.2, %v233_v61 }
  0xf2   :  { %471 = vst [vmem:[%s677_s3 + $0x20] sm:$0xff] %v451_v62   ;;  %vm254_vm12 = vcmp.gt.f32.partialorder %v212_v3, 0.0  ;;  %v270_v9 = vmul.f32 0.2, %v212_v3  ;;  %vm262_vm13 = vcmp.gt.f32.partialorder %v244_v4, 0.0  ;;  %v285_v12 = vsel %vm253_vm8, %v209_v45, %v269_v63 }
  0xf3   :  { %v278_v10 = vmul.f32 0.2, %v244_v4  ;;  %vm252_vm14 = vcmp.gt.f32.partialorder %v204_v6, 0.0  ;;  %v268_v11 = vmul.f32 0.2, %v204_v6  ;;  %vm260_vm15 = vcmp.gt.f32.partialorder %v236_v7, 0.0 }
  0xf4   :  { %v293_v13 = vsel %vm261_vm9, %v241_v46, %v277_v2  ;;  %v286_v14 = vsel %vm254_vm12, %v212_v3, %v270_v9  ;;  %v276_v15 = vmul.f32 0.2, %v236_v7  ;;  %v283_v17 = vsel %vm251_vm10, %v201_v55, %v267_v5 }
  0xf5   :  { %v446_v18 = vpack.c.bf16 %v286_v14, %v285_v12  ;;  %v294_v19 = vsel %vm262_vm13, %v244_v4, %v278_v10  ;;  %v284_v20 = vsel %vm252_vm14, %v204_v6, %v268_v11  ;;  %v291_v16 = vsel %vm259_vm11, %v233_v61, %v275_v8 }
  0xf6   :  { %v466_v21 = vpack.c.bf16 %v294_v19, %v293_v13  ;;  %v441_v22 = vpack.c.bf16 %v284_v20, %v283_v17  ;;  %v292_v23 = vsel %vm260_vm15, %v236_v7, %v276_v15 }
  0xf7   :  { %470 = vst [vmem:[%s677_s3 + $0x18] sm:$0xff] %v446_v18   ;;  %v461_v24 = vpack.c.bf16 %v292_v23, %v291_v16 }
  0xf8   :  { %474 = vst [vmem:[%s677_s3 + $0x38] sm:$0xff] %v466_v21   ;;  %469 = vst [vmem:[%s677_s3 + $0x10] sm:$0xff] %v441_v22  }
  0xf9   :  { %473 = vst [vmem:[%s677_s3 + $0x30] sm:$0xff] %v461_v24  }

// kernel: generator_forward.8
= control target key start
LH: loop header
LB: loop body
LE: loop exit
PB: predicated region body
PF: predicated region fallthrough
CT: control target
= control target key end

     0   :  { %s1407_s1 = inlined_call_operand.vmem [shape: bf16[1024,128], index: 1, kind: input, shape index: {}]   ;;  %s1408_s0 = inlined_call_operand.vmem [shape: bf16[32,1024], index: 0, kind: input, shape index: {}]   ;;  %s1409_s2 = inlined_call_operand.vmem [shape: f32[1,128], index: 2, kind: input, shape index: {}]   ;;  %s1410_s3 = inlined_call_operand.vmem [shape: bf16[32,128], index: 3, kind: output, shape index: {}]  }
   0x1   :  { %v1074_v0 = vld [vmem:[%s1407_s1 + $0x78] sm:$0xff]   ;;  %v1078_v4 = vld [vmem:[%s1407_s1 + $0x70] sm:$0xff]   ;;  %v1082_v8 = vld [vmem:[%s1407_s1 + $0x68] sm:$0xff]  }
   0x2   :  { %v1075_v1 = vld [vmem:[%s1407_s1 + $0xf8] sm:$0xff]   ;;  %962 = vmatprep.subr.bf16.mxu0 %v1074_v0  ;;  %v1079_v5 = vld [vmem:[%s1407_s1 + $0xf0] sm:$0xff]   ;;  %v1083_v9 = vld [vmem:[%s1407_s1 + $0xe8] sm:$0xff]  }
   0x3   :  { %v1076_v2 = vld [vmem:[%s1407_s1 + $0x38] sm:$0xff]   ;;  %990 = vmatprep.subr.bf16.mxu1 %v1075_v1  ;;  %v1080_v6 = vld [vmem:[%s1407_s1 + $0x30] sm:$0xff]   ;;  %v1084_v10 = vld [vmem:[%s1407_s1 + $0x28] sm:$0xff]  }
   0x4   :  { %v1077_v3 = vld [vmem:[%s1407_s1 + $0xb8] sm:$0xff]   ;;  %963 = vmatpush3.bf16.msra.mxu0 %v1076_v2  ;;  %v1081_v7 = vld [vmem:[%s1407_s1 + $0xb0] sm:$0xff]   ;;  %v1085_v11 = vld [vmem:[%s1407_s1 + $0xa8] sm:$0xff]  }
   0x5   :  { %991 = vmatpush3.bf16.msra.mxu1 %v1077_v3  ;;  %964 = vmatprep.subr.bf16.mxu0 %v1078_v4  ;;  %v1086_v12 = vld [vmem:[%s1407_s1 + $0x60] sm:$0xff]   ;;  %v1090_v16 = vld [vmem:[%s1407_s1 + $0x58] sm:$0xff]   ;;  %v1094_v20 = vld [vmem:[%s1407_s1 + $0x50] sm:$0xff]  }
   0x6   :  { %992 = vmatprep.subr.bf16.mxu1 %v1079_v5  ;;  %v1087_v13 = vld [vmem:[%s1407_s1 + $0xe0] sm:$0xff]   ;;  %v1091_v17 = vld [vmem:[%s1407_s1 + $0xd8] sm:$0xff]   ;;  %v1095_v21 = vld [vmem:[%s1407_s1 + $0xd0] sm:$0xff]  }
   0x7   :  { %v1088_v14 = vld [vmem:[%s1407_s1 + $0x20] sm:$0xff]   ;;  %v1092_v18 = vld [vmem:[%s1407_s1 + $0x18] sm:$0xff]   ;;  %v1096_v22 = vld [vmem:[%s1407_s1 + $0x10] sm:$0xff]  }
   0x8   :  { %965 = vmatpush3.bf16.msra.mxu0 %v1080_v6  ;;  %v1089_v15 = vld [vmem:[%s1407_s1 + $0xa0] sm:$0xff]   ;;  %v1093_v19 = vld [vmem:[%s1407_s1 + $0x98] sm:$0xff]   ;;  %v1097_v23 = vld [vmem:[%s1407_s1 + $0x90] sm:$0xff]  }
   0x9   :  { %993 = vmatpush3.bf16.msra.mxu1 %v1081_v7  ;;  %966 = vmatprep.subr.bf16.mxu0 %v1082_v8  ;;  %v1098_v24 = vld [vmem:[%s1407_s1 + $0x48] sm:$0xff]   ;;  %v1102_v28 = vld [vmem:[%s1407_s1 + $0x40] sm:$0xff]   ;;  %v1106_v40 = vld [vmem:[%s1407_s1 + $0x178] sm:$0xff]  }
   0xa   :  { %994 = vmatprep.subr.bf16.mxu1 %v1083_v9  ;;  %v1099_v25 = vld [vmem:[%s1407_s1 + $0xc8] sm:$0xff]   ;;  %v1103_v29 = vld [vmem:[%s1407_s1 + $0xc0] sm:$0xff]   ;;  %v1107_v41 = vld [vmem:[%s1407_s1 + $0x1f8] sm:$0xff]  }
   0xb   :  { %v1100_v26 = vld [vmem:[%s1407_s1 + $0x8] sm:$0xff]   ;;  %v1104_v30 = vld [vmem:[%s1407_s1] sm:$0xff]   ;;  %v1108_v42 = vld [vmem:[%s1407_s1 + $0x138] sm:$0xff]  }
   0xc   :  { %967 = vmatpush3.bf16.msra.mxu0 %v1084_v10  ;;  %v1101_v27 = vld [vmem:[%s1407_s1 + $0x88] sm:$0xff]   ;;  %v1105_v31 = vld [vmem:[%s1407_s1 + $0x80] sm:$0xff]   ;;  %v1109_v43 = vld [vmem:[%s1407_s1 + $0x1b8] sm:$0xff]  }
   0xd   :  { %995 = vmatpush3.bf16.msra.mxu1 %v1085_v11  ;;  %968 = vmatprep.subr.bf16.mxu0 %v1086_v12  ;;  %v15_v32 = vld [vmem:[%s1408_s0] sm:$0xff]  ;;  %v16_v34 = vld [vmem:[%s1408_s0 + $0x8] sm:$0xff]  ;;  %v1110_v44 = vld [vmem:[%s1407_s1 + $0x170] sm:$0xff]  }
   0xe   :  { %996 = vmatprep.subr.bf16.mxu1 %v1087_v13  ;;  %v19_v33 = vld [vmem:[%s1408_s0 + $0x20] sm:$0xff]  ;;  %v20_v37 = vld [vmem:[%s1408_s0 + $0x28] sm:$0xff]  ;;  %v1111_v45 = vld [vmem:[%s1407_s1 + $0x1f0] sm:$0xff]  }
   0xf   :  { %v863_v35 = vcombine.low %v15_v32, %v19_v33  ;;  %v864_v36 = vcombine.high %v15_v32, %v19_v33  ;;  %v865_v38 = vcombine.low %v16_v34, %v20_v37  ;;  %v866_v39 = vcombine.high %v16_v34, %v20_v37  ;;  %v1112_v46 = vld [vmem:[%s1407_s1 + $0x130] sm:$0xff]   ;;  %v1114_v48 = vld [vmem:[%s1407_s1 + $0x168] sm:$0xff]   ;;  %v1118_v52 = vld [vmem:[%s1407_s1 + $0x160] sm:$0xff]  }
  0x10   :  { %969 = vmatpush3.bf16.msra.mxu0 %v1088_v14  ;;  %v1113_v47 = vld [vmem:[%s1407_s1 + $0x1b0] sm:$0xff]   ;;  %v1115_v49 = vld [vmem:[%s1407_s1 + $0x1e8] sm:$0xff]   ;;  %v1119_v53 = vld [vmem:[%s1407_s1 + $0x1e0] sm:$0xff]  }
  0x11   :  { %997 = vmatpush3.bf16.msra.mxu1 %v1089_v15  ;;  %970 = vmatprep.subr.bf16.mxu0 %v1090_v16  ;;  %v1116_v50 = vld [vmem:[%s1407_s1 + $0x128] sm:$0xff]   ;;  %v1120_v54 = vld [vmem:[%s1407_s1 + $0x120] sm:$0xff]   ;;  %v1122_v56 = vld [vmem:[%s1407_s1 + $0x158] sm:$0xff]  }
  0x12   :  { %998 = vmatprep.subr.bf16.mxu1 %v1091_v17  ;;  %662 = vmatprep.mubr.bf16.mxu0 %v864_v36  ;;  %v1117_v51 = vld [vmem:[%s1407_s1 + $0x1a8] sm:$0xff]   ;;  %v1121_v55 = vld [vmem:[%s1407_s1 + $0x1a0] sm:$0xff]   ;;  %v1123_v57 = vld [vmem:[%s1407_s1 + $0x1d8] sm:$0xff]  }
  0x13   :  { %711 = vmatprep.mubr.bf16.mxu1 %v866_v39  ;;  %v23_v58 = vld [vmem:[%s1408_s0 + $0x40] sm:$0xff]  ;;  %v1124_v61 = vld [vmem:[%s1407_s1 + $0x118] sm:$0xff]   ;;  %v24_v0 = vld [vmem:[%s1408_s0 + $0x48] sm:$0xff] }
  0x14   :  { %971 = vmatpush3.bf16.msra.mxu0 %v1092_v18  ;;  %v27_v59 = vld [vmem:[%s1408_s0 + $0x60] sm:$0xff]  ;;  %v1125_v63 = vld [vmem:[%s1407_s1 + $0x198] sm:$0xff]   ;;  %v28_v1 = vld [vmem:[%s1408_s0 + $0x68] sm:$0xff] }
  0x15   :  { %999 = vmatpush3.bf16.msra.mxu1 %v1093_v19  ;;  %972 = vmatprep.subr.bf16.mxu0 %v1094_v20  ;;  %v872_v60 = vcombine.high %v23_v58, %v27_v59  ;;  %v871_v62 = vcombine.low %v23_v58, %v27_v59  ;;  %v874_v2 = vcombine.high %v24_v0, %v28_v1  ;;  %v1126_v4 = vld [vmem:[%s1407_s1 + $0x150] sm:$0xff]   ;;  %v1130_v8 = vld [vmem:[%s1407_s1 + $0x148] sm:$0xff]   ;;  %v1134_v12 = vld [vmem:[%s1407_s1 + $0x140] sm:$0xff]  }
  0x16   :  { %1000 = vmatprep.subr.bf16.mxu1 %v1095_v21  ;;  %v873_v3 = vcombine.low %v24_v0, %v28_v1  ;;  %v1127_v5 = vld [vmem:[%s1407_s1 + $0x1d0] sm:$0xff]   ;;  %v1131_v9 = vld [vmem:[%s1407_s1 + $0x1c8] sm:$0xff]   ;;  %v1135_v13 = vld [vmem:[%s1407_s1 + $0x1c0] sm:$0xff]  }
  0x17   :  { %v1128_v6 = vld [vmem:[%s1407_s1 + $0x110] sm:$0xff]   ;;  %v1132_v10 = vld [vmem:[%s1407_s1 + $0x108] sm:$0xff]   ;;  %v1136_v14 = vld [vmem:[%s1407_s1 + $0x100] sm:$0xff]  }
  0x18   :  { %973 = vmatpush3.bf16.msra.mxu0 %v1096_v22  ;;  %v1129_v7 = vld [vmem:[%s1407_s1 + $0x190] sm:$0xff]   ;;  %v1133_v11 = vld [vmem:[%s1407_s1 + $0x188] sm:$0xff]   ;;  %v1137_v15 = vld [vmem:[%s1407_s1 + $0x180] sm:$0xff]  }
  0x19   :  { %1001 = vmatpush3.bf16.msra.mxu1 %v1097_v23  ;;  %974 = vmatprep.subr.bf16.mxu0 %v1098_v24  ;;  %v17_v16 = vld [vmem:[%s1408_s0 + $0x10] sm:$0xff]  ;;  %v18_v18 = vld [vmem:[%s1408_s0 + $0x18] sm:$0xff] }
  0x1a   :  { %1002 = vmatprep.subr.bf16.mxu1 %v1099_v25  ;;  %v21_v17 = vld [vmem:[%s1408_s0 + $0x30] sm:$0xff]  ;;  %v22_v19 = vld [vmem:[%s1408_s0 + $0x38] sm:$0xff] }
  0x1b   :  { %v867_v20 = vcombine.low %v17_v16, %v21_v17  ;;  %v868_v21 = vcombine.high %v17_v16, %v21_v17  ;;  %v869_v22 = vcombine.low %v18_v18, %v22_v19  ;;  %v870_v23 = vcombine.high %v18_v18, %v22_v19  ;;  %v25_v24 = vld [vmem:[%s1408_s0 + $0x50] sm:$0xff] }
  0x1c   :  { %975 = vmatpush3.bf16.msra.mxu0 %v1100_v26  ;;  %v29_v25 = vld [vmem:[%s1408_s0 + $0x70] sm:$0xff]  ;;  %v26_v26 = vld [vmem:[%s1408_s0 + $0x58] sm:$0xff] }
  0x1d   :  { %1003 = vmatpush3.bf16.msra.mxu1 %v1101_v27  ;;  %976 = vmatprep.subr.bf16.mxu0 %v1102_v28  ;;  %v876_v27 = vcombine.high %v25_v24, %v29_v25  ;;  %v30_v28 = vld [vmem:[%s1408_s0 + $0x78] sm:$0xff] }
  0x1e   :  { %1004 = vmatprep.subr.bf16.mxu1 %v1103_v29  ;;  %v878_v29 = vcombine.high %v26_v26, %v30_v28 }
  0x20   :  { %977 = vmatpush3.bf16.msra.mxu0 %v1104_v30  ;;  %v875_v30 = vcombine.low %v25_v24, %v29_v25 }
  0x21   :  { %1005 = vmatpush3.bf16.msra.mxu1 %v1105_v31  ;;  %1018 = vmatprep.subr.bf16.mxu0 %v1106_v40  ;;  %v877_v31 = vcombine.low %v26_v26, %v30_v28 }
  0x22   :  { %1046 = vmatprep.subr.bf16.mxu1 %v1107_v41 }
  0x23   :  { %663 = vmatmul.mubr.bf16.vlgmr.msra.gmra.mxu0 %v863_v35 }
  0x24   :  { %712 = vmatmul.mubr.bf16.vlgmr.msra.gmra.mxu1 %v865_v38  ;;  %1019 = vmatpush3.bf16.msra.mxu0 %v1108_v42 }
  0x25   :  { %1047 = vmatpush3.bf16.msra.mxu1 %v1109_v43  ;;  %1020 = vmatprep.subr.bf16.mxu0 %v1110_v44 }
  0x26   :  { %1048 = vmatprep.subr.bf16.mxu1 %v1111_v45  ;;  %670 = vmatprep.mubr.bf16.mxu0 %v872_v60 }
  0x27   :  { %719 = vmatprep.mubr.bf16.mxu1 %v874_v2 }
  0x28   :  { %1021 = vmatpush3.bf16.msra.mxu0 %v1112_v46 }
  0x29   :  { %1049 = vmatpush3.bf16.msra.mxu1 %v1113_v47  ;;  %1022 = vmatprep.subr.bf16.mxu0 %v1114_v48  ;;  %v862_v47 = vld [vmem:[%s1409_s2] ss:$0 sm:$0xff] }
  0x2a   :  { %1050 = vmatprep.subr.bf16.mxu1 %v1115_v49 }
  0x2b   :  { %671 = vmatmul.mubr.bf16.gmra.mxu0 %v871_v62 }
  0x2c   :  { %1023 = vmatpush3.bf16.msra.mxu0 %v1116_v50  ;;  %720 = vmatmul.mubr.bf16.gmra.mxu1 %v873_v3 }
  0x2d   :  { %1051 = vmatpush3.bf16.msra.mxu1 %v1117_v51  ;;  %1024 = vmatprep.subr.bf16.mxu0 %v1118_v52 }
  0x2e   :  { %1052 = vmatprep.subr.bf16.mxu1 %v1119_v53  ;;  %760 = vmatprep.mubr.bf16.mxu0 %v868_v21 }
  0x2f   :  { %809 = vmatprep.mubr.bf16.mxu1 %v870_v23 }
  0x30   :  { %1025 = vmatpush3.bf16.msra.mxu0 %v1120_v54 }
  0x31   :  { %1053 = vmatpush3.bf16.msra.mxu1 %v1121_v55  ;;  %1026 = vmatprep.subr.bf16.mxu0 %v1122_v56 }
  0x32   :  { %1054 = vmatprep.subr.bf16.mxu1 %v1123_v57 }
  0x34   :  { %1027 = vmatpush3.bf16.msra.mxu0 %v1124_v61 }
  0x35   :  { %1055 = vmatpush3.bf16.msra.mxu1 %v1125_v63  ;;  %1028 = vmatprep.subr.bf16.mxu0 %v1126_v4 }
  0x36   :  { %1056 = vmatprep.subr.bf16.mxu1 %v1127_v5 }
  0x38   :  { %1029 = vmatpush3.bf16.msra.mxu0 %v1128_v6 }
  0x39   :  { %1057 = vmatpush3.bf16.msra.mxu1 %v1129_v7  ;;  %1030 = vmatprep.subr.bf16.mxu0 %v1130_v8 }
  0x3a   :  { %1058 = vmatprep.subr.bf16.mxu1 %v1131_v9 }
  0x3c   :  { %1031 = vmatpush3.bf16.msra.mxu0 %v1132_v10 }
  0x3d   :  { %1059 = vmatpush3.bf16.msra.mxu1 %v1133_v11  ;;  %1032 = vmatprep.subr.bf16.mxu0 %v1134_v12 }
  0x3e   :  { %1060 = vmatprep.subr.bf16.mxu1 %v1135_v13 }
  0x40   :  { %1033 = vmatpush3.bf16.msra.mxu0 %v1136_v14 }
  0x41   :  { %1061 = vmatpush3.bf16.msra.mxu1 %v1137_v15 }
  0x43   :  { %761 = vmatmul.mubr.bf16.vlgmr.msra.gmra.mxu0 %v867_v20 }
  0x44   :  { %810 = vmatmul.mubr.bf16.vlgmr.msra.gmra.mxu1 %v869_v22  ;;  %768 = vmatprep.mubr.bf16.mxu0 %v876_v27 }
  0x45   :  { %817 = vmatprep.mubr.bf16.mxu1 %v878_v29 }
  0x4b   :  { %769 = vmatmul.mubr.bf16.gmra.mxu0 %v875_v30 }
  0x4c   :  { %818 = vmatmul.mubr.bf16.gmra.mxu1 %v877_v31 }
  0xe3   :  { %v978_v32 = vpop.f32.mrf.mxu0 }
  0xe4   :  { %v1006_v33 = vpop.f32.mrf.mxu1 }
  0xe5   :  { %v979_v34 = vpop.f32.mrf.mxu0 }
  0xe6   :  { %v1007_v35 = vpop.f32.mrf.mxu1  ;;  %v980_v46 = vadd.f32 %v979_v34, %v978_v32 }
  0xe7   :  { %v981_v36 = vpop.f32.mrf.mxu0  ;;  %v1008_v52 = vadd.f32 %v1007_v35, %v1006_v33 }
  0xe8   :  { %v1009_v37 = vpop.f32.mrf.mxu1  ;;  %v665_v51 = vadd.f32 %v980_v46, %v862_v47 }
  0xe9   :  { %v982_v38 = vpop.f32.mrf.mxu0 }
  0xea   :  { %v1010_v39 = vpop.f32.mrf.mxu1  ;;  %v983_v48 = vadd.f32 %v982_v38, %v981_v36  ;;  %v714_v58 = vadd.f32 %v1008_v52, %v665_v51 }
  0xeb   :  { %v984_v40 = vpop.f32.mrf.mxu0  ;;  %v1011_v61 = vadd.f32 %v1010_v39, %v1009_v37 }
  0xec   :  { %v1012_v41 = vpop.f32.mrf.mxu1  ;;  %v668_v55 = vadd.f32 %v983_v48, %v862_v47 }
  0xed   :  { %v985_v42 = vpop.f32.mrf.mxu0 }
  0xee   :  { %v1013_v43 = vpop.f32.mrf.mxu1  ;;  %v986_v59 = vadd.f32 %v985_v42, %v984_v40  ;;  %v717_v2 = vadd.f32 %v1011_v61, %v668_v55 }
  0xef   :  { %v987_v44 = vpop.f32.mrf.mxu0  ;;  %v1014_v7 = vadd.f32 %v1013_v43, %v1012_v41 }
  0xf0   :  { %v1015_v45 = vpop.f32.mrf.mxu1  ;;  %v673_v6 = vadd.f32 %v986_v59, %v862_v47 }
  0xf1   :  { %v988_v49 = vpop.f32.mrf.mxu0 }
  0xf2   :  { %v1016_v50 = vpop.f32.mrf.mxu1  ;;  %v989_v3 = vadd.f32 %v988_v49, %v987_v44  ;;  %v722_v18 = vadd.f32 %v1014_v7, %v673_v6 }
  0xf3   :  { %v1017_v15 = vadd.f32 %v1016_v50, %v1015_v45 }
  0xf4   :  { %v676_v14 = vadd.f32 %v989_v3, %v862_v47 }
  0xf6   :  { %v725_v27 = vadd.f32 %v1017_v15, %v676_v14 }
 0x103   :  { %v1034_v53 = vpop.f32.mrf.mxu0 }
 0x104   :  { %v1062_v54 = vpop.f32.mrf.mxu1 }
 0x105   :  { %v1035_v56 = vpop.f32.mrf.mxu0 }
 0x106   :  { %v1063_v57 = vpop.f32.mrf.mxu1  ;;  %v1036_v60 = vadd.f32 %v1035_v56, %v1034_v53 }
 0x107   :  { %v1037_v62 = vpop.f32.mrf.mxu0  ;;  %v1064_v1 = vadd.f32 %v1063_v57, %v1062_v54 }
 0x108   :  { %v1065_v63 = vpop.f32.mrf.mxu1  ;;  %v763_v0 = vadd.f32 %v1036_v60, %v714_v58 }
 0x109   :  { %v1038_v4 = vpop.f32.mrf.mxu0 }
 0x10a   :  { %v1066_v5 = vpop.f32.mrf.mxu1  ;;  %v812_v8 = vadd.f32 %v1064_v1, %v763_v0  ;;  %v1039_v9 = vadd.f32 %v1038_v4, %v1037_v62 }
 0x10b   :  { %v1040_v10 = vpop.f32.mrf.mxu0  ;;  %v1067_v13 = vadd.f32 %v1066_v5, %v1065_v63 }
 0x10c   :  { %v1068_v11 = vpop.f32.mrf.mxu1  ;;  %v766_v12 = vadd.f32 %v1039_v9, %v717_v2  ;;  %v830_v19 = vmul.f32 0.2, %v812_v8  ;;  %vm826_vm0 = vcmp.gt.f32.partialorder %v812_v8, 0.0 }
 0x10d   :  { %v1041_v16 = vpop.f32.mrf.mxu0 }
 0x10e   :  { %v1069_v17 = vpop.f32.mrf.mxu1  ;;  %v815_v20 = vadd.f32 %v1067_v13, %v766_v12  ;;  %v1042_v21 = vadd.f32 %v1041_v16, %v1040_v10  ;;  %v834_v30 = vsel %vm826_vm0, %v812_v8, %v830_v19 }
 0x10f   :  { %v1043_v22 = vpop.f32.mrf.mxu0  ;;  %v1070_v26 = vadd.f32 %v1069_v17, %v1068_v11 }
 0x110   :  { %v1071_v23 = vpop.f32.mrf.mxu1  ;;  %vm827_vm1 = vcmp.gt.f32.partialorder %v815_v20, 0.0  ;;  %v831_v24 = vmul.f32 0.2, %v815_v20  ;;  %v771_v25 = vadd.f32 %v1042_v21, %v722_v18 }
 0x111   :  { %v1044_v28 = vpop.f32.mrf.mxu0 }
 0x112   :  { %v1072_v29 = vpop.f32.mrf.mxu1  ;;  %v835_v31 = vsel %vm827_vm1, %v815_v20, %v831_v24  ;;  %v820_v32 = vadd.f32 %v1070_v26, %v771_v25  ;;  %v1045_v33 = vadd.f32 %v1044_v28, %v1043_v22 }
 0x113   :  { %v954_v34 = vpack.c.bf16 %v835_v31, %v834_v30  ;;  %v1073_v36 = vadd.f32 %v1072_v29, %v1071_v23 }
 0x114   :  { %v774_v35 = vadd.f32 %v1045_v33, %v725_v27  ;;  %v832_v37 = vmul.f32 0.2, %v820_v32  ;;  %vm828_vm2 = vcmp.gt.f32.partialorder %v820_v32, 0.0 }
 0x115   :  { %955 = vst [vmem:[%s1410_s3] sm:$0xff] %v954_v34  }
 0x116   :  { %v823_v38 = vadd.f32 %v1073_v36, %v774_v35  ;;  %v836_v40 = vsel %vm828_vm2, %v820_v32, %v832_v37 }
 0x118   :  { %vm829_vm3 = vcmp.gt.f32.partialorder %v823_v38, 0.0  ;;  %v833_v39 = vmul.f32 0.2, %v823_v38 }
 0x11a   :  { %v837_v41 = vsel %vm829_vm3, %v823_v38, %v833_v39 }
 0x11b   :  { %v959_v42 = vpack.c.bf16 %v837_v41, %v836_v40 }
 0x11d   :  { %961 = vst [vmem:[%s1410_s3 + $0x8] sm:$0xff] %v959_v42  }

// kernel: generator_forward.9
= control target key start
LH: loop header
LB: loop body
LE: loop exit
PB: predicated region body
PF: predicated region fallthrough
CT: control target
= control target key end

     0   :  { %s3585_s1 = inlined_call_operand.vmem [shape: bf16[2048,256], index: 1, kind: input, shape index: {}]   ;;  %s3586_s0 = inlined_call_operand.vmem [shape: bf16[16,2048], index: 0, kind: input, shape index: {}]   ;;  %s3587_s2 = inlined_call_operand.vmem [shape: f32[1,256], index: 2, kind: input, shape index: {}]   ;;  %s3588_s3 = inlined_call_operand.vmem [shape: bf16[16,256], index: 3, kind: output, shape index: {}]  }
   0x1   :  { %v2308_v0 = vld [vmem:[%s3585_s1 + $0x74] ss:$8 sps:$4 sm:$0xff]   ;;  %v2312_v2 = vld [vmem:[%s3585_s1 + $0x70] ss:$8 sps:$4 sm:$0xff]   ;;  %v2314_v4 = vld [vmem:[%s3585_s1 + $0x64] ss:$8 sps:$4 sm:$0xff]  }
   0x2   :  { %v2310_v1 = vld [vmem:[%s3585_s1 + $0x174] ss:$8 sps:$4 sm:$0xff]   ;;  %1658 = vmatprep.subr.bf16.mxu0 %v2308_v0  ;;  %v2313_v3 = vld [vmem:[%s3585_s1 + $0x170] ss:$8 sps:$4 sm:$0xff]   ;;  %v2316_v5 = vld [vmem:[%s3585_s1 + $0x164] ss:$8 sps:$4 sm:$0xff]  }
   0x3   :  { %1701 = vmatprep.subr.bf16.mxu1 %v2310_v1  ;;  %1659 = vmatpush1.bf16.msra.mxu0 %v2312_v2  ;;  %v2318_v6 = vld [vmem:[%s3585_s1 + $0x60] ss:$8 sps:$4 sm:$0xff]   ;;  %v2320_v8 = vld [vmem:[%s3585_s1 + $0x54] ss:$8 sps:$4 sm:$0xff]   ;;  %v2324_v10 = vld [vmem:[%s3585_s1 + $0x50] ss:$8 sps:$4 sm:$0xff]  }
   0x4   :  { %1702 = vmatpush1.bf16.msra.mxu1 %v2313_v3  ;;  %1660 = vmatprep.subr.bf16.mxu0 %v2314_v4  ;;  %v2319_v7 = vld [vmem:[%s3585_s1 + $0x160] ss:$8 sps:$4 sm:$0xff]   ;;  %v2322_v9 = vld [vmem:[%s3585_s1 + $0x154] ss:$8 sps:$4 sm:$0xff]   ;;  %v2325_v11 = vld [vmem:[%s3585_s1 + $0x150] ss:$8 sps:$4 sm:$0xff]  }
   0x5   :  { %1703 = vmatprep.subr.bf16.mxu1 %v2316_v5  ;;  %v2326_v12 = vld [vmem:[%s3585_s1 + $0x44] ss:$8 sps:$4 sm:$0xff]   ;;  %v2330_v14 = vld [vmem:[%s3585_s1 + $0x40] ss:$8 sps:$4 sm:$0xff]   ;;  %v2332_v16 = vld [vmem:[%s3585_s1 + $0x34] ss:$8 sps:$4 sm:$0xff]  }
   0x6   :  { %v2328_v13 = vld [vmem:[%s3585_s1 + $0x144] ss:$8 sps:$4 sm:$0xff]   ;;  %v2331_v15 = vld [vmem:[%s3585_s1 + $0x140] ss:$8 sps:$4 sm:$0xff]   ;;  %v2334_v17 = vld [vmem:[%s3585_s1 + $0x134] ss:$8 sps:$4 sm:$0xff]  }
   0x7   :  { %1661 = vmatpush1.bf16.msra.mxu0 %v2318_v6  ;;  %v2336_v18 = vld [vmem:[%s3585_s1 + $0x30] ss:$8 sps:$4 sm:$0xff]   ;;  %v2338_v20 = vld [vmem:[%s3585_s1 + $0x24] ss:$8 sps:$4 sm:$0xff]   ;;  %v2342_v22 = vld [vmem:[%s3585_s1 + $0x20] ss:$8 sps:$4 sm:$0xff]  }
   0x8   :  { %1704 = vmatpush1.bf16.msra.mxu1 %v2319_v7  ;;  %1662 = vmatprep.subr.bf16.mxu0 %v2320_v8  ;;  %v2337_v19 = vld [vmem:[%s3585_s1 + $0x130] ss:$8 sps:$4 sm:$0xff]   ;;  %v2340_v21 = vld [vmem:[%s3585_s1 + $0x124] ss:$8 sps:$4 sm:$0xff]   ;;  %v2343_v23 = vld [vmem:[%s3585_s1 + $0x120] ss:$8 sps:$4 sm:$0xff]  }
   0x9   :  { %1705 = vmatprep.subr.bf16.mxu1 %v2322_v9  ;;  %v2344_v24 = vld [vmem:[%s3585_s1 + $0x14] ss:$8 sps:$4 sm:$0xff]   ;;  %v2348_v26 = vld [vmem:[%s3585_s1 + $0x10] ss:$8 sps:$4 sm:$0xff]   ;;  %v2350_v28 = vld [vmem:[%s3585_s1 + $0x4] ss:$8 sps:$4 sm:$0xff]  }
   0xa   :  { %v2346_v25 = vld [vmem:[%s3585_s1 + $0x114] ss:$8 sps:$4 sm:$0xff]   ;;  %v2349_v27 = vld [vmem:[%s3585_s1 + $0x110] ss:$8 sps:$4 sm:$0xff]   ;;  %v2352_v29 = vld [vmem:[%s3585_s1 + $0x104] ss:$8 sps:$4 sm:$0xff]  }
   0xb   :  { %1663 = vmatpush1.bf16.msra.mxu0 %v2324_v10  ;;  %v2354_v30 = vld [vmem:[%s3585_s1] ss:$8 sps:$4 sm:$0xff]   ;;  %v2356_v32 = vld [vmem:[%s3585_s1 + $0xf4] ss:$8 sps:$4 sm:$0xff]   ;;  %v2360_v34 = vld [vmem:[%s3585_s1 + $0xf0] ss:$8 sps:$4 sm:$0xff]  }
   0xc   :  { %1706 = vmatpush1.bf16.msra.mxu1 %v2325_v11  ;;  %1664 = vmatprep.subr.bf16.mxu0 %v2326_v12  ;;  %v2355_v31 = vld [vmem:[%s3585_s1 + $0x100] ss:$8 sps:$4 sm:$0xff]   ;;  %v2358_v33 = vld [vmem:[%s3585_s1 + $0x1f4] ss:$8 sps:$4 sm:$0xff]   ;;  %v2361_v35 = vld [vmem:[%s3585_s1 + $0x1f0] ss:$8 sps:$4 sm:$0xff]  }
   0xd   :  { %1707 = vmatprep.subr.bf16.mxu1 %v2328_v13  ;;  %v2362_v36 = vld [vmem:[%s3585_s1 + $0xe4] ss:$8 sps:$4 sm:$0xff]   ;;  %v2366_v38 = vld [vmem:[%s3585_s1 + $0xe0] ss:$8 sps:$4 sm:$0xff]   ;;  %v2368_v40 = vld [vmem:[%s3585_s1 + $0xd4] ss:$8 sps:$4 sm:$0xff]  }
   0xe   :  { %v2364_v37 = vld [vmem:[%s3585_s1 + $0x1e4] ss:$8 sps:$4 sm:$0xff]   ;;  %v2367_v39 = vld [vmem:[%s3585_s1 + $0x1e0] ss:$8 sps:$4 sm:$0xff]   ;;  %v2370_v41 = vld [vmem:[%s3585_s1 + $0x1d4] ss:$8 sps:$4 sm:$0xff]  }
   0xf   :  { %1665 = vmatpush1.bf16.msra.mxu0 %v2330_v14  ;;  %v2372_v42 = vld [vmem:[%s3585_s1 + $0xd0] ss:$8 sps:$4 sm:$0xff]   ;;  %v2374_v44 = vld [vmem:[%s3585_s1 + $0xc4] ss:$8 sps:$4 sm:$0xff]   ;;  %v2378_v46 = vld [vmem:[%s3585_s1 + $0xc0] ss:$8 sps:$4 sm:$0xff]  }
  0x10   :  { %1708 = vmatpush1.bf16.msra.mxu1 %v2331_v15  ;;  %1666 = vmatprep.subr.bf16.mxu0 %v2332_v16  ;;  %v2373_v43 = vld [vmem:[%s3585_s1 + $0x1d0] ss:$8 sps:$4 sm:$0xff]   ;;  %v2376_v45 = vld [vmem:[%s3585_s1 + $0x1c4] ss:$8 sps:$4 sm:$0xff]   ;;  %v2379_v47 = vld [vmem:[%s3585_s1 + $0x1c0] ss:$8 sps:$4 sm:$0xff]  }
  0x11   :  { %1709 = vmatprep.subr.bf16.mxu1 %v2334_v17  ;;  %v14_v48 = vld [vmem:[%s3586_s0] sm:$0xff]  ;;  %v15_v50 = vld [vmem:[%s3586_s0 + $0x8] sm:$0xff]  ;;  %v2380_v52 = vld [vmem:[%s3585_s1 + $0xb4] ss:$8 sps:$4 sm:$0xff]  }
  0x12   :  { %v22_v49 = vld [vmem:[%s3586_s0 + $0x40] sm:$0xff]  ;;  %v23_v51 = vld [vmem:[%s3586_s0 + $0x48] sm:$0xff]  ;;  %v2382_v54 = vld [vmem:[%s3585_s1 + $0x1b4] ss:$8 sps:$4 sm:$0xff]  }
  0x13   :  { %1667 = vmatpush1.bf16.msra.mxu0 %v2336_v18  ;;  %v2033_v53 = vcombine.high %v14_v48, %v22_v49  ;;  %v2035_v55 = vcombine.high %v15_v50, %v23_v51  ;;  %v2384_v56 = vld [vmem:[%s3585_s1 + $0xb0] ss:$8 sps:$4 sm:$0xff]   ;;  %v2386_v58 = vld [vmem:[%s3585_s1 + $0xa4] ss:$8 sps:$4 sm:$0xff]   ;;  %v2390_v60 = vld [vmem:[%s3585_s1 + $0xa0] ss:$8 sps:$4 sm:$0xff]   ;;  %v2032_v8 = vcombine.low %v14_v48, %v22_v49  ;;  %v2034_v9 = vcombine.low %v15_v50, %v23_v51 }
  0x14   :  { %1710 = vmatpush1.bf16.msra.mxu1 %v2337_v19  ;;  %1668 = vmatprep.subr.bf16.mxu0 %v2338_v20  ;;  %v2385_v57 = vld [vmem:[%s3585_s1 + $0x1b0] ss:$8 sps:$4 sm:$0xff]   ;;  %v2388_v59 = vld [vmem:[%s3585_s1 + $0x1a4] ss:$8 sps:$4 sm:$0xff]   ;;  %v2391_v61 = vld [vmem:[%s3585_s1 + $0x1a0] ss:$8 sps:$4 sm:$0xff]  }
  0x15   :  { %1711 = vmatprep.subr.bf16.mxu1 %v2340_v21  ;;  %1690 = vmatprep.mubr.bf16.mxu0 %v2033_v53  ;;  %v2392_v62 = vld [vmem:[%s3585_s1 + $0x94] ss:$8 sps:$4 sm:$0xff]   ;;  %v2396_v0 = vld [vmem:[%s3585_s1 + $0x90] ss:$8 sps:$4 sm:$0xff]   ;;  %v2398_v2 = vld [vmem:[%s3585_s1 + $0x84] ss:$8 sps:$4 sm:$0xff]  }
  0x16   :  { %1733 = vmatprep.mubr.bf16.mxu1 %v2035_v55  ;;  %v2394_v63 = vld [vmem:[%s3585_s1 + $0x194] ss:$8 sps:$4 sm:$0xff]   ;;  %v2397_v1 = vld [vmem:[%s3585_s1 + $0x190] ss:$8 sps:$4 sm:$0xff]   ;;  %v2400_v3 = vld [vmem:[%s3585_s1 + $0x184] ss:$8 sps:$4 sm:$0xff]  }
  0x17   :  { %1669 = vmatpush1.bf16.msra.mxu0 %v2342_v22  ;;  %v2402_v4 = vld [vmem:[%s3585_s1 + $0x80] ss:$8 sps:$4 sm:$0xff]   ;;  %v2406_v6 = vld [vmem:[%s3585_s1 + $0x274] ss:$8 sps:$4 sm:$0xff]   ;;  %v2404_v10 = vld [vmem:[%s3585_s1 + $0x270] ss:$8 sps:$4 sm:$0xff]  }
  0x18   :  { %1712 = vmatpush1.bf16.msra.mxu1 %v2343_v23  ;;  %1670 = vmatprep.subr.bf16.mxu0 %v2344_v24  ;;  %v2403_v5 = vld [vmem:[%s3585_s1 + $0x180] ss:$8 sps:$4 sm:$0xff]   ;;  %v2409_v7 = vld [vmem:[%s3585_s1 + $0x374] ss:$8 sps:$4 sm:$0xff]   ;;  %v2407_v11 = vld [vmem:[%s3585_s1 + $0x370] ss:$8 sps:$4 sm:$0xff]  }
  0x19   :  { %1713 = vmatprep.subr.bf16.mxu1 %v2346_v25  ;;  %v2412_v12 = vld [vmem:[%s3585_s1 + $0x264] ss:$8 sps:$4 sm:$0xff]   ;;  %v2410_v14 = vld [vmem:[%s3585_s1 + $0x260] ss:$8 sps:$4 sm:$0xff]   ;;  %v2418_v16 = vld [vmem:[%s3585_s1 + $0x254] ss:$8 sps:$4 sm:$0xff]  }
  0x1a   :  { %v2415_v13 = vld [vmem:[%s3585_s1 + $0x364] ss:$8 sps:$4 sm:$0xff]   ;;  %v2413_v15 = vld [vmem:[%s3585_s1 + $0x360] ss:$8 sps:$4 sm:$0xff]   ;;  %v2421_v17 = vld [vmem:[%s3585_s1 + $0x354] ss:$8 sps:$4 sm:$0xff]  }
  0x1b   :  { %1671 = vmatpush1.bf16.msra.mxu0 %v2348_v26  ;;  %v2416_v18 = vld [vmem:[%s3585_s1 + $0x250] ss:$8 sps:$4 sm:$0xff]   ;;  %v2424_v20 = vld [vmem:[%s3585_s1 + $0x244] ss:$8 sps:$4 sm:$0xff]   ;;  %v2422_v22 = vld [vmem:[%s3585_s1 + $0x240] ss:$8 sps:$4 sm:$0xff]  }
  0x1c   :  { %1714 = vmatpush1.bf16.msra.mxu1 %v2349_v27  ;;  %1672 = vmatprep.subr.bf16.mxu0 %v2350_v28  ;;  %v2419_v19 = vld [vmem:[%s3585_s1 + $0x350] ss:$8 sps:$4 sm:$0xff]   ;;  %v2427_v21 = vld [vmem:[%s3585_s1 + $0x344] ss:$8 sps:$4 sm:$0xff]   ;;  %v2425_v23 = vld [vmem:[%s3585_s1 + $0x340] ss:$8 sps:$4 sm:$0xff]  }
  0x1d   :  { %1715 = vmatprep.subr.bf16.mxu1 %v2352_v29  ;;  %v2430_v24 = vld [vmem:[%s3585_s1 + $0x234] ss:$8 sps:$4 sm:$0xff]   ;;  %v2428_v26 = vld [vmem:[%s3585_s1 + $0x230] ss:$8 sps:$4 sm:$0xff]   ;;  %v2436_v28 = vld [vmem:[%s3585_s1 + $0x224] ss:$8 sps:$4 sm:$0xff]  }
  0x1e   :  { %v2433_v25 = vld [vmem:[%s3585_s1 + $0x334] ss:$8 sps:$4 sm:$0xff]   ;;  %v2431_v27 = vld [vmem:[%s3585_s1 + $0x330] ss:$8 sps:$4 sm:$0xff]   ;;  %v2439_v29 = vld [vmem:[%s3585_s1 + $0x324] ss:$8 sps:$4 sm:$0xff]  }
  0x1f   :  { %1673 = vmatpush1.bf16.msra.mxu0 %v2354_v30  ;;  %v2434_v30 = vld [vmem:[%s3585_s1 + $0x220] ss:$8 sps:$4 sm:$0xff]   ;;  %v2452_v48 = vld [vmem:[%s3585_s1 + $0x2f0] ss:$8 sps:$4 sm:$0xff]   ;;  %v2460_v50 = vld [vmem:[%s3585_s1 + $0x2e4] ss:$8 sps:$4 sm:$0xff]  }
  0x20   :  { %1716 = vmatpush1.bf16.msra.mxu1 %v2355_v31  ;;  %1674 = vmatprep.subr.bf16.mxu0 %v2356_v32  ;;  %v2437_v31 = vld [vmem:[%s3585_s1 + $0x320] ss:$8 sps:$4 sm:$0xff]   ;;  %v2442_v32 = vld [vmem:[%s3585_s1 + $0x214] ss:$8 sps:$4 sm:$0xff]   ;;  %v2455_v49 = vld [vmem:[%s3585_s1 + $0x3f0] ss:$8 sps:$4 sm:$0xff]  }
  0x21   :  { %1717 = vmatprep.subr.bf16.mxu1 %v2358_v33  ;;  %v2445_v33 = vld [vmem:[%s3585_s1 + $0x314] ss:$8 sps:$4 sm:$0xff]   ;;  %v2463_v51 = vld [vmem:[%s3585_s1 + $0x3e4] ss:$8 sps:$4 sm:$0xff]   ;;  %v2461_v53 = vld [vmem:[%s3585_s1 + $0x3e0] ss:$8 sps:$4 sm:$0xff]  }
  0x22   :  { %v2469_v55 = vld [vmem:[%s3585_s1 + $0x3d4] ss:$8 sps:$4 sm:$0xff]  }
  0x23   :  { %1675 = vmatpush2.bf16.msra.mxu0 %v2360_v34  ;;  %v2440_v34 = vld [vmem:[%s3585_s1 + $0x210] ss:$8 sps:$4 sm:$0xff]  }
  0x24   :  { %1718 = vmatpush2.bf16.msra.mxu1 %v2361_v35  ;;  %1676 = vmatprep.subr.bf16.mxu0 %v2362_v36  ;;  %v2443_v35 = vld [vmem:[%s3585_s1 + $0x310] ss:$8 sps:$4 sm:$0xff]  }
  0x25   :  { %1719 = vmatprep.subr.bf16.mxu1 %v2364_v37  ;;  %v3003_v36 = vld [vmem:[%s3586_s0 + $0x10] sm:$0xff] }
  0x26   :  { %v3008_v37 = vld [vmem:[%s3586_s0 + $0x50] sm:$0xff] }
  0x27   :  { %1677 = vmatpush2.bf16.msra.mxu0 %v2366_v38  ;;  %v3013_v38 = vld [vmem:[%s3586_s0 + $0x18] sm:$0xff] }
  0x28   :  { %1720 = vmatpush2.bf16.msra.mxu1 %v2367_v39  ;;  %1678 = vmatprep.subr.bf16.mxu0 %v2368_v40  ;;  %v3018_v39 = vld [vmem:[%s3586_s0 + $0x58] sm:$0xff]  ;;  %v2448_v40 = vld [vmem:[%s3585_s1 + $0x204] ss:$8 sps:$4 sm:$0xff]  }
  0x29   :  { %1721 = vmatprep.subr.bf16.mxu1 %v2370_v41  ;;  %v2037_v41 = vcombine.high %v3003_v36, %v3008_v37 }
  0x2b   :  { %1679 = vmatpush2.bf16.msra.mxu0 %v2372_v42  ;;  %v2451_v42 = vld [vmem:[%s3585_s1 + $0x304] ss:$8 sps:$4 sm:$0xff]  }
  0x2c   :  { %1722 = vmatpush2.bf16.msra.mxu1 %v2373_v43  ;;  %1680 = vmatprep.subr.bf16.mxu0 %v2374_v44  ;;  %v2039_v43 = vcombine.high %v3013_v38, %v3018_v39  ;;  %v2446_v44 = vld [vmem:[%s3585_s1 + $0x200] ss:$8 sps:$4 sm:$0xff]  }
  0x2d   :  { %1723 = vmatprep.subr.bf16.mxu1 %v2376_v45  ;;  %v2449_v45 = vld [vmem:[%s3585_s1 + $0x300] ss:$8 sps:$4 sm:$0xff]  }
  0x2f   :  { %1681 = vmatpush2.bf16.msra.mxu0 %v2378_v46  ;;  %v2454_v46 = vld [vmem:[%s3585_s1 + $0x2f4] ss:$8 sps:$4 sm:$0xff]  }
  0x30   :  { %1724 = vmatpush2.bf16.msra.mxu1 %v2379_v47  ;;  %1682 = vmatprep.subr.bf16.mxu0 %v2380_v52  ;;  %v2457_v47 = vld [vmem:[%s3585_s1 + $0x3f4] ss:$8 sps:$4 sm:$0xff]   ;;  %v2458_v52 = vld [vmem:[%s3585_s1 + $0x2e0] ss:$8 sps:$4 sm:$0xff]  }
  0x31   :  { %1725 = vmatprep.subr.bf16.mxu1 %v2382_v54  ;;  %v2466_v54 = vld [vmem:[%s3585_s1 + $0x2d4] ss:$8 sps:$4 sm:$0xff]  }
  0x33   :  { %1683 = vmatpush2.bf16.msra.mxu0 %v2384_v56  ;;  %v2464_v56 = vld [vmem:[%s3585_s1 + $0x2d0] ss:$8 sps:$4 sm:$0xff]  }
  0x34   :  { %1726 = vmatpush2.bf16.msra.mxu1 %v2385_v57  ;;  %1684 = vmatprep.subr.bf16.mxu0 %v2386_v58  ;;  %v2467_v57 = vld [vmem:[%s3585_s1 + $0x3d0] ss:$8 sps:$4 sm:$0xff]   ;;  %v2472_v58 = vld [vmem:[%s3585_s1 + $0x2c4] ss:$8 sps:$4 sm:$0xff]  }
  0x35   :  { %1727 = vmatprep.subr.bf16.mxu1 %v2388_v59  ;;  %v2475_v59 = vld [vmem:[%s3585_s1 + $0x3c4] ss:$8 sps:$4 sm:$0xff]  }
  0x37   :  { %1685 = vmatpush2.bf16.msra.mxu0 %v2390_v60  ;;  %v2470_v60 = vld [vmem:[%s3585_s1 + $0x2c0] ss:$8 sps:$4 sm:$0xff]  }
  0x38   :  { %1728 = vmatpush2.bf16.msra.mxu1 %v2391_v61  ;;  %1686 = vmatprep.subr.bf16.mxu0 %v2392_v62  ;;  %v2473_v61 = vld [vmem:[%s3585_s1 + $0x3c0] ss:$8 sps:$4 sm:$0xff]   ;;  %v2478_v62 = vld [vmem:[%s3585_s1 + $0x2b4] ss:$8 sps:$4 sm:$0xff]  }
  0x39   :  { %1729 = vmatprep.subr.bf16.mxu1 %v2394_v63  ;;  %v2481_v63 = vld [vmem:[%s3585_s1 + $0x3b4] ss:$8 sps:$4 sm:$0xff]  }
  0x3b   :  { %1687 = vmatpush2.bf16.msra.mxu0 %v2396_v0  ;;  %v2476_v0 = vld [vmem:[%s3585_s1 + $0x2b0] ss:$8 sps:$4 sm:$0xff]  }
  0x3c   :  { %1730 = vmatpush2.bf16.msra.mxu1 %v2397_v1  ;;  %1688 = vmatprep.subr.bf16.mxu0 %v2398_v2  ;;  %v2479_v1 = vld [vmem:[%s3585_s1 + $0x3b0] ss:$8 sps:$4 sm:$0xff]   ;;  %v2484_v2 = vld [vmem:[%s3585_s1 + $0x2a4] ss:$8 sps:$4 sm:$0xff]  }
  0x3d   :  { %1731 = vmatprep.subr.bf16.mxu1 %v2400_v3  ;;  %v2487_v3 = vld [vmem:[%s3585_s1 + $0x3a4] ss:$8 sps:$4 sm:$0xff]  }
  0x3f   :  { %1689 = vmatpush2.bf16.msra.mxu0 %v2402_v4  ;;  %v2482_v4 = vld [vmem:[%s3585_s1 + $0x2a0] ss:$8 sps:$4 sm:$0xff]  }
  0x40   :  { %1732 = vmatpush2.bf16.msra.mxu1 %v2403_v5  ;;  %1744 = vmatprep.subr.bf16.mxu0 %v2406_v6  ;;  %v2485_v5 = vld [vmem:[%s3585_s1 + $0x3a0] ss:$8 sps:$4 sm:$0xff]   ;;  %v2490_v6 = vld [vmem:[%s3585_s1 + $0x294] ss:$8 sps:$4 sm:$0xff]  }
  0x41   :  { %1787 = vmatprep.subr.bf16.mxu1 %v2409_v7  ;;  %v2493_v7 = vld [vmem:[%s3585_s1 + $0x394] ss:$8 sps:$4 sm:$0xff]  }
  0x42   :  { %1691 = vmatmul.mubr.bf16.vlgmr.msra.gmra.mxu0 %v2032_v8  ;;  %v2488_v8 = vld [vmem:[%s3585_s1 + $0x290] ss:$8 sps:$4 sm:$0xff]  }
  0x43   :  { %1734 = vmatmul.mubr.bf16.vlgmr.msra.gmra.mxu1 %v2034_v9  ;;  %1745 = vmatpush1.bf16.msra.mxu0 %v2404_v10  ;;  %v2491_v9 = vld [vmem:[%s3585_s1 + $0x390] ss:$8 sps:$4 sm:$0xff]   ;;  %v2496_v10 = vld [vmem:[%s3585_s1 + $0x284] ss:$8 sps:$4 sm:$0xff]  }
  0x44   :  { %1788 = vmatpush1.bf16.msra.mxu1 %v2407_v11  ;;  %1746 = vmatprep.subr.bf16.mxu0 %v2412_v12  ;;  %v2499_v11 = vld [vmem:[%s3585_s1 + $0x384] ss:$8 sps:$4 sm:$0xff]   ;;  %v2494_v12 = vld [vmem:[%s3585_s1 + $0x280] ss:$8 sps:$4 sm:$0xff]  }
  0x45   :  { %1789 = vmatprep.subr.bf16.mxu1 %v2415_v13  ;;  %1776 = vmatprep.mubr.bf16.mxu0 %v2037_v41  ;;  %v2497_v13 = vld [vmem:[%s3585_s1 + $0x380] ss:$8 sps:$4 sm:$0xff]   ;;  %v2527_v41 = vld [vmem:[%s3585_s1 + $0x530] ss:$8 sps:$4 sm:$0xff]  }
  0x46   :  { %1819 = vmatprep.mubr.bf16.mxu1 %v2039_v43  ;;  %v2535_v43 = vld [vmem:[%s3585_s1 + $0x524] ss:$8 sps:$4 sm:$0xff]  }
  0x47   :  { %1747 = vmatpush1.bf16.msra.mxu0 %v2410_v14  ;;  %v2502_v14 = vld [vmem:[%s3585_s1 + $0x474] ss:$8 sps:$4 sm:$0xff]  }
  0x48   :  { %1790 = vmatpush1.bf16.msra.mxu1 %v2413_v15  ;;  %1748 = vmatprep.subr.bf16.mxu0 %v2418_v16  ;;  %v2505_v15 = vld [vmem:[%s3585_s1 + $0x574] ss:$8 sps:$4 sm:$0xff]   ;;  %v2036_v16 = vcombine.low %v3003_v36, %v3008_v37  ;;  %v2518_v36 = vld [vmem:[%s3585_s1 + $0x440] ss:$8 sps:$4 sm:$0xff]  }
  0x49   :  { %1791 = vmatprep.subr.bf16.mxu1 %v2421_v17  ;;  %v2038_v17 = vcombine.low %v3013_v38, %v3018_v39  ;;  %v2521_v37 = vld [vmem:[%s3585_s1 + $0x540] ss:$8 sps:$4 sm:$0xff]   ;;  %v2526_v38 = vld [vmem:[%s3585_s1 + $0x434] ss:$8 sps:$4 sm:$0xff]  }
  0x4a   :  { %v2529_v39 = vld [vmem:[%s3585_s1 + $0x534] ss:$8 sps:$4 sm:$0xff]  }
  0x4b   :  { %1749 = vmatpush1.bf16.msra.mxu0 %v2416_v18  ;;  %v2500_v18 = vld [vmem:[%s3585_s1 + $0x470] ss:$8 sps:$4 sm:$0xff]  }
  0x4c   :  { %1792 = vmatpush1.bf16.msra.mxu1 %v2419_v19  ;;  %1750 = vmatprep.subr.bf16.mxu0 %v2424_v20  ;;  %v2503_v19 = vld [vmem:[%s3585_s1 + $0x570] ss:$8 sps:$4 sm:$0xff]   ;;  %v2508_v20 = vld [vmem:[%s3585_s1 + $0x464] ss:$8 sps:$4 sm:$0xff]  }
  0x4d   :  { %1793 = vmatprep.subr.bf16.mxu1 %v2427_v21  ;;  %v2511_v21 = vld [vmem:[%s3585_s1 + $0x564] ss:$8 sps:$4 sm:$0xff]  }
  0x4f   :  { %1751 = vmatpush1.bf16.msra.mxu0 %v2422_v22  ;;  %v2506_v22 = vld [vmem:[%s3585_s1 + $0x460] ss:$8 sps:$4 sm:$0xff]  }
  0x50   :  { %1794 = vmatpush1.bf16.msra.mxu1 %v2425_v23  ;;  %1752 = vmatprep.subr.bf16.mxu0 %v2430_v24  ;;  %v2509_v23 = vld [vmem:[%s3585_s1 + $0x560] ss:$8 sps:$4 sm:$0xff]  }
  0x51   :  { %1795 = vmatprep.subr.bf16.mxu1 %v2433_v25  ;;  %v3163_v24 = vld [vmem:[%s3586_s0 + $0x20] sm:$0xff] }
  0x52   :  { %v3168_v25 = vld [vmem:[%s3586_s0 + $0x60] sm:$0xff] }
  0x53   :  { %1753 = vmatpush1.bf16.msra.mxu0 %v2428_v26  ;;  %v3173_v26 = vld [vmem:[%s3586_s0 + $0x28] sm:$0xff] }
  0x54   :  { %1796 = vmatpush1.bf16.msra.mxu1 %v2431_v27  ;;  %1754 = vmatprep.subr.bf16.mxu0 %v2436_v28  ;;  %v3178_v27 = vld [vmem:[%s3586_s0 + $0x68] sm:$0xff]  ;;  %v2514_v28 = vld [vmem:[%s3585_s1 + $0x454] ss:$8 sps:$4 sm:$0xff]  }
  0x55   :  { %1797 = vmatprep.subr.bf16.mxu1 %v2439_v29  ;;  %v2041_v29 = vcombine.high %v3163_v24, %v3168_v25 }
  0x57   :  { %1755 = vmatpush1.bf16.msra.mxu0 %v2434_v30  ;;  %v2517_v30 = vld [vmem:[%s3585_s1 + $0x554] ss:$8 sps:$4 sm:$0xff]  }
  0x58   :  { %1798 = vmatpush1.bf16.msra.mxu1 %v2437_v31  ;;  %1756 = vmatprep.subr.bf16.mxu0 %v2442_v32  ;;  %v2043_v31 = vcombine.high %v3173_v26, %v3178_v27  ;;  %v2512_v32 = vld [vmem:[%s3585_s1 + $0x450] ss:$8 sps:$4 sm:$0xff]  }
  0x59   :  { %1799 = vmatprep.subr.bf16.mxu1 %v2445_v33  ;;  %v2515_v33 = vld [vmem:[%s3585_s1 + $0x550] ss:$8 sps:$4 sm:$0xff]  }
  0x5b   :  { %1757 = vmatpush1.bf16.msra.mxu0 %v2440_v34  ;;  %v2520_v34 = vld [vmem:[%s3585_s1 + $0x444] ss:$8 sps:$4 sm:$0xff]  }
  0x5c   :  { %1800 = vmatpush1.bf16.msra.mxu1 %v2443_v35  ;;  %1758 = vmatprep.subr.bf16.mxu0 %v2448_v40  ;;  %v2523_v35 = vld [vmem:[%s3585_s1 + $0x544] ss:$8 sps:$4 sm:$0xff]   ;;  %v2524_v40 = vld [vmem:[%s3585_s1 + $0x430] ss:$8 sps:$4 sm:$0xff]  }
  0x5d   :  { %1801 = vmatprep.subr.bf16.mxu1 %v2451_v42  ;;  %v2532_v42 = vld [vmem:[%s3585_s1 + $0x424] ss:$8 sps:$4 sm:$0xff]  }
  0x5f   :  { %1759 = vmatpush1.bf16.msra.mxu0 %v2446_v44  ;;  %v2530_v44 = vld [vmem:[%s3585_s1 + $0x420] ss:$8 sps:$4 sm:$0xff]  }
  0x60   :  { %1802 = vmatpush1.bf16.msra.mxu1 %v2449_v45  ;;  %1760 = vmatprep.subr.bf16.mxu0 %v2454_v46  ;;  %v2533_v45 = vld [vmem:[%s3585_s1 + $0x520] ss:$8 sps:$4 sm:$0xff]   ;;  %v2538_v46 = vld [vmem:[%s3585_s1 + $0x414] ss:$8 sps:$4 sm:$0xff]  }
  0x61   :  { %1803 = vmatprep.subr.bf16.mxu1 %v2457_v47  ;;  %v2541_v47 = vld [vmem:[%s3585_s1 + $0x514] ss:$8 sps:$4 sm:$0xff]  }
  0x63   :  { %1761 = vmatpush2.bf16.msra.mxu0 %v2452_v48  ;;  %v2536_v48 = vld [vmem:[%s3585_s1 + $0x410] ss:$8 sps:$4 sm:$0xff]  }
  0x64   :  { %1804 = vmatpush2.bf16.msra.mxu1 %v2455_v49  ;;  %1762 = vmatprep.subr.bf16.mxu0 %v2460_v50  ;;  %v2539_v49 = vld [vmem:[%s3585_s1 + $0x510] ss:$8 sps:$4 sm:$0xff]   ;;  %v2544_v50 = vld [vmem:[%s3585_s1 + $0x404] ss:$8 sps:$4 sm:$0xff]  }
  0x65   :  { %1805 = vmatprep.subr.bf16.mxu1 %v2463_v51  ;;  %v2547_v51 = vld [vmem:[%s3585_s1 + $0x504] ss:$8 sps:$4 sm:$0xff]  }
  0x67   :  { %1763 = vmatpush2.bf16.msra.mxu0 %v2458_v52  ;;  %v2542_v52 = vld [vmem:[%s3585_s1 + $0x400] ss:$8 sps:$4 sm:$0xff]  }
  0x68   :  { %1806 = vmatpush2.bf16.msra.mxu1 %v2461_v53  ;;  %1764 = vmatprep.subr.bf16.mxu0 %v2466_v54  ;;  %v2545_v53 = vld [vmem:[%s3585_s1 + $0x500] ss:$8 sps:$4 sm:$0xff]   ;;  %v2550_v54 = vld [vmem:[%s3585_s1 + $0x4f4] ss:$8 sps:$4 sm:$0xff]  }
  0x69   :  { %1807 = vmatprep.subr.bf16.mxu1 %v2469_v55  ;;  %v2553_v55 = vld [vmem:[%s3585_s1 + $0x5f4] ss:$8 sps:$4 sm:$0xff]  }
  0x6b   :  { %1765 = vmatpush2.bf16.msra.mxu0 %v2464_v56  ;;  %v2548_v56 = vld [vmem:[%s3585_s1 + $0x4f0] ss:$8 sps:$4 sm:$0xff]  }
  0x6c   :  { %1808 = vmatpush2.bf16.msra.mxu1 %v2467_v57  ;;  %1766 = vmatprep.subr.bf16.mxu0 %v2472_v58  ;;  %v2551_v57 = vld [vmem:[%s3585_s1 + $0x5f0] ss:$8 sps:$4 sm:$0xff]   ;;  %v2556_v58 = vld [vmem:[%s3585_s1 + $0x4e4] ss:$8 sps:$4 sm:$0xff]  }
  0x6d   :  { %1809 = vmatprep.subr.bf16.mxu1 %v2475_v59  ;;  %v2559_v59 = vld [vmem:[%s3585_s1 + $0x5e4] ss:$8 sps:$4 sm:$0xff]  }
  0x6f   :  { %1767 = vmatpush2.bf16.msra.mxu0 %v2470_v60  ;;  %v2554_v60 = vld [vmem:[%s3585_s1 + $0x4e0] ss:$8 sps:$4 sm:$0xff]  }
  0x70   :  { %1810 = vmatpush2.bf16.msra.mxu1 %v2473_v61  ;;  %1768 = vmatprep.subr.bf16.mxu0 %v2478_v62  ;;  %v2557_v61 = vld [vmem:[%s3585_s1 + $0x5e0] ss:$8 sps:$4 sm:$0xff]   ;;  %v2562_v62 = vld [vmem:[%s3585_s1 + $0x4d4] ss:$8 sps:$4 sm:$0xff]  }
  0x71   :  { %1811 = vmatprep.subr.bf16.mxu1 %v2481_v63  ;;  %v2565_v63 = vld [vmem:[%s3585_s1 + $0x5d4] ss:$8 sps:$4 sm:$0xff]  }
  0x73   :  { %1769 = vmatpush2.bf16.msra.mxu0 %v2476_v0  ;;  %v2560_v0 = vld [vmem:[%s3585_s1 + $0x4d0] ss:$8 sps:$4 sm:$0xff]  }
  0x74   :  { %1812 = vmatpush2.bf16.msra.mxu1 %v2479_v1  ;;  %1770 = vmatprep.subr.bf16.mxu0 %v2484_v2  ;;  %v2563_v1 = vld [vmem:[%s3585_s1 + $0x5d0] ss:$8 sps:$4 sm:$0xff]   ;;  %v2568_v2 = vld [vmem:[%s3585_s1 + $0x4c4] ss:$8 sps:$4 sm:$0xff]  }
  0x75   :  { %1813 = vmatprep.subr.bf16.mxu1 %v2487_v3  ;;  %v2571_v3 = vld [vmem:[%s3585_s1 + $0x5c4] ss:$8 sps:$4 sm:$0xff]  }
  0x77   :  { %1771 = vmatpush2.bf16.msra.mxu0 %v2482_v4  ;;  %v2566_v4 = vld [vmem:[%s3585_s1 + $0x4c0] ss:$8 sps:$4 sm:$0xff]  }
  0x78   :  { %1814 = vmatpush2.bf16.msra.mxu1 %v2485_v5  ;;  %1772 = vmatprep.subr.bf16.mxu0 %v2490_v6  ;;  %v2569_v5 = vld [vmem:[%s3585_s1 + $0x5c0] ss:$8 sps:$4 sm:$0xff]   ;;  %v2574_v6 = vld [vmem:[%s3585_s1 + $0x4b4] ss:$8 sps:$4 sm:$0xff]  }
  0x79   :  { %1815 = vmatprep.subr.bf16.mxu1 %v2493_v7  ;;  %v2577_v7 = vld [vmem:[%s3585_s1 + $0x5b4] ss:$8 sps:$4 sm:$0xff]  }
  0x7b   :  { %1773 = vmatpush2.bf16.msra.mxu0 %v2488_v8  ;;  %v2572_v8 = vld [vmem:[%s3585_s1 + $0x4b0] ss:$8 sps:$4 sm:$0xff]  }
  0x7c   :  { %1816 = vmatpush2.bf16.msra.mxu1 %v2491_v9  ;;  %1774 = vmatprep.subr.bf16.mxu0 %v2496_v10  ;;  %v2575_v9 = vld [vmem:[%s3585_s1 + $0x5b0] ss:$8 sps:$4 sm:$0xff]   ;;  %v2580_v10 = vld [vmem:[%s3585_s1 + $0x4a4] ss:$8 sps:$4 sm:$0xff]  }
  0x7d   :  { %1817 = vmatprep.subr.bf16.mxu1 %v2499_v11  ;;  %v2583_v11 = vld [vmem:[%s3585_s1 + $0x5a4] ss:$8 sps:$4 sm:$0xff]  }
  0x7f   :  { %1775 = vmatpush2.bf16.msra.mxu0 %v2494_v12  ;;  %v2578_v12 = vld [vmem:[%s3585_s1 + $0x4a0] ss:$8 sps:$4 sm:$0xff]  }
  0x80   :  { %1818 = vmatpush2.bf16.msra.mxu1 %v2497_v13  ;;  %1830 = vmatprep.subr.bf16.mxu0 %v2502_v14  ;;  %v2581_v13 = vld [vmem:[%s3585_s1 + $0x5a0] ss:$8 sps:$4 sm:$0xff]   ;;  %v2586_v14 = vld [vmem:[%s3585_s1 + $0x494] ss:$8 sps:$4 sm:$0xff]  }
  0x81   :  { %1873 = vmatprep.subr.bf16.mxu1 %v2505_v15  ;;  %v2589_v15 = vld [vmem:[%s3585_s1 + $0x594] ss:$8 sps:$4 sm:$0xff]  }
  0x82   :  { %1777 = vmatmul.mubr.bf16.vlgmr.msra.gmra.mxu0 %v2036_v16  ;;  %v2584_v16 = vld [vmem:[%s3585_s1 + $0x490] ss:$8 sps:$4 sm:$0xff]  }
  0x83   :  { %1820 = vmatmul.mubr.bf16.vlgmr.msra.gmra.mxu1 %v2038_v17  ;;  %1831 = vmatpush1.bf16.msra.mxu0 %v2500_v18  ;;  %v2587_v17 = vld [vmem:[%s3585_s1 + $0x590] ss:$8 sps:$4 sm:$0xff]   ;;  %v2592_v18 = vld [vmem:[%s3585_s1 + $0x484] ss:$8 sps:$4 sm:$0xff]  }
  0x84   :  { %1874 = vmatpush1.bf16.msra.mxu1 %v2503_v19  ;;  %1832 = vmatprep.subr.bf16.mxu0 %v2508_v20  ;;  %v2595_v19 = vld [vmem:[%s3585_s1 + $0x584] ss:$8 sps:$4 sm:$0xff]   ;;  %v2590_v20 = vld [vmem:[%s3585_s1 + $0x480] ss:$8 sps:$4 sm:$0xff]  }
  0x85   :  { %1875 = vmatprep.subr.bf16.mxu1 %v2511_v21  ;;  %1862 = vmatprep.mubr.bf16.mxu0 %v2041_v29  ;;  %v2593_v21 = vld [vmem:[%s3585_s1 + $0x580] ss:$8 sps:$4 sm:$0xff]   ;;  %v2040_v29 = vcombine.low %v3163_v24, %v3168_v25  ;;  %v2596_v24 = vld [vmem:[%s3585_s1 + $0x670] ss:$8 sps:$4 sm:$0xff]  }
  0x86   :  { %1905 = vmatprep.mubr.bf16.mxu1 %v2043_v31  ;;  %v3370_v31 = vld [vmem:[%s3586_s0 + $0x70] sm:$0xff] }
  0x87   :  { %1833 = vmatpush1.bf16.msra.mxu0 %v2506_v22  ;;  %v2598_v22 = vld [vmem:[%s3585_s1 + $0x674] ss:$8 sps:$4 sm:$0xff]   ;;  %v2599_v25 = vld [vmem:[%s3585_s1 + $0x770] ss:$8 sps:$4 sm:$0xff]  }
  0x88   :  { %1876 = vmatpush1.bf16.msra.mxu1 %v2509_v23  ;;  %1834 = vmatprep.subr.bf16.mxu0 %v2514_v28  ;;  %v2601_v23 = vld [vmem:[%s3585_s1 + $0x774] ss:$8 sps:$4 sm:$0xff]  }
  0x89   :  { %1877 = vmatprep.subr.bf16.mxu1 %v2517_v30  ;;  %v3361_v28 = vld [vmem:[%s3586_s0 + $0x30] sm:$0xff]  ;;  %v2042_v30 = vcombine.low %v3173_v26, %v3178_v27  ;;  %v2604_v26 = vld [vmem:[%s3585_s1 + $0x664] ss:$8 sps:$4 sm:$0xff]  }
  0x8a   :  { %v2607_v27 = vld [vmem:[%s3585_s1 + $0x764] ss:$8 sps:$4 sm:$0xff]  }
  0x8b   :  { %1835 = vmatpush1.bf16.msra.mxu0 %v2512_v32  ;;  %v3375_v32 = vld [vmem:[%s3586_s0 + $0x38] sm:$0xff] }
  0x8c   :  { %1878 = vmatpush1.bf16.msra.mxu1 %v2515_v33  ;;  %1836 = vmatprep.subr.bf16.mxu0 %v2520_v34  ;;  %v3380_v33 = vld [vmem:[%s3586_s0 + $0x78] sm:$0xff]  ;;  %v2045_v34 = vcombine.high %v3361_v28, %v3370_v31 }
  0x8d   :  { %1879 = vmatprep.subr.bf16.mxu1 %v2523_v35  ;;  %v2047_v35 = vcombine.high %v3375_v32, %v3380_v33 }
  0x8f   :  { %1837 = vmatpush1.bf16.msra.mxu0 %v2518_v36  ;;  %v2602_v36 = vld [vmem:[%s3585_s1 + $0x660] ss:$8 sps:$4 sm:$0xff]  }
  0x90   :  { %1880 = vmatpush1.bf16.msra.mxu1 %v2521_v37  ;;  %1838 = vmatprep.subr.bf16.mxu0 %v2526_v38  ;;  %v2605_v37 = vld [vmem:[%s3585_s1 + $0x760] ss:$8 sps:$4 sm:$0xff]   ;;  %v2610_v38 = vld [vmem:[%s3585_s1 + $0x654] ss:$8 sps:$4 sm:$0xff]  }
  0x91   :  { %1881 = vmatprep.subr.bf16.mxu1 %v2529_v39  ;;  %v2613_v39 = vld [vmem:[%s3585_s1 + $0x754] ss:$8 sps:$4 sm:$0xff]  }
  0x93   :  { %1839 = vmatpush1.bf16.msra.mxu0 %v2524_v40  ;;  %v2608_v40 = vld [vmem:[%s3585_s1 + $0x650] ss:$8 sps:$4 sm:$0xff]  }
  0x94   :  { %1882 = vmatpush1.bf16.msra.mxu1 %v2527_v41  ;;  %1840 = vmatprep.subr.bf16.mxu0 %v2532_v42  ;;  %v2611_v41 = vld [vmem:[%s3585_s1 + $0x750] ss:$8 sps:$4 sm:$0xff]   ;;  %v2616_v42 = vld [vmem:[%s3585_s1 + $0x644] ss:$8 sps:$4 sm:$0xff]  }
  0x95   :  { %1883 = vmatprep.subr.bf16.mxu1 %v2535_v43  ;;  %v2619_v43 = vld [vmem:[%s3585_s1 + $0x744] ss:$8 sps:$4 sm:$0xff]  }
  0x97   :  { %1841 = vmatpush1.bf16.msra.mxu0 %v2530_v44  ;;  %v2614_v44 = vld [vmem:[%s3585_s1 + $0x640] ss:$8 sps:$4 sm:$0xff]  }
  0x98   :  { %1884 = vmatpush1.bf16.msra.mxu1 %v2533_v45  ;;  %1842 = vmatprep.subr.bf16.mxu0 %v2538_v46  ;;  %v2617_v45 = vld [vmem:[%s3585_s1 + $0x740] ss:$8 sps:$4 sm:$0xff]   ;;  %v2622_v46 = vld [vmem:[%s3585_s1 + $0x634] ss:$8 sps:$4 sm:$0xff]  }
  0x99   :  { %1885 = vmatprep.subr.bf16.mxu1 %v2541_v47  ;;  %v2625_v47 = vld [vmem:[%s3585_s1 + $0x734] ss:$8 sps:$4 sm:$0xff]  }
  0x9b   :  { %1843 = vmatpush1.bf16.msra.mxu0 %v2536_v48  ;;  %v2620_v48 = vld [vmem:[%s3585_s1 + $0x630] ss:$8 sps:$4 sm:$0xff]  }
  0x9c   :  { %1886 = vmatpush1.bf16.msra.mxu1 %v2539_v49  ;;  %1844 = vmatprep.subr.bf16.mxu0 %v2544_v50  ;;  %v2623_v49 = vld [vmem:[%s3585_s1 + $0x730] ss:$8 sps:$4 sm:$0xff]   ;;  %v2628_v50 = vld [vmem:[%s3585_s1 + $0x624] ss:$8 sps:$4 sm:$0xff]  }
  0x9d   :  { %1887 = vmatprep.subr.bf16.mxu1 %v2547_v51  ;;  %v2631_v51 = vld [vmem:[%s3585_s1 + $0x724] ss:$8 sps:$4 sm:$0xff]  }
  0x9f   :  { %1845 = vmatpush1.bf16.msra.mxu0 %v2542_v52  ;;  %v2626_v52 = vld [vmem:[%s3585_s1 + $0x620] ss:$8 sps:$4 sm:$0xff]  }
  0xa0   :  { %1888 = vmatpush1.bf16.msra.mxu1 %v2545_v53  ;;  %1846 = vmatprep.subr.bf16.mxu0 %v2550_v54  ;;  %v2629_v53 = vld [vmem:[%s3585_s1 + $0x720] ss:$8 sps:$4 sm:$0xff]   ;;  %v2634_v54 = vld [vmem:[%s3585_s1 + $0x614] ss:$8 sps:$4 sm:$0xff]  }
  0xa1   :  { %1889 = vmatprep.subr.bf16.mxu1 %v2553_v55  ;;  %v2637_v55 = vld [vmem:[%s3585_s1 + $0x714] ss:$8 sps:$4 sm:$0xff]  }
  0xa3   :  { %1847 = vmatpush2.bf16.msra.mxu0 %v2548_v56  ;;  %v2632_v56 = vld [vmem:[%s3585_s1 + $0x610] ss:$8 sps:$4 sm:$0xff]  }
  0xa4   :  { %1890 = vmatpush2.bf16.msra.mxu1 %v2551_v57  ;;  %1848 = vmatprep.subr.bf16.mxu0 %v2556_v58  ;;  %v2635_v57 = vld [vmem:[%s3585_s1 + $0x710] ss:$8 sps:$4 sm:$0xff]   ;;  %v2640_v58 = vld [vmem:[%s3585_s1 + $0x604] ss:$8 sps:$4 sm:$0xff]  }
  0xa5   :  { %1891 = vmatprep.subr.bf16.mxu1 %v2559_v59  ;;  %v2643_v59 = vld [vmem:[%s3585_s1 + $0x704] ss:$8 sps:$4 sm:$0xff]  }
  0xa7   :  { %1849 = vmatpush2.bf16.msra.mxu0 %v2554_v60  ;;  %v2638_v60 = vld [vmem:[%s3585_s1 + $0x600] ss:$8 sps:$4 sm:$0xff]  }
  0xa8   :  { %1892 = vmatpush2.bf16.msra.mxu1 %v2557_v61  ;;  %1850 = vmatprep.subr.bf16.mxu0 %v2562_v62  ;;  %v2641_v61 = vld [vmem:[%s3585_s1 + $0x700] ss:$8 sps:$4 sm:$0xff]   ;;  %v2646_v62 = vld [vmem:[%s3585_s1 + $0x6f4] ss:$8 sps:$4 sm:$0xff]  }
  0xa9   :  { %1893 = vmatprep.subr.bf16.mxu1 %v2565_v63  ;;  %v2649_v63 = vld [vmem:[%s3585_s1 + $0x7f4] ss:$8 sps:$4 sm:$0xff]  }
  0xab   :  { %1851 = vmatpush2.bf16.msra.mxu0 %v2560_v0  ;;  %v2644_v0 = vld [vmem:[%s3585_s1 + $0x6f0] ss:$8 sps:$4 sm:$0xff]  }
  0xac   :  { %1894 = vmatpush2.bf16.msra.mxu1 %v2563_v1  ;;  %1852 = vmatprep.subr.bf16.mxu0 %v2568_v2  ;;  %v2647_v1 = vld [vmem:[%s3585_s1 + $0x7f0] ss:$8 sps:$4 sm:$0xff]   ;;  %v2652_v2 = vld [vmem:[%s3585_s1 + $0x6e4] ss:$8 sps:$4 sm:$0xff]  }
  0xad   :  { %1895 = vmatprep.subr.bf16.mxu1 %v2571_v3  ;;  %v2655_v3 = vld [vmem:[%s3585_s1 + $0x7e4] ss:$8 sps:$4 sm:$0xff]  }
  0xaf   :  { %1853 = vmatpush2.bf16.msra.mxu0 %v2566_v4  ;;  %v2650_v4 = vld [vmem:[%s3585_s1 + $0x6e0] ss:$8 sps:$4 sm:$0xff]  }
  0xb0   :  { %1896 = vmatpush2.bf16.msra.mxu1 %v2569_v5  ;;  %1854 = vmatprep.subr.bf16.mxu0 %v2574_v6  ;;  %v2653_v5 = vld [vmem:[%s3585_s1 + $0x7e0] ss:$8 sps:$4 sm:$0xff]   ;;  %v2658_v6 = vld [vmem:[%s3585_s1 + $0x6d4] ss:$8 sps:$4 sm:$0xff]  }
  0xb1   :  { %1897 = vmatprep.subr.bf16.mxu1 %v2577_v7  ;;  %v2661_v7 = vld [vmem:[%s3585_s1 + $0x7d4] ss:$8 sps:$4 sm:$0xff]  }
  0xb3   :  { %1855 = vmatpush2.bf16.msra.mxu0 %v2572_v8  ;;  %v2656_v8 = vld [vmem:[%s3585_s1 + $0x6d0] ss:$8 sps:$4 sm:$0xff]  }
  0xb4   :  { %1898 = vmatpush2.bf16.msra.mxu1 %v2575_v9  ;;  %1856 = vmatprep.subr.bf16.mxu0 %v2580_v10  ;;  %v2659_v9 = vld [vmem:[%s3585_s1 + $0x7d0] ss:$8 sps:$4 sm:$0xff]   ;;  %v2664_v10 = vld [vmem:[%s3585_s1 + $0x6c4] ss:$8 sps:$4 sm:$0xff]  }
  0xb5   :  { %1899 = vmatprep.subr.bf16.mxu1 %v2583_v11  ;;  %v2667_v11 = vld [vmem:[%s3585_s1 + $0x7c4] ss:$8 sps:$4 sm:$0xff]  }
  0xb7   :  { %1857 = vmatpush2.bf16.msra.mxu0 %v2578_v12  ;;  %v2662_v12 = vld [vmem:[%s3585_s1 + $0x6c0] ss:$8 sps:$4 sm:$0xff]  }
  0xb8   :  { %1900 = vmatpush2.bf16.msra.mxu1 %v2581_v13  ;;  %1858 = vmatprep.subr.bf16.mxu0 %v2586_v14  ;;  %v2665_v13 = vld [vmem:[%s3585_s1 + $0x7c0] ss:$8 sps:$4 sm:$0xff]   ;;  %v2670_v14 = vld [vmem:[%s3585_s1 + $0x6b4] ss:$8 sps:$4 sm:$0xff]  }
  0xb9   :  { %1901 = vmatprep.subr.bf16.mxu1 %v2589_v15  ;;  %v2673_v15 = vld [vmem:[%s3585_s1 + $0x7b4] ss:$8 sps:$4 sm:$0xff]  }
  0xbb   :  { %1859 = vmatpush2.bf16.msra.mxu0 %v2584_v16  ;;  %v2668_v16 = vld [vmem:[%s3585_s1 + $0x6b0] ss:$8 sps:$4 sm:$0xff]  }
  0xbc   :  { %1902 = vmatpush2.bf16.msra.mxu1 %v2587_v17  ;;  %1860 = vmatprep.subr.bf16.mxu0 %v2592_v18  ;;  %v2671_v17 = vld [vmem:[%s3585_s1 + $0x7b0] ss:$8 sps:$4 sm:$0xff]   ;;  %v2676_v18 = vld [vmem:[%s3585_s1 + $0x6a4] ss:$8 sps:$4 sm:$0xff]  }
  0xbd   :  { %1903 = vmatprep.subr.bf16.mxu1 %v2595_v19  ;;  %v2679_v19 = vld [vmem:[%s3585_s1 + $0x7a4] ss:$8 sps:$4 sm:$0xff]  }
  0xbf   :  { %1861 = vmatpush2.bf16.msra.mxu0 %v2590_v20  ;;  %v2674_v20 = vld [vmem:[%s3585_s1 + $0x6a0] ss:$8 sps:$4 sm:$0xff]  }
  0xc0   :  { %1904 = vmatpush2.bf16.msra.mxu1 %v2593_v21  ;;  %1916 = vmatprep.subr.bf16.mxu0 %v2598_v22  ;;  %v2677_v21 = vld [vmem:[%s3585_s1 + $0x7a0] ss:$8 sps:$4 sm:$0xff]   ;;  %v2682_v22 = vld [vmem:[%s3585_s1 + $0x694] ss:$8 sps:$4 sm:$0xff]  }
  0xc1   :  { %1959 = vmatprep.subr.bf16.mxu1 %v2601_v23  ;;  %v2685_v23 = vld [vmem:[%s3585_s1 + $0x794] ss:$8 sps:$4 sm:$0xff]  }
  0xc2   :  { %1863 = vmatmul.mubr.bf16.vlgmr.msra.gmra.mxu0 %v2040_v29  ;;  %v2680_v29 = vld [vmem:[%s3585_s1 + $0x690] ss:$8 sps:$4 sm:$0xff]  }
  0xc3   :  { %1906 = vmatmul.mubr.bf16.vlgmr.msra.gmra.mxu1 %v2042_v30  ;;  %1917 = vmatpush1.bf16.msra.mxu0 %v2596_v24  ;;  %v2683_v30 = vld [vmem:[%s3585_s1 + $0x790] ss:$8 sps:$4 sm:$0xff]   ;;  %v2688_v24 = vld [vmem:[%s3585_s1 + $0x684] ss:$8 sps:$4 sm:$0xff]  }
  0xc4   :  { %1960 = vmatpush1.bf16.msra.mxu1 %v2599_v25  ;;  %1918 = vmatprep.subr.bf16.mxu0 %v2604_v26  ;;  %v2691_v25 = vld [vmem:[%s3585_s1 + $0x784] ss:$8 sps:$4 sm:$0xff]   ;;  %v2686_v26 = vld [vmem:[%s3585_s1 + $0x680] ss:$8 sps:$4 sm:$0xff]  }
  0xc5   :  { %1961 = vmatprep.subr.bf16.mxu1 %v2607_v27  ;;  %1948 = vmatprep.mubr.bf16.mxu0 %v2045_v34  ;;  %v2689_v27 = vld [vmem:[%s3585_s1 + $0x780] ss:$8 sps:$4 sm:$0xff]   ;;  %v2044_v34 = vcombine.low %v3361_v28, %v3370_v31 }
  0xc6   :  { %1991 = vmatprep.mubr.bf16.mxu1 %v2047_v35  ;;  %v2046_v35 = vcombine.low %v3375_v32, %v3380_v33  ;;  %v286_v31 = vld [vmem:[%s3587_s2] sm:$0x3] }
  0xc7   :  { %1919 = vmatpush1.bf16.msra.mxu0 %v2602_v36 }
  0xc8   :  { %1962 = vmatpush1.bf16.msra.mxu1 %v2605_v37  ;;  %1920 = vmatprep.subr.bf16.mxu0 %v2610_v38 }
  0xc9   :  { %1963 = vmatprep.subr.bf16.mxu1 %v2613_v39 }
  0xcb   :  { %1921 = vmatpush1.bf16.msra.mxu0 %v2608_v40 }
  0xcc   :  { %1964 = vmatpush1.bf16.msra.mxu1 %v2611_v41  ;;  %1922 = vmatprep.subr.bf16.mxu0 %v2616_v42  ;;  %v288_v42 = vlaneseq }
  0xcd   :  { %1965 = vmatprep.subr.bf16.mxu1 %v2619_v43 }
  0xcf   :  { %1923 = vmatpush1.bf16.msra.mxu0 %v2614_v44 }
  0xd0   :  { %1966 = vmatpush1.bf16.msra.mxu1 %v2617_v45  ;;  %1924 = vmatprep.subr.bf16.mxu0 %v2622_v46  ;;  %v289_v45 = vshrl.u32 %v288_v42, 7 }
  0xd1   :  { %1967 = vmatprep.subr.bf16.mxu1 %v2625_v47 }
  0xd2   :  { %v290_v28 = vsub.s32 0, %v289_v45 }
  0xd3   :  { %1925 = vmatpush1.bf16.msra.mxu0 %v2620_v48  ;;  %v294_v48 = vsub.s32 1, %v289_v45 }
  0xd4   :  { %1968 = vmatpush1.bf16.msra.mxu1 %v2623_v49  ;;  %1926 = vmatprep.subr.bf16.mxu0 %v2628_v50  ;;  %v291_v49 = vrot.slane %v286_v31, %v290_v28 }
  0xd5   :  { %1969 = vmatprep.subr.bf16.mxu1 %v2631_v51 }
  0xd7   :  { %1927 = vmatpush1.bf16.msra.mxu0 %v2626_v52  ;;  %v295_v52 = vrot.slane %v286_v31, %v294_v48 }
  0xd8   :  { %1970 = vmatpush1.bf16.msra.mxu1 %v2629_v53  ;;  %1928 = vmatprep.subr.bf16.mxu0 %v2634_v54 }
  0xd9   :  { %1971 = vmatprep.subr.bf16.mxu1 %v2637_v55 }
  0xdb   :  { %1929 = vmatpush1.bf16.msra.mxu0 %v2632_v56 }
  0xdc   :  { %1972 = vmatpush1.bf16.msra.mxu1 %v2635_v57  ;;  %1930 = vmatprep.subr.bf16.mxu0 %v2640_v58 }
  0xdd   :  { %1973 = vmatprep.subr.bf16.mxu1 %v2643_v59 }
  0xdf   :  { %1931 = vmatpush1.bf16.msra.mxu0 %v2638_v60 }
  0xe0   :  { %1974 = vmatpush1.bf16.msra.mxu1 %v2641_v61  ;;  %1932 = vmatprep.subr.bf16.mxu0 %v2646_v62 }
  0xe1   :  { %1975 = vmatprep.subr.bf16.mxu1 %v2649_v63 }
  0xe3   :  { %1933 = vmatpush2.bf16.msra.mxu0 %v2644_v0 }
  0xe4   :  { %1976 = vmatpush2.bf16.msra.mxu1 %v2647_v1  ;;  %1934 = vmatprep.subr.bf16.mxu0 %v2652_v2 }
  0xe5   :  { %1977 = vmatprep.subr.bf16.mxu1 %v2655_v3 }
  0xe7   :  { %1935 = vmatpush2.bf16.msra.mxu0 %v2650_v4 }
  0xe8   :  { %1978 = vmatpush2.bf16.msra.mxu1 %v2653_v5  ;;  %1936 = vmatprep.subr.bf16.mxu0 %v2658_v6 }
  0xe9   :  { %1979 = vmatprep.subr.bf16.mxu1 %v2661_v7 }
  0xeb   :  { %1937 = vmatpush2.bf16.msra.mxu0 %v2656_v8 }
  0xec   :  { %1980 = vmatpush2.bf16.msra.mxu1 %v2659_v9  ;;  %1938 = vmatprep.subr.bf16.mxu0 %v2664_v10 }
  0xed   :  { %1981 = vmatprep.subr.bf16.mxu1 %v2667_v11 }
  0xef   :  { %1939 = vmatpush2.bf16.msra.mxu0 %v2662_v12 }
  0xf0   :  { %1982 = vmatpush2.bf16.msra.mxu1 %v2665_v13  ;;  %1940 = vmatprep.subr.bf16.mxu0 %v2670_v14 }
  0xf1   :  { %1983 = vmatprep.subr.bf16.mxu1 %v2673_v15 }
  0xf3   :  { %1941 = vmatpush2.bf16.msra.mxu0 %v2668_v16 }
  0xf4   :  { %1984 = vmatpush2.bf16.msra.mxu1 %v2671_v17  ;;  %1942 = vmatprep.subr.bf16.mxu0 %v2676_v18 }
  0xf5   :  { %1985 = vmatprep.subr.bf16.mxu1 %v2679_v19 }
  0xf7   :  { %1943 = vmatpush2.bf16.msra.mxu0 %v2674_v20 }
  0xf8   :  { %1986 = vmatpush2.bf16.msra.mxu1 %v2677_v21  ;;  %1944 = vmatprep.subr.bf16.mxu0 %v2682_v22 }
  0xf9   :  { %1987 = vmatprep.subr.bf16.mxu1 %v2685_v23 }
  0xfb   :  { %1945 = vmatpush2.bf16.msra.mxu0 %v2680_v29 }
  0xfc   :  { %1988 = vmatpush2.bf16.msra.mxu1 %v2683_v30  ;;  %1946 = vmatprep.subr.bf16.mxu0 %v2688_v24 }
  0xfd   :  { %1989 = vmatprep.subr.bf16.mxu1 %v2691_v25 }
  0xff   :  { %1947 = vmatpush2.bf16.msra.mxu0 %v2686_v26 }
 0x100   :  { %1990 = vmatpush2.bf16.msra.mxu1 %v2689_v27 }
 0x102   :  { %1949 = vmatmul.mubr.bf16.vlgmr.msra.gmra.mxu0 %v2044_v34  ;;  %v1692_v36 = vpop.f32.mrf.mxu0 }
 0x103   :  { %1992 = vmatmul.mubr.bf16.vlgmr.msra.gmra.mxu1 %v2046_v35  ;;  %v1735_v37 = vpop.f32.mrf.mxu1  ;;  %v1693_v53 = vadd.f32 %v1692_v36, %v291_v49 }
 0x104   :  { %v1694_v38 = vpop.f32.mrf.mxu0 }
 0x105   :  { %v1737_v39 = vpop.f32.mrf.mxu1  ;;  %v1695_v56 = vadd.f32 %v1694_v38, %v295_v52  ;;  %v1736_v59 = vadd.f32 %v1735_v37, %v1693_v53 }
 0x106   :  { %v1696_v40 = vpop.f32.mrf.mxu0 }
 0x107   :  { %v1739_v41 = vpop.f32.mrf.mxu1  ;;  %v1697_v60 = vadd.f32 %v1696_v40, %v291_v49  ;;  %v1738_v61 = vadd.f32 %v1737_v39, %v1695_v56 }
 0x108   :  { %v1698_v43 = vpop.f32.mrf.mxu0 }
 0x109   :  { %v1741_v44 = vpop.f32.mrf.mxu1  ;;  %v1699_v63 = vadd.f32 %v1698_v43, %v295_v52  ;;  %v1740_v2 = vadd.f32 %v1739_v41, %v1697_v60 }
 0x10b   :  { %v1742_v6 = vadd.f32 %v1741_v44, %v1699_v63 }
 0x142   :  { %v1778_v46 = vpop.f32.mrf.mxu0 }
 0x143   :  { %v1821_v47 = vpop.f32.mrf.mxu1  ;;  %v1779_v62 = vadd.f32 %v1778_v46, %v1736_v59 }
 0x144   :  { %v1780_v32 = vpop.f32.mrf.mxu0 }
 0x145   :  { %v1823_v33 = vpop.f32.mrf.mxu1  ;;  %v1781_v3 = vadd.f32 %v1780_v32, %v1738_v61  ;;  %v1822_v4 = vadd.f32 %v1821_v47, %v1779_v62 }
 0x146   :  { %v1782_v50 = vpop.f32.mrf.mxu0 }
 0x147   :  { %v1825_v51 = vpop.f32.mrf.mxu1  ;;  %v1783_v5 = vadd.f32 %v1782_v50, %v1740_v2  ;;  %v1824_v9 = vadd.f32 %v1823_v33, %v1781_v3 }
 0x148   :  { %v1784_v54 = vpop.f32.mrf.mxu0 }
 0x149   :  { %v1827_v55 = vpop.f32.mrf.mxu1  ;;  %v1785_v11 = vadd.f32 %v1784_v54, %v1742_v6  ;;  %v1826_v12 = vadd.f32 %v1825_v51, %v1783_v5 }
 0x14b   :  { %v1828_v18 = vadd.f32 %v1827_v55, %v1785_v11 }
 0x182   :  { %v1864_v57 = vpop.f32.mrf.mxu0 }
 0x183   :  { %v1907_v58 = vpop.f32.mrf.mxu1  ;;  %v1865_v10 = vadd.f32 %v1864_v57, %v1822_v4 }
 0x184   :  { %v1866_v0 = vpop.f32.mrf.mxu0 }
 0x185   :  { %v1909_v1 = vpop.f32.mrf.mxu1  ;;  %v1867_v13 = vadd.f32 %v1866_v0, %v1824_v9  ;;  %v1908_v16 = vadd.f32 %v1907_v58, %v1865_v10 }
 0x186   :  { %v1868_v7 = vpop.f32.mrf.mxu0 }
 0x187   :  { %v1911_v8 = vpop.f32.mrf.mxu1  ;;  %v1869_v17 = vadd.f32 %v1868_v7, %v1826_v12  ;;  %v1910_v21 = vadd.f32 %v1909_v1, %v1867_v13 }
 0x188   :  { %v1870_v14 = vpop.f32.mrf.mxu0 }
 0x189   :  { %v1913_v15 = vpop.f32.mrf.mxu1  ;;  %v1871_v23 = vadd.f32 %v1870_v14, %v1828_v18  ;;  %v1912_v24 = vadd.f32 %v1911_v8, %v1869_v17 }
 0x18b   :  { %v1914_v38 = vadd.f32 %v1913_v15, %v1871_v23 }
 0x1c2   :  { %v1950_v19 = vpop.f32.mrf.mxu0 }
 0x1c3   :  { %v1993_v20 = vpop.f32.mrf.mxu1  ;;  %v1951_v22 = vadd.f32 %v1950_v19, %v1908_v16 }
 0x1c4   :  { %v1952_v29 = vpop.f32.mrf.mxu0 }
 0x1c5   :  { %v1995_v30 = vpop.f32.mrf.mxu1  ;;  %v1994_v25 = vadd.f32 %v1993_v20, %v1951_v22  ;;  %v1953_v26 = vadd.f32 %v1952_v29, %v1910_v21 }
 0x1c6   :  { %v1954_v27 = vpop.f32.mrf.mxu0 }
 0x1c7   :  { %v2006_v34 = vmul.f32 0.2, %v1994_v25  ;;  %v1996_v35 = vadd.f32 %v1995_v30, %v1953_v26  ;;  %v1955_v36 = vadd.f32 %v1954_v27, %v1912_v24  ;;  %v1997_v37 = vpop.f32.mrf.mxu1  ;;  %vm2002_vm0 = vcmp.gt.f32.partialorder %v1994_v25, 0.0 }
 0x1c8   :  { %v1956_v39 = vpop.f32.mrf.mxu0 }
 0x1c9   :  { %vm2003_vm1 = vcmp.gt.f32.partialorder %v1996_v35, 0.0  ;;  %v2007_v40 = vmul.f32 0.2, %v1996_v35  ;;  %v1998_v41 = vadd.f32 %v1997_v37, %v1955_v36  ;;  %v1957_v42 = vadd.f32 %v1956_v39, %v1914_v38  ;;  %v1999_v45 = vpop.f32.mrf.mxu1 }
 0x1ca   :  { %v2010_v43 = vsel %vm2002_vm0, %v1994_v25, %v2006_v34 }
 0x1cb   :  { %v2011_v44 = vsel %vm2003_vm1, %v1996_v35, %v2007_v40  ;;  %v2008_v47 = vmul.f32 0.2, %v1998_v41  ;;  %v2000_v28 = vadd.f32 %v1999_v45, %v1957_v42  ;;  %vm2004_vm2 = vcmp.gt.f32.partialorder %v1998_v41, 0.0 }
 0x1cc   :  { %v2306_v46 = vpack.c.bf16 %v2011_v44, %v2010_v43 }
 0x1cd   :  { %vm2005_vm3 = vcmp.gt.f32.partialorder %v2000_v28, 0.0  ;;  %v2009_v31 = vmul.f32 0.2, %v2000_v28  ;;  %v2012_v32 = vsel %vm2004_vm2, %v1998_v41, %v2008_v47 }
 0x1ce   :  { %2026 = vst [vmem:[%s3588_s3] sm:$0xff] %v2306_v46 }
 0x1cf   :  { %v2013_v33 = vsel %vm2005_vm3, %v2000_v28, %v2009_v31 }
 0x1d0   :  { %v2307_v48 = vpack.c.bf16 %v2013_v33, %v2012_v32 }
 0x1d2   :  { %2027 = vst [vmem:[%s3588_s3 + $0x8] sm:$0xff] %v2307_v48 }

// kernel: generator_forward.10
= control target key start
LH: loop header
LB: loop body
LE: loop exit
PB: predicated region body
PF: predicated region fallthrough
CT: control target
= control target key end

     0   :  { %s3865_s12 = smov 0   ;;  %s3867_s13 = smov 0   ;;  %s4877_s0 = inlined_call_operand.vmem [shape: bf16[32,1024], index: 0, kind: input, shape index: {}]   ;;  %s4878_s1 = inlined_call_operand.vmem [shape: bf16[1024,1024], index: 1, kind: input, shape index: {}]   ;;  %s4879_s2 = inlined_call_operand.vmem [shape: f32[1,1024], index: 2, kind: input, shape index: {}]   ;;  %s4880_s3 = inlined_call_operand.vmem [shape: bf16[32,1024], index: 3, kind: output, shape index: {}]  }
   0x1   :  { %s3869_s14 = smov 0   ;;  %s3871_s15 = smov 0  }
   0x2   :  { %s3873_s16 = smov 0  }
   0x3 LB: > { %s22_s17 = sadd.s32 1, %s3839_s15  ;;  %s3074_s18 = sadd.s32 4294967295, %s3843_s16   ;;  %s3843_s16 = sphi %s3873_s16, %s13_s16   ;;  %s3839_s15 = sphi %s3871_s15, %s4885_s15   ;;  %s3835_s14 = sphi %s3869_s14, %s4884_s14   ;;  %s3831_s13 = sphi %s3867_s13, %s4883_s13   ;;  %s3827_s12 = sphi %s3865_s12, %s4882_s12  }
   0x4   : > { %p23_p0 = scmp.ge.s32.totalorder %s22_s17, 2  ;;  %p65_p1 = scmp.ne.s32.totalorder %s3831_s13, %s3827_s12 }
   0x5   : > { %p66_p2 = scmp.eq.s32.totalorder %s3843_s16, 0  ;;  %p123_p4 = scmp.eq.s32.totalorder %s3074_s18, 1 }
   0x6   : > { %s4887_s17 = smov (%p23_p0, %s22_s17), 0  ;;  %s58_s20 = sadd.s32 1, %s3831_s13 }
   0x7   : > { %p67_p3 = por %p66_p2, %p65_p1  ;;  %s55_s19 = ssub.s32 %s3839_s15, %s4887_s17 }
   0x8   : > { %p56_p5 = scmp.eq.s32.totalorder %s55_s19, 0  ;;  %p3900_p6 = por %p123_p4, %p65_p1 }
   0x9   : > { %p3078_p7 = scmp.ge.s32.totalorder %s3843_s16, 2 }
   0xa   : > { %s3905_s22 = scalar_select %p56_p5, %s3831_s13, %s58_s20  }
   0xb   : > { %155 = sbr.rel (%p3078_p7) target bundleno = 148 (0x94), region = 20 }
  0x10   : > { %158 = sbr.rel (!%p67_p3) target bundleno = 148 (0x94), region = 24  ;;  %s160_s23 = sand.u32 (%p67_p3), 1, %s3831_s13  }
  0x11   : > { %s3371_s24 = sshll.u32 (%p67_p3), %s3839_s15, 4  ;;  %s3079_s25 = sshll.u32 (%p67_p3), %s160_s23, 11 }
  0x12   : > { %s3913_s28 = scalar_lea.vmem (%p67_p3), %s4878_s1, %s3371_s24  ;;  %s3918_s29 = scalar_lea.vmem (%p67_p3), [#allocation2], %s3079_s25 }
  0x13   : > { %v178_v0 = vld [vmem:[%s3913_s28] sm:$0xff] (%p67_p3)  ;;  %v180_v1 = vld [vmem:[%s3913_s28 + $0x8] sm:$0xff] (%p67_p3) }
  0x14   : > { %v182_v2 = vld [vmem:[%s3913_s28 + $0x20] sm:$0xff] (%p67_p3)  ;;  %179 = vst [vmem:[%s3918_s29] sm:$0xff] (%p67_p3), %v178_v0  ;;  %181 = vst [vmem:[%s3918_s29 + $0x8] sm:$0xff] (%p67_p3), %v180_v1  ;;  %v184_v3 = vld [vmem:[%s3913_s28 + $0x28] sm:$0xff] (%p67_p3) }
  0x15   : > { %183 = vst [vmem:[%s3918_s29 + $0x10] sm:$0xff] %v182_v2  ;;  %v186_v4 = vld [vmem:[%s3913_s28 + $0x40] sm:$0xff]  ;;  %v188_v5 = vld [vmem:[%s3913_s28 + $0x48] sm:$0xff]  ;;  %185 = vst [vmem:[%s3918_s29 + $0x18] sm:$0xff] %v184_v3 }
  0x16   : > { %187 = vst [vmem:[%s3918_s29 + $0x20] sm:$0xff] %v186_v4  ;;  %189 = vst [vmem:[%s3918_s29 + $0x28] sm:$0xff] %v188_v5  ;;  %v190_v6 = vld [vmem:[%s3913_s28 + $0x60] sm:$0xff]  ;;  %v192_v7 = vld [vmem:[%s3913_s28 + $0x68] sm:$0xff] }
  0x17   : > { %v194_v8 = vld [vmem:[%s3913_s28 + $0x80] sm:$0xff]  ;;  %191 = vst [vmem:[%s3918_s29 + $0x30] sm:$0xff] %v190_v6  ;;  %193 = vst [vmem:[%s3918_s29 + $0x38] sm:$0xff] %v192_v7  ;;  %v196_v9 = vld [vmem:[%s3913_s28 + $0x88] sm:$0xff] }
  0x18   : > { %195 = vst [vmem:[%s3918_s29 + $0x40] sm:$0xff] %v194_v8  ;;  %v198_v10 = vld [vmem:[%s3913_s28 + $0xa0] sm:$0xff]  ;;  %v200_v11 = vld [vmem:[%s3913_s28 + $0xa8] sm:$0xff]  ;;  %197 = vst [vmem:[%s3918_s29 + $0x48] sm:$0xff] %v196_v9 }
  0x19   : > { %199 = vst [vmem:[%s3918_s29 + $0x50] sm:$0xff] %v198_v10  ;;  %201 = vst [vmem:[%s3918_s29 + $0x58] sm:$0xff] %v200_v11  ;;  %v202_v12 = vld [vmem:[%s3913_s28 + $0xc0] sm:$0xff]  ;;  %v204_v13 = vld [vmem:[%s3913_s28 + $0xc8] sm:$0xff] }
  0x1a   : > { %v206_v14 = vld [vmem:[%s3913_s28 + $0xe0] sm:$0xff]  ;;  %203 = vst [vmem:[%s3918_s29 + $0x60] sm:$0xff] %v202_v12  ;;  %205 = vst [vmem:[%s3918_s29 + $0x68] sm:$0xff] %v204_v13  ;;  %v208_v15 = vld [vmem:[%s3913_s28 + $0xe8] sm:$0xff] }
  0x1b   : > { %207 = vst [vmem:[%s3918_s29 + $0x70] sm:$0xff] %v206_v14  ;;  %v210_v16 = vld [vmem:[%s3913_s28 + $0x100] sm:$0xff]  ;;  %v212_v17 = vld [vmem:[%s3913_s28 + $0x108] sm:$0xff]  ;;  %209 = vst [vmem:[%s3918_s29 + $0x78] sm:$0xff] %v208_v15 }
  0x1c   : > { %211 = vst [vmem:[%s3918_s29 + $0x80] sm:$0xff] %v210_v16  ;;  %213 = vst [vmem:[%s3918_s29 + $0x88] sm:$0xff] %v212_v17  ;;  %v214_v18 = vld [vmem:[%s3913_s28 + $0x120] sm:$0xff]  ;;  %v216_v19 = vld [vmem:[%s3913_s28 + $0x128] sm:$0xff] }
  0x1d   : > { %v218_v20 = vld [vmem:[%s3913_s28 + $0x140] sm:$0xff]  ;;  %215 = vst [vmem:[%s3918_s29 + $0x90] sm:$0xff] %v214_v18  ;;  %217 = vst [vmem:[%s3918_s29 + $0x98] sm:$0xff] %v216_v19  ;;  %v220_v21 = vld [vmem:[%s3913_s28 + $0x148] sm:$0xff] }
  0x1e   : > { %219 = vst [vmem:[%s3918_s29 + $0xa0] sm:$0xff] %v218_v20  ;;  %v222_v22 = vld [vmem:[%s3913_s28 + $0x160] sm:$0xff]  ;;  %v224_v23 = vld [vmem:[%s3913_s28 + $0x168] sm:$0xff]  ;;  %221 = vst [vmem:[%s3918_s29 + $0xa8] sm:$0xff] %v220_v21 }
  0x1f   : > { %223 = vst [vmem:[%s3918_s29 + $0xb0] sm:$0xff] %v222_v22  ;;  %225 = vst [vmem:[%s3918_s29 + $0xb8] sm:$0xff] %v224_v23  ;;  %v226_v24 = vld [vmem:[%s3913_s28 + $0x180] sm:$0xff]  ;;  %v228_v25 = vld [vmem:[%s3913_s28 + $0x188] sm:$0xff] }
  0x20   : > { %v230_v26 = vld [vmem:[%s3913_s28 + $0x1a0] sm:$0xff]  ;;  %227 = vst [vmem:[%s3918_s29 + $0xc0] sm:$0xff] %v226_v24  ;;  %229 = vst [vmem:[%s3918_s29 + $0xc8] sm:$0xff] %v228_v25  ;;  %v232_v27 = vld [vmem:[%s3913_s28 + $0x1a8] sm:$0xff] }
  0x21   : > { %231 = vst [vmem:[%s3918_s29 + $0xd0] sm:$0xff] %v230_v26  ;;  %v234_v28 = vld [vmem:[%s3913_s28 + $0x1c0] sm:$0xff]  ;;  %v236_v29 = vld [vmem:[%s3913_s28 + $0x1c8] sm:$0xff]  ;;  %233 = vst [vmem:[%s3918_s29 + $0xd8] sm:$0xff] %v232_v27 }
  0x22   : > { %235 = vst [vmem:[%s3918_s29 + $0xe0] sm:$0xff] %v234_v28  ;;  %237 = vst [vmem:[%s3918_s29 + $0xe8] sm:$0xff] %v236_v29  ;;  %v238_v30 = vld [vmem:[%s3913_s28 + $0x1e0] sm:$0xff]  ;;  %v240_v31 = vld [vmem:[%s3913_s28 + $0x1e8] sm:$0xff] }
  0x23   : > { %v242_v32 = vld [vmem:[%s3913_s28 + $0x200] sm:$0xff]  ;;  %239 = vst [vmem:[%s3918_s29 + $0xf0] sm:$0xff] %v238_v30  ;;  %241 = vst [vmem:[%s3918_s29 + $0xf8] sm:$0xff] %v240_v31  ;;  %v244_v33 = vld [vmem:[%s3913_s28 + $0x208] sm:$0xff] }
  0x24   : > { %243 = vst [vmem:[%s3918_s29 + $0x100] sm:$0xff] %v242_v32  ;;  %v246_v34 = vld [vmem:[%s3913_s28 + $0x220] sm:$0xff]  ;;  %v248_v35 = vld [vmem:[%s3913_s28 + $0x228] sm:$0xff]  ;;  %245 = vst [vmem:[%s3918_s29 + $0x108] sm:$0xff] %v244_v33 }
  0x25   : > { %247 = vst [vmem:[%s3918_s29 + $0x110] sm:$0xff] %v246_v34  ;;  %249 = vst [vmem:[%s3918_s29 + $0x118] sm:$0xff] %v248_v35  ;;  %v250_v36 = vld [vmem:[%s3913_s28 + $0x240] sm:$0xff]  ;;  %v252_v37 = vld [vmem:[%s3913_s28 + $0x248] sm:$0xff] }
  0x26   : > { %v254_v38 = vld [vmem:[%s3913_s28 + $0x260] sm:$0xff]  ;;  %251 = vst [vmem:[%s3918_s29 + $0x120] sm:$0xff] %v250_v36  ;;  %253 = vst [vmem:[%s3918_s29 + $0x128] sm:$0xff] %v252_v37  ;;  %v256_v39 = vld [vmem:[%s3913_s28 + $0x268] sm:$0xff] }
  0x27   : > { %255 = vst [vmem:[%s3918_s29 + $0x130] sm:$0xff] %v254_v38  ;;  %v258_v40 = vld [vmem:[%s3913_s28 + $0x280] sm:$0xff]  ;;  %v260_v41 = vld [vmem:[%s3913_s28 + $0x288] sm:$0xff]  ;;  %257 = vst [vmem:[%s3918_s29 + $0x138] sm:$0xff] %v256_v39 }
  0x28   : > { %259 = vst [vmem:[%s3918_s29 + $0x140] sm:$0xff] %v258_v40  ;;  %261 = vst [vmem:[%s3918_s29 + $0x148] sm:$0xff] %v260_v41  ;;  %v262_v42 = vld [vmem:[%s3913_s28 + $0x2a0] sm:$0xff]  ;;  %v264_v43 = vld [vmem:[%s3913_s28 + $0x2a8] sm:$0xff] }
  0x29   : > { %v266_v44 = vld [vmem:[%s3913_s28 + $0x2c0] sm:$0xff]  ;;  %263 = vst [vmem:[%s3918_s29 + $0x150] sm:$0xff] %v262_v42  ;;  %265 = vst [vmem:[%s3918_s29 + $0x158] sm:$0xff] %v264_v43  ;;  %v268_v45 = vld [vmem:[%s3913_s28 + $0x2c8] sm:$0xff] }
  0x2a   : > { %267 = vst [vmem:[%s3918_s29 + $0x160] sm:$0xff] %v266_v44  ;;  %v270_v46 = vld [vmem:[%s3913_s28 + $0x2e0] sm:$0xff]  ;;  %v272_v47 = vld [vmem:[%s3913_s28 + $0x2e8] sm:$0xff]  ;;  %269 = vst [vmem:[%s3918_s29 + $0x168] sm:$0xff] %v268_v45 }
  0x2b   : > { %271 = vst [vmem:[%s3918_s29 + $0x170] sm:$0xff] %v270_v46  ;;  %273 = vst [vmem:[%s3918_s29 + $0x178] sm:$0xff] %v272_v47  ;;  %v274_v48 = vld [vmem:[%s3913_s28 + $0x300] sm:$0xff]  ;;  %v276_v49 = vld [vmem:[%s3913_s28 + $0x308] sm:$0xff] }
  0x2c   : > { %v278_v50 = vld [vmem:[%s3913_s28 + $0x320] sm:$0xff]  ;;  %275 = vst [vmem:[%s3918_s29 + $0x180] sm:$0xff] %v274_v48  ;;  %277 = vst [vmem:[%s3918_s29 + $0x188] sm:$0xff] %v276_v49  ;;  %v280_v51 = vld [vmem:[%s3913_s28 + $0x328] sm:$0xff] }
  0x2d   : > { %279 = vst [vmem:[%s3918_s29 + $0x190] sm:$0xff] %v278_v50  ;;  %v282_v52 = vld [vmem:[%s3913_s28 + $0x340] sm:$0xff]  ;;  %v284_v53 = vld [vmem:[%s3913_s28 + $0x348] sm:$0xff]  ;;  %281 = vst [vmem:[%s3918_s29 + $0x198] sm:$0xff] %v280_v51 }
  0x2e   : > { %283 = vst [vmem:[%s3918_s29 + $0x1a0] sm:$0xff] %v282_v52  ;;  %285 = vst [vmem:[%s3918_s29 + $0x1a8] sm:$0xff] %v284_v53  ;;  %v286_v54 = vld [vmem:[%s3913_s28 + $0x360] sm:$0xff]  ;;  %v288_v55 = vld [vmem:[%s3913_s28 + $0x368] sm:$0xff] }
  0x2f   : > { %v290_v56 = vld [vmem:[%s3913_s28 + $0x380] sm:$0xff]  ;;  %287 = vst [vmem:[%s3918_s29 + $0x1b0] sm:$0xff] %v286_v54  ;;  %289 = vst [vmem:[%s3918_s29 + $0x1b8] sm:$0xff] %v288_v55  ;;  %v292_v57 = vld [vmem:[%s3913_s28 + $0x388] sm:$0xff] }
  0x30   : > { %291 = vst [vmem:[%s3918_s29 + $0x1c0] sm:$0xff] %v290_v56  ;;  %v294_v58 = vld [vmem:[%s3913_s28 + $0x3a0] sm:$0xff]  ;;  %v296_v59 = vld [vmem:[%s3913_s28 + $0x3a8] sm:$0xff]  ;;  %293 = vst [vmem:[%s3918_s29 + $0x1c8] sm:$0xff] %v292_v57 }
  0x31   : > { %295 = vst [vmem:[%s3918_s29 + $0x1d0] sm:$0xff] %v294_v58  ;;  %297 = vst [vmem:[%s3918_s29 + $0x1d8] sm:$0xff] %v296_v59  ;;  %v298_v60 = vld [vmem:[%s3913_s28 + $0x3c0] sm:$0xff]  ;;  %v300_v61 = vld [vmem:[%s3913_s28 + $0x3c8] sm:$0xff] }
  0x32   : > { %v302_v62 = vld [vmem:[%s3913_s28 + $0x3e0] sm:$0xff]  ;;  %299 = vst [vmem:[%s3918_s29 + $0x1e0] sm:$0xff] %v298_v60  ;;  %301 = vst [vmem:[%s3918_s29 + $0x1e8] sm:$0xff] %v300_v61  ;;  %v304_v63 = vld [vmem:[%s3913_s28 + $0x3e8] sm:$0xff] }
  0x33   : > { %303 = vst [vmem:[%s3918_s29 + $0x1f0] sm:$0xff] %v302_v62  ;;  %v306_v0 = vld [vmem:[%s3913_s28 + $0x400] sm:$0xff]  ;;  %v308_v1 = vld [vmem:[%s3913_s28 + $0x408] sm:$0xff]  ;;  %305 = vst [vmem:[%s3918_s29 + $0x1f8] sm:$0xff] %v304_v63 }
  0x34   : > { %307 = vst [vmem:[%s3918_s29 + $0x200] sm:$0xff] %v306_v0  ;;  %309 = vst [vmem:[%s3918_s29 + $0x208] sm:$0xff] %v308_v1  ;;  %v310_v2 = vld [vmem:[%s3913_s28 + $0x420] sm:$0xff]  ;;  %v312_v3 = vld [vmem:[%s3913_s28 + $0x428] sm:$0xff] }
  0x35   : > { %v314_v4 = vld [vmem:[%s3913_s28 + $0x440] sm:$0xff]  ;;  %311 = vst [vmem:[%s3918_s29 + $0x210] sm:$0xff] %v310_v2  ;;  %313 = vst [vmem:[%s3918_s29 + $0x218] sm:$0xff] %v312_v3  ;;  %v316_v5 = vld [vmem:[%s3913_s28 + $0x448] sm:$0xff] }
  0x36   : > { %315 = vst [vmem:[%s3918_s29 + $0x220] sm:$0xff] %v314_v4  ;;  %v318_v6 = vld [vmem:[%s3913_s28 + $0x460] sm:$0xff]  ;;  %v320_v7 = vld [vmem:[%s3913_s28 + $0x468] sm:$0xff]  ;;  %317 = vst [vmem:[%s3918_s29 + $0x228] sm:$0xff] %v316_v5 }
  0x37   : > { %319 = vst [vmem:[%s3918_s29 + $0x230] sm:$0xff] %v318_v6  ;;  %321 = vst [vmem:[%s3918_s29 + $0x238] sm:$0xff] %v320_v7  ;;  %v322_v8 = vld [vmem:[%s3913_s28 + $0x480] sm:$0xff]  ;;  %v324_v9 = vld [vmem:[%s3913_s28 + $0x488] sm:$0xff] }
  0x38   : > { %v326_v10 = vld [vmem:[%s3913_s28 + $0x4a0] sm:$0xff]  ;;  %323 = vst [vmem:[%s3918_s29 + $0x240] sm:$0xff] %v322_v8  ;;  %325 = vst [vmem:[%s3918_s29 + $0x248] sm:$0xff] %v324_v9  ;;  %v328_v11 = vld [vmem:[%s3913_s28 + $0x4a8] sm:$0xff] }
  0x39   : > { %327 = vst [vmem:[%s3918_s29 + $0x250] sm:$0xff] %v326_v10  ;;  %v330_v12 = vld [vmem:[%s3913_s28 + $0x4c0] sm:$0xff]  ;;  %v332_v13 = vld [vmem:[%s3913_s28 + $0x4c8] sm:$0xff]  ;;  %329 = vst [vmem:[%s3918_s29 + $0x258] sm:$0xff] %v328_v11 }
  0x3a   : > { %331 = vst [vmem:[%s3918_s29 + $0x260] sm:$0xff] %v330_v12  ;;  %333 = vst [vmem:[%s3918_s29 + $0x268] sm:$0xff] %v332_v13  ;;  %v334_v14 = vld [vmem:[%s3913_s28 + $0x4e0] sm:$0xff]  ;;  %v336_v15 = vld [vmem:[%s3913_s28 + $0x4e8] sm:$0xff] }
  0x3b   : > { %v338_v16 = vld [vmem:[%s3913_s28 + $0x500] sm:$0xff]  ;;  %335 = vst [vmem:[%s3918_s29 + $0x270] sm:$0xff] %v334_v14  ;;  %337 = vst [vmem:[%s3918_s29 + $0x278] sm:$0xff] %v336_v15  ;;  %v340_v17 = vld [vmem:[%s3913_s28 + $0x508] sm:$0xff] }
  0x3c   : > { %339 = vst [vmem:[%s3918_s29 + $0x280] sm:$0xff] %v338_v16  ;;  %v342_v18 = vld [vmem:[%s3913_s28 + $0x520] sm:$0xff]  ;;  %v344_v19 = vld [vmem:[%s3913_s28 + $0x528] sm:$0xff]  ;;  %341 = vst [vmem:[%s3918_s29 + $0x288] sm:$0xff] %v340_v17 }
  0x3d   : > { %343 = vst [vmem:[%s3918_s29 + $0x290] sm:$0xff] %v342_v18  ;;  %345 = vst [vmem:[%s3918_s29 + $0x298] sm:$0xff] %v344_v19  ;;  %v346_v20 = vld [vmem:[%s3913_s28 + $0x540] sm:$0xff]  ;;  %v348_v21 = vld [vmem:[%s3913_s28 + $0x548] sm:$0xff] }
  0x3e   : > { %v350_v22 = vld [vmem:[%s3913_s28 + $0x560] sm:$0xff]  ;;  %347 = vst [vmem:[%s3918_s29 + $0x2a0] sm:$0xff] %v346_v20  ;;  %349 = vst [vmem:[%s3918_s29 + $0x2a8] sm:$0xff] %v348_v21  ;;  %v352_v23 = vld [vmem:[%s3913_s28 + $0x568] sm:$0xff] }
  0x3f   : > { %351 = vst [vmem:[%s3918_s29 + $0x2b0] sm:$0xff] %v350_v22  ;;  %v354_v24 = vld [vmem:[%s3913_s28 + $0x580] sm:$0xff]  ;;  %v356_v25 = vld [vmem:[%s3913_s28 + $0x588] sm:$0xff]  ;;  %353 = vst [vmem:[%s3918_s29 + $0x2b8] sm:$0xff] %v352_v23 }
  0x40   : > { %355 = vst [vmem:[%s3918_s29 + $0x2c0] sm:$0xff] %v354_v24  ;;  %357 = vst [vmem:[%s3918_s29 + $0x2c8] sm:$0xff] %v356_v25  ;;  %v358_v26 = vld [vmem:[%s3913_s28 + $0x5a0] sm:$0xff]  ;;  %v360_v27 = vld [vmem:[%s3913_s28 + $0x5a8] sm:$0xff] }
  0x41   : > { %v362_v28 = vld [vmem:[%s3913_s28 + $0x5c0] sm:$0xff]  ;;  %359 = vst [vmem:[%s3918_s29 + $0x2d0] sm:$0xff] %v358_v26  ;;  %361 = vst [vmem:[%s3918_s29 + $0x2d8] sm:$0xff] %v360_v27  ;;  %v364_v29 = vld [vmem:[%s3913_s28 + $0x5c8] sm:$0xff] }
  0x42   : > { %363 = vst [vmem:[%s3918_s29 + $0x2e0] sm:$0xff] %v362_v28  ;;  %v366_v30 = vld [vmem:[%s3913_s28 + $0x5e0] sm:$0xff]  ;;  %v368_v31 = vld [vmem:[%s3913_s28 + $0x5e8] sm:$0xff]  ;;  %365 = vst [vmem:[%s3918_s29 + $0x2e8] sm:$0xff] %v364_v29 }
  0x43   : > { %367 = vst [vmem:[%s3918_s29 + $0x2f0] sm:$0xff] %v366_v30  ;;  %369 = vst [vmem:[%s3918_s29 + $0x2f8] sm:$0xff] %v368_v31  ;;  %v370_v32 = vld [vmem:[%s3913_s28 + $0x600] sm:$0xff]  ;;  %v372_v33 = vld [vmem:[%s3913_s28 + $0x608] sm:$0xff] }
  0x44   : > { %v374_v34 = vld [vmem:[%s3913_s28 + $0x620] sm:$0xff]  ;;  %371 = vst [vmem:[%s3918_s29 + $0x300] sm:$0xff] %v370_v32  ;;  %373 = vst [vmem:[%s3918_s29 + $0x308] sm:$0xff] %v372_v33  ;;  %v376_v35 = vld [vmem:[%s3913_s28 + $0x628] sm:$0xff] }
  0x45   : > { %375 = vst [vmem:[%s3918_s29 + $0x310] sm:$0xff] %v374_v34  ;;  %v378_v36 = vld [vmem:[%s3913_s28 + $0x640] sm:$0xff]  ;;  %v380_v37 = vld [vmem:[%s3913_s28 + $0x648] sm:$0xff]  ;;  %377 = vst [vmem:[%s3918_s29 + $0x318] sm:$0xff] %v376_v35 }
  0x46   : > { %379 = vst [vmem:[%s3918_s29 + $0x320] sm:$0xff] %v378_v36  ;;  %381 = vst [vmem:[%s3918_s29 + $0x328] sm:$0xff] %v380_v37  ;;  %v382_v38 = vld [vmem:[%s3913_s28 + $0x660] sm:$0xff]  ;;  %v384_v39 = vld [vmem:[%s3913_s28 + $0x668] sm:$0xff] }
  0x47   : > { %v386_v40 = vld [vmem:[%s3913_s28 + $0x680] sm:$0xff]  ;;  %383 = vst [vmem:[%s3918_s29 + $0x330] sm:$0xff] %v382_v38  ;;  %385 = vst [vmem:[%s3918_s29 + $0x338] sm:$0xff] %v384_v39  ;;  %v388_v41 = vld [vmem:[%s3913_s28 + $0x688] sm:$0xff] }
  0x48   : > { %387 = vst [vmem:[%s3918_s29 + $0x340] sm:$0xff] %v386_v40  ;;  %v390_v42 = vld [vmem:[%s3913_s28 + $0x6a0] sm:$0xff]  ;;  %v392_v43 = vld [vmem:[%s3913_s28 + $0x6a8] sm:$0xff]  ;;  %389 = vst [vmem:[%s3918_s29 + $0x348] sm:$0xff] %v388_v41 }
  0x49   : > { %391 = vst [vmem:[%s3918_s29 + $0x350] sm:$0xff] %v390_v42  ;;  %393 = vst [vmem:[%s3918_s29 + $0x358] sm:$0xff] %v392_v43  ;;  %v394_v44 = vld [vmem:[%s3913_s28 + $0x6c0] sm:$0xff]  ;;  %v396_v45 = vld [vmem:[%s3913_s28 + $0x6c8] sm:$0xff] }
  0x4a   : > { %v398_v46 = vld [vmem:[%s3913_s28 + $0x6e0] sm:$0xff]  ;;  %395 = vst [vmem:[%s3918_s29 + $0x360] sm:$0xff] %v394_v44  ;;  %397 = vst [vmem:[%s3918_s29 + $0x368] sm:$0xff] %v396_v45  ;;  %v400_v47 = vld [vmem:[%s3913_s28 + $0x6e8] sm:$0xff] }
  0x4b   : > { %399 = vst [vmem:[%s3918_s29 + $0x370] sm:$0xff] %v398_v46  ;;  %v402_v48 = vld [vmem:[%s3913_s28 + $0x700] sm:$0xff]  ;;  %v404_v49 = vld [vmem:[%s3913_s28 + $0x708] sm:$0xff]  ;;  %401 = vst [vmem:[%s3918_s29 + $0x378] sm:$0xff] %v400_v47 }
  0x4c   : > { %403 = vst [vmem:[%s3918_s29 + $0x380] sm:$0xff] %v402_v48  ;;  %405 = vst [vmem:[%s3918_s29 + $0x388] sm:$0xff] %v404_v49  ;;  %v406_v50 = vld [vmem:[%s3913_s28 + $0x720] sm:$0xff]  ;;  %v408_v51 = vld [vmem:[%s3913_s28 + $0x728] sm:$0xff] }
  0x4d   : > { %v410_v52 = vld [vmem:[%s3913_s28 + $0x740] sm:$0xff]  ;;  %407 = vst [vmem:[%s3918_s29 + $0x390] sm:$0xff] %v406_v50  ;;  %409 = vst [vmem:[%s3918_s29 + $0x398] sm:$0xff] %v408_v51  ;;  %v412_v53 = vld [vmem:[%s3913_s28 + $0x748] sm:$0xff] }
  0x4e   : > { %411 = vst [vmem:[%s3918_s29 + $0x3a0] sm:$0xff] %v410_v52  ;;  %v414_v54 = vld [vmem:[%s3913_s28 + $0x760] sm:$0xff]  ;;  %v416_v55 = vld [vmem:[%s3913_s28 + $0x768] sm:$0xff]  ;;  %413 = vst [vmem:[%s3918_s29 + $0x3a8] sm:$0xff] %v412_v53 }
  0x4f   : > { %415 = vst [vmem:[%s3918_s29 + $0x3b0] sm:$0xff] %v414_v54  ;;  %417 = vst [vmem:[%s3918_s29 + $0x3b8] sm:$0xff] %v416_v55  ;;  %v418_v56 = vld [vmem:[%s3913_s28 + $0x780] sm:$0xff]  ;;  %v420_v57 = vld [vmem:[%s3913_s28 + $0x788] sm:$0xff] }
  0x50   : > { %v422_v58 = vld [vmem:[%s3913_s28 + $0x7a0] sm:$0xff]  ;;  %419 = vst [vmem:[%s3918_s29 + $0x3c0] sm:$0xff] %v418_v56  ;;  %421 = vst [vmem:[%s3918_s29 + $0x3c8] sm:$0xff] %v420_v57  ;;  %v424_v59 = vld [vmem:[%s3913_s28 + $0x7a8] sm:$0xff] }
  0x51   : > { %423 = vst [vmem:[%s3918_s29 + $0x3d0] sm:$0xff] %v422_v58  ;;  %v426_v60 = vld [vmem:[%s3913_s28 + $0x7c0] sm:$0xff]  ;;  %v428_v61 = vld [vmem:[%s3913_s28 + $0x7c8] sm:$0xff]  ;;  %425 = vst [vmem:[%s3918_s29 + $0x3d8] sm:$0xff] %v424_v59 }
  0x52   : > { %427 = vst [vmem:[%s3918_s29 + $0x3e0] sm:$0xff] %v426_v60  ;;  %429 = vst [vmem:[%s3918_s29 + $0x3e8] sm:$0xff] %v428_v61  ;;  %v430_v62 = vld [vmem:[%s3913_s28 + $0x7e0] sm:$0xff]  ;;  %v432_v63 = vld [vmem:[%s3913_s28 + $0x7e8] sm:$0xff] }
  0x53   : > { %v434_v0 = vld [vmem:[%s3913_s28 + $0x800] sm:$0xff]  ;;  %431 = vst [vmem:[%s3918_s29 + $0x3f0] sm:$0xff] %v430_v62  ;;  %433 = vst [vmem:[%s3918_s29 + $0x3f8] sm:$0xff] %v432_v63  ;;  %v436_v1 = vld [vmem:[%s3913_s28 + $0x808] sm:$0xff] }
  0x54   : > { %435 = vst [vmem:[%s3918_s29 + $0x400] sm:$0xff] %v434_v0  ;;  %v438_v2 = vld [vmem:[%s3913_s28 + $0x820] sm:$0xff]  ;;  %v440_v3 = vld [vmem:[%s3913_s28 + $0x828] sm:$0xff]  ;;  %437 = vst [vmem:[%s3918_s29 + $0x408] sm:$0xff] %v436_v1 }
  0x55   : > { %439 = vst [vmem:[%s3918_s29 + $0x410] sm:$0xff] %v438_v2  ;;  %441 = vst [vmem:[%s3918_s29 + $0x418] sm:$0xff] %v440_v3  ;;  %v442_v4 = vld [vmem:[%s3913_s28 + $0x840] sm:$0xff]  ;;  %v444_v5 = vld [vmem:[%s3913_s28 + $0x848] sm:$0xff] }
  0x56   : > { %v446_v6 = vld [vmem:[%s3913_s28 + $0x860] sm:$0xff]  ;;  %443 = vst [vmem:[%s3918_s29 + $0x420] sm:$0xff] %v442_v4  ;;  %445 = vst [vmem:[%s3918_s29 + $0x428] sm:$0xff] %v444_v5  ;;  %v448_v7 = vld [vmem:[%s3913_s28 + $0x868] sm:$0xff] }
  0x57   : > { %447 = vst [vmem:[%s3918_s29 + $0x430] sm:$0xff] %v446_v6  ;;  %v450_v8 = vld [vmem:[%s3913_s28 + $0x880] sm:$0xff]  ;;  %v452_v9 = vld [vmem:[%s3913_s28 + $0x888] sm:$0xff]  ;;  %449 = vst [vmem:[%s3918_s29 + $0x438] sm:$0xff] %v448_v7 }
  0x58   : > { %451 = vst [vmem:[%s3918_s29 + $0x440] sm:$0xff] %v450_v8  ;;  %453 = vst [vmem:[%s3918_s29 + $0x448] sm:$0xff] %v452_v9  ;;  %v454_v10 = vld [vmem:[%s3913_s28 + $0x8a0] sm:$0xff]  ;;  %v456_v11 = vld [vmem:[%s3913_s28 + $0x8a8] sm:$0xff] }
  0x59   : > { %v458_v12 = vld [vmem:[%s3913_s28 + $0x8c0] sm:$0xff]  ;;  %455 = vst [vmem:[%s3918_s29 + $0x450] sm:$0xff] %v454_v10  ;;  %457 = vst [vmem:[%s3918_s29 + $0x458] sm:$0xff] %v456_v11  ;;  %v460_v13 = vld [vmem:[%s3913_s28 + $0x8c8] sm:$0xff] }
  0x5a   : > { %459 = vst [vmem:[%s3918_s29 + $0x460] sm:$0xff] %v458_v12  ;;  %v462_v14 = vld [vmem:[%s3913_s28 + $0x8e0] sm:$0xff]  ;;  %v464_v15 = vld [vmem:[%s3913_s28 + $0x8e8] sm:$0xff]  ;;  %461 = vst [vmem:[%s3918_s29 + $0x468] sm:$0xff] %v460_v13 }
  0x5b   : > { %463 = vst [vmem:[%s3918_s29 + $0x470] sm:$0xff] %v462_v14  ;;  %465 = vst [vmem:[%s3918_s29 + $0x478] sm:$0xff] %v464_v15  ;;  %v466_v16 = vld [vmem:[%s3913_s28 + $0x900] sm:$0xff]  ;;  %v468_v17 = vld [vmem:[%s3913_s28 + $0x908] sm:$0xff] }
  0x5c   : > { %v470_v18 = vld [vmem:[%s3913_s28 + $0x920] sm:$0xff]  ;;  %467 = vst [vmem:[%s3918_s29 + $0x480] sm:$0xff] %v466_v16  ;;  %469 = vst [vmem:[%s3918_s29 + $0x488] sm:$0xff] %v468_v17  ;;  %v472_v19 = vld [vmem:[%s3913_s28 + $0x928] sm:$0xff] }
  0x5d   : > { %471 = vst [vmem:[%s3918_s29 + $0x490] sm:$0xff] %v470_v18  ;;  %v474_v20 = vld [vmem:[%s3913_s28 + $0x940] sm:$0xff]  ;;  %v476_v21 = vld [vmem:[%s3913_s28 + $0x948] sm:$0xff]  ;;  %473 = vst [vmem:[%s3918_s29 + $0x498] sm:$0xff] %v472_v19 }
  0x5e   : > { %475 = vst [vmem:[%s3918_s29 + $0x4a0] sm:$0xff] %v474_v20  ;;  %477 = vst [vmem:[%s3918_s29 + $0x4a8] sm:$0xff] %v476_v21  ;;  %v478_v22 = vld [vmem:[%s3913_s28 + $0x960] sm:$0xff]  ;;  %v480_v23 = vld [vmem:[%s3913_s28 + $0x968] sm:$0xff] }
  0x5f   : > { %v482_v24 = vld [vmem:[%s3913_s28 + $0x980] sm:$0xff]  ;;  %479 = vst [vmem:[%s3918_s29 + $0x4b0] sm:$0xff] %v478_v22  ;;  %481 = vst [vmem:[%s3918_s29 + $0x4b8] sm:$0xff] %v480_v23  ;;  %v484_v25 = vld [vmem:[%s3913_s28 + $0x988] sm:$0xff] }
  0x60   : > { %483 = vst [vmem:[%s3918_s29 + $0x4c0] sm:$0xff] %v482_v24  ;;  %v486_v26 = vld [vmem:[%s3913_s28 + $0x9a0] sm:$0xff]  ;;  %v488_v27 = vld [vmem:[%s3913_s28 + $0x9a8] sm:$0xff]  ;;  %485 = vst [vmem:[%s3918_s29 + $0x4c8] sm:$0xff] %v484_v25 }
  0x61   : > { %487 = vst [vmem:[%s3918_s29 + $0x4d0] sm:$0xff] %v486_v26  ;;  %489 = vst [vmem:[%s3918_s29 + $0x4d8] sm:$0xff] %v488_v27  ;;  %v490_v28 = vld [vmem:[%s3913_s28 + $0x9c0] sm:$0xff]  ;;  %v492_v29 = vld [vmem:[%s3913_s28 + $0x9c8] sm:$0xff] }
  0x62   : > { %v494_v30 = vld [vmem:[%s3913_s28 + $0x9e0] sm:$0xff]  ;;  %491 = vst [vmem:[%s3918_s29 + $0x4e0] sm:$0xff] %v490_v28  ;;  %493 = vst [vmem:[%s3918_s29 + $0x4e8] sm:$0xff] %v492_v29  ;;  %v496_v31 = vld [vmem:[%s3913_s28 + $0x9e8] sm:$0xff] }
  0x63   : > { %495 = vst [vmem:[%s3918_s29 + $0x4f0] sm:$0xff] %v494_v30  ;;  %v498_v32 = vld [vmem:[%s3913_s28 + $0xa00] sm:$0xff]  ;;  %v500_v33 = vld [vmem:[%s3913_s28 + $0xa08] sm:$0xff]  ;;  %497 = vst [vmem:[%s3918_s29 + $0x4f8] sm:$0xff] %v496_v31 }
  0x64   : > { %499 = vst [vmem:[%s3918_s29 + $0x500] sm:$0xff] %v498_v32  ;;  %501 = vst [vmem:[%s3918_s29 + $0x508] sm:$0xff] %v500_v33  ;;  %v502_v34 = vld [vmem:[%s3913_s28 + $0xa20] sm:$0xff]  ;;  %v504_v35 = vld [vmem:[%s3913_s28 + $0xa28] sm:$0xff] }
  0x65   : > { %v506_v36 = vld [vmem:[%s3913_s28 + $0xa40] sm:$0xff]  ;;  %503 = vst [vmem:[%s3918_s29 + $0x510] sm:$0xff] %v502_v34  ;;  %505 = vst [vmem:[%s3918_s29 + $0x518] sm:$0xff] %v504_v35  ;;  %v508_v37 = vld [vmem:[%s3913_s28 + $0xa48] sm:$0xff] }
  0x66   : > { %507 = vst [vmem:[%s3918_s29 + $0x520] sm:$0xff] %v506_v36  ;;  %v510_v38 = vld [vmem:[%s3913_s28 + $0xa60] sm:$0xff]  ;;  %v512_v39 = vld [vmem:[%s3913_s28 + $0xa68] sm:$0xff]  ;;  %509 = vst [vmem:[%s3918_s29 + $0x528] sm:$0xff] %v508_v37 }
  0x67   : > { %511 = vst [vmem:[%s3918_s29 + $0x530] sm:$0xff] %v510_v38  ;;  %513 = vst [vmem:[%s3918_s29 + $0x538] sm:$0xff] %v512_v39  ;;  %v514_v40 = vld [vmem:[%s3913_s28 + $0xa80] sm:$0xff]  ;;  %v516_v41 = vld [vmem:[%s3913_s28 + $0xa88] sm:$0xff] }
  0x68   : > { %v518_v42 = vld [vmem:[%s3913_s28 + $0xaa0] sm:$0xff]  ;;  %515 = vst [vmem:[%s3918_s29 + $0x540] sm:$0xff] %v514_v40  ;;  %517 = vst [vmem:[%s3918_s29 + $0x548] sm:$0xff] %v516_v41  ;;  %v520_v43 = vld [vmem:[%s3913_s28 + $0xaa8] sm:$0xff] }
  0x69   : > { %519 = vst [vmem:[%s3918_s29 + $0x550] sm:$0xff] %v518_v42  ;;  %v522_v44 = vld [vmem:[%s3913_s28 + $0xac0] sm:$0xff]  ;;  %v524_v45 = vld [vmem:[%s3913_s28 + $0xac8] sm:$0xff]  ;;  %521 = vst [vmem:[%s3918_s29 + $0x558] sm:$0xff] %v520_v43 }
  0x6a   : > { %523 = vst [vmem:[%s3918_s29 + $0x560] sm:$0xff] %v522_v44  ;;  %525 = vst [vmem:[%s3918_s29 + $0x568] sm:$0xff] %v524_v45  ;;  %v526_v46 = vld [vmem:[%s3913_s28 + $0xae0] sm:$0xff]  ;;  %v528_v47 = vld [vmem:[%s3913_s28 + $0xae8] sm:$0xff] }
  0x6b   : > { %v530_v48 = vld [vmem:[%s3913_s28 + $0xb00] sm:$0xff]  ;;  %527 = vst [vmem:[%s3918_s29 + $0x570] sm:$0xff] %v526_v46  ;;  %529 = vst [vmem:[%s3918_s29 + $0x578] sm:$0xff] %v528_v47  ;;  %v532_v49 = vld [vmem:[%s3913_s28 + $0xb08] sm:$0xff] }
  0x6c   : > { %531 = vst [vmem:[%s3918_s29 + $0x580] sm:$0xff] %v530_v48  ;;  %v534_v50 = vld [vmem:[%s3913_s28 + $0xb20] sm:$0xff]  ;;  %v536_v51 = vld [vmem:[%s3913_s28 + $0xb28] sm:$0xff]  ;;  %533 = vst [vmem:[%s3918_s29 + $0x588] sm:$0xff] %v532_v49 }
  0x6d   : > { %535 = vst [vmem:[%s3918_s29 + $0x590] sm:$0xff] %v534_v50  ;;  %537 = vst [vmem:[%s3918_s29 + $0x598] sm:$0xff] %v536_v51  ;;  %v538_v52 = vld [vmem:[%s3913_s28 + $0xb40] sm:$0xff]  ;;  %v540_v53 = vld [vmem:[%s3913_s28 + $0xb48] sm:$0xff] }
  0x6e   : > { %v542_v54 = vld [vmem:[%s3913_s28 + $0xb60] sm:$0xff]  ;;  %539 = vst [vmem:[%s3918_s29 + $0x5a0] sm:$0xff] %v538_v52  ;;  %541 = vst [vmem:[%s3918_s29 + $0x5a8] sm:$0xff] %v540_v53  ;;  %v544_v55 = vld [vmem:[%s3913_s28 + $0xb68] sm:$0xff] }
  0x6f   : > { %543 = vst [vmem:[%s3918_s29 + $0x5b0] sm:$0xff] %v542_v54  ;;  %v546_v56 = vld [vmem:[%s3913_s28 + $0xb80] sm:$0xff]  ;;  %v548_v57 = vld [vmem:[%s3913_s28 + $0xb88] sm:$0xff]  ;;  %545 = vst [vmem:[%s3918_s29 + $0x5b8] sm:$0xff] %v544_v55 }
  0x70   : > { %547 = vst [vmem:[%s3918_s29 + $0x5c0] sm:$0xff] %v546_v56  ;;  %549 = vst [vmem:[%s3918_s29 + $0x5c8] sm:$0xff] %v548_v57  ;;  %v550_v58 = vld [vmem:[%s3913_s28 + $0xba0] sm:$0xff]  ;;  %v552_v59 = vld [vmem:[%s3913_s28 + $0xba8] sm:$0xff] }
  0x71   : > { %v554_v60 = vld [vmem:[%s3913_s28 + $0xbc0] sm:$0xff]  ;;  %551 = vst [vmem:[%s3918_s29 + $0x5d0] sm:$0xff] %v550_v58  ;;  %553 = vst [vmem:[%s3918_s29 + $0x5d8] sm:$0xff] %v552_v59  ;;  %v556_v61 = vld [vmem:[%s3913_s28 + $0xbc8] sm:$0xff] }
  0x72   : > { %555 = vst [vmem:[%s3918_s29 + $0x5e0] sm:$0xff] %v554_v60  ;;  %v558_v62 = vld [vmem:[%s3913_s28 + $0xbe0] sm:$0xff]  ;;  %v560_v63 = vld [vmem:[%s3913_s28 + $0xbe8] sm:$0xff]  ;;  %557 = vst [vmem:[%s3918_s29 + $0x5e8] sm:$0xff] %v556_v61 }
  0x73   : > { %559 = vst [vmem:[%s3918_s29 + $0x5f0] sm:$0xff] %v558_v62  ;;  %561 = vst [vmem:[%s3918_s29 + $0x5f8] sm:$0xff] %v560_v63  ;;  %v562_v0 = vld [vmem:[%s3913_s28 + $0xc00] sm:$0xff]  ;;  %v564_v1 = vld [vmem:[%s3913_s28 + $0xc08] sm:$0xff] }
  0x74   : > { %v566_v2 = vld [vmem:[%s3913_s28 + $0xc20] sm:$0xff]  ;;  %563 = vst [vmem:[%s3918_s29 + $0x600] sm:$0xff] %v562_v0  ;;  %565 = vst [vmem:[%s3918_s29 + $0x608] sm:$0xff] %v564_v1  ;;  %v568_v3 = vld [vmem:[%s3913_s28 + $0xc28] sm:$0xff] }
  0x75   : > { %567 = vst [vmem:[%s3918_s29 + $0x610] sm:$0xff] %v566_v2  ;;  %v570_v4 = vld [vmem:[%s3913_s28 + $0xc40] sm:$0xff]  ;;  %v572_v5 = vld [vmem:[%s3913_s28 + $0xc48] sm:$0xff]  ;;  %569 = vst [vmem:[%s3918_s29 + $0x618] sm:$0xff] %v568_v3 }
  0x76   : > { %571 = vst [vmem:[%s3918_s29 + $0x620] sm:$0xff] %v570_v4  ;;  %573 = vst [vmem:[%s3918_s29 + $0x628] sm:$0xff] %v572_v5  ;;  %v574_v6 = vld [vmem:[%s3913_s28 + $0xc60] sm:$0xff]  ;;  %v576_v7 = vld [vmem:[%s3913_s28 + $0xc68] sm:$0xff] }
  0x77   : > { %v578_v8 = vld [vmem:[%s3913_s28 + $0xc80] sm:$0xff]  ;;  %575 = vst [vmem:[%s3918_s29 + $0x630] sm:$0xff] %v574_v6  ;;  %577 = vst [vmem:[%s3918_s29 + $0x638] sm:$0xff] %v576_v7  ;;  %v580_v9 = vld [vmem:[%s3913_s28 + $0xc88] sm:$0xff] }
  0x78   : > { %579 = vst [vmem:[%s3918_s29 + $0x640] sm:$0xff] %v578_v8  ;;  %v582_v10 = vld [vmem:[%s3913_s28 + $0xca0] sm:$0xff]  ;;  %v584_v11 = vld [vmem:[%s3913_s28 + $0xca8] sm:$0xff]  ;;  %581 = vst [vmem:[%s3918_s29 + $0x648] sm:$0xff] %v580_v9 }
  0x79   : > { %583 = vst [vmem:[%s3918_s29 + $0x650] sm:$0xff] %v582_v10  ;;  %585 = vst [vmem:[%s3918_s29 + $0x658] sm:$0xff] %v584_v11  ;;  %v586_v12 = vld [vmem:[%s3913_s28 + $0xcc0] sm:$0xff]  ;;  %v588_v13 = vld [vmem:[%s3913_s28 + $0xcc8] sm:$0xff] }
  0x7a   : > { %v590_v14 = vld [vmem:[%s3913_s28 + $0xce0] sm:$0xff]  ;;  %587 = vst [vmem:[%s3918_s29 + $0x660] sm:$0xff] %v586_v12  ;;  %589 = vst [vmem:[%s3918_s29 + $0x668] sm:$0xff] %v588_v13  ;;  %v592_v15 = vld [vmem:[%s3913_s28 + $0xce8] sm:$0xff] }
  0x7b   : > { %591 = vst [vmem:[%s3918_s29 + $0x670] sm:$0xff] %v590_v14  ;;  %v594_v16 = vld [vmem:[%s3913_s28 + $0xd00] sm:$0xff]  ;;  %v596_v17 = vld [vmem:[%s3913_s28 + $0xd08] sm:$0xff]  ;;  %593 = vst [vmem:[%s3918_s29 + $0x678] sm:$0xff] %v592_v15 }
  0x7c   : > { %595 = vst [vmem:[%s3918_s29 + $0x680] sm:$0xff] %v594_v16  ;;  %597 = vst [vmem:[%s3918_s29 + $0x688] sm:$0xff] %v596_v17  ;;  %v598_v18 = vld [vmem:[%s3913_s28 + $0xd20] sm:$0xff]  ;;  %v600_v19 = vld [vmem:[%s3913_s28 + $0xd28] sm:$0xff] }
  0x7d   : > { %v602_v20 = vld [vmem:[%s3913_s28 + $0xd40] sm:$0xff]  ;;  %599 = vst [vmem:[%s3918_s29 + $0x690] sm:$0xff] %v598_v18  ;;  %601 = vst [vmem:[%s3918_s29 + $0x698] sm:$0xff] %v600_v19  ;;  %v604_v21 = vld [vmem:[%s3913_s28 + $0xd48] sm:$0xff] }
  0x7e   : > { %603 = vst [vmem:[%s3918_s29 + $0x6a0] sm:$0xff] %v602_v20  ;;  %v606_v22 = vld [vmem:[%s3913_s28 + $0xd60] sm:$0xff]  ;;  %v608_v23 = vld [vmem:[%s3913_s28 + $0xd68] sm:$0xff]  ;;  %605 = vst [vmem:[%s3918_s29 + $0x6a8] sm:$0xff] %v604_v21 }
  0x7f   : > { %607 = vst [vmem:[%s3918_s29 + $0x6b0] sm:$0xff] %v606_v22  ;;  %609 = vst [vmem:[%s3918_s29 + $0x6b8] sm:$0xff] %v608_v23  ;;  %v610_v24 = vld [vmem:[%s3913_s28 + $0xd80] sm:$0xff]  ;;  %v612_v25 = vld [vmem:[%s3913_s28 + $0xd88] sm:$0xff] }
  0x80   : > { %v614_v26 = vld [vmem:[%s3913_s28 + $0xda0] sm:$0xff]  ;;  %611 = vst [vmem:[%s3918_s29 + $0x6c0] sm:$0xff] %v610_v24  ;;  %613 = vst [vmem:[%s3918_s29 + $0x6c8] sm:$0xff] %v612_v25  ;;  %v616_v27 = vld [vmem:[%s3913_s28 + $0xda8] sm:$0xff] }
  0x81   : > { %615 = vst [vmem:[%s3918_s29 + $0x6d0] sm:$0xff] %v614_v26  ;;  %v618_v28 = vld [vmem:[%s3913_s28 + $0xdc0] sm:$0xff]  ;;  %v620_v29 = vld [vmem:[%s3913_s28 + $0xdc8] sm:$0xff]  ;;  %617 = vst [vmem:[%s3918_s29 + $0x6d8] sm:$0xff] %v616_v27 }
  0x82   : > { %619 = vst [vmem:[%s3918_s29 + $0x6e0] sm:$0xff] %v618_v28  ;;  %621 = vst [vmem:[%s3918_s29 + $0x6e8] sm:$0xff] %v620_v29  ;;  %v622_v30 = vld [vmem:[%s3913_s28 + $0xde0] sm:$0xff]  ;;  %v624_v31 = vld [vmem:[%s3913_s28 + $0xde8] sm:$0xff] }
  0x83   : > { %v626_v32 = vld [vmem:[%s3913_s28 + $0xe00] sm:$0xff]  ;;  %623 = vst [vmem:[%s3918_s29 + $0x6f0] sm:$0xff] %v622_v30  ;;  %625 = vst [vmem:[%s3918_s29 + $0x6f8] sm:$0xff] %v624_v31  ;;  %v628_v33 = vld [vmem:[%s3913_s28 + $0xe08] sm:$0xff] }
  0x84   : > { %627 = vst [vmem:[%s3918_s29 + $0x700] sm:$0xff] %v626_v32  ;;  %v630_v34 = vld [vmem:[%s3913_s28 + $0xe20] sm:$0xff]  ;;  %v632_v35 = vld [vmem:[%s3913_s28 + $0xe28] sm:$0xff]  ;;  %629 = vst [vmem:[%s3918_s29 + $0x708] sm:$0xff] %v628_v33 }
  0x85   : > { %631 = vst [vmem:[%s3918_s29 + $0x710] sm:$0xff] %v630_v34  ;;  %633 = vst [vmem:[%s3918_s29 + $0x718] sm:$0xff] %v632_v35  ;;  %v634_v36 = vld [vmem:[%s3913_s28 + $0xe40] sm:$0xff]  ;;  %v636_v37 = vld [vmem:[%s3913_s28 + $0xe48] sm:$0xff] }
  0x86   : > { %v638_v38 = vld [vmem:[%s3913_s28 + $0xe60] sm:$0xff]  ;;  %635 = vst [vmem:[%s3918_s29 + $0x720] sm:$0xff] %v634_v36  ;;  %637 = vst [vmem:[%s3918_s29 + $0x728] sm:$0xff] %v636_v37  ;;  %v640_v39 = vld [vmem:[%s3913_s28 + $0xe68] sm:$0xff] }
  0x87   : > { %639 = vst [vmem:[%s3918_s29 + $0x730] sm:$0xff] %v638_v38  ;;  %v642_v40 = vld [vmem:[%s3913_s28 + $0xe80] sm:$0xff]  ;;  %v644_v41 = vld [vmem:[%s3913_s28 + $0xe88] sm:$0xff]  ;;  %641 = vst [vmem:[%s3918_s29 + $0x738] sm:$0xff] %v640_v39 }
  0x88   : > { %643 = vst [vmem:[%s3918_s29 + $0x740] sm:$0xff] %v642_v40  ;;  %645 = vst [vmem:[%s3918_s29 + $0x748] sm:$0xff] %v644_v41  ;;  %v646_v42 = vld [vmem:[%s3913_s28 + $0xea0] sm:$0xff]  ;;  %v648_v43 = vld [vmem:[%s3913_s28 + $0xea8] sm:$0xff] }
  0x89   : > { %v650_v44 = vld [vmem:[%s3913_s28 + $0xec0] sm:$0xff]  ;;  %647 = vst [vmem:[%s3918_s29 + $0x750] sm:$0xff] %v646_v42  ;;  %649 = vst [vmem:[%s3918_s29 + $0x758] sm:$0xff] %v648_v43  ;;  %v652_v45 = vld [vmem:[%s3913_s28 + $0xec8] sm:$0xff] }
  0x8a   : > { %651 = vst [vmem:[%s3918_s29 + $0x760] sm:$0xff] %v650_v44  ;;  %v654_v46 = vld [vmem:[%s3913_s28 + $0xee0] sm:$0xff]  ;;  %v656_v47 = vld [vmem:[%s3913_s28 + $0xee8] sm:$0xff]  ;;  %653 = vst [vmem:[%s3918_s29 + $0x768] sm:$0xff] %v652_v45 }
  0x8b   : > { %655 = vst [vmem:[%s3918_s29 + $0x770] sm:$0xff] %v654_v46  ;;  %657 = vst [vmem:[%s3918_s29 + $0x778] sm:$0xff] %v656_v47  ;;  %v658_v48 = vld [vmem:[%s3913_s28 + $0xf00] sm:$0xff]  ;;  %v660_v49 = vld [vmem:[%s3913_s28 + $0xf08] sm:$0xff] }
  0x8c   : > { %v662_v50 = vld [vmem:[%s3913_s28 + $0xf20] sm:$0xff]  ;;  %659 = vst [vmem:[%s3918_s29 + $0x780] sm:$0xff] %v658_v48  ;;  %661 = vst [vmem:[%s3918_s29 + $0x788] sm:$0xff] %v660_v49  ;;  %v664_v51 = vld [vmem:[%s3913_s28 + $0xf28] sm:$0xff] }
  0x8d   : > { %663 = vst [vmem:[%s3918_s29 + $0x790] sm:$0xff] %v662_v50  ;;  %v666_v52 = vld [vmem:[%s3913_s28 + $0xf40] sm:$0xff]  ;;  %v668_v53 = vld [vmem:[%s3913_s28 + $0xf48] sm:$0xff]  ;;  %665 = vst [vmem:[%s3918_s29 + $0x798] sm:$0xff] %v664_v51 }
  0x8e   : > { %667 = vst [vmem:[%s3918_s29 + $0x7a0] sm:$0xff] %v666_v52  ;;  %669 = vst [vmem:[%s3918_s29 + $0x7a8] sm:$0xff] %v668_v53  ;;  %v670_v54 = vld [vmem:[%s3913_s28 + $0xf60] sm:$0xff]  ;;  %v672_v55 = vld [vmem:[%s3913_s28 + $0xf68] sm:$0xff] }
  0x8f   : > { %v674_v56 = vld [vmem:[%s3913_s28 + $0xf80] sm:$0xff]  ;;  %671 = vst [vmem:[%s3918_s29 + $0x7b0] sm:$0xff] %v670_v54  ;;  %673 = vst [vmem:[%s3918_s29 + $0x7b8] sm:$0xff] %v672_v55  ;;  %v676_v57 = vld [vmem:[%s3913_s28 + $0xf88] sm:$0xff] }
  0x90   : > { %675 = vst [vmem:[%s3918_s29 + $0x7c0] sm:$0xff] %v674_v56  ;;  %v678_v58 = vld [vmem:[%s3913_s28 + $0xfa0] sm:$0xff]  ;;  %v680_v59 = vld [vmem:[%s3913_s28 + $0xfa8] sm:$0xff]  ;;  %677 = vst [vmem:[%s3918_s29 + $0x7c8] sm:$0xff] %v676_v57 }
  0x91   : > { %679 = vst [vmem:[%s3918_s29 + $0x7d0] sm:$0xff] %v678_v58  ;;  %681 = vst [vmem:[%s3918_s29 + $0x7d8] sm:$0xff] %v680_v59  ;;  %v682_v60 = vld [vmem:[%s3913_s28 + $0xfc0] sm:$0xff]  ;;  %v684_v61 = vld [vmem:[%s3913_s28 + $0xfc8] sm:$0xff] }
  0x92   : > { %v686_v62 = vld [vmem:[%s3913_s28 + $0xfe0] sm:$0xff]  ;;  %683 = vst [vmem:[%s3918_s29 + $0x7e0] sm:$0xff] %v682_v60  ;;  %685 = vst [vmem:[%s3918_s29 + $0x7e8] sm:$0xff] %v684_v61  ;;  %v688_v63 = vld [vmem:[%s3913_s28 + $0xfe8] sm:$0xff] }
  0x93   : > { %687 = vst [vmem:[%s3918_s29 + $0x7f0] sm:$0xff] %v686_v62  ;;  %689 = vst [vmem:[%s3918_s29 + $0x7f8] sm:$0xff] %v688_v63 }
  0x94 PF: > { %p3082_p8 = scmp.ge.s32.totalorder %s3843_s16, 1  ;;  %p702_p9 = scmp.lt.s32.totalorder %s3843_s16, 3 }
  0x96   : > { %p703_p10 = pnand %p3082_p8, %p702_p9 }
  0x97   : > { %s709_s30 = sand.u32 (!%p703_p10), 1, %s3827_s12   ;;  %s3085_s29 = sshll.u32 (!%p703_p10), %s3835_s14, 2 }
  0x98   : > { %706 = sbr.rel (%p703_p10) target bundleno = 642 (0x282), region = 51  ;;  %s3083_s10 = sshll.u32 (!%p703_p10), %s709_s30, 11 }
  0x99   : > { %s4454_s19 = scalar_lea.vmem (!%p703_p10), [#allocation2], %s3083_s10  ;;  %p750_p11 = scmp.lt.s32.totalorder (!%p703_p10), %s3085_s29, 7 }
  0x9a   : > { %s3084_s6 = sshll.u32 (!%p703_p10), %s709_s30, 6 }
  0x9b   : > { %s4834_s12 = scalar_lea.vmem (!%p703_p10), [#allocation3], %s3084_s6 }
  0x9d   : > { %v756_v0 = vld [vmem:[%s4877_s0] sm:$0xff]  ;;  %v757_v2 = vld [vmem:[%s4877_s0 + $0x8] sm:$0xff]  ;;  %s4889_s29 = smov (!%p750_p11, %s3085_s29), 7  ;;  %s3380_s30 = sshll.u32 (%p3900_p6), %s3835_s14, 4 }
  0x9e   : > { %v760_v1 = vld [vmem:[%s4877_s0 + $0x20] sm:$0xff]  ;;  %v761_v5 = vld [vmem:[%s4877_s0 + $0x28] sm:$0xff]  ;;  %s752_s5 = scalar_lea.vmem %s4879_s2, %s4889_s29  ;;  %s2950_s9 = scalar_lea.vmem (%p3900_p6), %s4880_s3, %s3380_s30 }
  0x9f   : > { %v4443_v3 = vcombine.low %v756_v0, %v760_v1  ;;  %v4445_v4 = vcombine.high %v756_v0, %v760_v1  ;;  %v4450_v6 = vcombine.low %v757_v2, %v761_v5  ;;  %v4452_v7 = vcombine.high %v757_v2, %v761_v5  ;;  %v3421_v8 = vld [vmem:[%s4454_s19 + $0xe4] ss:$16 sps:$4 sm:$0xff]   ;;  %v3425_v10 = vld [vmem:[%s4454_s19 + $0xe0] ss:$16 sps:$4 sm:$0xff]  }
  0xa0   : > { %v3423_v9 = vld [vmem:[%s4454_s19 + $0x2e4] ss:$16 sps:$4 sm:$0xff]   ;;  %2410 = vmatprep.subr.bf16.mxu0 %v3421_v8  ;;  %v3426_v11 = vld [vmem:[%s4454_s19 + $0x2e0] ss:$16 sps:$4 sm:$0xff]  }
  0xa1   : > { %2442 = vmatprep.mubr.bf16.mxu0 %v4445_v4  ;;  %2495 = vmatprep.mubr.bf16.mxu1 %v4452_v7  ;;  %v3427_v12 = vld [vmem:[%s4454_s19 + $0xc4] ss:$16 sps:$4 sm:$0xff]   ;;  %v3431_v14 = vld [vmem:[%s4454_s19 + $0xc0] ss:$16 sps:$4 sm:$0xff]  }
  0xa2   : > { %2463 = vmatprep.subr.bf16.mxu1 %v3423_v9  ;;  %2411 = vmatpush1.bf16.msra.mxu0 %v3425_v10  ;;  %v3429_v13 = vld [vmem:[%s4454_s19 + $0x2c4] ss:$16 sps:$4 sm:$0xff]   ;;  %v3432_v15 = vld [vmem:[%s4454_s19 + $0x2c0] ss:$16 sps:$4 sm:$0xff]  }
  0xa3   : > { %2464 = vmatpush1.bf16.msra.mxu1 %v3426_v11  ;;  %2412 = vmatprep.subr.bf16.mxu0 %v3427_v12  ;;  %v3433_v16 = vld [vmem:[%s4454_s19 + $0xa4] ss:$16 sps:$4 sm:$0xff]   ;;  %v3437_v18 = vld [vmem:[%s4454_s19 + $0xa0] ss:$16 sps:$4 sm:$0xff]  }
  0xa4   : > { %2465 = vmatprep.subr.bf16.mxu1 %v3429_v13  ;;  %v3435_v17 = vld [vmem:[%s4454_s19 + $0x2a4] ss:$16 sps:$4 sm:$0xff]   ;;  %v3438_v19 = vld [vmem:[%s4454_s19 + $0x2a0] ss:$16 sps:$4 sm:$0xff]  }
  0xa5   : > { %v3439_v20 = vld [vmem:[%s4454_s19 + $0x84] ss:$16 sps:$4 sm:$0xff]   ;;  %v3443_v22 = vld [vmem:[%s4454_s19 + $0x80] ss:$16 sps:$4 sm:$0xff]  }
  0xa6   : > { %2413 = vmatpush1.bf16.msra.mxu0 %v3431_v14  ;;  %v3441_v21 = vld [vmem:[%s4454_s19 + $0x284] ss:$16 sps:$4 sm:$0xff]   ;;  %v3444_v23 = vld [vmem:[%s4454_s19 + $0x280] ss:$16 sps:$4 sm:$0xff]  }
  0xa7   : > { %2466 = vmatpush1.bf16.msra.mxu1 %v3432_v15  ;;  %2414 = vmatprep.subr.bf16.mxu0 %v3433_v16  ;;  %v3445_v24 = vld [vmem:[%s4454_s19 + $0x64] ss:$16 sps:$4 sm:$0xff]   ;;  %v3449_v26 = vld [vmem:[%s4454_s19 + $0x60] ss:$16 sps:$4 sm:$0xff]   ;;  %v765_v16 = vld [vmem:[%s4877_s0 + $0x48] sm:$0xff] }
  0xa8   : > { %2467 = vmatprep.subr.bf16.mxu1 %v3435_v17  ;;  %v3447_v25 = vld [vmem:[%s4454_s19 + $0x264] ss:$16 sps:$4 sm:$0xff]   ;;  %v3450_v27 = vld [vmem:[%s4454_s19 + $0x260] ss:$16 sps:$4 sm:$0xff]   ;;  %v769_v17 = vld [vmem:[%s4877_s0 + $0x68] sm:$0xff] }
  0xa9   : > { %v3451_v28 = vld [vmem:[%s4454_s19 + $0x44] ss:$16 sps:$4 sm:$0xff]   ;;  %v3455_v30 = vld [vmem:[%s4454_s19 + $0x40] ss:$16 sps:$4 sm:$0xff]  }
  0xaa   : > { %2415 = vmatpush1.bf16.msra.mxu0 %v3437_v18  ;;  %v3453_v29 = vld [vmem:[%s4454_s19 + $0x244] ss:$16 sps:$4 sm:$0xff]   ;;  %v3456_v31 = vld [vmem:[%s4454_s19 + $0x240] ss:$16 sps:$4 sm:$0xff]  }
  0xab   : > { %2468 = vmatpush1.bf16.msra.mxu1 %v3438_v19  ;;  %2416 = vmatprep.subr.bf16.mxu0 %v3439_v20  ;;  %v3457_v32 = vld [vmem:[%s4454_s19 + $0x24] ss:$16 sps:$4 sm:$0xff]   ;;  %v3461_v34 = vld [vmem:[%s4454_s19 + $0x20] ss:$16 sps:$4 sm:$0xff]  }
  0xac   : > { %2469 = vmatprep.subr.bf16.mxu1 %v3441_v21  ;;  %v3459_v33 = vld [vmem:[%s4454_s19 + $0x224] ss:$16 sps:$4 sm:$0xff]   ;;  %v3462_v35 = vld [vmem:[%s4454_s19 + $0x220] ss:$16 sps:$4 sm:$0xff]  }
  0xad   : > { %v3463_v36 = vld [vmem:[%s4454_s19 + $0x4] ss:$16 sps:$4 sm:$0xff]   ;;  %v3467_v38 = vld [vmem:[%s4454_s19] ss:$16 sps:$4 sm:$0xff]  }
  0xae   : > { %2417 = vmatpush1.bf16.msra.mxu0 %v3443_v22  ;;  %v3465_v37 = vld [vmem:[%s4454_s19 + $0x204] ss:$16 sps:$4 sm:$0xff]   ;;  %v3468_v39 = vld [vmem:[%s4454_s19 + $0x200] ss:$16 sps:$4 sm:$0xff]  }
  0xaf   : > { %2470 = vmatpush1.bf16.msra.mxu1 %v3444_v23  ;;  %2418 = vmatprep.subr.bf16.mxu0 %v3445_v24  ;;  %v3469_v40 = vld [vmem:[%s4454_s19 + $0x1e4] ss:$16 sps:$4 sm:$0xff]   ;;  %v3473_v42 = vld [vmem:[%s4454_s19 + $0x1e0] ss:$16 sps:$4 sm:$0xff]   ;;  %v4542_v23 = vcombine.high %v765_v16, %v769_v17 }
  0xb0   : > { %2471 = vmatprep.subr.bf16.mxu1 %v3447_v25  ;;  %v3471_v41 = vld [vmem:[%s4454_s19 + $0x3e4] ss:$16 sps:$4 sm:$0xff]   ;;  %v3474_v43 = vld [vmem:[%s4454_s19 + $0x3e0] ss:$16 sps:$4 sm:$0xff]  }
  0xb1   : > { %v3475_v44 = vld [vmem:[%s4454_s19 + $0x1c4] ss:$16 sps:$4 sm:$0xff]   ;;  %v3479_v46 = vld [vmem:[%s4454_s19 + $0x1c0] ss:$16 sps:$4 sm:$0xff]  }
  0xb2   : > { %2419 = vmatpush1.bf16.msra.mxu0 %v3449_v26  ;;  %v3477_v45 = vld [vmem:[%s4454_s19 + $0x3c4] ss:$16 sps:$4 sm:$0xff]   ;;  %v3480_v47 = vld [vmem:[%s4454_s19 + $0x3c0] ss:$16 sps:$4 sm:$0xff]  }
  0xb3   : > { %2472 = vmatpush1.bf16.msra.mxu1 %v3450_v27  ;;  %2420 = vmatprep.subr.bf16.mxu0 %v3451_v28  ;;  %v3481_v48 = vld [vmem:[%s4454_s19 + $0x1a4] ss:$16 sps:$4 sm:$0xff]   ;;  %v3485_v50 = vld [vmem:[%s4454_s19 + $0x1a0] ss:$16 sps:$4 sm:$0xff]  }
  0xb4   : > { %2473 = vmatprep.subr.bf16.mxu1 %v3453_v29  ;;  %v3483_v49 = vld [vmem:[%s4454_s19 + $0x3a4] ss:$16 sps:$4 sm:$0xff]   ;;  %v3486_v51 = vld [vmem:[%s4454_s19 + $0x3a0] ss:$16 sps:$4 sm:$0xff]  }
  0xb5   : > { %v3487_v52 = vld [vmem:[%s4454_s19 + $0x184] ss:$16 sps:$4 sm:$0xff]   ;;  %v3491_v54 = vld [vmem:[%s4454_s19 + $0x180] ss:$16 sps:$4 sm:$0xff]  }
  0xb6   : > { %2421 = vmatpush1.bf16.msra.mxu0 %v3455_v30  ;;  %v3489_v53 = vld [vmem:[%s4454_s19 + $0x384] ss:$16 sps:$4 sm:$0xff]   ;;  %v3492_v55 = vld [vmem:[%s4454_s19 + $0x380] ss:$16 sps:$4 sm:$0xff]  }
  0xb7   : > { %2474 = vmatpush1.bf16.msra.mxu1 %v3456_v31  ;;  %2422 = vmatprep.subr.bf16.mxu0 %v3457_v32  ;;  %v3493_v56 = vld [vmem:[%s4454_s19 + $0x164] ss:$16 sps:$4 sm:$0xff]   ;;  %v3497_v58 = vld [vmem:[%s4454_s19 + $0x160] ss:$16 sps:$4 sm:$0xff]   ;;  %v4556_v31 = vcombine.low %v765_v16, %v769_v17 }
  0xb8   : > { %2475 = vmatprep.subr.bf16.mxu1 %v3459_v33  ;;  %v3495_v57 = vld [vmem:[%s4454_s19 + $0x364] ss:$16 sps:$4 sm:$0xff]   ;;  %v3498_v59 = vld [vmem:[%s4454_s19 + $0x360] ss:$16 sps:$4 sm:$0xff]  }
  0xb9   : > { %v3499_v60 = vld [vmem:[%s4454_s19 + $0x144] ss:$16 sps:$4 sm:$0xff]   ;;  %v3503_v62 = vld [vmem:[%s4454_s19 + $0x140] ss:$16 sps:$4 sm:$0xff]  }
  0xba   : > { %2423 = vmatpush1.bf16.msra.mxu0 %v3461_v34  ;;  %v3501_v61 = vld [vmem:[%s4454_s19 + $0x344] ss:$16 sps:$4 sm:$0xff]   ;;  %v3504_v63 = vld [vmem:[%s4454_s19 + $0x340] ss:$16 sps:$4 sm:$0xff]  }
  0xbb   : > { %2476 = vmatpush1.bf16.msra.mxu1 %v3462_v35  ;;  %2424 = vmatprep.subr.bf16.mxu0 %v3463_v36  ;;  %v3505_v0 = vld [vmem:[%s4454_s19 + $0x124] ss:$16 sps:$4 sm:$0xff]   ;;  %v3509_v2 = vld [vmem:[%s4454_s19 + $0x120] ss:$16 sps:$4 sm:$0xff]  }
  0xbc   : > { %2477 = vmatprep.subr.bf16.mxu1 %v3465_v37  ;;  %v3507_v1 = vld [vmem:[%s4454_s19 + $0x324] ss:$16 sps:$4 sm:$0xff]   ;;  %v3510_v5 = vld [vmem:[%s4454_s19 + $0x320] ss:$16 sps:$4 sm:$0xff]  }
  0xbd   : > { %v3511_v8 = vld [vmem:[%s4454_s19 + $0x104] ss:$16 sps:$4 sm:$0xff]   ;;  %v3515_v10 = vld [vmem:[%s4454_s19 + $0x100] ss:$16 sps:$4 sm:$0xff]  }
  0xbe   : > { %2425 = vmatpush1.bf16.msra.mxu0 %v3467_v38  ;;  %v3513_v9 = vld [vmem:[%s4454_s19 + $0x304] ss:$16 sps:$4 sm:$0xff]   ;;  %v3516_v11 = vld [vmem:[%s4454_s19 + $0x300] ss:$16 sps:$4 sm:$0xff]  }
  0xbf   : > { %2478 = vmatpush1.bf16.msra.mxu1 %v3468_v39  ;;  %2426 = vmatprep.subr.bf16.mxu0 %v3469_v40  ;;  %v3519_v12 = vld [vmem:[%s4454_s19 + $0x4e4] ss:$16 sps:$4 sm:$0xff]   ;;  %v3517_v18 = vld [vmem:[%s4454_s19 + $0x4e0] ss:$16 sps:$4 sm:$0xff]  }
  0xc0   : > { %2479 = vmatprep.subr.bf16.mxu1 %v3471_v41  ;;  %v3522_v13 = vld [vmem:[%s4454_s19 + $0x6e4] ss:$16 sps:$4 sm:$0xff]   ;;  %v3520_v19 = vld [vmem:[%s4454_s19 + $0x6e0] ss:$16 sps:$4 sm:$0xff]  }
  0xc1   : > { %v764_v14 = vld [vmem:[%s4877_s0 + $0x40] sm:$0xff] }
  0xc2   : > { %2427 = vmatpush2.bf16.msra.mxu0 %v3473_v42  ;;  %v768_v15 = vld [vmem:[%s4877_s0 + $0x60] sm:$0xff]  ;;  %v4573_v42 = vld [vmem:[%s4877_s0 + $0x10] sm:$0xff] }
  0xc3   : > { %2480 = vmatpush2.bf16.msra.mxu1 %v3474_v43  ;;  %2428 = vmatprep.subr.bf16.mxu0 %v3475_v44  ;;  %v3525_v20 = vld [vmem:[%s4454_s19 + $0x4c4] ss:$16 sps:$4 sm:$0xff]   ;;  %v4540_v22 = vcombine.high %v764_v14, %v768_v15  ;;  %v3523_v24 = vld [vmem:[%s4454_s19 + $0x4c0] ss:$16 sps:$4 sm:$0xff]   ;;  %v4554_v30 = vcombine.low %v764_v14, %v768_v15 }
  0xc4   : > { %2481 = vmatprep.subr.bf16.mxu1 %v3477_v45  ;;  %v3528_v21 = vld [vmem:[%s4454_s19 + $0x6c4] ss:$16 sps:$4 sm:$0xff]   ;;  %v3526_v25 = vld [vmem:[%s4454_s19 + $0x6c0] ss:$16 sps:$4 sm:$0xff]  }
  0xc5   : > { %v3531_v26 = vld [vmem:[%s4454_s19 + $0x4a4] ss:$16 sps:$4 sm:$0xff]   ;;  %v3529_v28 = vld [vmem:[%s4454_s19 + $0x4a0] ss:$16 sps:$4 sm:$0xff]  }
  0xc6   : > { %2429 = vmatpush2.bf16.msra.mxu0 %v3479_v46  ;;  %v3534_v27 = vld [vmem:[%s4454_s19 + $0x6a4] ss:$16 sps:$4 sm:$0xff]   ;;  %v3532_v29 = vld [vmem:[%s4454_s19 + $0x6a0] ss:$16 sps:$4 sm:$0xff]  }
  0xc7   : > { %2482 = vmatpush2.bf16.msra.mxu1 %v3480_v47  ;;  %2430 = vmatprep.subr.bf16.mxu0 %v3481_v48  ;;  %v3537_v32 = vld [vmem:[%s4454_s19 + $0x484] ss:$16 sps:$4 sm:$0xff]   ;;  %v3535_v34 = vld [vmem:[%s4454_s19 + $0x480] ss:$16 sps:$4 sm:$0xff]   ;;  %v4587_v48 = vld [vmem:[%s4877_s0 + $0x18] sm:$0xff] }
  0xc8   : > { %2483 = vmatprep.subr.bf16.mxu1 %v3483_v49  ;;  %v3540_v33 = vld [vmem:[%s4454_s19 + $0x684] ss:$16 sps:$4 sm:$0xff]   ;;  %v3538_v35 = vld [vmem:[%s4454_s19 + $0x680] ss:$16 sps:$4 sm:$0xff]  }
  0xc9   : > { %v3543_v36 = vld [vmem:[%s4454_s19 + $0x464] ss:$16 sps:$4 sm:$0xff]   ;;  %v3541_v38 = vld [vmem:[%s4454_s19 + $0x460] ss:$16 sps:$4 sm:$0xff]  }
  0xca   : > { %2431 = vmatpush2.bf16.msra.mxu0 %v3485_v50  ;;  %v3546_v37 = vld [vmem:[%s4454_s19 + $0x664] ss:$16 sps:$4 sm:$0xff]   ;;  %v3544_v39 = vld [vmem:[%s4454_s19 + $0x660] ss:$16 sps:$4 sm:$0xff]   ;;  %v4596_v50 = vld [vmem:[%s4877_s0 + $0x38] sm:$0xff] }
  0xcb   : > { %2484 = vmatpush2.bf16.msra.mxu1 %v3486_v51  ;;  %2432 = vmatprep.subr.bf16.mxu0 %v3487_v52  ;;  %v3549_v40 = vld [vmem:[%s4454_s19 + $0x444] ss:$16 sps:$4 sm:$0xff]   ;;  %v3547_v43 = vld [vmem:[%s4454_s19 + $0x440] ss:$16 sps:$4 sm:$0xff]   ;;  %v4601_v52 = vcombine.high %v4587_v48, %v4596_v50 }
  0xcc   : > { %2485 = vmatprep.subr.bf16.mxu1 %v3489_v53  ;;  %v3552_v41 = vld [vmem:[%s4454_s19 + $0x644] ss:$16 sps:$4 sm:$0xff]   ;;  %v3550_v44 = vld [vmem:[%s4454_s19 + $0x640] ss:$16 sps:$4 sm:$0xff]  }
  0xcd   : > { %v3555_v45 = vld [vmem:[%s4454_s19 + $0x424] ss:$16 sps:$4 sm:$0xff]   ;;  %v3553_v51 = vld [vmem:[%s4454_s19 + $0x420] ss:$16 sps:$4 sm:$0xff]  }
  0xce   : > { %2433 = vmatpush2.bf16.msra.mxu0 %v3491_v54  ;;  %v3558_v46 = vld [vmem:[%s4454_s19 + $0x624] ss:$16 sps:$4 sm:$0xff]   ;;  %v3556_v53 = vld [vmem:[%s4454_s19 + $0x620] ss:$16 sps:$4 sm:$0xff]  }
  0xcf   : > { %2486 = vmatpush2.bf16.msra.mxu1 %v3492_v55  ;;  %2434 = vmatprep.subr.bf16.mxu0 %v3493_v56  ;;  %v4582_v47 = vld [vmem:[%s4877_s0 + $0x30] sm:$0xff] }
  0xd0   : > { %2487 = vmatprep.subr.bf16.mxu1 %v3495_v57  ;;  %v4591_v49 = vcombine.high %v4573_v42, %v4582_v47  ;;  %v3561_v54 = vld [vmem:[%s4454_s19 + $0x404] ss:$16 sps:$4 sm:$0xff]   ;;  %v3559_v56 = vld [vmem:[%s4454_s19 + $0x400] ss:$16 sps:$4 sm:$0xff]  }
  0xd1   : > { %v3564_v55 = vld [vmem:[%s4454_s19 + $0x604] ss:$16 sps:$4 sm:$0xff]   ;;  %v3562_v57 = vld [vmem:[%s4454_s19 + $0x600] ss:$16 sps:$4 sm:$0xff]  }
  0xd2   : > { %2435 = vmatpush2.bf16.msra.mxu0 %v3497_v58  ;;  %v3567_v58 = vld [vmem:[%s4454_s19 + $0x5e4] ss:$16 sps:$4 sm:$0xff]   ;;  %v3589_v16 = vld [vmem:[%s4454_s19 + $0x560] ss:$16 sps:$4 sm:$0xff]  }
  0xd3   : > { %2488 = vmatpush2.bf16.msra.mxu1 %v3498_v59  ;;  %2436 = vmatprep.subr.bf16.mxu0 %v3499_v60  ;;  %v3570_v59 = vld [vmem:[%s4454_s19 + $0x7e4] ss:$16 sps:$4 sm:$0xff]   ;;  %v3565_v60 = vld [vmem:[%s4454_s19 + $0x5e0] ss:$16 sps:$4 sm:$0xff]  }
  0xd4   : > { %2489 = vmatprep.subr.bf16.mxu1 %v3501_v61  ;;  %v3568_v61 = vld [vmem:[%s4454_s19 + $0x7e0] ss:$16 sps:$4 sm:$0xff]   ;;  %v3591_v14 = vld [vmem:[%s4454_s19 + $0x564] ss:$16 sps:$4 sm:$0xff]  }
  0xd5   : > { %v3594_v15 = vld [vmem:[%s4454_s19 + $0x764] ss:$16 sps:$4 sm:$0xff]   ;;  %v3592_v17 = vld [vmem:[%s4454_s19 + $0x760] ss:$16 sps:$4 sm:$0xff]  }
  0xd6   : > { %2437 = vmatpush2.bf16.msra.mxu0 %v3503_v62  ;;  %v3573_v62 = vld [vmem:[%s4454_s19 + $0x5c4] ss:$16 sps:$4 sm:$0xff]  }
  0xd7   : > { %2490 = vmatpush2.bf16.msra.mxu1 %v3504_v63  ;;  %2438 = vmatprep.subr.bf16.mxu0 %v3505_v0  ;;  %v3576_v63 = vld [vmem:[%s4454_s19 + $0x7c4] ss:$16 sps:$4 sm:$0xff]   ;;  %v3571_v0 = vld [vmem:[%s4454_s19 + $0x5c0] ss:$16 sps:$4 sm:$0xff]  }
  0xd8   : > { %2491 = vmatprep.subr.bf16.mxu1 %v3507_v1  ;;  %v3574_v1 = vld [vmem:[%s4454_s19 + $0x7c0] ss:$16 sps:$4 sm:$0xff]  }
  0xda   : > { %2439 = vmatpush2.bf16.msra.mxu0 %v3509_v2  ;;  %v3579_v2 = vld [vmem:[%s4454_s19 + $0x5a4] ss:$16 sps:$4 sm:$0xff]  }
  0xdb   : > { %2492 = vmatpush2.bf16.msra.mxu1 %v3510_v5  ;;  %2440 = vmatprep.subr.bf16.mxu0 %v3511_v8  ;;  %v3582_v5 = vld [vmem:[%s4454_s19 + $0x7a4] ss:$16 sps:$4 sm:$0xff]   ;;  %v3577_v8 = vld [vmem:[%s4454_s19 + $0x5a0] ss:$16 sps:$4 sm:$0xff]  }
  0xdc   : > { %2493 = vmatprep.subr.bf16.mxu1 %v3513_v9  ;;  %v3580_v9 = vld [vmem:[%s4454_s19 + $0x7a0] ss:$16 sps:$4 sm:$0xff]  }
  0xde   : > { %2441 = vmatpush2.bf16.msra.mxu0 %v3515_v10  ;;  %v3585_v10 = vld [vmem:[%s4454_s19 + $0x584] ss:$16 sps:$4 sm:$0xff]  }
  0xdf   : > { %2494 = vmatpush2.bf16.msra.mxu1 %v3516_v11  ;;  %2516 = vmatprep.subr.bf16.mxu0 %v3519_v12  ;;  %v3588_v11 = vld [vmem:[%s4454_s19 + $0x784] ss:$16 sps:$4 sm:$0xff]   ;;  %v3583_v12 = vld [vmem:[%s4454_s19 + $0x580] ss:$16 sps:$4 sm:$0xff]  }
  0xe0   : > { %2569 = vmatprep.subr.bf16.mxu1 %v3522_v13  ;;  %v3586_v13 = vld [vmem:[%s4454_s19 + $0x780] ss:$16 sps:$4 sm:$0xff]  }
  0xe1   : > { %2443 = vmatmul.mubr.bf16.vlgmr.msra.gmra.mxu0 %v4443_v3 }
  0xe2   : > { %2496 = vmatmul.mubr.bf16.vlgmr.msra.gmra.mxu1 %v4450_v6  ;;  %2517 = vmatpush1.bf16.msra.mxu0 %v3517_v18  ;;  %v3597_v18 = vld [vmem:[%s4454_s19 + $0x544] ss:$16 sps:$4 sm:$0xff]  }
  0xe3   : > { %2570 = vmatpush1.bf16.msra.mxu1 %v3520_v19  ;;  %2518 = vmatprep.subr.bf16.mxu0 %v3525_v20  ;;  %v3600_v19 = vld [vmem:[%s4454_s19 + $0x744] ss:$16 sps:$4 sm:$0xff]   ;;  %v3595_v20 = vld [vmem:[%s4454_s19 + $0x540] ss:$16 sps:$4 sm:$0xff]  }
  0xe4   : > { %2571 = vmatprep.subr.bf16.mxu1 %v3528_v21  ;;  %2452 = vmatprep.mubr.bf16.mxu0 %v4540_v22  ;;  %v3598_v21 = vld [vmem:[%s4454_s19 + $0x740] ss:$16 sps:$4 sm:$0xff]  }
  0xe5   : > { %2505 = vmatprep.mubr.bf16.mxu1 %v4542_v23 }
  0xe6   : > { %2519 = vmatpush1.bf16.msra.mxu0 %v3523_v24  ;;  %v3603_v24 = vld [vmem:[%s4454_s19 + $0x524] ss:$16 sps:$4 sm:$0xff]  }
  0xe7   : > { %2572 = vmatpush1.bf16.msra.mxu1 %v3526_v25  ;;  %2520 = vmatprep.subr.bf16.mxu0 %v3531_v26  ;;  %v3606_v25 = vld [vmem:[%s4454_s19 + $0x724] ss:$16 sps:$4 sm:$0xff]   ;;  %v3601_v26 = vld [vmem:[%s4454_s19 + $0x520] ss:$16 sps:$4 sm:$0xff]  }
  0xe8   : > { %2573 = vmatprep.subr.bf16.mxu1 %v3534_v27  ;;  %v3604_v27 = vld [vmem:[%s4454_s19 + $0x720] ss:$16 sps:$4 sm:$0xff]  }
  0xe9   : > { %2453 = vmatmul.mubr.bf16.gmra.mxu0 %v4554_v30 }
  0xea   : > { %2506 = vmatmul.mubr.bf16.gmra.mxu1 %v4556_v31  ;;  %2521 = vmatpush1.bf16.msra.mxu0 %v3529_v28  ;;  %v3609_v28 = vld [vmem:[%s4454_s19 + $0x504] ss:$16 sps:$4 sm:$0xff]  }
  0xeb   : > { %2574 = vmatpush1.bf16.msra.mxu1 %v3532_v29  ;;  %2522 = vmatprep.subr.bf16.mxu0 %v3537_v32  ;;  %v3612_v29 = vld [vmem:[%s4454_s19 + $0x704] ss:$16 sps:$4 sm:$0xff]   ;;  %v3607_v32 = vld [vmem:[%s4454_s19 + $0x500] ss:$16 sps:$4 sm:$0xff]  }
  0xec   : > { %2575 = vmatprep.subr.bf16.mxu1 %v3540_v33  ;;  %2548 = vmatprep.mubr.bf16.mxu0 %v4591_v49  ;;  %v3610_v33 = vld [vmem:[%s4454_s19 + $0x700] ss:$16 sps:$4 sm:$0xff]  }
  0xed   : > { %2601 = vmatprep.mubr.bf16.mxu1 %v4601_v52 }
  0xee   : > { %2523 = vmatpush1.bf16.msra.mxu0 %v3535_v34  ;;  %v3615_v34 = vld [vmem:[%s4454_s19 + $0xec] ss:$16 sps:$4 sm:$0xff]  }
  0xef   : > { %2576 = vmatpush1.bf16.msra.mxu1 %v3538_v35  ;;  %2524 = vmatprep.subr.bf16.mxu0 %v3543_v36  ;;  %v3618_v35 = vld [vmem:[%s4454_s19 + $0x2ec] ss:$16 sps:$4 sm:$0xff]   ;;  %v766_v36 = vld [vmem:[%s4877_s0 + $0x50] sm:$0xff] }
  0xf0   : > { %2577 = vmatprep.subr.bf16.mxu1 %v3546_v37  ;;  %v3613_v37 = vld [vmem:[%s4454_s19 + $0xe8] ss:$16 sps:$4 sm:$0xff]  }
  0xf2   : > { %2525 = vmatpush1.bf16.msra.mxu0 %v3541_v38  ;;  %v770_v38 = vld [vmem:[%s4877_s0 + $0x70] sm:$0xff] }
  0xf3   : > { %2578 = vmatpush1.bf16.msra.mxu1 %v3544_v39  ;;  %2526 = vmatprep.subr.bf16.mxu0 %v3549_v40  ;;  %v4653_v39 = vcombine.low %v4573_v42, %v4582_v47  ;;  %v4657_v40 = vcombine.low %v4587_v48, %v4596_v50  ;;  %v3621_v42 = vld [vmem:[%s4454_s19 + $0xcc] ss:$16 sps:$4 sm:$0xff]   ;;  %v3619_v48 = vld [vmem:[%s4454_s19 + $0xc8] ss:$16 sps:$4 sm:$0xff]  }
  0xf4   : > { %2579 = vmatprep.subr.bf16.mxu1 %v3552_v41  ;;  %v767_v41 = vld [vmem:[%s4877_s0 + $0x58] sm:$0xff] }
  0xf5   : > { %v3622_v50 = vld [vmem:[%s4454_s19 + $0x2c8] ss:$16 sps:$4 sm:$0xff]  }
  0xf6   : > { %2527 = vmatpush1.bf16.msra.mxu0 %v3547_v43  ;;  %v771_v43 = vld [vmem:[%s4877_s0 + $0x78] sm:$0xff] }
  0xf7   : > { %2580 = vmatpush1.bf16.msra.mxu1 %v3550_v44  ;;  %2528 = vmatprep.subr.bf16.mxu0 %v3555_v45  ;;  %v3616_v44 = vld [vmem:[%s4454_s19 + $0x2e8] ss:$16 sps:$4 sm:$0xff]   ;;  %v3624_v45 = vld [vmem:[%s4454_s19 + $0x2cc] ss:$16 sps:$4 sm:$0xff]   ;;  %v4670_v47 = vcombine.high %v767_v41, %v771_v43 }
  0xf8   : > { %2581 = vmatprep.subr.bf16.mxu1 %v3558_v46  ;;  %v4668_v46 = vcombine.high %v766_v36, %v770_v38 }
  0xfa   : > { %2529 = vmatpush1.bf16.msra.mxu0 %v3553_v51  ;;  %v3627_v51 = vld [vmem:[%s4454_s19 + $0xac] ss:$16 sps:$4 sm:$0xff]  }
  0xfb   : > { %2582 = vmatpush1.bf16.msra.mxu1 %v3556_v53  ;;  %2530 = vmatprep.subr.bf16.mxu0 %v3561_v54  ;;  %v3630_v53 = vld [vmem:[%s4454_s19 + $0x2ac] ss:$16 sps:$4 sm:$0xff]   ;;  %v4680_v54 = vcombine.low %v766_v36, %v770_v38  ;;  %v3685_v38 = vld [vmem:[%s4454_s19 + $0x168] ss:$16 sps:$4 sm:$0xff]  }
  0xfc   : > { %2583 = vmatprep.subr.bf16.mxu1 %v3564_v55  ;;  %v3625_v55 = vld [vmem:[%s4454_s19 + $0xa8] ss:$16 sps:$4 sm:$0xff]   ;;  %v3687_v36 = vld [vmem:[%s4454_s19 + $0x16c] ss:$16 sps:$4 sm:$0xff]  }
  0xfe   : > { %2531 = vmatpush1.bf16.msra.mxu0 %v3559_v56  ;;  %v4683_v56 = vcombine.low %v767_v41, %v771_v43  ;;  %v3688_v41 = vld [vmem:[%s4454_s19 + $0x368] ss:$16 sps:$4 sm:$0xff]   ;;  %v3693_v43 = vld [vmem:[%s4454_s19 + $0x14c] ss:$16 sps:$4 sm:$0xff]  }
  0xff   : > { %2584 = vmatpush1.bf16.msra.mxu1 %v3562_v57  ;;  %2532 = vmatprep.subr.bf16.mxu0 %v3567_v58  ;;  %v3628_v57 = vld [vmem:[%s4454_s19 + $0x2a8] ss:$16 sps:$4 sm:$0xff]   ;;  %v3633_v58 = vld [vmem:[%s4454_s19 + $0x8c] ss:$16 sps:$4 sm:$0xff]  }
 0x100   : > { %2585 = vmatprep.subr.bf16.mxu1 %v3570_v59  ;;  %v3636_v59 = vld [vmem:[%s4454_s19 + $0x28c] ss:$16 sps:$4 sm:$0xff]  }
 0x102   : > { %2533 = vmatpush2.bf16.msra.mxu0 %v3565_v60  ;;  %v3631_v60 = vld [vmem:[%s4454_s19 + $0x88] ss:$16 sps:$4 sm:$0xff]  }
 0x103   : > { %2586 = vmatpush2.bf16.msra.mxu1 %v3568_v61  ;;  %2534 = vmatprep.subr.bf16.mxu0 %v3573_v62  ;;  %v3634_v61 = vld [vmem:[%s4454_s19 + $0x288] ss:$16 sps:$4 sm:$0xff]   ;;  %v3639_v62 = vld [vmem:[%s4454_s19 + $0x6c] ss:$16 sps:$4 sm:$0xff]  }
 0x104   : > { %2587 = vmatprep.subr.bf16.mxu1 %v3576_v63  ;;  %v3642_v63 = vld [vmem:[%s4454_s19 + $0x26c] ss:$16 sps:$4 sm:$0xff]  }
 0x106   : > { %2535 = vmatpush2.bf16.msra.mxu0 %v3571_v0  ;;  %v3637_v0 = vld [vmem:[%s4454_s19 + $0x68] ss:$16 sps:$4 sm:$0xff]  }
 0x107   : > { %2588 = vmatpush2.bf16.msra.mxu1 %v3574_v1  ;;  %2536 = vmatprep.subr.bf16.mxu0 %v3579_v2  ;;  %v3640_v1 = vld [vmem:[%s4454_s19 + $0x268] ss:$16 sps:$4 sm:$0xff]   ;;  %v3645_v2 = vld [vmem:[%s4454_s19 + $0x4c] ss:$16 sps:$4 sm:$0xff]  }
 0x108   : > { %2589 = vmatprep.subr.bf16.mxu1 %v3582_v5  ;;  %v3648_v5 = vld [vmem:[%s4454_s19 + $0x24c] ss:$16 sps:$4 sm:$0xff]  }
 0x10a   : > { %2537 = vmatpush2.bf16.msra.mxu0 %v3577_v8  ;;  %v3643_v8 = vld [vmem:[%s4454_s19 + $0x48] ss:$16 sps:$4 sm:$0xff]  }
 0x10b   : > { %2590 = vmatpush2.bf16.msra.mxu1 %v3580_v9  ;;  %2538 = vmatprep.subr.bf16.mxu0 %v3585_v10  ;;  %v3654_v9 = vld [vmem:[%s4454_s19 + $0x22c] ss:$16 sps:$4 sm:$0xff]   ;;  %v3649_v10 = vld [vmem:[%s4454_s19 + $0x28] ss:$16 sps:$4 sm:$0xff]  }
 0x10c   : > { %2591 = vmatprep.subr.bf16.mxu1 %v3588_v11  ;;  %v3652_v11 = vld [vmem:[%s4454_s19 + $0x228] ss:$16 sps:$4 sm:$0xff]  }
 0x10e   : > { %2539 = vmatpush2.bf16.msra.mxu0 %v3583_v12  ;;  %v3657_v12 = vld [vmem:[%s4454_s19 + $0xc] ss:$16 sps:$4 sm:$0xff]  }
 0x10f   : > { %2592 = vmatpush2.bf16.msra.mxu1 %v3586_v13  ;;  %2540 = vmatprep.subr.bf16.mxu0 %v3591_v14  ;;  %v3660_v13 = vld [vmem:[%s4454_s19 + $0x20c] ss:$16 sps:$4 sm:$0xff]   ;;  %v3655_v14 = vld [vmem:[%s4454_s19 + $0x8] ss:$16 sps:$4 sm:$0xff]  }
 0x110   : > { %2593 = vmatprep.subr.bf16.mxu1 %v3594_v15  ;;  %v3658_v15 = vld [vmem:[%s4454_s19 + $0x208] ss:$16 sps:$4 sm:$0xff]  }
 0x112   : > { %2541 = vmatpush2.bf16.msra.mxu0 %v3589_v16  ;;  %v3663_v16 = vld [vmem:[%s4454_s19 + $0x1ec] ss:$16 sps:$4 sm:$0xff]  }
 0x113   : > { %2594 = vmatpush2.bf16.msra.mxu1 %v3592_v17  ;;  %2542 = vmatprep.subr.bf16.mxu0 %v3597_v18  ;;  %v3666_v17 = vld [vmem:[%s4454_s19 + $0x3ec] ss:$16 sps:$4 sm:$0xff]   ;;  %v3661_v18 = vld [vmem:[%s4454_s19 + $0x1e8] ss:$16 sps:$4 sm:$0xff]  }
 0x114   : > { %2595 = vmatprep.subr.bf16.mxu1 %v3600_v19  ;;  %v3664_v19 = vld [vmem:[%s4454_s19 + $0x3e8] ss:$16 sps:$4 sm:$0xff]  }
 0x116   : > { %2543 = vmatpush2.bf16.msra.mxu0 %v3595_v20  ;;  %v3669_v20 = vld [vmem:[%s4454_s19 + $0x1cc] ss:$16 sps:$4 sm:$0xff]  }
 0x117   : > { %2596 = vmatpush2.bf16.msra.mxu1 %v3598_v21  ;;  %2544 = vmatprep.subr.bf16.mxu0 %v3603_v24  ;;  %v3672_v21 = vld [vmem:[%s4454_s19 + $0x3cc] ss:$16 sps:$4 sm:$0xff]   ;;  %v3667_v24 = vld [vmem:[%s4454_s19 + $0x1c8] ss:$16 sps:$4 sm:$0xff]  }
 0x118   : > { %2597 = vmatprep.subr.bf16.mxu1 %v3606_v25  ;;  %v3670_v25 = vld [vmem:[%s4454_s19 + $0x3c8] ss:$16 sps:$4 sm:$0xff]  }
 0x11a   : > { %2545 = vmatpush2.bf16.msra.mxu0 %v3601_v26  ;;  %v3675_v26 = vld [vmem:[%s4454_s19 + $0x1ac] ss:$16 sps:$4 sm:$0xff]  }
 0x11b   : > { %2598 = vmatpush2.bf16.msra.mxu1 %v3604_v27  ;;  %2546 = vmatprep.subr.bf16.mxu0 %v3609_v28  ;;  %v3678_v27 = vld [vmem:[%s4454_s19 + $0x3ac] ss:$16 sps:$4 sm:$0xff]   ;;  %v3673_v28 = vld [vmem:[%s4454_s19 + $0x1a8] ss:$16 sps:$4 sm:$0xff]  }
 0x11c   : > { %2599 = vmatprep.subr.bf16.mxu1 %v3612_v29  ;;  %v3676_v29 = vld [vmem:[%s4454_s19 + $0x3a8] ss:$16 sps:$4 sm:$0xff]  }
 0x11e   : > { %2547 = vmatpush2.bf16.msra.mxu0 %v3607_v32  ;;  %v3681_v32 = vld [vmem:[%s4454_s19 + $0x18c] ss:$16 sps:$4 sm:$0xff]  }
 0x11f   : > { %2600 = vmatpush2.bf16.msra.mxu1 %v3610_v33  ;;  %2622 = vmatprep.subr.bf16.mxu0 %v3615_v34  ;;  %v3684_v33 = vld [vmem:[%s4454_s19 + $0x38c] ss:$16 sps:$4 sm:$0xff]   ;;  %v3679_v34 = vld [vmem:[%s4454_s19 + $0x188] ss:$16 sps:$4 sm:$0xff]  }
 0x120   : > { %2675 = vmatprep.subr.bf16.mxu1 %v3618_v35  ;;  %v3682_v35 = vld [vmem:[%s4454_s19 + $0x388] ss:$16 sps:$4 sm:$0xff]  }
 0x121   : > { %2549 = vmatmul.mubr.bf16.vlgmr.msra.gmra.mxu0 %v4653_v39 }
 0x122   : > { %2602 = vmatmul.mubr.bf16.vlgmr.msra.gmra.mxu1 %v4657_v40  ;;  %2623 = vmatpush1.bf16.msra.mxu0 %v3613_v37  ;;  %v3690_v37 = vld [vmem:[%s4454_s19 + $0x36c] ss:$16 sps:$4 sm:$0xff]  }
 0x123   : > { %2676 = vmatpush1.bf16.msra.mxu1 %v3616_v44  ;;  %2624 = vmatprep.subr.bf16.mxu0 %v3621_v42  ;;  %v3696_v44 = vld [vmem:[%s4454_s19 + $0x34c] ss:$16 sps:$4 sm:$0xff]   ;;  %v3691_v42 = vld [vmem:[%s4454_s19 + $0x148] ss:$16 sps:$4 sm:$0xff]  }
 0x124   : > { %2677 = vmatprep.subr.bf16.mxu1 %v3624_v45  ;;  %2558 = vmatprep.mubr.bf16.mxu0 %v4668_v46  ;;  %v3694_v45 = vld [vmem:[%s4454_s19 + $0x348] ss:$16 sps:$4 sm:$0xff]  }
 0x125   : > { %2611 = vmatprep.mubr.bf16.mxu1 %v4670_v47 }
 0x126   : > { %2625 = vmatpush1.bf16.msra.mxu0 %v3619_v48  ;;  %v3699_v48 = vld [vmem:[%s4454_s19 + $0x12c] ss:$16 sps:$4 sm:$0xff]  }
 0x127   : > { %2678 = vmatpush1.bf16.msra.mxu1 %v3622_v50  ;;  %2626 = vmatprep.subr.bf16.mxu0 %v3627_v51  ;;  %v3702_v50 = vld [vmem:[%s4454_s19 + $0x32c] ss:$16 sps:$4 sm:$0xff]   ;;  %v3697_v51 = vld [vmem:[%s4454_s19 + $0x128] ss:$16 sps:$4 sm:$0xff]  }
 0x128   : > { %2679 = vmatprep.subr.bf16.mxu1 %v3630_v53  ;;  %v3700_v53 = vld [vmem:[%s4454_s19 + $0x328] ss:$16 sps:$4 sm:$0xff]  }
 0x129   : > { %2559 = vmatmul.mubr.bf16.gmra.mxu0 %v4680_v54 }
 0x12a   : > { %2612 = vmatmul.mubr.bf16.gmra.mxu1 %v4683_v56  ;;  %2627 = vmatpush1.bf16.msra.mxu0 %v3625_v55  ;;  %v3705_v55 = vld [vmem:[%s4454_s19 + $0x10c] ss:$16 sps:$4 sm:$0xff]  }
 0x12b   : > { %2680 = vmatpush1.bf16.msra.mxu1 %v3628_v57  ;;  %2628 = vmatprep.subr.bf16.mxu0 %v3633_v58  ;;  %v3708_v57 = vld [vmem:[%s4454_s19 + $0x30c] ss:$16 sps:$4 sm:$0xff]   ;;  %v3703_v58 = vld [vmem:[%s4454_s19 + $0x108] ss:$16 sps:$4 sm:$0xff]  }
 0x12c   : > { %2681 = vmatprep.subr.bf16.mxu1 %v3636_v59  ;;  %2654 = vmatprep.mubr.bf16.mxu0 %v4445_v4  ;;  %v3646_v4 = vld [vmem:[%s4454_s19 + $0x248] ss:$16 sps:$4 sm:$0xff]  }
 0x12d   : > { %2707 = vmatprep.mubr.bf16.mxu1 %v4452_v7  ;;  %v3651_v7 = vld [vmem:[%s4454_s19 + $0x2c] ss:$16 sps:$4 sm:$0xff]   ;;  %v3706_v59 = vld [vmem:[%s4454_s19 + $0x308] ss:$16 sps:$4 sm:$0xff]  }
 0x12e   : > { %2629 = vmatpush1.bf16.msra.mxu0 %v3631_v60  ;;  %v3711_v60 = vld [vmem:[%s4454_s19 + $0x4ec] ss:$16 sps:$4 sm:$0xff]  }
 0x12f   : > { %2682 = vmatpush1.bf16.msra.mxu1 %v3634_v61  ;;  %2630 = vmatprep.subr.bf16.mxu0 %v3639_v62  ;;  %v3714_v61 = vld [vmem:[%s4454_s19 + $0x6ec] ss:$16 sps:$4 sm:$0xff]   ;;  %v3709_v62 = vld [vmem:[%s4454_s19 + $0x4e8] ss:$16 sps:$4 sm:$0xff]  }
 0x130   : > { %2683 = vmatprep.subr.bf16.mxu1 %v3642_v63  ;;  %v3712_v63 = vld [vmem:[%s4454_s19 + $0x6e8] ss:$16 sps:$4 sm:$0xff]  }
 0x132   : > { %2631 = vmatpush1.bf16.msra.mxu0 %v3637_v0  ;;  %v3717_v0 = vld [vmem:[%s4454_s19 + $0x4cc] ss:$16 sps:$4 sm:$0xff]  }
 0x133   : > { %2684 = vmatpush1.bf16.msra.mxu1 %v3640_v1  ;;  %2632 = vmatprep.subr.bf16.mxu0 %v3645_v2  ;;  %v3720_v1 = vld [vmem:[%s4454_s19 + $0x6cc] ss:$16 sps:$4 sm:$0xff]   ;;  %v3715_v2 = vld [vmem:[%s4454_s19 + $0x4c8] ss:$16 sps:$4 sm:$0xff]  }
 0x134   : > { %2685 = vmatprep.subr.bf16.mxu1 %v3648_v5  ;;  %v3718_v5 = vld [vmem:[%s4454_s19 + $0x6c8] ss:$16 sps:$4 sm:$0xff]  }
 0x136   : > { %2633 = vmatpush1.bf16.msra.mxu0 %v3643_v8  ;;  %v3723_v8 = vld [vmem:[%s4454_s19 + $0x4ac] ss:$16 sps:$4 sm:$0xff]  }
 0x137   : > { %2686 = vmatpush1.bf16.msra.mxu1 %v3646_v4  ;;  %2634 = vmatprep.subr.bf16.mxu0 %v3651_v7  ;;  %v3726_v4 = vld [vmem:[%s4454_s19 + $0x6ac] ss:$16 sps:$4 sm:$0xff]  }
 0x138   : > { %2687 = vmatprep.subr.bf16.mxu1 %v3654_v9  ;;  %v3729_v7 = vld [vmem:[%s4454_s19 + $0x48c] ss:$16 sps:$4 sm:$0xff]  }
 0x139   : > { %v3732_v9 = vld [vmem:[%s4454_s19 + $0x68c] ss:$16 sps:$4 sm:$0xff]  }
 0x13a   : > { %2635 = vmatpush1.bf16.msra.mxu0 %v3649_v10  ;;  %v3735_v10 = vld [vmem:[%s4454_s19 + $0x46c] ss:$16 sps:$4 sm:$0xff]  }
 0x13b   : > { %2688 = vmatpush1.bf16.msra.mxu1 %v3652_v11  ;;  %2636 = vmatprep.subr.bf16.mxu0 %v3657_v12  ;;  %v3738_v11 = vld [vmem:[%s4454_s19 + $0x66c] ss:$16 sps:$4 sm:$0xff]  }
 0x13c   : > { %2689 = vmatprep.subr.bf16.mxu1 %v3660_v13  ;;  %v3741_v12 = vld [vmem:[%s4454_s19 + $0x44c] ss:$16 sps:$4 sm:$0xff]  }
 0x13d   : > { %v3744_v13 = vld [vmem:[%s4454_s19 + $0x64c] ss:$16 sps:$4 sm:$0xff]  }
 0x13e   : > { %2637 = vmatpush1.bf16.msra.mxu0 %v3655_v14  ;;  %v3739_v14 = vld [vmem:[%s4454_s19 + $0x448] ss:$16 sps:$4 sm:$0xff]  }
 0x13f   : > { %2690 = vmatpush1.bf16.msra.mxu1 %v3658_v15  ;;  %2638 = vmatprep.subr.bf16.mxu0 %v3663_v16  ;;  %v3750_v15 = vld [vmem:[%s4454_s19 + $0x62c] ss:$16 sps:$4 sm:$0xff]   ;;  %v3745_v16 = vld [vmem:[%s4454_s19 + $0x428] ss:$16 sps:$4 sm:$0xff]  }
 0x140   : > { %2691 = vmatprep.subr.bf16.mxu1 %v3666_v17  ;;  %v3748_v17 = vld [vmem:[%s4454_s19 + $0x628] ss:$16 sps:$4 sm:$0xff]  }
 0x142   : > { %2639 = vmatpush2.bf16.msra.mxu0 %v3661_v18  ;;  %v3753_v18 = vld [vmem:[%s4454_s19 + $0x40c] ss:$16 sps:$4 sm:$0xff]  }
 0x143   : > { %2692 = vmatpush2.bf16.msra.mxu1 %v3664_v19  ;;  %2640 = vmatprep.subr.bf16.mxu0 %v3669_v20  ;;  %v3756_v19 = vld [vmem:[%s4454_s19 + $0x60c] ss:$16 sps:$4 sm:$0xff]   ;;  %v3751_v20 = vld [vmem:[%s4454_s19 + $0x408] ss:$16 sps:$4 sm:$0xff]  }
 0x144   : > { %2693 = vmatprep.subr.bf16.mxu1 %v3672_v21  ;;  %v3754_v21 = vld [vmem:[%s4454_s19 + $0x608] ss:$16 sps:$4 sm:$0xff]  }
 0x146   : > { %2641 = vmatpush2.bf16.msra.mxu0 %v3667_v24  ;;  %v3759_v24 = vld [vmem:[%s4454_s19 + $0x5ec] ss:$16 sps:$4 sm:$0xff]  }
 0x147   : > { %2694 = vmatpush2.bf16.msra.mxu1 %v3670_v25  ;;  %2642 = vmatprep.subr.bf16.mxu0 %v3675_v26  ;;  %v3762_v25 = vld [vmem:[%s4454_s19 + $0x7ec] ss:$16 sps:$4 sm:$0xff]   ;;  %v3757_v26 = vld [vmem:[%s4454_s19 + $0x5e8] ss:$16 sps:$4 sm:$0xff]  }
 0x148   : > { %2695 = vmatprep.subr.bf16.mxu1 %v3678_v27  ;;  %v3760_v27 = vld [vmem:[%s4454_s19 + $0x7e8] ss:$16 sps:$4 sm:$0xff]  }
 0x14a   : > { %2643 = vmatpush2.bf16.msra.mxu0 %v3673_v28  ;;  %v3765_v28 = vld [vmem:[%s4454_s19 + $0x5cc] ss:$16 sps:$4 sm:$0xff]  }
 0x14b   : > { %2696 = vmatpush2.bf16.msra.mxu1 %v3676_v29  ;;  %2644 = vmatprep.subr.bf16.mxu0 %v3681_v32  ;;  %v3768_v29 = vld [vmem:[%s4454_s19 + $0x7cc] ss:$16 sps:$4 sm:$0xff]   ;;  %v3763_v32 = vld [vmem:[%s4454_s19 + $0x5c8] ss:$16 sps:$4 sm:$0xff]  }
 0x14c   : > { %2697 = vmatprep.subr.bf16.mxu1 %v3684_v33  ;;  %v3766_v33 = vld [vmem:[%s4454_s19 + $0x7c8] ss:$16 sps:$4 sm:$0xff]  }
 0x14e   : > { %2645 = vmatpush2.bf16.msra.mxu0 %v3679_v34  ;;  %v3771_v34 = vld [vmem:[%s4454_s19 + $0x5ac] ss:$16 sps:$4 sm:$0xff]  }
 0x14f   : > { %2698 = vmatpush2.bf16.msra.mxu1 %v3682_v35  ;;  %2646 = vmatprep.subr.bf16.mxu0 %v3687_v36  ;;  %v3774_v35 = vld [vmem:[%s4454_s19 + $0x7ac] ss:$16 sps:$4 sm:$0xff]   ;;  %v3769_v36 = vld [vmem:[%s4454_s19 + $0x5a8] ss:$16 sps:$4 sm:$0xff]  }
 0x150   : > { %2699 = vmatprep.subr.bf16.mxu1 %v3690_v37  ;;  %v3772_v37 = vld [vmem:[%s4454_s19 + $0x7a8] ss:$16 sps:$4 sm:$0xff]  }
 0x152   : > { %2647 = vmatpush2.bf16.msra.mxu0 %v3685_v38  ;;  %v3777_v38 = vld [vmem:[%s4454_s19 + $0x58c] ss:$16 sps:$4 sm:$0xff]  }
 0x153   : > { %2700 = vmatpush2.bf16.msra.mxu1 %v3688_v41  ;;  %2648 = vmatprep.subr.bf16.mxu0 %v3693_v43  ;;  %v3780_v41 = vld [vmem:[%s4454_s19 + $0x78c] ss:$16 sps:$4 sm:$0xff]   ;;  %v3775_v43 = vld [vmem:[%s4454_s19 + $0x588] ss:$16 sps:$4 sm:$0xff]  }
 0x154   : > { %2701 = vmatprep.subr.bf16.mxu1 %v3696_v44  ;;  %v3778_v44 = vld [vmem:[%s4454_s19 + $0x788] ss:$16 sps:$4 sm:$0xff]  }
 0x156   : > { %2649 = vmatpush2.bf16.msra.mxu0 %v3691_v42  ;;  %v3783_v42 = vld [vmem:[%s4454_s19 + $0x56c] ss:$16 sps:$4 sm:$0xff]  }
 0x157   : > { %2702 = vmatpush2.bf16.msra.mxu1 %v3694_v45  ;;  %2650 = vmatprep.subr.bf16.mxu0 %v3699_v48  ;;  %v3786_v45 = vld [vmem:[%s4454_s19 + $0x76c] ss:$16 sps:$4 sm:$0xff]   ;;  %v3781_v48 = vld [vmem:[%s4454_s19 + $0x568] ss:$16 sps:$4 sm:$0xff]  }
 0x158   : > { %2703 = vmatprep.subr.bf16.mxu1 %v3702_v50  ;;  %v3784_v50 = vld [vmem:[%s4454_s19 + $0x768] ss:$16 sps:$4 sm:$0xff]  }
 0x15a   : > { %2651 = vmatpush2.bf16.msra.mxu0 %v3697_v51  ;;  %v3789_v51 = vld [vmem:[%s4454_s19 + $0x54c] ss:$16 sps:$4 sm:$0xff]  }
 0x15b   : > { %2704 = vmatpush2.bf16.msra.mxu1 %v3700_v53  ;;  %2652 = vmatprep.subr.bf16.mxu0 %v3705_v55  ;;  %v3792_v53 = vld [vmem:[%s4454_s19 + $0x74c] ss:$16 sps:$4 sm:$0xff]   ;;  %v3787_v55 = vld [vmem:[%s4454_s19 + $0x548] ss:$16 sps:$4 sm:$0xff]  }
 0x15c   : > { %2705 = vmatprep.subr.bf16.mxu1 %v3708_v57  ;;  %v3790_v57 = vld [vmem:[%s4454_s19 + $0x748] ss:$16 sps:$4 sm:$0xff]  }
 0x15e   : > { %2653 = vmatpush2.bf16.msra.mxu0 %v3703_v58  ;;  %v3795_v58 = vld [vmem:[%s4454_s19 + $0x52c] ss:$16 sps:$4 sm:$0xff]  }
 0x15f   : > { %2706 = vmatpush2.bf16.msra.mxu1 %v3706_v59  ;;  %2728 = vmatprep.subr.bf16.mxu0 %v3711_v60  ;;  %v3798_v59 = vld [vmem:[%s4454_s19 + $0x72c] ss:$16 sps:$4 sm:$0xff]   ;;  %v3793_v60 = vld [vmem:[%s4454_s19 + $0x528] ss:$16 sps:$4 sm:$0xff]  }
 0x160   : > { %2781 = vmatprep.subr.bf16.mxu1 %v3714_v61  ;;  %v3796_v61 = vld [vmem:[%s4454_s19 + $0x728] ss:$16 sps:$4 sm:$0xff]  }
 0x161   : > { %2655 = vmatmul.mubr.bf16.vlgmr.msra.gmra.mxu0 %v4443_v3  ;;  %v3721_v3 = vld [vmem:[%s4454_s19 + $0x4a8] ss:$16 sps:$4 sm:$0xff]  }
 0x162   : > { %2708 = vmatmul.mubr.bf16.vlgmr.msra.gmra.mxu1 %v4450_v6  ;;  %2729 = vmatpush1.bf16.msra.mxu0 %v3709_v62  ;;  %v3724_v6 = vld [vmem:[%s4454_s19 + $0x6a8] ss:$16 sps:$4 sm:$0xff]   ;;  %v3801_v62 = vld [vmem:[%s4454_s19 + $0x50c] ss:$16 sps:$4 sm:$0xff]  }
 0x163   : > { %2782 = vmatpush1.bf16.msra.mxu1 %v3712_v63  ;;  %2730 = vmatprep.subr.bf16.mxu0 %v3717_v0  ;;  %v3804_v63 = vld [vmem:[%s4454_s19 + $0x70c] ss:$16 sps:$4 sm:$0xff]   ;;  %v3799_v0 = vld [vmem:[%s4454_s19 + $0x508] ss:$16 sps:$4 sm:$0xff]  }
 0x164   : > { %2783 = vmatprep.subr.bf16.mxu1 %v3720_v1  ;;  %2664 = vmatprep.mubr.bf16.mxu0 %v4540_v22  ;;  %v3727_v22 = vld [vmem:[%s4454_s19 + $0x488] ss:$16 sps:$4 sm:$0xff]  }
 0x165   : > { %2717 = vmatprep.mubr.bf16.mxu1 %v4542_v23  ;;  %v3730_v23 = vld [vmem:[%s4454_s19 + $0x688] ss:$16 sps:$4 sm:$0xff]  }
 0x166   : > { %2731 = vmatpush1.bf16.msra.mxu0 %v3715_v2  ;;  %v3802_v1 = vld [vmem:[%s4454_s19 + $0x708] ss:$16 sps:$4 sm:$0xff]  }
 0x167   : > { %2784 = vmatpush1.bf16.msra.mxu1 %v3718_v5  ;;  %2732 = vmatprep.subr.bf16.mxu0 %v3723_v8 }
 0x168   : > { %2785 = vmatprep.subr.bf16.mxu1 %v3726_v4 }
 0x169   : > { %2665 = vmatmul.mubr.bf16.gmra.mxu0 %v4554_v30  ;;  %v3733_v30 = vld [vmem:[%s4454_s19 + $0x468] ss:$16 sps:$4 sm:$0xff]  }
 0x16a   : > { %2718 = vmatmul.mubr.bf16.gmra.mxu1 %v4556_v31  ;;  %2733 = vmatpush1.bf16.msra.mxu0 %v3721_v3  ;;  %v3736_v31 = vld [vmem:[%s4454_s19 + $0x668] ss:$16 sps:$4 sm:$0xff]   ;;  %v1030_v3 = vlaneseq }
 0x16b   : > { %2786 = vmatpush1.bf16.msra.mxu1 %v3724_v6  ;;  %2734 = vmatprep.subr.bf16.mxu0 %v3729_v7 }
 0x16c   : > { %2787 = vmatprep.subr.bf16.mxu1 %v3732_v9  ;;  %2760 = vmatprep.mubr.bf16.mxu0 %v4591_v49  ;;  %v3742_v49 = vld [vmem:[%s4454_s19 + $0x648] ss:$16 sps:$4 sm:$0xff]   ;;  %v4827_v9 = vld [vmem:[%s752_s5] sm:$0xf] }
 0x16d   : > { %2813 = vmatprep.mubr.bf16.mxu1 %v4601_v52  ;;  %v3747_v52 = vld [vmem:[%s4454_s19 + $0x42c] ss:$16 sps:$4 sm:$0xff]  }
 0x16e   : > { %2735 = vmatpush1.bf16.msra.mxu0 %v3727_v22 }
 0x16f   : > { %2788 = vmatpush1.bf16.msra.mxu1 %v3730_v23  ;;  %2736 = vmatprep.subr.bf16.mxu0 %v3735_v10 }
 0x170   : > { %2789 = vmatprep.subr.bf16.mxu1 %v3738_v11 }
 0x172   : > { %2737 = vmatpush1.bf16.msra.mxu0 %v3733_v30 }
 0x173   : > { %2790 = vmatpush1.bf16.msra.mxu1 %v3736_v31  ;;  %2738 = vmatprep.subr.bf16.mxu0 %v3741_v12 }
 0x174   : > { %2791 = vmatprep.subr.bf16.mxu1 %v3744_v13 }
 0x176   : > { %2739 = vmatpush1.bf16.msra.mxu0 %v3739_v14 }
 0x177   : > { %2792 = vmatpush1.bf16.msra.mxu1 %v3742_v49  ;;  %2740 = vmatprep.subr.bf16.mxu0 %v3747_v52 }
 0x178   : > { %2793 = vmatprep.subr.bf16.mxu1 %v3750_v15 }
 0x17a   : > { %2741 = vmatpush1.bf16.msra.mxu0 %v3745_v16 }
 0x17b   : > { %2794 = vmatpush1.bf16.msra.mxu1 %v3748_v17  ;;  %2742 = vmatprep.subr.bf16.mxu0 %v3753_v18 }
 0x17c   : > { %2795 = vmatprep.subr.bf16.mxu1 %v3756_v19 }
 0x17e   : > { %2743 = vmatpush1.bf16.msra.mxu0 %v3751_v20 }
 0x17f   : > { %2796 = vmatpush1.bf16.msra.mxu1 %v3754_v21  ;;  %2744 = vmatprep.subr.bf16.mxu0 %v3759_v24 }
 0x180   : > { %2797 = vmatprep.subr.bf16.mxu1 %v3762_v25 }
 0x182   : > { %2745 = vmatpush2.bf16.msra.mxu0 %v3757_v26 }
 0x183   : > { %2798 = vmatpush2.bf16.msra.mxu1 %v3760_v27  ;;  %2746 = vmatprep.subr.bf16.mxu0 %v3765_v28 }
 0x184   : > { %2799 = vmatprep.subr.bf16.mxu1 %v3768_v29 }
 0x186   : > { %2747 = vmatpush2.bf16.msra.mxu0 %v3763_v32 }
 0x187   : > { %2800 = vmatpush2.bf16.msra.mxu1 %v3766_v33  ;;  %2748 = vmatprep.subr.bf16.mxu0 %v3771_v34 }
 0x188   : > { %2801 = vmatprep.subr.bf16.mxu1 %v3774_v35 }
 0x18a   : > { %2749 = vmatpush2.bf16.msra.mxu0 %v3769_v36 }
 0x18b   : > { %2802 = vmatpush2.bf16.msra.mxu1 %v3772_v37  ;;  %2750 = vmatprep.subr.bf16.mxu0 %v3777_v38 }
 0x18c   : > { %2803 = vmatprep.subr.bf16.mxu1 %v3780_v41 }
 0x18e   : > { %2751 = vmatpush2.bf16.msra.mxu0 %v3775_v43 }
 0x18f   : > { %2804 = vmatpush2.bf16.msra.mxu1 %v3778_v44  ;;  %2752 = vmatprep.subr.bf16.mxu0 %v3783_v42 }
 0x190   : > { %2805 = vmatprep.subr.bf16.mxu1 %v3786_v45 }
 0x192   : > { %2753 = vmatpush2.bf16.msra.mxu0 %v3781_v48 }
 0x193   : > { %2806 = vmatpush2.bf16.msra.mxu1 %v3784_v50  ;;  %2754 = vmatprep.subr.bf16.mxu0 %v3789_v51 }
 0x194   : > { %2807 = vmatprep.subr.bf16.mxu1 %v3792_v53 }
 0x196   : > { %2755 = vmatpush2.bf16.msra.mxu0 %v3787_v55 }
 0x197   : > { %2808 = vmatpush2.bf16.msra.mxu1 %v3790_v57  ;;  %2756 = vmatprep.subr.bf16.mxu0 %v3795_v58 }
 0x198   : > { %2809 = vmatprep.subr.bf16.mxu1 %v3798_v59 }
 0x19a   : > { %2757 = vmatpush2.bf16.msra.mxu0 %v3793_v60 }
 0x19b   : > { %2810 = vmatpush2.bf16.msra.mxu1 %v3796_v61  ;;  %2758 = vmatprep.subr.bf16.mxu0 %v3801_v62 }
 0x19c   : > { %2811 = vmatprep.subr.bf16.mxu1 %v3804_v63 }
 0x19e   : > { %2759 = vmatpush2.bf16.msra.mxu0 %v3799_v0 }
 0x19f   : > { %2812 = vmatpush2.bf16.msra.mxu1 %v3802_v1 }
 0x1a1   : > { %2761 = vmatmul.mubr.bf16.vlgmr.msra.gmra.mxu0 %v4653_v39  ;;  %v2444_v2 = vpop.f32.mrf.mxu0  ;;  %v4821_v39 = vshrl.u32 %v1030_v3, 7 }
 0x1a2   : > { %2814 = vmatmul.mubr.bf16.vlgmr.msra.gmra.mxu1 %v4657_v40  ;;  %2770 = vmatprep.mubr.bf16.mxu0 %v4668_v46  ;;  %v2497_v5 = vpop.f32.mrf.mxu1 }
 0x1a3   : > { %2823 = vmatprep.mubr.bf16.mxu1 %v4670_v47  ;;  %v2446_v8 = vpop.f32.mrf.mxu0  ;;  %v1036_v22 = vsub.s32 1, %v4821_v39 }
 0x1a4   : > { %v2499_v4 = vpop.f32.mrf.mxu1 }
 0x1a5   : > { %v2448_v6 = vpop.f32.mrf.mxu0  ;;  %v1037_v30 = vrot.slane %v4827_v9, %v1036_v22 }
 0x1a6   : > { %v2501_v7 = vpop.f32.mrf.mxu1 }
 0x1a7   : > { %v2450_v40 = vpop.f32.mrf.mxu0  ;;  %v2447_v14 = vadd.f32 %v2446_v8, %v1037_v30 }
 0x1a8   : > { %v2503_v46 = vpop.f32.mrf.mxu1  ;;  %v2451_v21 = vadd.f32 %v2450_v40, %v1037_v30 }
 0x1a9   : > { %2771 = vmatmul.mubr.bf16.gmra.mxu0 %v4680_v54  ;;  %v2454_v47 = vpop.f32.mrf.mxu0  ;;  %v2500_v19 = vadd.f32 %v2499_v4, %v2447_v14 }
 0x1aa   : > { %2824 = vmatmul.mubr.bf16.gmra.mxu1 %v4683_v56  ;;  %v2507_v54 = vpop.f32.mrf.mxu1  ;;  %v1032_v56 = vsub.s32 0, %v4821_v39  ;;  %v2504_v38 = vadd.f32 %v2503_v46, %v2451_v21 }
 0x1ab   : > { %v2456_v23 = vpop.f32.mrf.mxu0 }
 0x1ac   : > { %v2509_v10 = vpop.f32.mrf.mxu1  ;;  %v1033_v11 = vrot.slane %v4827_v9, %v1032_v56  ;;  %v2457_v34 = vadd.f32 %v2456_v23, %v1037_v30 }
 0x1ad   : > { %v2458_v31 = vpop.f32.mrf.mxu0 }
 0x1ae   : > { %v2511_v12 = vpop.f32.mrf.mxu1  ;;  %v2445_v13 = vadd.f32 %v2444_v2, %v1033_v11  ;;  %v2449_v16 = vadd.f32 %v2448_v6, %v1033_v11  ;;  %v2455_v24 = vadd.f32 %v2454_v47, %v1033_v11  ;;  %v2459_v42 = vadd.f32 %v2458_v31, %v1033_v11 }
 0x1af   : > { %v2460_v49 = vpop.f32.mrf.mxu0  ;;  %v2510_v55 = vadd.f32 %v2509_v10, %v2457_v34  ;;  %v1044_v34 = vsub.s32 3, %v4821_v39 }
 0x1b0   : > { %v2513_v52 = vpop.f32.mrf.mxu1  ;;  %v2498_v15 = vadd.f32 %v2497_v5, %v2445_v13  ;;  %v2502_v27 = vadd.f32 %v2501_v7, %v2449_v16  ;;  %v2508_v41 = vadd.f32 %v2507_v54, %v2455_v24  ;;  %v2461_v60 = vadd.f32 %v2460_v49, %v1037_v30 }
 0x1b1   : > { %v2512_v2 = vadd.f32 %v2511_v12, %v2459_v42 }
 0x1b2   : > { %v2514_v47 = vadd.f32 %v2513_v52, %v2461_v60 }
 0x1e1   : > { %v2550_v17 = vpop.f32.mrf.mxu0 }
 0x1e2   : > { %v2603_v18 = vpop.f32.mrf.mxu1  ;;  %v2551_v20 = vadd.f32 %v2550_v17, %v2498_v15 }
 0x1e3   : > { %v2552_v25 = vpop.f32.mrf.mxu0 }
 0x1e4   : > { %v2605_v26 = vpop.f32.mrf.mxu1  ;;  %v2604_v28 = vadd.f32 %v2603_v18, %v2551_v20  ;;  %v2553_v29 = vadd.f32 %v2552_v25, %v2500_v19 }
 0x1e5   : > { %v2554_v32 = vpop.f32.mrf.mxu0 }
 0x1e6   : > { %v2607_v33 = vpop.f32.mrf.mxu1  ;;  %v2850_v35 = vmul.f32 0.2, %v2604_v28  ;;  %v2606_v36 = vadd.f32 %v2605_v26, %v2553_v29  ;;  %v2555_v37 = vadd.f32 %v2554_v32, %v2502_v27  ;;  %vm2834_vm0 = vcmp.gt.f32.partialorder %v2604_v28, 0.0 }
 0x1e7   : > { %v2556_v43 = vpop.f32.mrf.mxu0 }
 0x1e8   : > { %v2609_v44 = vpop.f32.mrf.mxu1  ;;  %vm2835_vm1 = vcmp.gt.f32.partialorder %v2606_v36, 0.0  ;;  %v2851_v45 = vmul.f32 0.2, %v2606_v36  ;;  %v2608_v48 = vadd.f32 %v2607_v33, %v2555_v37  ;;  %v2557_v50 = vadd.f32 %v2556_v43, %v2504_v38 }
 0x1e9   : > { %v2560_v51 = vpop.f32.mrf.mxu0  ;;  %v2866_v57 = vsel %vm2834_vm0, %v2604_v28, %v2850_v35  ;;  %v1040_v33 = vsub.s32 2, %v4821_v39  ;;  %v1045_v38 = vrot.slane %v4827_v9, %v1044_v34 }
 0x1ea   : > { %v2613_v53 = vpop.f32.mrf.mxu1  ;;  %v2867_v58 = vsel %vm2835_vm1, %v2606_v36, %v2851_v45  ;;  %v2561_v59 = vadd.f32 %v2560_v51, %v2508_v41  ;;  %v2854_v62 = vmul.f32 0.2, %v2608_v48  ;;  %v2610_v63 = vadd.f32 %v2609_v44, %v2557_v50 }
 0x1eb   : > { %v3372_v61 = vpack.c.bf16 %v2867_v58, %v2866_v57  ;;  %v2562_v0 = vpop.f32.mrf.mxu0  ;;  %vm2838_vm2 = vcmp.gt.f32.partialorder %v2608_v48, 0.0  ;;  %v1041_v37 = vrot.slane %v4827_v9, %v1040_v33 }
 0x1ec   : > { %v2615_v1 = vpop.f32.mrf.mxu1  ;;  %v2563_v5 = vadd.f32 %v2562_v0, %v2510_v55  ;;  %v2614_v8 = vadd.f32 %v2613_v53, %v2561_v59  ;;  %vm2839_vm3 = vcmp.gt.f32.partialorder %v2610_v63, 0.0  ;;  %v2855_v4 = vmul.f32 0.2, %v2610_v63 }
 0x1ed   : > { %2930 = vst [vmem:[%s4834_s12] sm:$0xff] %v3372_v61  ;;  %v2564_v3 = vpop.f32.mrf.mxu0  ;;  %v2870_v54 = vsel %vm2838_vm2, %v2608_v48, %v2854_v62 }
 0x1ee   : > { %v2617_v6 = vpop.f32.mrf.mxu1  ;;  %v2858_v7 = vmul.f32 0.2, %v2614_v8  ;;  %v2565_v40 = vadd.f32 %v2564_v3, %v2512_v2  ;;  %v2616_v46 = vadd.f32 %v2615_v1, %v2563_v5  ;;  %v2871_v56 = vsel %vm2839_vm3, %v2610_v63, %v2855_v4 }
 0x1ef   : > { %vm2842_vm4 = vcmp.gt.f32.partialorder %v2614_v8, 0.0  ;;  %v2566_v22 = vpop.f32.mrf.mxu0  ;;  %v3374_v23 = vpack.c.bf16 %v2871_v56, %v2870_v54 }
 0x1f0   : > { %vm2843_vm5 = vcmp.gt.f32.partialorder %v2616_v46, 0.0  ;;  %v2859_v10 = vmul.f32 0.2, %v2616_v46  ;;  %v2619_v11 = vpop.f32.mrf.mxu1  ;;  %v2567_v30 = vadd.f32 %v2566_v22, %v2514_v47  ;;  %v2618_v31 = vadd.f32 %v2617_v6, %v2565_v40 }
 0x1f1   : > { %2932 = vst [vmem:[%s4834_s12 + $0x10] sm:$0xff] %v3374_v23  ;;  %v2874_v12 = vsel %vm2842_vm4, %v2614_v8, %v2858_v7 }
 0x1f2   : > { %v2875_v13 = vsel %vm2843_vm5, %v2616_v46, %v2859_v10  ;;  %v2862_v49 = vmul.f32 0.2, %v2618_v31  ;;  %v2620_v15 = vadd.f32 %v2619_v11, %v2567_v30  ;;  %vm2846_vm6 = vcmp.gt.f32.partialorder %v2618_v31, 0.0 }
 0x1f3   : > { %v3376_v14 = vpack.c.bf16 %v2875_v13, %v2874_v12 }
 0x1f4   : > { %vm2847_vm7 = vcmp.gt.f32.partialorder %v2620_v15, 0.0  ;;  %v2863_v52 = vmul.f32 0.2, %v2620_v15  ;;  %v2878_v16 = vsel %vm2846_vm6, %v2618_v31, %v2862_v49 }
 0x1f5   : > { %2934 = vst [vmem:[%s4834_s12 + $0x20] sm:$0xff] %v3376_v14 }
 0x1f6   : > { %v2879_v17 = vsel %vm2847_vm7, %v2620_v15, %v2863_v52 }
 0x1f7   : > { %v3378_v18 = vpack.c.bf16 %v2879_v17, %v2878_v16 }
 0x1f9   : > { %2936 = vst [vmem:[%s4834_s12 + $0x30] sm:$0xff] %v3378_v18 }
 0x221   : > { %v2656_v19 = vpop.f32.mrf.mxu0 }
 0x222   : > { %v2709_v20 = vpop.f32.mrf.mxu1  ;;  %v2657_v44 = vadd.f32 %v2656_v19, %v1041_v37 }
 0x223   : > { %v2658_v21 = vpop.f32.mrf.mxu0 }
 0x224   : > { %v2711_v24 = vpop.f32.mrf.mxu1  ;;  %v2659_v42 = vadd.f32 %v2658_v21, %v1045_v38  ;;  %v2710_v50 = vadd.f32 %v2709_v20, %v2657_v44 }
 0x225   : > { %v2660_v25 = vpop.f32.mrf.mxu0 }
 0x226   : > { %v2713_v26 = vpop.f32.mrf.mxu1  ;;  %v2661_v51 = vadd.f32 %v2660_v25, %v1041_v37  ;;  %v2712_v57 = vadd.f32 %v2711_v24, %v2659_v42 }
 0x227   : > { %v2662_v27 = vpop.f32.mrf.mxu0 }
 0x228   : > { %v2715_v28 = vpop.f32.mrf.mxu1  ;;  %v2663_v59 = vadd.f32 %v2662_v27, %v1045_v38  ;;  %v2714_v62 = vadd.f32 %v2713_v26, %v2661_v51 }
 0x229   : > { %v2666_v29 = vpop.f32.mrf.mxu0 }
 0x22a   : > { %v2719_v32 = vpop.f32.mrf.mxu1  ;;  %v2667_v39 = vadd.f32 %v2666_v29, %v1041_v37  ;;  %v2716_v3 = vadd.f32 %v2715_v28, %v2663_v59  ;;  %v2971_v59 = vld [vmem:[%s4834_s12 + $0x20] sm:$0xff] (%p3900_p6) }
 0x22b   : > { %v2668_v35 = vpop.f32.mrf.mxu0  ;;  %2972 = vst [vmem:[%s2950_s9 + $0x40] sm:$0xff] (%p3900_p6), %v2971_v59 }
 0x22c   : > { %v2721_v36 = vpop.f32.mrf.mxu1  ;;  %v2669_v2 = vadd.f32 %v2668_v35, %v1045_v38  ;;  %v2720_v6 = vadd.f32 %v2719_v32, %v2667_v39 }
 0x22d   : > { %v2670_v41 = vpop.f32.mrf.mxu0 }
 0x22e   : > { %v2723_v43 = vpop.f32.mrf.mxu1  ;;  %v2671_v46 = vadd.f32 %v2670_v41, %v1041_v37  ;;  %v2722_v10 = vadd.f32 %v2721_v36, %v2669_v2 }
 0x22f   : > { %v2672_v45 = vpop.f32.mrf.mxu0 }
 0x230   : > { %v2725_v48 = vpop.f32.mrf.mxu1  ;;  %v2673_v12 = vadd.f32 %v2672_v45, %v1045_v38  ;;  %v2724_v16 = vadd.f32 %v2723_v43, %v2671_v46 }
 0x232   : > { %v2726_v27 = vadd.f32 %v2725_v48, %v2673_v12 }
 0x261   : > { %v2762_v53 = vpop.f32.mrf.mxu0 }
 0x262   : > { %v2815_v55 = vpop.f32.mrf.mxu1  ;;  %v2763_v58 = vadd.f32 %v2762_v53, %v2710_v50  ;;  %v2963_v53 = vld [vmem:[%s4834_s12] sm:$0xff] (%p3900_p6) }
 0x263   : > { %v2764_v60 = vpop.f32.mrf.mxu0  ;;  %2964 = vst [vmem:[%s2950_s9] sm:$0xff] (%p3900_p6), %v2963_v53 }
 0x264   : > { %v2817_v61 = vpop.f32.mrf.mxu1  ;;  %v2816_v63 = vadd.f32 %v2815_v55, %v2763_v58  ;;  %v2765_v0 = vadd.f32 %v2764_v60, %v2712_v57  ;;  %v2967_v57 = vld [vmem:[%s4834_s12 + $0x10] sm:$0xff] (%p3900_p6) }
 0x265   : > { %v2766_v9 = vpop.f32.mrf.mxu0  ;;  %2968 = vst [vmem:[%s2950_s9 + $0x20] sm:$0xff] (%p3900_p6), %v2967_v57  ;;  %v2975_v60 = vld [vmem:[%s4834_s12 + $0x30] sm:$0xff] (%p3900_p6) }
 0x266   : > { %v2819_v1 = vpop.f32.mrf.mxu1  ;;  %v2852_v5 = vmul.f32 0.2, %v2816_v63  ;;  %v2818_v8 = vadd.f32 %v2817_v61, %v2765_v0  ;;  %v2767_v4 = vadd.f32 %v2766_v9, %v2714_v62  ;;  %vm2836_vm8 = vcmp.gt.f32.partialorder %v2816_v63, 0.0  ;;  %2976 = vst [vmem:[%s2950_s9 + $0x60] sm:$0xff] (%p3900_p6), %v2975_v60 }
 0x267   : > { %v2768_v7 = vpop.f32.mrf.mxu0 }
 0x268   : > { %v2821_v40 = vpop.f32.mrf.mxu1  ;;  %vm2837_vm9 = vcmp.gt.f32.partialorder %v2818_v8, 0.0  ;;  %v2853_v47 = vmul.f32 0.2, %v2818_v8  ;;  %v2820_v54 = vadd.f32 %v2819_v1, %v2767_v4  ;;  %v2769_v56 = vadd.f32 %v2768_v7, %v2716_v3 }
 0x269   : > { %v2772_v22 = vpop.f32.mrf.mxu0  ;;  %v2868_v11 = vsel %vm2836_vm8, %v2816_v63, %v2852_v5 }
 0x26a   : > { %v2825_v23 = vpop.f32.mrf.mxu1  ;;  %v2869_v30 = vsel %vm2837_vm9, %v2818_v8, %v2853_v47  ;;  %v2773_v31 = vadd.f32 %v2772_v22, %v2720_v6  ;;  %v2856_v14 = vmul.f32 0.2, %v2820_v54  ;;  %v2822_v49 = vadd.f32 %v2821_v40, %v2769_v56 }
 0x26b   : > { %v3373_v13 = vpack.c.bf16 %v2869_v30, %v2868_v11  ;;  %v2774_v15 = vpop.f32.mrf.mxu0  ;;  %vm2840_vm10 = vcmp.gt.f32.partialorder %v2820_v54, 0.0 }
 0x26c   : > { %v2827_v52 = vpop.f32.mrf.mxu1  ;;  %v2826_v17 = vadd.f32 %v2825_v23, %v2773_v31  ;;  %v2775_v18 = vadd.f32 %v2774_v15, %v2722_v10  ;;  %vm2841_vm11 = vcmp.gt.f32.partialorder %v2822_v49, 0.0  ;;  %v2857_v19 = vmul.f32 0.2, %v2822_v49 }
 0x26d   : > { %2931 = vst [vmem:[%s4834_s12 + $0x8] sm:$0xff] %v3373_v13  ;;  %v2776_v20 = vpop.f32.mrf.mxu0  ;;  %v2872_v28 = vsel %vm2840_vm10, %v2820_v54, %v2856_v14 }
 0x26e   : > { %v2860_v21 = vmul.f32 0.2, %v2826_v17  ;;  %v2828_v24 = vadd.f32 %v2827_v52, %v2775_v18  ;;  %v2777_v25 = vadd.f32 %v2776_v20, %v2724_v16  ;;  %v2829_v26 = vpop.f32.mrf.mxu1  ;;  %v2873_v29 = vsel %vm2841_vm11, %v2822_v49, %v2857_v19 }
 0x26f   : > { %vm2844_vm12 = vcmp.gt.f32.partialorder %v2826_v17, 0.0  ;;  %v2778_v32 = vpop.f32.mrf.mxu0  ;;  %v3375_v33 = vpack.c.bf16 %v2873_v29, %v2872_v28 }
 0x270   : > { %vm2845_vm13 = vcmp.gt.f32.partialorder %v2828_v24, 0.0  ;;  %v2861_v34 = vmul.f32 0.2, %v2828_v24  ;;  %v2830_v35 = vadd.f32 %v2829_v26, %v2777_v25  ;;  %v2779_v36 = vadd.f32 %v2778_v32, %v2726_v27  ;;  %v2831_v41 = vpop.f32.mrf.mxu1 }
 0x271   : > { %2933 = vst [vmem:[%s4834_s12 + $0x18] sm:$0xff] %v3375_v33  ;;  %v2876_v37 = vsel %vm2844_vm12, %v2826_v17, %v2860_v21 }
 0x272   : > { %v2877_v38 = vsel %vm2845_vm13, %v2828_v24, %v2861_v34  ;;  %v2864_v44 = vmul.f32 0.2, %v2830_v35  ;;  %v2832_v42 = vadd.f32 %v2831_v41, %v2779_v36  ;;  %vm2848_vm14 = vcmp.gt.f32.partialorder %v2830_v35, 0.0 }
 0x273   : > { %v3377_v43 = vpack.c.bf16 %v2877_v38, %v2876_v37 }
 0x274   : > { %vm2849_vm15 = vcmp.gt.f32.partialorder %v2832_v42, 0.0  ;;  %v2865_v45 = vmul.f32 0.2, %v2832_v42  ;;  %v2880_v48 = vsel %vm2848_vm14, %v2830_v35, %v2864_v44  ;;  %v2965_v55 = vld [vmem:[%s4834_s12 + $0x8] sm:$0xff] (%p3900_p6) }
 0x275   : > { %2935 = vst [vmem:[%s4834_s12 + $0x28] sm:$0xff] %v3377_v43  ;;  %2944 = sbr.rel (!%p3900_p6) target bundleno = 642 (0x282), region = 59  ;;  %2966 = vst [vmem:[%s2950_s9 + $0x8] sm:$0xff] (%p3900_p6), %v2965_v55 }
 0x276   : > { %v2881_v50 = vsel %vm2849_vm15, %v2832_v42, %v2865_v45 }
 0x277   : > { %v3379_v51 = vpack.c.bf16 %v2881_v50, %v2880_v48 }
 0x278   : > { %v2969_v58 = vld [vmem:[%s4834_s12 + $0x18] sm:$0xff] (%p3900_p6) }
 0x279   : > { %2937 = vst [vmem:[%s4834_s12 + $0x38] sm:$0xff] %v3379_v51  ;;  %2970 = vst [vmem:[%s2950_s9 + $0x28] sm:$0xff] (%p3900_p6), %v2969_v58 }
 0x27c   : > { %v2973_v39 = vld [vmem:[%s4834_s12 + $0x28] sm:$0xff] }
 0x27d   : > { %2974 = vst [vmem:[%s2950_s9 + $0x48] sm:$0xff] %v2973_v39 }
 0x280   : > { %v2977_v61 = vld [vmem:[%s4834_s12 + $0x38] sm:$0xff] }
 0x281   : > { %2978 = vst [vmem:[%s2950_s9 + $0x68] sm:$0xff] %v2977_v61 }
 0x282 PF: > { %s13_s16 = sadd.s32 1, %s3843_s16   ;;  %s4882_s12 = smov %s3831_s13 }
 0x283   : > { %p10_p12 = scmp.ge.s32.totalorder %s13_s16, 4   ;;  %s4883_s13 = smov %s3905_s22 }
 0x284   : > { %s4884_s14 = smov %s3839_s15  ;;  %s4885_s15 = smov %s4887_s17 }
 0x285   :  { %12 = sbr.rel (!%p10_p12) target bundleno = 3 (0x3), region = 119 }

// kernel: generator_forward.11
= control target key start
LH: loop header
LB: loop body
LE: loop exit
PB: predicated region body
PF: predicated region fallthrough
CT: control target
= control target key end

     0   :  { %s4503_s1 = inlined_call_operand.vmem [shape: bf16[1024,512], index: 1, kind: input, shape index: {}]   ;;  %s4504_s0 = inlined_call_operand.vmem [shape: bf16[64,1024], index: 0, kind: input, shape index: {}]   ;;  %s4505_s2 = inlined_call_operand.vmem [shape: f32[1,512], index: 2, kind: input, shape index: {}]   ;;  %s4506_s3 = inlined_call_operand.vmem [shape: bf16[64,512], index: 3, kind: output, shape index: {}]  }
   0x1   :  { %v2880_v0 = vld [vmem:[%s4503_s1 + $0xe4] ss:$16 sps:$4 sm:$0xff]   ;;  %v2884_v2 = vld [vmem:[%s4503_s1 + $0xe0] ss:$16 sps:$4 sm:$0xff]   ;;  %v15_v50 = vld [vmem:[%s4504_s0 + $0x8] sm:$0xff] }
   0x2   :  { %v2882_v1 = vld [vmem:[%s4503_s1 + $0x2e4] ss:$16 sps:$4 sm:$0xff]   ;;  %1764 = vmatprep.subr.bf16.mxu0 %v2880_v0  ;;  %v2885_v3 = vld [vmem:[%s4503_s1 + $0x2e0] ss:$16 sps:$4 sm:$0xff]   ;;  %v19_v51 = vld [vmem:[%s4504_s0 + $0x28] sm:$0xff] }
   0x3   :  { %1837 = vmatprep.subr.bf16.mxu1 %v2882_v1  ;;  %v2886_v4 = vld [vmem:[%s4503_s1 + $0xc4] ss:$16 sps:$4 sm:$0xff]   ;;  %1765 = vmatpush1.bf16.msra.mxu0 %v2884_v2  ;;  %v2890_v6 = vld [vmem:[%s4503_s1 + $0xc0] ss:$16 sps:$4 sm:$0xff]   ;;  %v3448_v55 = vcombine.high %v15_v50, %v19_v51 }
   0x4   :  { %1838 = vmatpush1.bf16.msra.mxu1 %v2885_v3  ;;  %v2888_v5 = vld [vmem:[%s4503_s1 + $0x2c4] ss:$16 sps:$4 sm:$0xff]   ;;  %1766 = vmatprep.subr.bf16.mxu0 %v2886_v4  ;;  %v2891_v7 = vld [vmem:[%s4503_s1 + $0x2c0] ss:$16 sps:$4 sm:$0xff]  }
   0x5   :  { %1839 = vmatprep.subr.bf16.mxu1 %v2888_v5  ;;  %v2892_v8 = vld [vmem:[%s4503_s1 + $0xa4] ss:$16 sps:$4 sm:$0xff]   ;;  %v2896_v10 = vld [vmem:[%s4503_s1 + $0xa0] ss:$16 sps:$4 sm:$0xff]   ;;  %1869 = vmatprep.mubr.bf16.mxu1 %v3448_v55 }
   0x6   :  { %v2894_v9 = vld [vmem:[%s4503_s1 + $0x2a4] ss:$16 sps:$4 sm:$0xff]   ;;  %v2897_v11 = vld [vmem:[%s4503_s1 + $0x2a0] ss:$16 sps:$4 sm:$0xff]  }
   0x7   :  { %1767 = vmatpush1.bf16.msra.mxu0 %v2890_v6  ;;  %v2898_v12 = vld [vmem:[%s4503_s1 + $0x84] ss:$16 sps:$4 sm:$0xff]   ;;  %v2902_v14 = vld [vmem:[%s4503_s1 + $0x80] ss:$16 sps:$4 sm:$0xff]  }
   0x8   :  { %1840 = vmatpush1.bf16.msra.mxu1 %v2891_v7  ;;  %1768 = vmatprep.subr.bf16.mxu0 %v2892_v8  ;;  %v2900_v13 = vld [vmem:[%s4503_s1 + $0x284] ss:$16 sps:$4 sm:$0xff]   ;;  %v2903_v15 = vld [vmem:[%s4503_s1 + $0x280] ss:$16 sps:$4 sm:$0xff]  }
   0x9   :  { %1841 = vmatprep.subr.bf16.mxu1 %v2894_v9  ;;  %v2904_v16 = vld [vmem:[%s4503_s1 + $0x64] ss:$16 sps:$4 sm:$0xff]   ;;  %v2908_v18 = vld [vmem:[%s4503_s1 + $0x60] ss:$16 sps:$4 sm:$0xff]   ;;  %v3502_v9 = vcombine.low %v15_v50, %v19_v51  ;;  %v43_v50 = vld [vmem:[%s4504_s0 + $0xe8] sm:$0xff] }
   0xa   :  { %v2906_v17 = vld [vmem:[%s4503_s1 + $0x264] ss:$16 sps:$4 sm:$0xff]   ;;  %v2909_v19 = vld [vmem:[%s4503_s1 + $0x260] ss:$16 sps:$4 sm:$0xff]  }
   0xb   :  { %1769 = vmatpush1.bf16.msra.mxu0 %v2896_v10  ;;  %v2910_v20 = vld [vmem:[%s4503_s1 + $0x44] ss:$16 sps:$4 sm:$0xff]   ;;  %v2914_v22 = vld [vmem:[%s4503_s1 + $0x40] ss:$16 sps:$4 sm:$0xff]  }
   0xc   :  { %1842 = vmatpush1.bf16.msra.mxu1 %v2897_v11  ;;  %1770 = vmatprep.subr.bf16.mxu0 %v2898_v12  ;;  %v2912_v21 = vld [vmem:[%s4503_s1 + $0x244] ss:$16 sps:$4 sm:$0xff]   ;;  %v2915_v23 = vld [vmem:[%s4503_s1 + $0x240] ss:$16 sps:$4 sm:$0xff]  }
   0xd   :  { %1843 = vmatprep.subr.bf16.mxu1 %v2900_v13  ;;  %v2916_v24 = vld [vmem:[%s4503_s1 + $0x24] ss:$16 sps:$4 sm:$0xff]   ;;  %v2920_v26 = vld [vmem:[%s4503_s1 + $0x20] ss:$16 sps:$4 sm:$0xff]  }
   0xe   :  { %v2918_v25 = vld [vmem:[%s4503_s1 + $0x224] ss:$16 sps:$4 sm:$0xff]   ;;  %v2921_v27 = vld [vmem:[%s4503_s1 + $0x220] ss:$16 sps:$4 sm:$0xff]  }
   0xf   :  { %1771 = vmatpush1.bf16.msra.mxu0 %v2902_v14  ;;  %v2922_v28 = vld [vmem:[%s4503_s1 + $0x4] ss:$16 sps:$4 sm:$0xff]   ;;  %v2926_v30 = vld [vmem:[%s4503_s1] ss:$16 sps:$4 sm:$0xff]  }
  0x10   :  { %1844 = vmatpush1.bf16.msra.mxu1 %v2903_v15  ;;  %1772 = vmatprep.subr.bf16.mxu0 %v2904_v16  ;;  %v2924_v29 = vld [vmem:[%s4503_s1 + $0x204] ss:$16 sps:$4 sm:$0xff]   ;;  %v2927_v31 = vld [vmem:[%s4503_s1 + $0x200] ss:$16 sps:$4 sm:$0xff]  }
  0x11   :  { %1845 = vmatprep.subr.bf16.mxu1 %v2906_v17  ;;  %v2928_v32 = vld [vmem:[%s4503_s1 + $0x1e4] ss:$16 sps:$4 sm:$0xff]   ;;  %v2932_v34 = vld [vmem:[%s4503_s1 + $0x1e0] ss:$16 sps:$4 sm:$0xff]  }
  0x12   :  { %v2930_v33 = vld [vmem:[%s4503_s1 + $0x3e4] ss:$16 sps:$4 sm:$0xff]   ;;  %v2933_v35 = vld [vmem:[%s4503_s1 + $0x3e0] ss:$16 sps:$4 sm:$0xff]  }
  0x13   :  { %1773 = vmatpush1.bf16.msra.mxu0 %v2908_v18  ;;  %v2934_v36 = vld [vmem:[%s4503_s1 + $0x1c4] ss:$16 sps:$4 sm:$0xff]   ;;  %v2938_v38 = vld [vmem:[%s4503_s1 + $0x1c0] ss:$16 sps:$4 sm:$0xff]  }
  0x14   :  { %1846 = vmatpush1.bf16.msra.mxu1 %v2909_v19  ;;  %1774 = vmatprep.subr.bf16.mxu0 %v2910_v20  ;;  %v2936_v37 = vld [vmem:[%s4503_s1 + $0x3c4] ss:$16 sps:$4 sm:$0xff]   ;;  %v2939_v39 = vld [vmem:[%s4503_s1 + $0x3c0] ss:$16 sps:$4 sm:$0xff]   ;;  %v23_v20 = vld [vmem:[%s4504_s0 + $0x48] sm:$0xff] }
  0x15   :  { %1847 = vmatprep.subr.bf16.mxu1 %v2912_v21  ;;  %v2940_v40 = vld [vmem:[%s4503_s1 + $0x1a4] ss:$16 sps:$4 sm:$0xff]   ;;  %v2944_v42 = vld [vmem:[%s4503_s1 + $0x1a0] ss:$16 sps:$4 sm:$0xff]  }
  0x16   :  { %v2942_v41 = vld [vmem:[%s4503_s1 + $0x3a4] ss:$16 sps:$4 sm:$0xff]   ;;  %v2945_v43 = vld [vmem:[%s4503_s1 + $0x3a0] ss:$16 sps:$4 sm:$0xff]  }
  0x17   :  { %1775 = vmatpush1.bf16.msra.mxu0 %v2914_v22  ;;  %v2946_v44 = vld [vmem:[%s4503_s1 + $0x184] ss:$16 sps:$4 sm:$0xff]   ;;  %v2950_v46 = vld [vmem:[%s4503_s1 + $0x180] ss:$16 sps:$4 sm:$0xff]   ;;  %v27_v22 = vld [vmem:[%s4504_s0 + $0x68] sm:$0xff] }
  0x18   :  { %1848 = vmatpush1.bf16.msra.mxu1 %v2915_v23  ;;  %1776 = vmatprep.subr.bf16.mxu0 %v2916_v24  ;;  %v2948_v45 = vld [vmem:[%s4503_s1 + $0x384] ss:$16 sps:$4 sm:$0xff]   ;;  %v2951_v47 = vld [vmem:[%s4503_s1 + $0x380] ss:$16 sps:$4 sm:$0xff]   ;;  %v3544_v23 = vcombine.high %v23_v20, %v27_v22 }
  0x19   :  { %1849 = vmatprep.subr.bf16.mxu1 %v2918_v25  ;;  %v14_v48 = vld [vmem:[%s4504_s0] sm:$0xff] }
  0x1a   :  { %v18_v49 = vld [vmem:[%s4504_s0 + $0x20] sm:$0xff] }
  0x1b   :  { %1777 = vmatpush1.bf16.msra.mxu0 %v2920_v26  ;;  %v2952_v52 = vld [vmem:[%s4503_s1 + $0x164] ss:$16 sps:$4 sm:$0xff]   ;;  %v3443_v53 = vcombine.high %v14_v48, %v18_v49  ;;  %v2956_v56 = vld [vmem:[%s4503_s1 + $0x160] ss:$16 sps:$4 sm:$0xff]   ;;  %v3500_v8 = vcombine.low %v14_v48, %v18_v49  ;;  %v39_v49 = vld [vmem:[%s4504_s0 + $0xc8] sm:$0xff] }
  0x1c   :  { %1850 = vmatpush1.bf16.msra.mxu1 %v2921_v27  ;;  %1778 = vmatprep.subr.bf16.mxu0 %v2922_v28  ;;  %v2954_v54 = vld [vmem:[%s4503_s1 + $0x364] ss:$16 sps:$4 sm:$0xff]   ;;  %v2957_v57 = vld [vmem:[%s4503_s1 + $0x360] ss:$16 sps:$4 sm:$0xff]   ;;  %v3555_v27 = vcombine.low %v23_v20, %v27_v22 }
  0x1d   :  { %1851 = vmatprep.subr.bf16.mxu1 %v2924_v29  ;;  %1796 = vmatprep.mubr.bf16.mxu0 %v3443_v53  ;;  %v2958_v58 = vld [vmem:[%s4503_s1 + $0x144] ss:$16 sps:$4 sm:$0xff]   ;;  %v2962_v60 = vld [vmem:[%s4503_s1 + $0x140] ss:$16 sps:$4 sm:$0xff]  }
  0x1e   :  { %v2960_v59 = vld [vmem:[%s4503_s1 + $0x344] ss:$16 sps:$4 sm:$0xff]   ;;  %v2963_v61 = vld [vmem:[%s4503_s1 + $0x340] ss:$16 sps:$4 sm:$0xff]  }
  0x1f   :  { %1779 = vmatpush1.bf16.msra.mxu0 %v2926_v30  ;;  %v2964_v62 = vld [vmem:[%s4503_s1 + $0x124] ss:$16 sps:$4 sm:$0xff]   ;;  %v2968_v0 = vld [vmem:[%s4503_s1 + $0x120] ss:$16 sps:$4 sm:$0xff]  }
  0x20   :  { %1852 = vmatpush1.bf16.msra.mxu1 %v2927_v31  ;;  %1780 = vmatprep.subr.bf16.mxu0 %v2928_v32  ;;  %v2966_v63 = vld [vmem:[%s4503_s1 + $0x324] ss:$16 sps:$4 sm:$0xff]   ;;  %v2969_v1 = vld [vmem:[%s4503_s1 + $0x320] ss:$16 sps:$4 sm:$0xff]  }
  0x21   :  { %1853 = vmatprep.subr.bf16.mxu1 %v2930_v33  ;;  %v2970_v2 = vld [vmem:[%s4503_s1 + $0x104] ss:$16 sps:$4 sm:$0xff]   ;;  %v2974_v4 = vld [vmem:[%s4503_s1 + $0x100] ss:$16 sps:$4 sm:$0xff]  }
  0x22   :  { %v2972_v3 = vld [vmem:[%s4503_s1 + $0x304] ss:$16 sps:$4 sm:$0xff]   ;;  %v2975_v5 = vld [vmem:[%s4503_s1 + $0x300] ss:$16 sps:$4 sm:$0xff]  }
  0x23   :  { %1781 = vmatpush2.bf16.msra.mxu0 %v2932_v34  ;;  %v2978_v6 = vld [vmem:[%s4503_s1 + $0x4e4] ss:$16 sps:$4 sm:$0xff]   ;;  %v2976_v10 = vld [vmem:[%s4503_s1 + $0x4e0] ss:$16 sps:$4 sm:$0xff]   ;;  %v31_v34 = vld [vmem:[%s4504_s0 + $0x88] sm:$0xff] }
  0x24   :  { %1854 = vmatpush2.bf16.msra.mxu1 %v2933_v35  ;;  %1782 = vmatprep.subr.bf16.mxu0 %v2934_v36  ;;  %v2981_v7 = vld [vmem:[%s4503_s1 + $0x6e4] ss:$16 sps:$4 sm:$0xff]   ;;  %v2979_v11 = vld [vmem:[%s4503_s1 + $0x6e0] ss:$16 sps:$4 sm:$0xff]   ;;  %v35_v35 = vld [vmem:[%s4504_s0 + $0xa8] sm:$0xff] }
  0x25   :  { %1855 = vmatprep.subr.bf16.mxu1 %v2936_v37  ;;  %v2984_v12 = vld [vmem:[%s4503_s1 + $0x4c4] ss:$16 sps:$4 sm:$0xff]   ;;  %v2982_v14 = vld [vmem:[%s4503_s1 + $0x4c0] ss:$16 sps:$4 sm:$0xff]  }
  0x26   :  { %v2987_v13 = vld [vmem:[%s4503_s1 + $0x6c4] ss:$16 sps:$4 sm:$0xff]   ;;  %v2985_v15 = vld [vmem:[%s4503_s1 + $0x6c0] ss:$16 sps:$4 sm:$0xff]  }
  0x27   :  { %1783 = vmatpush2.bf16.msra.mxu0 %v2938_v38  ;;  %v2990_v16 = vld [vmem:[%s4503_s1 + $0x4a4] ss:$16 sps:$4 sm:$0xff]   ;;  %v2988_v24 = vld [vmem:[%s4503_s1 + $0x4a0] ss:$16 sps:$4 sm:$0xff]   ;;  %v3589_v38 = vcombine.high %v31_v34, %v35_v35 }
  0x28   :  { %1856 = vmatpush2.bf16.msra.mxu1 %v2939_v39  ;;  %1784 = vmatprep.subr.bf16.mxu0 %v2940_v40  ;;  %v2993_v17 = vld [vmem:[%s4503_s1 + $0x6a4] ss:$16 sps:$4 sm:$0xff]   ;;  %v2991_v25 = vld [vmem:[%s4503_s1 + $0x6a0] ss:$16 sps:$4 sm:$0xff]  }
  0x29   :  { %1857 = vmatprep.subr.bf16.mxu1 %v2942_v41  ;;  %v22_v18 = vld [vmem:[%s4504_s0 + $0x40] sm:$0xff] }
  0x2a   :  { %v26_v19 = vld [vmem:[%s4504_s0 + $0x60] sm:$0xff] }
  0x2b   :  { %1785 = vmatpush2.bf16.msra.mxu0 %v2944_v42  ;;  %v3539_v21 = vcombine.high %v22_v18, %v26_v19  ;;  %v3553_v26 = vcombine.low %v22_v18, %v26_v19  ;;  %v2996_v28 = vld [vmem:[%s4503_s1 + $0x484] ss:$16 sps:$4 sm:$0xff]   ;;  %v2994_v30 = vld [vmem:[%s4503_s1 + $0x480] ss:$16 sps:$4 sm:$0xff]  }
  0x2c   :  { %1858 = vmatpush2.bf16.msra.mxu1 %v2945_v43  ;;  %1786 = vmatprep.subr.bf16.mxu0 %v2946_v44  ;;  %v2999_v29 = vld [vmem:[%s4503_s1 + $0x684] ss:$16 sps:$4 sm:$0xff]   ;;  %v2997_v31 = vld [vmem:[%s4503_s1 + $0x680] ss:$16 sps:$4 sm:$0xff]   ;;  %v3604_v43 = vcombine.low %v31_v34, %v35_v35 }
  0x2d   :  { %1859 = vmatprep.subr.bf16.mxu1 %v2948_v45  ;;  %v30_v32 = vld [vmem:[%s4504_s0 + $0x80] sm:$0xff] }
  0x2e   :  { %v34_v33 = vld [vmem:[%s4504_s0 + $0xa0] sm:$0xff] }
  0x2f   :  { %1787 = vmatpush2.bf16.msra.mxu0 %v2950_v46  ;;  %v3002_v36 = vld [vmem:[%s4503_s1 + $0x464] ss:$16 sps:$4 sm:$0xff]   ;;  %v3587_v37 = vcombine.high %v30_v32, %v34_v33  ;;  %v3000_v40 = vld [vmem:[%s4503_s1 + $0x460] ss:$16 sps:$4 sm:$0xff]   ;;  %v3602_v42 = vcombine.low %v30_v32, %v34_v33 }
  0x30   :  { %1860 = vmatpush2.bf16.msra.mxu1 %v2951_v47  ;;  %1788 = vmatprep.subr.bf16.mxu0 %v2952_v52  ;;  %v3005_v39 = vld [vmem:[%s4503_s1 + $0x664] ss:$16 sps:$4 sm:$0xff]   ;;  %v3003_v41 = vld [vmem:[%s4503_s1 + $0x660] ss:$16 sps:$4 sm:$0xff]  }
  0x31   :  { %1861 = vmatprep.subr.bf16.mxu1 %v2954_v54  ;;  %v3008_v44 = vld [vmem:[%s4503_s1 + $0x444] ss:$16 sps:$4 sm:$0xff]   ;;  %v3006_v51 = vld [vmem:[%s4503_s1 + $0x440] ss:$16 sps:$4 sm:$0xff]   ;;  %v3634_v54 = vcombine.high %v39_v49, %v43_v50 }
  0x32   :  { %v3011_v45 = vld [vmem:[%s4503_s1 + $0x644] ss:$16 sps:$4 sm:$0xff]   ;;  %v3009_v52 = vld [vmem:[%s4503_s1 + $0x640] ss:$16 sps:$4 sm:$0xff]  }
  0x33   :  { %1789 = vmatpush2.bf16.msra.mxu0 %v2956_v56  ;;  %v38_v46 = vld [vmem:[%s4504_s0 + $0xc0] sm:$0xff] }
  0x34   :  { %1862 = vmatpush2.bf16.msra.mxu1 %v2957_v57  ;;  %1790 = vmatprep.subr.bf16.mxu0 %v2958_v58  ;;  %v42_v47 = vld [vmem:[%s4504_s0 + $0xe0] sm:$0xff] }
  0x35   :  { %1863 = vmatprep.subr.bf16.mxu1 %v2960_v59  ;;  %v3618_v48 = vcombine.high %v38_v46, %v42_v47  ;;  %v3014_v56 = vld [vmem:[%s4503_s1 + $0x424] ss:$16 sps:$4 sm:$0xff]   ;;  %v3012_v58 = vld [vmem:[%s4503_s1 + $0x420] ss:$16 sps:$4 sm:$0xff]  }
  0x36   :  { %v3017_v57 = vld [vmem:[%s4503_s1 + $0x624] ss:$16 sps:$4 sm:$0xff]   ;;  %v3015_v59 = vld [vmem:[%s4503_s1 + $0x620] ss:$16 sps:$4 sm:$0xff]  }
  0x37   :  { %1791 = vmatpush2.bf16.msra.mxu0 %v2962_v60  ;;  %v3650_v60 = vcombine.low %v38_v46, %v42_v47  ;;  %v3038_v18 = vld [vmem:[%s4503_s1 + $0x5a4] ss:$16 sps:$4 sm:$0xff]   ;;  %v3036_v20 = vld [vmem:[%s4503_s1 + $0x5a0] ss:$16 sps:$4 sm:$0xff]  }
  0x38   :  { %1864 = vmatpush2.bf16.msra.mxu1 %v2963_v61  ;;  %1792 = vmatprep.subr.bf16.mxu0 %v2964_v62  ;;  %v3652_v61 = vcombine.low %v39_v49, %v43_v50  ;;  %v3020_v62 = vld [vmem:[%s4503_s1 + $0x404] ss:$16 sps:$4 sm:$0xff]   ;;  %v3039_v22 = vld [vmem:[%s4503_s1 + $0x7a0] ss:$16 sps:$4 sm:$0xff]  }
  0x39   :  { %1865 = vmatprep.subr.bf16.mxu1 %v2966_v63  ;;  %v3023_v63 = vld [vmem:[%s4503_s1 + $0x604] ss:$16 sps:$4 sm:$0xff]   ;;  %v3048_v32 = vld [vmem:[%s4503_s1 + $0x560] ss:$16 sps:$4 sm:$0xff]  }
  0x3a   :  { %v3041_v19 = vld [vmem:[%s4503_s1 + $0x7a4] ss:$16 sps:$4 sm:$0xff]   ;;  %v3051_v33 = vld [vmem:[%s4503_s1 + $0x760] ss:$16 sps:$4 sm:$0xff]  }
  0x3b   :  { %1793 = vmatpush2.bf16.msra.mxu0 %v2968_v0  ;;  %v3018_v0 = vld [vmem:[%s4503_s1 + $0x400] ss:$16 sps:$4 sm:$0xff]   ;;  %v3056_v34 = vld [vmem:[%s4503_s1 + $0x544] ss:$16 sps:$4 sm:$0xff]  }
  0x3c   :  { %1866 = vmatpush2.bf16.msra.mxu1 %v2969_v1  ;;  %1794 = vmatprep.subr.bf16.mxu0 %v2970_v2  ;;  %v3021_v1 = vld [vmem:[%s4503_s1 + $0x600] ss:$16 sps:$4 sm:$0xff]   ;;  %v3059_v35 = vld [vmem:[%s4503_s1 + $0x744] ss:$16 sps:$4 sm:$0xff]  }
  0x3d   :  { %1867 = vmatprep.subr.bf16.mxu1 %v2972_v3  ;;  %v3669_v2 = vld [vmem:[%s4504_s0 + $0x10] sm:$0xff] }
  0x3e   :  { %v3676_v3 = vld [vmem:[%s4504_s0 + $0x30] sm:$0xff] }
  0x3f   :  { %1795 = vmatpush2.bf16.msra.mxu0 %v2974_v4  ;;  %v3681_v4 = vld [vmem:[%s4504_s0 + $0x18] sm:$0xff]  ;;  %v3068_v46 = vld [vmem:[%s4503_s1 + $0x504] ss:$16 sps:$4 sm:$0xff]   ;;  %v3066_v49 = vld [vmem:[%s4503_s1 + $0x500] ss:$16 sps:$4 sm:$0xff]  }
  0x40   :  { %1868 = vmatpush2.bf16.msra.mxu1 %v2975_v5  ;;  %1910 = vmatprep.subr.bf16.mxu0 %v2978_v6  ;;  %v3686_v5 = vld [vmem:[%s4504_s0 + $0x38] sm:$0xff]  ;;  %v3026_v6 = vld [vmem:[%s4503_s1 + $0x5e4] ss:$16 sps:$4 sm:$0xff]   ;;  %v3069_v50 = vld [vmem:[%s4503_s1 + $0x700] ss:$16 sps:$4 sm:$0xff]  }
  0x41   :  { %1983 = vmatprep.subr.bf16.mxu1 %v2981_v7  ;;  %v3693_v7 = vcombine.high %v3669_v2, %v3676_v3  ;;  %v3071_v47 = vld [vmem:[%s4503_s1 + $0x704] ss:$16 sps:$4 sm:$0xff]  }
  0x42   :  { %1797 = vmatmul.mubr.bf16.vlgmr.msra.gmra.mxu0 %v3500_v8 }
  0x43   :  { %1870 = vmatmul.mubr.bf16.vlgmr.msra.gmra.mxu1 %v3502_v9  ;;  %1911 = vmatpush1.bf16.msra.mxu0 %v2976_v10  ;;  %v3029_v10 = vld [vmem:[%s4503_s1 + $0x7e4] ss:$16 sps:$4 sm:$0xff]  }
  0x44   :  { %1984 = vmatpush1.bf16.msra.mxu1 %v2979_v11  ;;  %1912 = vmatprep.subr.bf16.mxu0 %v2984_v12  ;;  %v3700_v11 = vcombine.high %v3681_v4, %v3686_v5  ;;  %v3024_v12 = vld [vmem:[%s4503_s1 + $0x5e0] ss:$16 sps:$4 sm:$0xff]  }
  0x45   :  { %1985 = vmatprep.subr.bf16.mxu1 %v2987_v13  ;;  %1806 = vmatprep.mubr.bf16.mxu0 %v3539_v21  ;;  %v3027_v13 = vld [vmem:[%s4503_s1 + $0x7e0] ss:$16 sps:$4 sm:$0xff]  }
  0x46   :  { %1879 = vmatprep.mubr.bf16.mxu1 %v3544_v23 }
  0x47   :  { %1913 = vmatpush1.bf16.msra.mxu0 %v2982_v14  ;;  %v3032_v14 = vld [vmem:[%s4503_s1 + $0x5c4] ss:$16 sps:$4 sm:$0xff]  }
  0x48   :  { %1986 = vmatpush1.bf16.msra.mxu1 %v2985_v15  ;;  %1914 = vmatprep.subr.bf16.mxu0 %v2990_v16  ;;  %v3035_v15 = vld [vmem:[%s4503_s1 + $0x7c4] ss:$16 sps:$4 sm:$0xff]   ;;  %v3030_v16 = vld [vmem:[%s4503_s1 + $0x5c0] ss:$16 sps:$4 sm:$0xff]  }
  0x49   :  { %1987 = vmatprep.subr.bf16.mxu1 %v2993_v17  ;;  %v3033_v17 = vld [vmem:[%s4503_s1 + $0x7c0] ss:$16 sps:$4 sm:$0xff]  }
  0x4a   :  { %1807 = vmatmul.mubr.bf16.gmra.mxu0 %v3553_v26 }
  0x4b   :  { %1880 = vmatmul.mubr.bf16.gmra.mxu1 %v3555_v27  ;;  %1915 = vmatpush1.bf16.msra.mxu0 %v2988_v24  ;;  %v3044_v24 = vld [vmem:[%s4503_s1 + $0x584] ss:$16 sps:$4 sm:$0xff]  }
  0x4c   :  { %1988 = vmatpush1.bf16.msra.mxu1 %v2991_v25  ;;  %1916 = vmatprep.subr.bf16.mxu0 %v2996_v28  ;;  %v3047_v25 = vld [vmem:[%s4503_s1 + $0x784] ss:$16 sps:$4 sm:$0xff]   ;;  %v3042_v28 = vld [vmem:[%s4503_s1 + $0x580] ss:$16 sps:$4 sm:$0xff]  }
  0x4d   :  { %1989 = vmatprep.subr.bf16.mxu1 %v2999_v29  ;;  %1816 = vmatprep.mubr.bf16.mxu0 %v3587_v37  ;;  %v3045_v29 = vld [vmem:[%s4503_s1 + $0x780] ss:$16 sps:$4 sm:$0xff]  }
  0x4e   :  { %1889 = vmatprep.mubr.bf16.mxu1 %v3589_v38 }
  0x4f   :  { %1917 = vmatpush1.bf16.msra.mxu0 %v2994_v30  ;;  %v3050_v30 = vld [vmem:[%s4503_s1 + $0x564] ss:$16 sps:$4 sm:$0xff]  }
  0x50   :  { %1990 = vmatpush1.bf16.msra.mxu1 %v2997_v31  ;;  %1918 = vmatprep.subr.bf16.mxu0 %v3002_v36  ;;  %v3053_v31 = vld [vmem:[%s4503_s1 + $0x764] ss:$16 sps:$4 sm:$0xff]   ;;  %v3054_v36 = vld [vmem:[%s4503_s1 + $0x540] ss:$16 sps:$4 sm:$0xff]  }
  0x51   :  { %1991 = vmatprep.subr.bf16.mxu1 %v3005_v39  ;;  %v3057_v39 = vld [vmem:[%s4503_s1 + $0x740] ss:$16 sps:$4 sm:$0xff]  }
  0x52   :  { %1817 = vmatmul.mubr.bf16.gmra.mxu0 %v3602_v42 }
  0x53   :  { %1890 = vmatmul.mubr.bf16.gmra.mxu1 %v3604_v43  ;;  %1919 = vmatpush1.bf16.msra.mxu0 %v3000_v40  ;;  %v3062_v40 = vld [vmem:[%s4503_s1 + $0x524] ss:$16 sps:$4 sm:$0xff]  }
  0x54   :  { %1992 = vmatpush1.bf16.msra.mxu1 %v3003_v41  ;;  %1920 = vmatprep.subr.bf16.mxu0 %v3008_v44  ;;  %v3065_v41 = vld [vmem:[%s4503_s1 + $0x724] ss:$16 sps:$4 sm:$0xff]   ;;  %v3060_v44 = vld [vmem:[%s4503_s1 + $0x520] ss:$16 sps:$4 sm:$0xff]  }
  0x55   :  { %1993 = vmatprep.subr.bf16.mxu1 %v3011_v45  ;;  %1826 = vmatprep.mubr.bf16.mxu0 %v3618_v48  ;;  %v3063_v45 = vld [vmem:[%s4503_s1 + $0x720] ss:$16 sps:$4 sm:$0xff]  }
  0x56   :  { %1899 = vmatprep.mubr.bf16.mxu1 %v3634_v54 }
  0x57   :  { %1921 = vmatpush1.bf16.msra.mxu0 %v3006_v51  ;;  %v3074_v51 = vld [vmem:[%s4503_s1 + $0xec] ss:$16 sps:$4 sm:$0xff]  }
  0x58   :  { %1994 = vmatpush1.bf16.msra.mxu1 %v3009_v52  ;;  %1922 = vmatprep.subr.bf16.mxu0 %v3014_v56  ;;  %v3077_v52 = vld [vmem:[%s4503_s1 + $0x2ec] ss:$16 sps:$4 sm:$0xff]   ;;  %v3072_v56 = vld [vmem:[%s4503_s1 + $0xe8] ss:$16 sps:$4 sm:$0xff]  }
  0x59   :  { %1995 = vmatprep.subr.bf16.mxu1 %v3017_v57  ;;  %v3075_v57 = vld [vmem:[%s4503_s1 + $0x2e8] ss:$16 sps:$4 sm:$0xff]  }
  0x5a   :  { %1827 = vmatmul.mubr.bf16.gmra.mxu0 %v3650_v60 }
  0x5b   :  { %1900 = vmatmul.mubr.bf16.gmra.mxu1 %v3652_v61  ;;  %1923 = vmatpush1.bf16.msra.mxu0 %v3012_v58  ;;  %v24_v58 = vld [vmem:[%s4504_s0 + $0x50] sm:$0xff] }
  0x5c   :  { %1996 = vmatpush1.bf16.msra.mxu1 %v3015_v59  ;;  %1924 = vmatprep.subr.bf16.mxu0 %v3020_v62  ;;  %v28_v59 = vld [vmem:[%s4504_s0 + $0x70] sm:$0xff]  ;;  %v3814_v62 = vcombine.low %v3669_v2, %v3676_v3  ;;  %v3083_v2 = vld [vmem:[%s4503_s1 + $0x2cc] ss:$16 sps:$4 sm:$0xff]  }
  0x5d   :  { %1997 = vmatprep.subr.bf16.mxu1 %v3023_v63  ;;  %1942 = vmatprep.mubr.bf16.mxu0 %v3693_v7  ;;  %v3818_v63 = vcombine.low %v3681_v4, %v3686_v5  ;;  %v3832_v3 = vcombine.high %v24_v58, %v28_v59  ;;  %v3078_v5 = vld [vmem:[%s4503_s1 + $0xc8] ss:$16 sps:$4 sm:$0xff]  }
  0x5e   :  { %2015 = vmatprep.mubr.bf16.mxu1 %v3700_v11 }
  0x5f   :  { %1925 = vmatpush1.bf16.msra.mxu0 %v3018_v0  ;;  %v25_v0 = vld [vmem:[%s4504_s0 + $0x58] sm:$0xff] }
  0x60   :  { %1998 = vmatpush1.bf16.msra.mxu1 %v3021_v1  ;;  %1926 = vmatprep.subr.bf16.mxu0 %v3026_v6  ;;  %v29_v1 = vld [vmem:[%s4504_s0 + $0x78] sm:$0xff] }
  0x61   :  { %1999 = vmatprep.subr.bf16.mxu1 %v3029_v10  ;;  %v3080_v6 = vld [vmem:[%s4503_s1 + $0xcc] ss:$16 sps:$4 sm:$0xff]   ;;  %v3834_v4 = vcombine.high %v25_v0, %v29_v1  ;;  %v3081_v10 = vld [vmem:[%s4503_s1 + $0x2c8] ss:$16 sps:$4 sm:$0xff]  }
  0x63   :  { %1927 = vmatpush2.bf16.msra.mxu0 %v3024_v12  ;;  %v3086_v12 = vld [vmem:[%s4503_s1 + $0xac] ss:$16 sps:$4 sm:$0xff]  }
  0x64   :  { %2000 = vmatpush2.bf16.msra.mxu1 %v3027_v13  ;;  %1928 = vmatprep.subr.bf16.mxu0 %v3032_v14  ;;  %v3089_v13 = vld [vmem:[%s4503_s1 + $0x2ac] ss:$16 sps:$4 sm:$0xff]   ;;  %v3084_v14 = vld [vmem:[%s4503_s1 + $0xa8] ss:$16 sps:$4 sm:$0xff]  }
  0x65   :  { %2001 = vmatprep.subr.bf16.mxu1 %v3035_v15  ;;  %v3087_v15 = vld [vmem:[%s4503_s1 + $0x2a8] ss:$16 sps:$4 sm:$0xff]  }
  0x67   :  { %1929 = vmatpush2.bf16.msra.mxu0 %v3030_v16  ;;  %v32_v16 = vld [vmem:[%s4504_s0 + $0x90] sm:$0xff] }
  0x68   :  { %2002 = vmatpush2.bf16.msra.mxu1 %v3033_v17  ;;  %1930 = vmatprep.subr.bf16.mxu0 %v3038_v18  ;;  %v36_v17 = vld [vmem:[%s4504_s0 + $0xb0] sm:$0xff]  ;;  %v3864_v18 = vcombine.low %v24_v58, %v28_v59  ;;  %v3108_v59 = vld [vmem:[%s4503_s1 + $0x28] ss:$16 sps:$4 sm:$0xff]  }
  0x69   :  { %2003 = vmatprep.subr.bf16.mxu1 %v3041_v19  ;;  %v3866_v19 = vcombine.low %v25_v0, %v29_v1  ;;  %v3111_v0 = vld [vmem:[%s4503_s1 + $0x228] ss:$16 sps:$4 sm:$0xff]  }
  0x6b   :  { %1931 = vmatpush2.bf16.msra.mxu0 %v3036_v20  ;;  %v33_v20 = vld [vmem:[%s4504_s0 + $0x98] sm:$0xff] }
  0x6c   :  { %2004 = vmatpush2.bf16.msra.mxu1 %v3039_v22  ;;  %1932 = vmatprep.subr.bf16.mxu0 %v3044_v24  ;;  %v37_v22 = vld [vmem:[%s4504_s0 + $0xb8] sm:$0xff] }
  0x6d   :  { %2005 = vmatprep.subr.bf16.mxu1 %v3047_v25  ;;  %v3092_v24 = vld [vmem:[%s4503_s1 + $0x8c] ss:$16 sps:$4 sm:$0xff]  }
  0x6e   :  { %v3095_v25 = vld [vmem:[%s4503_s1 + $0x28c] ss:$16 sps:$4 sm:$0xff]  }
  0x6f   :  { %1933 = vmatpush2.bf16.msra.mxu0 %v3042_v28  ;;  %v3880_v28 = vcombine.high %v32_v16, %v36_v17 }
  0x70   :  { %2006 = vmatpush2.bf16.msra.mxu1 %v3045_v29  ;;  %1934 = vmatprep.subr.bf16.mxu0 %v3050_v30  ;;  %v3882_v29 = vcombine.high %v33_v20, %v37_v22  ;;  %v3090_v30 = vld [vmem:[%s4503_s1 + $0x88] ss:$16 sps:$4 sm:$0xff]  }
  0x71   :  { %2007 = vmatprep.subr.bf16.mxu1 %v3053_v31  ;;  %v3093_v31 = vld [vmem:[%s4503_s1 + $0x288] ss:$16 sps:$4 sm:$0xff]  }
  0x73   :  { %1935 = vmatpush2.bf16.msra.mxu0 %v3048_v32  ;;  %v3098_v32 = vld [vmem:[%s4503_s1 + $0x6c] ss:$16 sps:$4 sm:$0xff]  }
  0x74   :  { %2008 = vmatpush2.bf16.msra.mxu1 %v3051_v33  ;;  %1936 = vmatprep.subr.bf16.mxu0 %v3056_v34  ;;  %v3101_v33 = vld [vmem:[%s4503_s1 + $0x26c] ss:$16 sps:$4 sm:$0xff]   ;;  %v3096_v34 = vld [vmem:[%s4503_s1 + $0x68] ss:$16 sps:$4 sm:$0xff]  }
  0x75   :  { %2009 = vmatprep.subr.bf16.mxu1 %v3059_v35  ;;  %v3099_v35 = vld [vmem:[%s4503_s1 + $0x268] ss:$16 sps:$4 sm:$0xff]  }
  0x77   :  { %1937 = vmatpush2.bf16.msra.mxu0 %v3054_v36  ;;  %v40_v36 = vld [vmem:[%s4504_s0 + $0xd0] sm:$0xff] }
  0x78   :  { %2010 = vmatpush2.bf16.msra.mxu1 %v3057_v39  ;;  %1938 = vmatprep.subr.bf16.mxu0 %v3062_v40  ;;  %v44_v39 = vld [vmem:[%s4504_s0 + $0xf0] sm:$0xff]  ;;  %v3912_v40 = vcombine.low %v32_v16, %v36_v17  ;;  %v3128_v16 = vld [vmem:[%s4503_s1 + $0x1cc] ss:$16 sps:$4 sm:$0xff]   ;;  %v3129_v17 = vld [vmem:[%s4503_s1 + $0x3c8] ss:$16 sps:$4 sm:$0xff]  }
  0x79   :  { %2011 = vmatprep.subr.bf16.mxu1 %v3065_v41  ;;  %v3914_v41 = vcombine.low %v33_v20, %v37_v22  ;;  %v3948_v58 = vcombine.low %v40_v36, %v44_v39  ;;  %v3134_v20 = vld [vmem:[%s4503_s1 + $0x1ac] ss:$16 sps:$4 sm:$0xff]  }
  0x7a   :  { %v3137_v22 = vld [vmem:[%s4503_s1 + $0x3ac] ss:$16 sps:$4 sm:$0xff]  }
  0x7b   :  { %1939 = vmatpush2.bf16.msra.mxu0 %v3060_v44  ;;  %v41_v44 = vld [vmem:[%s4504_s0 + $0xd8] sm:$0xff] }
  0x7c   :  { %2012 = vmatpush2.bf16.msra.mxu1 %v3063_v45  ;;  %1940 = vmatprep.subr.bf16.mxu0 %v3068_v46  ;;  %v45_v45 = vld [vmem:[%s4504_s0 + $0xf8] sm:$0xff] }
  0x7d   :  { %2013 = vmatprep.subr.bf16.mxu1 %v3071_v47  ;;  %v3104_v46 = vld [vmem:[%s4503_s1 + $0x4c] ss:$16 sps:$4 sm:$0xff]   ;;  %v3956_v1 = vcombine.low %v41_v44, %v45_v45 }
  0x7e   :  { %v3107_v47 = vld [vmem:[%s4503_s1 + $0x24c] ss:$16 sps:$4 sm:$0xff]  }
  0x7f   :  { %1941 = vmatpush2.bf16.msra.mxu0 %v3066_v49  ;;  %v3928_v49 = vcombine.high %v40_v36, %v44_v39  ;;  %v3144_v36 = vld [vmem:[%s4503_s1 + $0x168] ss:$16 sps:$4 sm:$0xff]  }
  0x80   :  { %2014 = vmatpush2.bf16.msra.mxu1 %v3069_v50  ;;  %2056 = vmatprep.subr.bf16.mxu0 %v3074_v51  ;;  %v3930_v50 = vcombine.high %v41_v44, %v45_v45  ;;  %v3102_v51 = vld [vmem:[%s4503_s1 + $0x48] ss:$16 sps:$4 sm:$0xff]   ;;  %v3152_v44 = vld [vmem:[%s4503_s1 + $0x14c] ss:$16 sps:$4 sm:$0xff]  }
  0x81   :  { %2129 = vmatprep.subr.bf16.mxu1 %v3077_v52  ;;  %v3105_v52 = vld [vmem:[%s4503_s1 + $0x248] ss:$16 sps:$4 sm:$0xff]   ;;  %v3155_v45 = vld [vmem:[%s4503_s1 + $0x34c] ss:$16 sps:$4 sm:$0xff]  }
  0x82   :  { %1943 = vmatmul.mubr.bf16.vlgmr.msra.gmra.mxu0 %v3814_v62  ;;  %v3147_v39 = vld [vmem:[%s4503_s1 + $0x368] ss:$16 sps:$4 sm:$0xff]  }
  0x83   :  { %2016 = vmatmul.mubr.bf16.vlgmr.msra.gmra.mxu1 %v3818_v63  ;;  %2057 = vmatpush1.bf16.msra.mxu0 %v3072_v56  ;;  %v3110_v56 = vld [vmem:[%s4503_s1 + $0x2c] ss:$16 sps:$4 sm:$0xff]  }
  0x84   :  { %2130 = vmatpush1.bf16.msra.mxu1 %v3075_v57  ;;  %2058 = vmatprep.subr.bf16.mxu0 %v3080_v6  ;;  %v3113_v57 = vld [vmem:[%s4503_s1 + $0x22c] ss:$16 sps:$4 sm:$0xff]  }
  0x85   :  { %2131 = vmatprep.subr.bf16.mxu1 %v3083_v2  ;;  %1952 = vmatprep.mubr.bf16.mxu0 %v3832_v3  ;;  %v3116_v6 = vld [vmem:[%s4503_s1 + $0xc] ss:$16 sps:$4 sm:$0xff]  }
  0x86   :  { %2025 = vmatprep.mubr.bf16.mxu1 %v3834_v4  ;;  %v3119_v2 = vld [vmem:[%s4503_s1 + $0x20c] ss:$16 sps:$4 sm:$0xff]  }
  0x87   :  { %2059 = vmatpush1.bf16.msra.mxu0 %v3078_v5  ;;  %v3114_v5 = vld [vmem:[%s4503_s1 + $0x8] ss:$16 sps:$4 sm:$0xff]  }
  0x88   :  { %2132 = vmatpush1.bf16.msra.mxu1 %v3081_v10  ;;  %2060 = vmatprep.subr.bf16.mxu0 %v3086_v12  ;;  %v3117_v10 = vld [vmem:[%s4503_s1 + $0x208] ss:$16 sps:$4 sm:$0xff]   ;;  %v3122_v12 = vld [vmem:[%s4503_s1 + $0x1ec] ss:$16 sps:$4 sm:$0xff]  }
  0x89   :  { %2133 = vmatprep.subr.bf16.mxu1 %v3089_v13  ;;  %v3125_v13 = vld [vmem:[%s4503_s1 + $0x3ec] ss:$16 sps:$4 sm:$0xff]  }
  0x8a   :  { %1953 = vmatmul.mubr.bf16.gmra.mxu0 %v3864_v18 }
  0x8b   :  { %2026 = vmatmul.mubr.bf16.gmra.mxu1 %v3866_v19  ;;  %2061 = vmatpush1.bf16.msra.mxu0 %v3084_v14  ;;  %v3120_v14 = vld [vmem:[%s4503_s1 + $0x1e8] ss:$16 sps:$4 sm:$0xff]  }
  0x8c   :  { %2134 = vmatpush1.bf16.msra.mxu1 %v3087_v15  ;;  %2062 = vmatprep.subr.bf16.mxu0 %v3092_v24  ;;  %v3123_v15 = vld [vmem:[%s4503_s1 + $0x3e8] ss:$16 sps:$4 sm:$0xff]  }
  0x8d   :  { %2135 = vmatprep.subr.bf16.mxu1 %v3095_v25  ;;  %1962 = vmatprep.mubr.bf16.mxu0 %v3880_v28  ;;  %v3132_v24 = vld [vmem:[%s4503_s1 + $0x1a8] ss:$16 sps:$4 sm:$0xff]  }
  0x8e   :  { %2035 = vmatprep.mubr.bf16.mxu1 %v3882_v29  ;;  %v3135_v25 = vld [vmem:[%s4503_s1 + $0x3a8] ss:$16 sps:$4 sm:$0xff]  }
  0x8f   :  { %2063 = vmatpush1.bf16.msra.mxu0 %v3090_v30  ;;  %v3140_v30 = vld [vmem:[%s4503_s1 + $0x18c] ss:$16 sps:$4 sm:$0xff]  }
  0x90   :  { %2136 = vmatpush1.bf16.msra.mxu1 %v3093_v31  ;;  %2064 = vmatprep.subr.bf16.mxu0 %v3098_v32  ;;  %v3143_v31 = vld [vmem:[%s4503_s1 + $0x38c] ss:$16 sps:$4 sm:$0xff]   ;;  %v3138_v32 = vld [vmem:[%s4503_s1 + $0x188] ss:$16 sps:$4 sm:$0xff]  }
  0x91   :  { %2137 = vmatprep.subr.bf16.mxu1 %v3101_v33  ;;  %v3141_v33 = vld [vmem:[%s4503_s1 + $0x388] ss:$16 sps:$4 sm:$0xff]  }
  0x92   :  { %1963 = vmatmul.mubr.bf16.gmra.mxu0 %v3912_v40 }
  0x93   :  { %2036 = vmatmul.mubr.bf16.gmra.mxu1 %v3914_v41  ;;  %2065 = vmatpush1.bf16.msra.mxu0 %v3096_v34  ;;  %v3146_v34 = vld [vmem:[%s4503_s1 + $0x16c] ss:$16 sps:$4 sm:$0xff]  }
  0x94   :  { %2138 = vmatpush1.bf16.msra.mxu1 %v3099_v35  ;;  %2066 = vmatprep.subr.bf16.mxu0 %v3104_v46  ;;  %v3149_v35 = vld [vmem:[%s4503_s1 + $0x36c] ss:$16 sps:$4 sm:$0xff]   ;;  %v3150_v46 = vld [vmem:[%s4503_s1 + $0x148] ss:$16 sps:$4 sm:$0xff]  }
  0x95   :  { %2139 = vmatprep.subr.bf16.mxu1 %v3107_v47  ;;  %1972 = vmatprep.mubr.bf16.mxu0 %v3928_v49  ;;  %v3153_v47 = vld [vmem:[%s4503_s1 + $0x348] ss:$16 sps:$4 sm:$0xff]  }
  0x96   :  { %2045 = vmatprep.mubr.bf16.mxu1 %v3930_v50 }
  0x97   :  { %2067 = vmatpush1.bf16.msra.mxu0 %v3102_v51  ;;  %v3158_v51 = vld [vmem:[%s4503_s1 + $0x12c] ss:$16 sps:$4 sm:$0xff]  }
  0x98   :  { %2140 = vmatpush1.bf16.msra.mxu1 %v3105_v52  ;;  %2068 = vmatprep.subr.bf16.mxu0 %v3110_v56  ;;  %v3161_v52 = vld [vmem:[%s4503_s1 + $0x32c] ss:$16 sps:$4 sm:$0xff]   ;;  %v3156_v56 = vld [vmem:[%s4503_s1 + $0x128] ss:$16 sps:$4 sm:$0xff]  }
  0x99   :  { %2141 = vmatprep.subr.bf16.mxu1 %v3113_v57  ;;  %v3159_v57 = vld [vmem:[%s4503_s1 + $0x328] ss:$16 sps:$4 sm:$0xff]  }
  0x9a   :  { %1973 = vmatmul.mubr.bf16.gmra.mxu0 %v3948_v58 }
  0x9b   :  { %2046 = vmatmul.mubr.bf16.gmra.mxu1 %v3956_v1  ;;  %2069 = vmatpush1.bf16.msra.mxu0 %v3108_v59  ;;  %v3164_v59 = vld [vmem:[%s4503_s1 + $0x10c] ss:$16 sps:$4 sm:$0xff]  }
  0x9c   :  { %2142 = vmatpush1.bf16.msra.mxu1 %v3111_v0  ;;  %2070 = vmatprep.subr.bf16.mxu0 %v3116_v6  ;;  %v3167_v0 = vld [vmem:[%s4503_s1 + $0x30c] ss:$16 sps:$4 sm:$0xff]   ;;  %v3162_v6 = vld [vmem:[%s4503_s1 + $0x108] ss:$16 sps:$4 sm:$0xff]  }
  0x9d   :  { %2143 = vmatprep.subr.bf16.mxu1 %v3119_v2  ;;  %2088 = vmatprep.mubr.bf16.mxu0 %v3443_v53  ;;  %v3131_v53 = vld [vmem:[%s4503_s1 + $0x3cc] ss:$16 sps:$4 sm:$0xff]   ;;  %v3165_v2 = vld [vmem:[%s4503_s1 + $0x308] ss:$16 sps:$4 sm:$0xff]  }
  0x9e   :  { %2161 = vmatprep.mubr.bf16.mxu1 %v3448_v55  ;;  %v3126_v55 = vld [vmem:[%s4503_s1 + $0x1c8] ss:$16 sps:$4 sm:$0xff]  }
  0x9f   :  { %2071 = vmatpush1.bf16.msra.mxu0 %v3114_v5  ;;  %v3170_v5 = vld [vmem:[%s4503_s1 + $0x4ec] ss:$16 sps:$4 sm:$0xff]  }
  0xa0   :  { %2144 = vmatpush1.bf16.msra.mxu1 %v3117_v10  ;;  %2072 = vmatprep.subr.bf16.mxu0 %v3122_v12  ;;  %v3173_v10 = vld [vmem:[%s4503_s1 + $0x6ec] ss:$16 sps:$4 sm:$0xff]   ;;  %v3168_v12 = vld [vmem:[%s4503_s1 + $0x4e8] ss:$16 sps:$4 sm:$0xff]  }
  0xa1   :  { %2145 = vmatprep.subr.bf16.mxu1 %v3125_v13  ;;  %v3171_v13 = vld [vmem:[%s4503_s1 + $0x6e8] ss:$16 sps:$4 sm:$0xff]  }
  0xa3   :  { %2073 = vmatpush2.bf16.msra.mxu0 %v3120_v14  ;;  %v3176_v14 = vld [vmem:[%s4503_s1 + $0x4cc] ss:$16 sps:$4 sm:$0xff]  }
  0xa4   :  { %2146 = vmatpush2.bf16.msra.mxu1 %v3123_v15  ;;  %2074 = vmatprep.subr.bf16.mxu0 %v3128_v16  ;;  %v3179_v15 = vld [vmem:[%s4503_s1 + $0x6cc] ss:$16 sps:$4 sm:$0xff]   ;;  %v3174_v16 = vld [vmem:[%s4503_s1 + $0x4c8] ss:$16 sps:$4 sm:$0xff]  }
  0xa5   :  { %2147 = vmatprep.subr.bf16.mxu1 %v3131_v53  ;;  %v3177_v53 = vld [vmem:[%s4503_s1 + $0x6c8] ss:$16 sps:$4 sm:$0xff]  }
  0xa7   :  { %2075 = vmatpush2.bf16.msra.mxu0 %v3126_v55  ;;  %v3182_v55 = vld [vmem:[%s4503_s1 + $0x4ac] ss:$16 sps:$4 sm:$0xff]  }
  0xa8   :  { %2148 = vmatpush2.bf16.msra.mxu1 %v3129_v17  ;;  %2076 = vmatprep.subr.bf16.mxu0 %v3134_v20  ;;  %v3183_v17 = vld [vmem:[%s4503_s1 + $0x6a8] ss:$16 sps:$4 sm:$0xff]   ;;  %v3188_v20 = vld [vmem:[%s4503_s1 + $0x48c] ss:$16 sps:$4 sm:$0xff]  }
  0xa9   :  { %2149 = vmatprep.subr.bf16.mxu1 %v3137_v22  ;;  %v3189_v22 = vld [vmem:[%s4503_s1 + $0x688] ss:$16 sps:$4 sm:$0xff]  }
  0xab   :  { %2077 = vmatpush2.bf16.msra.mxu0 %v3132_v24  ;;  %v3194_v24 = vld [vmem:[%s4503_s1 + $0x46c] ss:$16 sps:$4 sm:$0xff]  }
  0xac   :  { %2150 = vmatpush2.bf16.msra.mxu1 %v3135_v25  ;;  %2078 = vmatprep.subr.bf16.mxu0 %v3140_v30  ;;  %v3195_v25 = vld [vmem:[%s4503_s1 + $0x668] ss:$16 sps:$4 sm:$0xff]   ;;  %v3200_v30 = vld [vmem:[%s4503_s1 + $0x44c] ss:$16 sps:$4 sm:$0xff]  }
  0xad   :  { %2151 = vmatprep.subr.bf16.mxu1 %v3143_v31  ;;  %v3201_v31 = vld [vmem:[%s4503_s1 + $0x648] ss:$16 sps:$4 sm:$0xff]  }
  0xaf   :  { %2079 = vmatpush2.bf16.msra.mxu0 %v3138_v32  ;;  %v3206_v32 = vld [vmem:[%s4503_s1 + $0x42c] ss:$16 sps:$4 sm:$0xff]  }
  0xb0   :  { %2152 = vmatpush2.bf16.msra.mxu1 %v3141_v33  ;;  %2080 = vmatprep.subr.bf16.mxu0 %v3146_v34  ;;  %v3207_v33 = vld [vmem:[%s4503_s1 + $0x628] ss:$16 sps:$4 sm:$0xff]   ;;  %v3212_v34 = vld [vmem:[%s4503_s1 + $0x40c] ss:$16 sps:$4 sm:$0xff]  }
  0xb1   :  { %2153 = vmatprep.subr.bf16.mxu1 %v3149_v35  ;;  %v3213_v35 = vld [vmem:[%s4503_s1 + $0x608] ss:$16 sps:$4 sm:$0xff]  }
  0xb3   :  { %2081 = vmatpush2.bf16.msra.mxu0 %v3144_v36  ;;  %v3218_v36 = vld [vmem:[%s4503_s1 + $0x5ec] ss:$16 sps:$4 sm:$0xff]  }
  0xb4   :  { %2154 = vmatpush2.bf16.msra.mxu1 %v3147_v39  ;;  %2082 = vmatprep.subr.bf16.mxu0 %v3152_v44  ;;  %v3219_v39 = vld [vmem:[%s4503_s1 + $0x7e8] ss:$16 sps:$4 sm:$0xff]   ;;  %v3224_v44 = vld [vmem:[%s4503_s1 + $0x5cc] ss:$16 sps:$4 sm:$0xff]  }
  0xb5   :  { %2155 = vmatprep.subr.bf16.mxu1 %v3155_v45  ;;  %v3225_v45 = vld [vmem:[%s4503_s1 + $0x7c8] ss:$16 sps:$4 sm:$0xff]  }
  0xb7   :  { %2083 = vmatpush2.bf16.msra.mxu0 %v3150_v46  ;;  %v3230_v46 = vld [vmem:[%s4503_s1 + $0x5ac] ss:$16 sps:$4 sm:$0xff]  }
  0xb8   :  { %2156 = vmatpush2.bf16.msra.mxu1 %v3153_v47  ;;  %2084 = vmatprep.subr.bf16.mxu0 %v3158_v51  ;;  %v3233_v47 = vld [vmem:[%s4503_s1 + $0x7ac] ss:$16 sps:$4 sm:$0xff]   ;;  %v3228_v51 = vld [vmem:[%s4503_s1 + $0x5a8] ss:$16 sps:$4 sm:$0xff]  }
  0xb9   :  { %2157 = vmatprep.subr.bf16.mxu1 %v3161_v52  ;;  %v3231_v52 = vld [vmem:[%s4503_s1 + $0x7a8] ss:$16 sps:$4 sm:$0xff]  }
  0xbb   :  { %2085 = vmatpush2.bf16.msra.mxu0 %v3156_v56  ;;  %v3236_v56 = vld [vmem:[%s4503_s1 + $0x58c] ss:$16 sps:$4 sm:$0xff]  }
  0xbc   :  { %2158 = vmatpush2.bf16.msra.mxu1 %v3159_v57  ;;  %2086 = vmatprep.subr.bf16.mxu0 %v3164_v59  ;;  %v3239_v57 = vld [vmem:[%s4503_s1 + $0x78c] ss:$16 sps:$4 sm:$0xff]   ;;  %v3234_v59 = vld [vmem:[%s4503_s1 + $0x588] ss:$16 sps:$4 sm:$0xff]  }
  0xbd   :  { %2159 = vmatprep.subr.bf16.mxu1 %v3167_v0  ;;  %v3237_v0 = vld [vmem:[%s4503_s1 + $0x788] ss:$16 sps:$4 sm:$0xff]  }
  0xbf   :  { %2087 = vmatpush2.bf16.msra.mxu0 %v3162_v6  ;;  %v3242_v6 = vld [vmem:[%s4503_s1 + $0x56c] ss:$16 sps:$4 sm:$0xff]  }
  0xc0   :  { %2160 = vmatpush2.bf16.msra.mxu1 %v3165_v2  ;;  %2202 = vmatprep.subr.bf16.mxu0 %v3170_v5  ;;  %v3245_v2 = vld [vmem:[%s4503_s1 + $0x76c] ss:$16 sps:$4 sm:$0xff]   ;;  %v3240_v5 = vld [vmem:[%s4503_s1 + $0x568] ss:$16 sps:$4 sm:$0xff]  }
  0xc1   :  { %2275 = vmatprep.subr.bf16.mxu1 %v3173_v10  ;;  %v3243_v10 = vld [vmem:[%s4503_s1 + $0x768] ss:$16 sps:$4 sm:$0xff]  }
  0xc2   :  { %2089 = vmatmul.mubr.bf16.vlgmr.msra.gmra.mxu0 %v3500_v8  ;;  %v3185_v8 = vld [vmem:[%s4503_s1 + $0x6ac] ss:$16 sps:$4 sm:$0xff]  }
  0xc3   :  { %2162 = vmatmul.mubr.bf16.vlgmr.msra.gmra.mxu1 %v3502_v9  ;;  %2203 = vmatpush1.bf16.msra.mxu0 %v3168_v12  ;;  %v3180_v9 = vld [vmem:[%s4503_s1 + $0x4a8] ss:$16 sps:$4 sm:$0xff]   ;;  %v3248_v12 = vld [vmem:[%s4503_s1 + $0x54c] ss:$16 sps:$4 sm:$0xff]  }
  0xc4   :  { %2276 = vmatpush1.bf16.msra.mxu1 %v3171_v13  ;;  %2204 = vmatprep.subr.bf16.mxu0 %v3176_v14  ;;  %v3251_v13 = vld [vmem:[%s4503_s1 + $0x74c] ss:$16 sps:$4 sm:$0xff]   ;;  %v3246_v14 = vld [vmem:[%s4503_s1 + $0x548] ss:$16 sps:$4 sm:$0xff]  }
  0xc5   :  { %2277 = vmatprep.subr.bf16.mxu1 %v3179_v15  ;;  %2098 = vmatprep.mubr.bf16.mxu0 %v3539_v21  ;;  %v3191_v21 = vld [vmem:[%s4503_s1 + $0x68c] ss:$16 sps:$4 sm:$0xff]   ;;  %v3249_v15 = vld [vmem:[%s4503_s1 + $0x748] ss:$16 sps:$4 sm:$0xff]  }
  0xc6   :  { %2171 = vmatprep.mubr.bf16.mxu1 %v3544_v23  ;;  %v3186_v23 = vld [vmem:[%s4503_s1 + $0x488] ss:$16 sps:$4 sm:$0xff]  }
  0xc7   :  { %2205 = vmatpush1.bf16.msra.mxu0 %v3174_v16  ;;  %v3254_v16 = vld [vmem:[%s4503_s1 + $0x52c] ss:$16 sps:$4 sm:$0xff]  }
  0xc8   :  { %2278 = vmatpush1.bf16.msra.mxu1 %v3177_v53  ;;  %2206 = vmatprep.subr.bf16.mxu0 %v3182_v55  ;;  %v3257_v53 = vld [vmem:[%s4503_s1 + $0x72c] ss:$16 sps:$4 sm:$0xff]   ;;  %v3252_v55 = vld [vmem:[%s4503_s1 + $0x528] ss:$16 sps:$4 sm:$0xff]  }
  0xc9   :  { %2279 = vmatprep.subr.bf16.mxu1 %v3185_v8  ;;  %v3255_v8 = vld [vmem:[%s4503_s1 + $0x728] ss:$16 sps:$4 sm:$0xff]  }
  0xca   :  { %2099 = vmatmul.mubr.bf16.gmra.mxu0 %v3553_v26  ;;  %v3197_v26 = vld [vmem:[%s4503_s1 + $0x66c] ss:$16 sps:$4 sm:$0xff]  }
  0xcb   :  { %2172 = vmatmul.mubr.bf16.gmra.mxu1 %v3555_v27  ;;  %2207 = vmatpush1.bf16.msra.mxu0 %v3180_v9  ;;  %v3192_v27 = vld [vmem:[%s4503_s1 + $0x468] ss:$16 sps:$4 sm:$0xff]   ;;  %v3260_v9 = vld [vmem:[%s4503_s1 + $0x50c] ss:$16 sps:$4 sm:$0xff]  }
  0xcc   :  { %2280 = vmatpush1.bf16.msra.mxu1 %v3183_v17  ;;  %2208 = vmatprep.subr.bf16.mxu0 %v3188_v20  ;;  %v3263_v17 = vld [vmem:[%s4503_s1 + $0x70c] ss:$16 sps:$4 sm:$0xff]   ;;  %v3258_v20 = vld [vmem:[%s4503_s1 + $0x508] ss:$16 sps:$4 sm:$0xff]  }
  0xcd   :  { %2281 = vmatprep.subr.bf16.mxu1 %v3191_v21  ;;  %2108 = vmatprep.mubr.bf16.mxu0 %v3587_v37  ;;  %v3203_v37 = vld [vmem:[%s4503_s1 + $0x64c] ss:$16 sps:$4 sm:$0xff]   ;;  %v3261_v21 = vld [vmem:[%s4503_s1 + $0x708] ss:$16 sps:$4 sm:$0xff]  }
  0xce   :  { %2181 = vmatprep.mubr.bf16.mxu1 %v3589_v38  ;;  %v3198_v38 = vld [vmem:[%s4503_s1 + $0x448] ss:$16 sps:$4 sm:$0xff]  }
  0xcf   :  { %2209 = vmatpush1.bf16.msra.mxu0 %v3186_v23 }
  0xd0   :  { %2282 = vmatpush1.bf16.msra.mxu1 %v3189_v22  ;;  %2210 = vmatprep.subr.bf16.mxu0 %v3194_v24 }
  0xd1   :  { %2283 = vmatprep.subr.bf16.mxu1 %v3197_v26 }
  0xd2   :  { %2109 = vmatmul.mubr.bf16.gmra.mxu0 %v3602_v42  ;;  %v3209_v42 = vld [vmem:[%s4503_s1 + $0x62c] ss:$16 sps:$4 sm:$0xff]  }
  0xd3   :  { %2182 = vmatmul.mubr.bf16.gmra.mxu1 %v3604_v43  ;;  %2211 = vmatpush1.bf16.msra.mxu0 %v3192_v27  ;;  %v3204_v43 = vld [vmem:[%s4503_s1 + $0x428] ss:$16 sps:$4 sm:$0xff]  }
  0xd4   :  { %2284 = vmatpush1.bf16.msra.mxu1 %v3195_v25  ;;  %2212 = vmatprep.subr.bf16.mxu0 %v3200_v30 }
  0xd5   :  { %2285 = vmatprep.subr.bf16.mxu1 %v3203_v37  ;;  %2118 = vmatprep.mubr.bf16.mxu0 %v3618_v48  ;;  %v3215_v48 = vld [vmem:[%s4503_s1 + $0x60c] ss:$16 sps:$4 sm:$0xff]  }
  0xd6   :  { %2191 = vmatprep.mubr.bf16.mxu1 %v3634_v54  ;;  %v3210_v54 = vld [vmem:[%s4503_s1 + $0x408] ss:$16 sps:$4 sm:$0xff]  }
  0xd7   :  { %2213 = vmatpush1.bf16.msra.mxu0 %v3198_v38 }
  0xd8   :  { %2286 = vmatpush1.bf16.msra.mxu1 %v3201_v31  ;;  %2214 = vmatprep.subr.bf16.mxu0 %v3206_v32 }
  0xd9   :  { %2287 = vmatprep.subr.bf16.mxu1 %v3209_v42 }
  0xda   :  { %2119 = vmatmul.mubr.bf16.gmra.mxu0 %v3650_v60  ;;  %v3221_v60 = vld [vmem:[%s4503_s1 + $0x7ec] ss:$16 sps:$4 sm:$0xff]  }
  0xdb   :  { %2192 = vmatmul.mubr.bf16.gmra.mxu1 %v3652_v61  ;;  %2215 = vmatpush1.bf16.msra.mxu0 %v3204_v43  ;;  %v3216_v61 = vld [vmem:[%s4503_s1 + $0x5e8] ss:$16 sps:$4 sm:$0xff]  }
  0xdc   :  { %2288 = vmatpush1.bf16.msra.mxu1 %v3207_v33  ;;  %2216 = vmatprep.subr.bf16.mxu0 %v3212_v34 }
  0xdd   :  { %2289 = vmatprep.subr.bf16.mxu1 %v3215_v48  ;;  %2234 = vmatprep.mubr.bf16.mxu0 %v3693_v7  ;;  %v3227_v7 = vld [vmem:[%s4503_s1 + $0x7cc] ss:$16 sps:$4 sm:$0xff]   ;;  %v4324_v48 = vld [vmem:[%s4505_s2] sm:$0xf] }
  0xde   :  { %2307 = vmatprep.mubr.bf16.mxu1 %v3700_v11  ;;  %v3222_v11 = vld [vmem:[%s4503_s1 + $0x5c8] ss:$16 sps:$4 sm:$0xff]  }
  0xdf   :  { %2217 = vmatpush1.bf16.msra.mxu0 %v3210_v54 }
  0xe0   :  { %2290 = vmatpush1.bf16.msra.mxu1 %v3213_v35  ;;  %2218 = vmatprep.subr.bf16.mxu0 %v3218_v36 }
  0xe1   :  { %2291 = vmatprep.subr.bf16.mxu1 %v3221_v60 }
  0xe3   :  { %2219 = vmatpush2.bf16.msra.mxu0 %v3216_v61 }
  0xe4   :  { %2292 = vmatpush2.bf16.msra.mxu1 %v3219_v39  ;;  %2220 = vmatprep.subr.bf16.mxu0 %v3224_v44 }
  0xe5   :  { %2293 = vmatprep.subr.bf16.mxu1 %v3227_v7 }
  0xe7   :  { %2221 = vmatpush2.bf16.msra.mxu0 %v3222_v11 }
  0xe8   :  { %2294 = vmatpush2.bf16.msra.mxu1 %v3225_v45  ;;  %2222 = vmatprep.subr.bf16.mxu0 %v3230_v46 }
  0xe9   :  { %2295 = vmatprep.subr.bf16.mxu1 %v3233_v47 }
  0xeb   :  { %2223 = vmatpush2.bf16.msra.mxu0 %v3228_v51 }
  0xec   :  { %2296 = vmatpush2.bf16.msra.mxu1 %v3231_v52  ;;  %2224 = vmatprep.subr.bf16.mxu0 %v3236_v56 }
  0xed   :  { %2297 = vmatprep.subr.bf16.mxu1 %v3239_v57 }
  0xef   :  { %2225 = vmatpush2.bf16.msra.mxu0 %v3234_v59 }
  0xf0   :  { %2298 = vmatpush2.bf16.msra.mxu1 %v3237_v0  ;;  %2226 = vmatprep.subr.bf16.mxu0 %v3242_v6 }
  0xf1   :  { %2299 = vmatprep.subr.bf16.mxu1 %v3245_v2 }
  0xf3   :  { %2227 = vmatpush2.bf16.msra.mxu0 %v3240_v5 }
  0xf4   :  { %2300 = vmatpush2.bf16.msra.mxu1 %v3243_v10  ;;  %2228 = vmatprep.subr.bf16.mxu0 %v3248_v12 }
  0xf5   :  { %2301 = vmatprep.subr.bf16.mxu1 %v3251_v13 }
  0xf7   :  { %2229 = vmatpush2.bf16.msra.mxu0 %v3246_v14 }
  0xf8   :  { %2302 = vmatpush2.bf16.msra.mxu1 %v3249_v15  ;;  %2230 = vmatprep.subr.bf16.mxu0 %v3254_v16 }
  0xf9   :  { %2303 = vmatprep.subr.bf16.mxu1 %v3257_v53 }
  0xfb   :  { %2231 = vmatpush2.bf16.msra.mxu0 %v3252_v55 }
  0xfc   :  { %2304 = vmatpush2.bf16.msra.mxu1 %v3255_v8  ;;  %2232 = vmatprep.subr.bf16.mxu0 %v3260_v9 }
  0xfd   :  { %2305 = vmatprep.subr.bf16.mxu1 %v3263_v17 }
  0xff   :  { %2233 = vmatpush2.bf16.msra.mxu0 %v3258_v20 }
 0x100   :  { %2306 = vmatpush2.bf16.msra.mxu1 %v3261_v21 }
 0x102   :  { %2235 = vmatmul.mubr.bf16.vlgmr.msra.gmra.mxu0 %v3814_v62  ;;  %v1798_v23 = vpop.f32.mrf.mxu0 }
 0x103   :  { %2308 = vmatmul.mubr.bf16.vlgmr.msra.gmra.mxu1 %v3818_v63  ;;  %2244 = vmatprep.mubr.bf16.mxu0 %v3832_v3  ;;  %v1871_v22 = vpop.f32.mrf.mxu1 }
 0x104   :  { %2317 = vmatprep.mubr.bf16.mxu1 %v3834_v4  ;;  %v1800_v24 = vpop.f32.mrf.mxu0 }
 0x105   :  { %v1873_v26 = vpop.f32.mrf.mxu1 }
 0x106   :  { %v1802_v27 = vpop.f32.mrf.mxu0 }
 0x107   :  { %v1875_v62 = vpop.f32.mrf.mxu1 }
 0x108   :  { %v1804_v25 = vpop.f32.mrf.mxu0 }
 0x109   :  { %v1877_v63 = vpop.f32.mrf.mxu1 }
 0x10a   :  { %2245 = vmatmul.mubr.bf16.gmra.mxu0 %v3864_v18  ;;  %v1808_v3 = vpop.f32.mrf.mxu0 }
 0x10b   :  { %2318 = vmatmul.mubr.bf16.gmra.mxu1 %v3866_v19  ;;  %2254 = vmatprep.mubr.bf16.mxu0 %v3880_v28  ;;  %v1881_v4 = vpop.f32.mrf.mxu1 }
 0x10c   :  { %2327 = vmatprep.mubr.bf16.mxu1 %v3882_v29  ;;  %v1810_v18 = vpop.f32.mrf.mxu0 }
 0x10d   :  { %v4290_v19 = vpop.f32.mrf.mxu1 }
 0x10e   :  { %v1812_v28 = vpop.f32.mrf.mxu0 }
 0x10f   :  { %v4294_v29 = vpop.f32.mrf.mxu1 }
 0x110   :  { %v1814_v30 = vpop.f32.mrf.mxu0 }
 0x112   :  { %2255 = vmatmul.mubr.bf16.gmra.mxu0 %v3912_v40  ;;  %v4296_v40 = vpop.f32.mrf.mxu1 }
 0x113   :  { %2328 = vmatmul.mubr.bf16.gmra.mxu1 %v3914_v41  ;;  %2264 = vmatprep.mubr.bf16.mxu0 %v3928_v49  ;;  %v4298_v41 = vpop.f32.mrf.mxu0 }
 0x114   :  { %2337 = vmatprep.mubr.bf16.mxu1 %v3930_v50  ;;  %v4300_v49 = vpop.f32.mrf.mxu1 }
 0x115   :  { %v4302_v50 = vpop.f32.mrf.mxu0 }
 0x116   :  { %v4304_v37 = vpop.f32.mrf.mxu1 }
 0x117   :  { %v4306_v38 = vpop.f32.mrf.mxu0 }
 0x118   :  { %v4308_v31 = vpop.f32.mrf.mxu1 }
 0x11a   :  { %2265 = vmatmul.mubr.bf16.gmra.mxu0 %v3948_v58  ;;  %v304_v58 = vlaneseq  ;;  %v4312_v32 = vpop.f32.mrf.mxu1 }
 0x11b   :  { %2338 = vmatmul.mubr.bf16.gmra.mxu1 %v3956_v1  ;;  %v4310_v1 = vpop.f32.mrf.mxu0 }
 0x11c   :  { %v4314_v42 = vshrl.u32 %v304_v58, 7  ;;  %v4318_v33 = vpop.f32.mrf.mxu1 }
 0x11d   :  { %v4316_v43 = vpop.f32.mrf.mxu0 }
 0x11e   :  { %v306_v34 = vsub.s32 0, %v4314_v42  ;;  %v310_v54 = vsub.s32 1, %v4314_v42  ;;  %v4329_v36 = vpop.f32.mrf.mxu1 }
 0x11f   :  { %v4327_v35 = vpop.f32.mrf.mxu0 }
 0x120   :  { %v4332_v60 = vrot.slane %v4324_v48, %v306_v34  ;;  %v4335_v61 = vrot.slane %v4324_v48, %v310_v54  ;;  %v4339_v44 = vpop.f32.mrf.mxu1 }
 0x121   :  { %v4337_v39 = vpop.f32.mrf.mxu0 }
 0x122   :  { %v1799_v7 = vadd.f32 %v1798_v23, %v4332_v60  ;;  %v1801_v11 = vadd.f32 %v1800_v24, %v4335_v61  ;;  %v4345_v46 = vpop.f32.mrf.mxu1  ;;  %v1803_v51 = vadd.f32 %v1802_v27, %v4332_v60  ;;  %v1805_v0 = vadd.f32 %v1804_v25, %v4335_v61 }
 0x123   :  { %v4343_v45 = vpop.f32.mrf.mxu0  ;;  %v1809_v6 = vadd.f32 %v1808_v3, %v4332_v60  ;;  %v1811_v16 = vadd.f32 %v1810_v18, %v4335_v61  ;;  %v1813_v23 = vadd.f32 %v1812_v28, %v4332_v60 }
 0x124   :  { %v1872_v47 = vadd.f32 %v1871_v22, %v1799_v7  ;;  %v1874_v57 = vadd.f32 %v1873_v26, %v1801_v11  ;;  %v1876_v10 = vadd.f32 %v1875_v62, %v1803_v51  ;;  %v1878_v9 = vadd.f32 %v1877_v63, %v1805_v0 }
 0x125   :  { %v1882_v17 = vadd.f32 %v1881_v4, %v1809_v6  ;;  %v1815_v26 = vadd.f32 %v1814_v30, %v4335_v61  ;;  %v1884_v3 = vadd.f32 %v4290_v19, %v1811_v16  ;;  %v1819_v63 = vadd.f32 %v4298_v41, %v4332_v60 }
 0x142   :  { %v1944_v52 = vpop.f32.mrf.mxu0 }
 0x143   :  { %v2017_v56 = vpop.f32.mrf.mxu1  ;;  %v1945_v59 = vadd.f32 %v1944_v52, %v1872_v47  ;;  %v1886_v47 = vadd.f32 %v4294_v29, %v1813_v23  ;;  %v1888_v52 = vadd.f32 %v4296_v40, %v1815_v26  ;;  %v1892_v29 = vadd.f32 %v4300_v49, %v1819_v63 }
 0x144   :  { %v1946_v2 = vpop.f32.mrf.mxu0 }
 0x145   :  { %v2019_v5 = vpop.f32.mrf.mxu1  ;;  %v2018_v12 = vadd.f32 %v2017_v56, %v1945_v59  ;;  %v1947_v13 = vadd.f32 %v1946_v2, %v1874_v57  ;;  %v1821_v57 = vadd.f32 %v4302_v50, %v4335_v61 }
 0x146   :  { %v1948_v14 = vpop.f32.mrf.mxu0 }
 0x147   :  { %v2021_v15 = vpop.f32.mrf.mxu1  ;;  %v2380_v53 = vmul.f32 0.2, %v2018_v12  ;;  %v2020_v55 = vadd.f32 %v2019_v5, %v1947_v13  ;;  %v1949_v8 = vadd.f32 %v1948_v14, %v1876_v10  ;;  %vm2348_vm0 = vcmp.gt.f32.partialorder %v2018_v12, 0.0 }
 0x148   :  { %v1950_v20 = vpop.f32.mrf.mxu0  ;;  %v1894_v49 = vadd.f32 %v4304_v37, %v1821_v57 }
 0x149   :  { %v2023_v21 = vpop.f32.mrf.mxu1  ;;  %vm2349_vm1 = vcmp.gt.f32.partialorder %v2020_v55, 0.0  ;;  %v2381_v22 = vmul.f32 0.2, %v2020_v55  ;;  %v2022_v24 = vadd.f32 %v2021_v15, %v1949_v8  ;;  %v1951_v27 = vadd.f32 %v1950_v20, %v1878_v9 }
 0x14a   :  { %v1954_v62 = vpop.f32.mrf.mxu0  ;;  %v2412_v18 = vsel %vm2348_vm0, %v2018_v12, %v2380_v53  ;;  %v1823_v12 = vadd.f32 %v4306_v38, %v4332_v60  ;;  %v1825_v15 = vadd.f32 %v4310_v1, %v4335_v61  ;;  %v1829_v38 = vadd.f32 %v4316_v43, %v4332_v60 }
 0x14b   :  { %v2027_v25 = vpop.f32.mrf.mxu1  ;;  %v2413_v58 = vsel %vm2349_vm1, %v2020_v55, %v2381_v22  ;;  %v1955_v34 = vadd.f32 %v1954_v62, %v1882_v17  ;;  %v2384_v54 = vmul.f32 0.2, %v2022_v24  ;;  %v2024_v7 = vadd.f32 %v2023_v21, %v1951_v27 }
 0x14c   :  { %v2864_v4 = vpack.c.bf16 %v2413_v58, %v2412_v18  ;;  %v1956_v28 = vpop.f32.mrf.mxu0  ;;  %vm2352_vm2 = vcmp.gt.f32.partialorder %v2022_v24, 0.0  ;;  %v1898_v27 = vadd.f32 %v4312_v32, %v1825_v15 }
 0x14d   :  { %v2029_v11 = vpop.f32.mrf.mxu1  ;;  %v1957_v30 = vadd.f32 %v1956_v28, %v1884_v3  ;;  %v2028_v51 = vadd.f32 %v2027_v25, %v1955_v34  ;;  %vm2353_vm3 = vcmp.gt.f32.partialorder %v2024_v7, 0.0  ;;  %v2385_v19 = vmul.f32 0.2, %v2024_v7 }
 0x14e   :  { %2540 = vst [vmem:[%s4506_s3] sm:$0xff] %v2864_v4  ;;  %v1958_v56 = vpop.f32.mrf.mxu0  ;;  %v2416_v2 = vsel %vm2352_vm2, %v2022_v24, %v2384_v54  ;;  %v1896_v24 = vadd.f32 %v4308_v31, %v1823_v12  ;;  %v1831_v3 = vadd.f32 %v4327_v35, %v4335_v61  ;;  %v1902_v31 = vadd.f32 %v4318_v33, %v1829_v38 }
 0x14f   :  { %v2031_v41 = vpop.f32.mrf.mxu1  ;;  %v2388_v59 = vmul.f32 0.2, %v2028_v51  ;;  %v1959_v0 = vadd.f32 %v1958_v56, %v1886_v47  ;;  %v2030_v6 = vadd.f32 %v2029_v11, %v1957_v30  ;;  %v2417_v5 = vsel %vm2353_vm3, %v2024_v7, %v2385_v19 }
 0x150   :  { %vm2356_vm4 = vcmp.gt.f32.partialorder %v2028_v51, 0.0  ;;  %v1960_v40 = vpop.f32.mrf.mxu0  ;;  %v2866_v13 = vpack.c.bf16 %v2417_v5, %v2416_v2  ;;  %v1833_v7 = vadd.f32 %v4337_v39, %v4332_v60 }
 0x151   :  { %v2033_v10 = vpop.f32.mrf.mxu1  ;;  %vm2357_vm5 = vcmp.gt.f32.partialorder %v2030_v6, 0.0  ;;  %v2389_v14 = vmul.f32 0.2, %v2030_v6  ;;  %v1961_v50 = vadd.f32 %v1960_v40, %v1888_v52  ;;  %v2032_v16 = vadd.f32 %v2031_v41, %v1959_v0 }
 0x152   :  { %v1964_v53 = vpop.f32.mrf.mxu0  ;;  %2542 = vst [vmem:[%s4506_s3 + $0x10] sm:$0xff] %v2866_v13  ;;  %v2420_v8 = vsel %vm2356_vm4, %v2028_v51, %v2388_v59  ;;  %v1904_v52 = vadd.f32 %v4329_v36, %v1831_v3  ;;  %v1835_v41 = vadd.f32 %v4343_v45, %v4335_v61 }
 0x153   :  { %v2037_v55 = vpop.f32.mrf.mxu1  ;;  %v2421_v9 = vsel %vm2357_vm5, %v2030_v6, %v2389_v14  ;;  %v1965_v17 = vadd.f32 %v1964_v53, %v1892_v29  ;;  %v2392_v21 = vmul.f32 0.2, %v2032_v16  ;;  %v2034_v23 = vadd.f32 %v2033_v10, %v1961_v50 }
 0x154   :  { %v2868_v20 = vpack.c.bf16 %v2421_v9, %v2420_v8  ;;  %v1966_v1 = vpop.f32.mrf.mxu0  ;;  %vm2360_vm6 = vcmp.gt.f32.partialorder %v2032_v16, 0.0  ;;  %v1906_v6 = vadd.f32 %v4339_v44, %v1833_v7  ;;  %v1908_v12 = vadd.f32 %v4345_v46, %v1835_v41 }
 0x155   :  { %v2039_v22 = vpop.f32.mrf.mxu1  ;;  %v1967_v26 = vadd.f32 %v1966_v1, %v1894_v49  ;;  %v2038_v37 = vadd.f32 %v2037_v55, %v1965_v17  ;;  %vm2361_vm7 = vcmp.gt.f32.partialorder %v2034_v23, 0.0  ;;  %v2393_v62 = vmul.f32 0.2, %v2034_v23 }
 0x156   :  { %2544 = vst [vmem:[%s4506_s3 + $0x20] sm:$0xff] %v2868_v20  ;;  %v1968_v25 = vpop.f32.mrf.mxu0  ;;  %v2424_v63 = vsel %vm2360_vm6, %v2032_v16, %v2392_v21 }
 0x157   :  { %v2041_v43 = vpop.f32.mrf.mxu1  ;;  %v2396_v18 = vmul.f32 0.2, %v2038_v37  ;;  %v1969_v58 = vadd.f32 %v1968_v25, %v1896_v24  ;;  %v2040_v34 = vadd.f32 %v2039_v22, %v1967_v26  ;;  %v2425_v4 = vsel %vm2361_vm7, %v2034_v23, %v2393_v62 }
 0x158   :  { %vm2364_vm8 = vcmp.gt.f32.partialorder %v2038_v37, 0.0  ;;  %v1970_v32 = vpop.f32.mrf.mxu0  ;;  %v2870_v28 = vpack.c.bf16 %v2425_v4, %v2424_v63 }
 0x159   :  { %v2043_v54 = vpop.f32.mrf.mxu1  ;;  %vm2365_vm9 = vcmp.gt.f32.partialorder %v2040_v34, 0.0  ;;  %v2397_v11 = vmul.f32 0.2, %v2040_v34  ;;  %v1971_v47 = vadd.f32 %v1970_v32, %v1898_v27  ;;  %v2042_v30 = vadd.f32 %v2041_v43, %v1969_v58 }
 0x15a   :  { %v1974_v51 = vpop.f32.mrf.mxu0  ;;  %2546 = vst [vmem:[%s4506_s3 + $0x30] sm:$0xff] %v2870_v28  ;;  %v2428_v33 = vsel %vm2364_vm8, %v2038_v37, %v2396_v18 }
 0x15b   :  { %v2047_v35 = vpop.f32.mrf.mxu1  ;;  %v2429_v19 = vsel %vm2365_vm9, %v2040_v34, %v2397_v11  ;;  %v1975_v56 = vadd.f32 %v1974_v51, %v1902_v31  ;;  %v2400_v39 = vmul.f32 0.2, %v2042_v30  ;;  %v2044_v57 = vadd.f32 %v2043_v54, %v1971_v47 }
 0x15c   :  { %v2872_v60 = vpack.c.bf16 %v2429_v19, %v2428_v33  ;;  %v1976_v59 = vpop.f32.mrf.mxu0  ;;  %vm2368_vm10 = vcmp.gt.f32.partialorder %v2042_v30, 0.0  ;;  %v314_v33 = vsub.s32 2, %v4314_v42  ;;  %v318_v19 = vsub.s32 3, %v4314_v42 }
 0x15d   :  { %v2049_v0 = vpop.f32.mrf.mxu1  ;;  %v1977_v29 = vadd.f32 %v1976_v59, %v1904_v52  ;;  %v2048_v36 = vadd.f32 %v2047_v35, %v1975_v56  ;;  %vm2369_vm11 = vcmp.gt.f32.partialorder %v2044_v57, 0.0  ;;  %v2401_v2 = vmul.f32 0.2, %v2044_v57 }
 0x15e   :  { %2548 = vst [vmem:[%s4506_s3 + $0x40] sm:$0xff] %v2872_v60  ;;  %v1978_v5 = vpop.f32.mrf.mxu0  ;;  %v2432_v13 = vsel %vm2368_vm10, %v2042_v30, %v2400_v39  ;;  %v4433_v60 = vrot.slane %v4324_v48, %v314_v33  ;;  %v4436_v39 = vrot.slane %v4324_v48, %v318_v19 }
 0x15f   :  { %v2051_v40 = vpop.f32.mrf.mxu1  ;;  %v2404_v10 = vmul.f32 0.2, %v2048_v36  ;;  %v1979_v61 = vadd.f32 %v1978_v5, %v1906_v6  ;;  %v2050_v45 = vadd.f32 %v2049_v0, %v1977_v29  ;;  %v2433_v14 = vsel %vm2369_vm11, %v2044_v57, %v2401_v2 }
 0x160   :  { %vm2372_vm12 = vcmp.gt.f32.partialorder %v2048_v36, 0.0  ;;  %v1980_v44 = vpop.f32.mrf.mxu0  ;;  %v2874_v15 = vpack.c.bf16 %v2433_v14, %v2432_v13 }
 0x161   :  { %vm2373_vm13 = vcmp.gt.f32.partialorder %v2050_v45, 0.0  ;;  %v2405_v50 = vmul.f32 0.2, %v2050_v45  ;;  %v2053_v16 = vpop.f32.mrf.mxu1  ;;  %v1981_v53 = vadd.f32 %v1980_v44, %v1908_v12  ;;  %v2052_v55 = vadd.f32 %v2051_v40, %v1979_v61 }
 0x162   :  { %2550 = vst [vmem:[%s4506_s3 + $0x50] sm:$0xff] %v2874_v15  ;;  %v2436_v49 = vsel %vm2372_vm12, %v2048_v36, %v2404_v10 }
 0x163   :  { %v2437_v8 = vsel %vm2373_vm13, %v2050_v45, %v2405_v50  ;;  %v2408_v17 = vmul.f32 0.2, %v2052_v55  ;;  %v2054_v38 = vadd.f32 %v2053_v16, %v1981_v53  ;;  %vm2376_vm14 = vcmp.gt.f32.partialorder %v2052_v55, 0.0 }
 0x164   :  { %v2876_v9 = vpack.c.bf16 %v2437_v8, %v2436_v49 }
 0x165   :  { %vm2377_vm15 = vcmp.gt.f32.partialorder %v2054_v38, 0.0  ;;  %v2409_v46 = vmul.f32 0.2, %v2054_v38  ;;  %v2440_v20 = vsel %vm2376_vm14, %v2052_v55, %v2408_v17 }
 0x166   :  { %2552 = vst [vmem:[%s4506_s3 + $0x60] sm:$0xff] %v2876_v9 }
 0x167   :  { %v2441_v21 = vsel %vm2377_vm15, %v2054_v38, %v2409_v46 }
 0x168   :  { %v2878_v23 = vpack.c.bf16 %v2441_v21, %v2440_v20 }
 0x16a   :  { %2554 = vst [vmem:[%s4506_s3 + $0x70] sm:$0xff] %v2878_v23 }
 0x182   :  { %v2090_v1 = vpop.f32.mrf.mxu0 }
 0x183   :  { %v2163_v22 = vpop.f32.mrf.mxu1  ;;  %v2091_v0 = vadd.f32 %v2090_v1, %v4433_v60 }
 0x184   :  { %v2092_v24 = vpop.f32.mrf.mxu0 }
 0x185   :  { %v2165_v26 = vpop.f32.mrf.mxu1  ;;  %v2093_v6 = vadd.f32 %v2092_v24, %v4436_v39  ;;  %v2164_v36 = vadd.f32 %v2163_v22, %v2091_v0 }
 0x186   :  { %v2094_v37 = vpop.f32.mrf.mxu0 }
 0x187   :  { %v2167_v27 = vpop.f32.mrf.mxu1  ;;  %v2095_v2 = vadd.f32 %v2094_v37, %v4433_v60  ;;  %v2166_v10 = vadd.f32 %v2165_v26, %v2093_v6 }
 0x188   :  { %v2096_v62 = vpop.f32.mrf.mxu0 }
 0x189   :  { %v2169_v25 = vpop.f32.mrf.mxu1  ;;  %v2097_v61 = vadd.f32 %v2096_v62, %v4436_v39  ;;  %v2168_v14 = vadd.f32 %v2167_v27, %v2095_v2 }
 0x18a   :  { %v2100_v43 = vpop.f32.mrf.mxu0 }
 0x18b   :  { %v2173_v3 = vpop.f32.mrf.mxu1  ;;  %v2101_v45 = vadd.f32 %v2100_v43, %v4433_v60  ;;  %v2170_v9 = vadd.f32 %v2169_v25, %v2097_v61 }
 0x18c   :  { %v2102_v18 = vpop.f32.mrf.mxu0 }
 0x18d   :  { %v2175_v58 = vpop.f32.mrf.mxu1  ;;  %v2103_v53 = vadd.f32 %v2102_v18, %v4436_v39  ;;  %v2174_v17 = vadd.f32 %v2173_v3, %v2101_v45 }
 0x18e   :  { %v2104_v34 = vpop.f32.mrf.mxu0 }
 0x18f   :  { %v4404_v31 = vpop.f32.mrf.mxu1  ;;  %v2105_v20 = vadd.f32 %v2104_v34, %v4433_v60  ;;  %v2176_v37 = vadd.f32 %v2175_v58, %v2103_v53 }
 0x190   :  { %v2106_v63 = vpop.f32.mrf.mxu0 }
 0x191   :  { %v4406_v4 = vpop.f32.mrf.mxu1  ;;  %v2107_v1 = vadd.f32 %v2106_v63, %v4436_v39  ;;  %v2178_v34 = vadd.f32 %v4404_v31, %v2105_v20 }
 0x192   :  { %v2110_v32 = vpop.f32.mrf.mxu0 }
 0x193   :  { %v4408_v54 = vpop.f32.mrf.mxu1  ;;  %v2111_v25 = vadd.f32 %v2110_v32, %v4433_v60  ;;  %v2180_v63 = vadd.f32 %v4406_v4, %v2107_v1 }
 0x194   :  { %v4410_v7 = vpop.f32.mrf.mxu0 }
 0x195   :  { %v4412_v28 = vpop.f32.mrf.mxu1  ;;  %v2184_v31 = vadd.f32 %v4408_v54, %v2111_v25 }
 0x196   :  { %v4414_v11 = vpop.f32.mrf.mxu0 }
 0x197   :  { %v4416_v47 = vpop.f32.mrf.mxu1 }
 0x198   :  { %v4418_v30 = vpop.f32.mrf.mxu0 }
 0x199   :  { %v4420_v51 = vpop.f32.mrf.mxu1 }
 0x19a   :  { %v4422_v35 = vpop.f32.mrf.mxu0 }
 0x19b   :  { %v4424_v52 = vpop.f32.mrf.mxu1 }
 0x19c   :  { %v4428_v56 = vpop.f32.mrf.mxu0 }
 0x19d   :  { %v4430_v41 = vpop.f32.mrf.mxu1 }
 0x19e   :  { %v4438_v57 = vpop.f32.mrf.mxu0 }
 0x19f   :  { %v4440_v59 = vpop.f32.mrf.mxu1 }
 0x1a0   :  { %v4444_v29 = vpop.f32.mrf.mxu0 }
 0x1a1   :  { %v4446_v42 = vpop.f32.mrf.mxu1 }
 0x1c2   :  { %v2236_v5 = vpop.f32.mrf.mxu0 }
 0x1c3   :  { %v2309_v40 = vpop.f32.mrf.mxu1  ;;  %v2237_v48 = vadd.f32 %v2236_v5, %v2164_v36  ;;  %v2113_v5 = vadd.f32 %v4410_v7, %v4436_v39 }
 0x1c4   :  { %v2238_v12 = vpop.f32.mrf.mxu0 }
 0x1c5   :  { %v2311_v13 = vpop.f32.mrf.mxu1  ;;  %v2310_v44 = vadd.f32 %v2309_v40, %v2237_v48  ;;  %v2239_v15 = vadd.f32 %v2238_v12, %v2166_v10  ;;  %v2186_v54 = vadd.f32 %v4412_v28, %v2113_v5 }
 0x1c6   :  { %v2240_v50 = vpop.f32.mrf.mxu0 }
 0x1c7   :  { %v2313_v16 = vpop.f32.mrf.mxu1  ;;  %v2382_v55 = vmul.f32 0.2, %v2310_v44  ;;  %v2312_v49 = vadd.f32 %v2311_v13, %v2239_v15  ;;  %v2241_v8 = vadd.f32 %v2240_v50, %v2168_v14  ;;  %vm2350_vm0 = vcmp.gt.f32.partialorder %v2310_v44, 0.0 }
 0x1c8   :  { %v2242_v38 = vpop.f32.mrf.mxu0  ;;  %v2115_v13 = vadd.f32 %v4414_v11, %v4433_v60  ;;  %v2117_v15 = vadd.f32 %v4418_v30, %v4436_v39  ;;  %v2121_v11 = vadd.f32 %v4422_v35, %v4433_v60 }
 0x1c9   :  { %v2315_v46 = vpop.f32.mrf.mxu1  ;;  %vm2351_vm1 = vcmp.gt.f32.partialorder %v2312_v49, 0.0  ;;  %v2383_v21 = vmul.f32 0.2, %v2312_v49  ;;  %v2314_v23 = vadd.f32 %v2313_v16, %v2241_v8  ;;  %v2243_v22 = vadd.f32 %v2242_v38, %v2170_v9 }
 0x1ca   :  { %v2246_v24 = vpop.f32.mrf.mxu0  ;;  %v2414_v27 = vsel %vm2350_vm0, %v2310_v44, %v2382_v55  ;;  %v2188_v20 = vadd.f32 %v4416_v47, %v2115_v13  ;;  %v2194_v47 = vadd.f32 %v4424_v52, %v2121_v11 }
 0x1cb   :  { %v2319_v26 = vpop.f32.mrf.mxu1  ;;  %v2415_v62 = vsel %vm2351_vm1, %v2312_v49, %v2383_v21  ;;  %v2247_v43 = vadd.f32 %v2246_v24, %v2174_v17  ;;  %v2386_v18 = vmul.f32 0.2, %v2314_v23  ;;  %v2316_v33 = vadd.f32 %v2315_v46, %v2243_v22 }
 0x1cc   :  { %v2865_v3 = vpack.c.bf16 %v2415_v62, %v2414_v27  ;;  %v2248_v19 = vpop.f32.mrf.mxu0  ;;  %vm2354_vm2 = vcmp.gt.f32.partialorder %v2314_v23, 0.0  ;;  %v2123_v24 = vadd.f32 %v4428_v56, %v4436_v39 }
 0x1cd   :  { %v2321_v0 = vpop.f32.mrf.mxu1  ;;  %v2320_v6 = vadd.f32 %v2319_v26, %v2247_v43  ;;  %v2249_v36 = vadd.f32 %v2248_v19, %v2176_v37  ;;  %vm2355_vm3 = vcmp.gt.f32.partialorder %v2316_v33, 0.0  ;;  %v2387_v58 = vmul.f32 0.2, %v2316_v33 }
 0x1ce   :  { %2541 = vst [vmem:[%s4506_s3 + $0x8] sm:$0xff] %v2865_v3  ;;  %v2250_v2 = vpop.f32.mrf.mxu0  ;;  %v2418_v61 = vsel %vm2354_vm2, %v2314_v23, %v2386_v18  ;;  %v2190_v23 = vadd.f32 %v4420_v51, %v2117_v15  ;;  %v2125_v3 = vadd.f32 %v4438_v57, %v4433_v60 }
 0x1cf   :  { %v2323_v32 = vpop.f32.mrf.mxu1  ;;  %v2390_v40 = vmul.f32 0.2, %v2320_v6  ;;  %v2322_v10 = vadd.f32 %v2321_v0, %v2249_v36  ;;  %v2251_v48 = vadd.f32 %v2250_v2, %v2178_v34  ;;  %v2419_v45 = vsel %vm2355_vm3, %v2316_v33, %v2387_v58 }
 0x1d0   :  { %vm2358_vm4 = vcmp.gt.f32.partialorder %v2320_v6, 0.0  ;;  %v2252_v4 = vpop.f32.mrf.mxu0  ;;  %v2867_v14 = vpack.c.bf16 %v2419_v45, %v2418_v61  ;;  %v2127_v58 = vadd.f32 %v4444_v29, %v4436_v39 }
 0x1d1   :  { %v2325_v12 = vpop.f32.mrf.mxu1  ;;  %vm2359_vm5 = vcmp.gt.f32.partialorder %v2322_v10, 0.0  ;;  %v2391_v44 = vmul.f32 0.2, %v2322_v10  ;;  %v2324_v7 = vadd.f32 %v2323_v32, %v2251_v48  ;;  %v2253_v50 = vadd.f32 %v2252_v4, %v2180_v63 }
 0x1d2   :  { %v2256_v16 = vpop.f32.mrf.mxu0  ;;  %2543 = vst [vmem:[%s4506_s3 + $0x18] sm:$0xff] %v2867_v14  ;;  %v2422_v55 = vsel %vm2358_vm4, %v2320_v6, %v2390_v40  ;;  %v2196_v6 = vadd.f32 %v4430_v41, %v2123_v24  ;;  %v2198_v40 = vadd.f32 %v4440_v59, %v2125_v3  ;;  %v2200_v4 = vadd.f32 %v4446_v42, %v2127_v58 }
 0x1d3   :  { %v2329_v53 = vpop.f32.mrf.mxu1  ;;  %v2423_v49 = vsel %vm2359_vm5, %v2322_v10, %v2391_v44  ;;  %v2257_v8 = vadd.f32 %v2256_v16, %v2184_v31  ;;  %v2394_v17 = vmul.f32 0.2, %v2324_v7  ;;  %v2326_v38 = vadd.f32 %v2325_v12, %v2253_v50 }
 0x1d4   :  { %v2869_v9 = vpack.c.bf16 %v2423_v49, %v2422_v55  ;;  %v2258_v30 = vpop.f32.mrf.mxu0  ;;  %vm2362_vm6 = vcmp.gt.f32.partialorder %v2324_v7, 0.0 }
 0x1d5   :  { %v2331_v46 = vpop.f32.mrf.mxu1  ;;  %v2330_v21 = vadd.f32 %v2329_v53, %v2257_v8  ;;  %v2259_v28 = vadd.f32 %v2258_v30, %v2186_v54  ;;  %vm2363_vm7 = vcmp.gt.f32.partialorder %v2326_v38, 0.0  ;;  %v2395_v1 = vmul.f32 0.2, %v2326_v38 }
 0x1d6   :  { %2545 = vst [vmem:[%s4506_s3 + $0x28] sm:$0xff] %v2869_v9  ;;  %v2260_v22 = vpop.f32.mrf.mxu0  ;;  %v2426_v62 = vsel %vm2362_vm6, %v2324_v7, %v2394_v17 }
 0x1d7   :  { %v2333_v35 = vpop.f32.mrf.mxu1  ;;  %v2398_v26 = vmul.f32 0.2, %v2330_v21  ;;  %v2332_v37 = vadd.f32 %v2331_v46, %v2259_v28  ;;  %v2261_v27 = vadd.f32 %v2260_v22, %v2188_v20  ;;  %v2427_v43 = vsel %vm2363_vm7, %v2326_v38, %v2395_v1 }
 0x1d8   :  { %vm2366_vm8 = vcmp.gt.f32.partialorder %v2330_v21, 0.0  ;;  %v2262_v51 = vpop.f32.mrf.mxu0  ;;  %v2871_v18 = vpack.c.bf16 %v2427_v43, %v2426_v62 }
 0x1d9   :  { %v2335_v25 = vpop.f32.mrf.mxu1  ;;  %vm2367_vm9 = vcmp.gt.f32.partialorder %v2332_v37, 0.0  ;;  %v2399_v33 = vmul.f32 0.2, %v2332_v37  ;;  %v2334_v19 = vadd.f32 %v2333_v35, %v2261_v27  ;;  %v2263_v0 = vadd.f32 %v2262_v51, %v2190_v23 }
 0x1da   :  { %v2266_v34 = vpop.f32.mrf.mxu0  ;;  %2547 = vst [vmem:[%s4506_s3 + $0x38] sm:$0xff] %v2871_v18  ;;  %v2430_v52 = vsel %vm2366_vm8, %v2330_v21, %v2398_v26 }
 0x1db   :  { %v2339_v56 = vpop.f32.mrf.mxu1  ;;  %v2431_v36 = vsel %vm2367_vm9, %v2332_v37, %v2399_v33  ;;  %v2267_v63 = vadd.f32 %v2266_v34, %v2194_v47  ;;  %v2402_v57 = vmul.f32 0.2, %v2334_v19  ;;  %v2336_v2 = vadd.f32 %v2335_v25, %v2263_v0 }
 0x1dc   :  { %v2873_v60 = vpack.c.bf16 %v2431_v36, %v2430_v52  ;;  %v2268_v32 = vpop.f32.mrf.mxu0  ;;  %vm2370_vm10 = vcmp.gt.f32.partialorder %v2334_v19, 0.0 }
 0x1dd   :  { %v2341_v5 = vpop.f32.mrf.mxu1  ;;  %v2340_v10 = vadd.f32 %v2339_v56, %v2267_v63  ;;  %v2269_v41 = vadd.f32 %v2268_v32, %v2196_v6  ;;  %vm2371_vm11 = vcmp.gt.f32.partialorder %v2336_v2, 0.0  ;;  %v2403_v48 = vmul.f32 0.2, %v2336_v2 }
 0x1de   :  { %2549 = vst [vmem:[%s4506_s3 + $0x48] sm:$0xff] %v2873_v60  ;;  %v2270_v31 = vpop.f32.mrf.mxu0  ;;  %v2434_v12 = vsel %vm2370_vm10, %v2334_v19, %v2402_v57 }
 0x1df   :  { %v2406_v61 = vmul.f32 0.2, %v2340_v10  ;;  %v2342_v45 = vadd.f32 %v2341_v5, %v2269_v41  ;;  %v2271_v39 = vadd.f32 %v2270_v31, %v2198_v40  ;;  %v2343_v29 = vpop.f32.mrf.mxu1  ;;  %v2435_v13 = vsel %vm2371_vm11, %v2336_v2, %v2403_v48 }
 0x1e0   :  { %vm2374_vm12 = vcmp.gt.f32.partialorder %v2340_v10, 0.0  ;;  %v2272_v59 = vpop.f32.mrf.mxu0  ;;  %v2875_v14 = vpack.c.bf16 %v2435_v13, %v2434_v12 }
 0x1e1   :  { %vm2375_vm13 = vcmp.gt.f32.partialorder %v2342_v45, 0.0  ;;  %v2407_v44 = vmul.f32 0.2, %v2342_v45  ;;  %v2344_v15 = vadd.f32 %v2343_v29, %v2271_v39  ;;  %v2273_v7 = vadd.f32 %v2272_v59, %v2200_v4  ;;  %v2345_v53 = vpop.f32.mrf.mxu1 }
 0x1e2   :  { %2551 = vst [vmem:[%s4506_s3 + $0x58] sm:$0xff] %v2875_v14  ;;  %v2438_v50 = vsel %vm2374_vm12, %v2340_v10, %v2406_v61 }
 0x1e3   :  { %v2439_v16 = vsel %vm2375_vm13, %v2342_v45, %v2407_v44  ;;  %v2410_v55 = vmul.f32 0.2, %v2344_v15  ;;  %v2346_v49 = vadd.f32 %v2345_v53, %v2273_v7  ;;  %vm2378_vm14 = vcmp.gt.f32.partialorder %v2344_v15, 0.0 }
 0x1e4   :  { %v2877_v54 = vpack.c.bf16 %v2439_v16, %v2438_v50 }
 0x1e5   :  { %vm2379_vm15 = vcmp.gt.f32.partialorder %v2346_v49, 0.0  ;;  %v2411_v42 = vmul.f32 0.2, %v2346_v49  ;;  %v2442_v8 = vsel %vm2378_vm14, %v2344_v15, %v2410_v55 }
 0x1e6   :  { %2553 = vst [vmem:[%s4506_s3 + $0x68] sm:$0xff] %v2877_v54 }
 0x1e7   :  { %v2443_v11 = vsel %vm2379_vm15, %v2346_v49, %v2411_v42 }
 0x1e8   :  { %v2879_v9 = vpack.c.bf16 %v2443_v11, %v2442_v8 }
 0x1ea   :  { %2555 = vst [vmem:[%s4506_s3 + $0x78] sm:$0xff] %v2879_v9 }

// kernel: generator_forward.12
= control target key start
LH: loop header
LB: loop body
LE: loop exit
PB: predicated region body
PF: predicated region fallthrough
CT: control target
= control target key end

     0   :  { %s2025_s1 = inlined_call_operand.vmem [shape: bf16[512,256], index: 1, kind: input, shape index: {}]   ;;  %s2026_s0 = inlined_call_operand.vmem [shape: bf16[176,512], index: 0, kind: input, shape index: {}]   ;;  %s2027_s2 = inlined_call_operand.vmem [shape: f32[1,256], index: 2, kind: input, shape index: {}]   ;;  %s2028_s3 = inlined_call_operand.vmem [shape: bf16[176,256], index: 3, kind: output, shape index: {}]  }
   0x1   :  { %v1402_v0 = vld [vmem:[%s2025_s1 + $0x74] ss:$8 sps:$4 sm:$0xff]   ;;  %v1406_v2 = vld [vmem:[%s2025_s1 + $0x70] ss:$8 sps:$4 sm:$0xff]   ;;  %v1408_v4 = vld [vmem:[%s2025_s1 + $0x64] ss:$8 sps:$4 sm:$0xff]  }
   0x2   :  { %v1404_v1 = vld [vmem:[%s2025_s1 + $0x174] ss:$8 sps:$4 sm:$0xff]   ;;  %674 = vmatprep.subr.bf16.mxu0 %v1402_v0  ;;  %v1407_v3 = vld [vmem:[%s2025_s1 + $0x170] ss:$8 sps:$4 sm:$0xff]   ;;  %v1410_v5 = vld [vmem:[%s2025_s1 + $0x164] ss:$8 sps:$4 sm:$0xff]  }
   0x3   :  { %817 = vmatprep.subr.bf16.mxu1 %v1404_v1  ;;  %675 = vmatpush1.bf16.msra.mxu0 %v1406_v2  ;;  %v1412_v6 = vld [vmem:[%s2025_s1 + $0x60] ss:$8 sps:$4 sm:$0xff]   ;;  %v1414_v8 = vld [vmem:[%s2025_s1 + $0x54] ss:$8 sps:$4 sm:$0xff]   ;;  %v1418_v10 = vld [vmem:[%s2025_s1 + $0x50] ss:$8 sps:$4 sm:$0xff]  }
   0x4   :  { %818 = vmatpush1.bf16.msra.mxu1 %v1407_v3  ;;  %676 = vmatprep.subr.bf16.mxu0 %v1408_v4  ;;  %v1413_v7 = vld [vmem:[%s2025_s1 + $0x160] ss:$8 sps:$4 sm:$0xff]   ;;  %v1416_v9 = vld [vmem:[%s2025_s1 + $0x154] ss:$8 sps:$4 sm:$0xff]   ;;  %v1419_v11 = vld [vmem:[%s2025_s1 + $0x150] ss:$8 sps:$4 sm:$0xff]  }
   0x5   :  { %819 = vmatprep.subr.bf16.mxu1 %v1410_v5  ;;  %v1420_v12 = vld [vmem:[%s2025_s1 + $0x44] ss:$8 sps:$4 sm:$0xff]   ;;  %v1424_v14 = vld [vmem:[%s2025_s1 + $0x40] ss:$8 sps:$4 sm:$0xff]   ;;  %v1426_v16 = vld [vmem:[%s2025_s1 + $0x34] ss:$8 sps:$4 sm:$0xff]  }
   0x6   :  { %v1422_v13 = vld [vmem:[%s2025_s1 + $0x144] ss:$8 sps:$4 sm:$0xff]   ;;  %v1425_v15 = vld [vmem:[%s2025_s1 + $0x140] ss:$8 sps:$4 sm:$0xff]   ;;  %v1428_v17 = vld [vmem:[%s2025_s1 + $0x134] ss:$8 sps:$4 sm:$0xff]  }
   0x7   :  { %677 = vmatpush1.bf16.msra.mxu0 %v1412_v6  ;;  %v1430_v18 = vld [vmem:[%s2025_s1 + $0x30] ss:$8 sps:$4 sm:$0xff]   ;;  %v1432_v20 = vld [vmem:[%s2025_s1 + $0x24] ss:$8 sps:$4 sm:$0xff]   ;;  %v1436_v22 = vld [vmem:[%s2025_s1 + $0x20] ss:$8 sps:$4 sm:$0xff]  }
   0x8   :  { %820 = vmatpush1.bf16.msra.mxu1 %v1413_v7  ;;  %678 = vmatprep.subr.bf16.mxu0 %v1414_v8  ;;  %v1431_v19 = vld [vmem:[%s2025_s1 + $0x130] ss:$8 sps:$4 sm:$0xff]   ;;  %v1434_v21 = vld [vmem:[%s2025_s1 + $0x124] ss:$8 sps:$4 sm:$0xff]   ;;  %v1437_v23 = vld [vmem:[%s2025_s1 + $0x120] ss:$8 sps:$4 sm:$0xff]  }
   0x9   :  { %821 = vmatprep.subr.bf16.mxu1 %v1416_v9  ;;  %v1438_v24 = vld [vmem:[%s2025_s1 + $0x14] ss:$8 sps:$4 sm:$0xff]   ;;  %v1442_v26 = vld [vmem:[%s2025_s1 + $0x10] ss:$8 sps:$4 sm:$0xff]   ;;  %v1444_v28 = vld [vmem:[%s2025_s1 + $0x4] ss:$8 sps:$4 sm:$0xff]  }
   0xa   :  { %v1440_v25 = vld [vmem:[%s2025_s1 + $0x114] ss:$8 sps:$4 sm:$0xff]   ;;  %v1443_v27 = vld [vmem:[%s2025_s1 + $0x110] ss:$8 sps:$4 sm:$0xff]   ;;  %v1446_v29 = vld [vmem:[%s2025_s1 + $0x104] ss:$8 sps:$4 sm:$0xff]  }
   0xb   :  { %679 = vmatpush1.bf16.msra.mxu0 %v1418_v10  ;;  %v1448_v30 = vld [vmem:[%s2025_s1] ss:$8 sps:$4 sm:$0xff]   ;;  %v1450_v32 = vld [vmem:[%s2025_s1 + $0xf4] ss:$8 sps:$4 sm:$0xff]   ;;  %v1454_v34 = vld [vmem:[%s2025_s1 + $0xf0] ss:$8 sps:$4 sm:$0xff]  }
   0xc   :  { %822 = vmatpush1.bf16.msra.mxu1 %v1419_v11  ;;  %680 = vmatprep.subr.bf16.mxu0 %v1420_v12  ;;  %v1449_v31 = vld [vmem:[%s2025_s1 + $0x100] ss:$8 sps:$4 sm:$0xff]   ;;  %v1452_v33 = vld [vmem:[%s2025_s1 + $0x1f4] ss:$8 sps:$4 sm:$0xff]   ;;  %v1455_v35 = vld [vmem:[%s2025_s1 + $0x1f0] ss:$8 sps:$4 sm:$0xff]  }
   0xd   :  { %823 = vmatprep.subr.bf16.mxu1 %v1422_v13  ;;  %v1456_v36 = vld [vmem:[%s2025_s1 + $0xe4] ss:$8 sps:$4 sm:$0xff]   ;;  %v1460_v38 = vld [vmem:[%s2025_s1 + $0xe0] ss:$8 sps:$4 sm:$0xff]   ;;  %v1462_v40 = vld [vmem:[%s2025_s1 + $0xd4] ss:$8 sps:$4 sm:$0xff]  }
   0xe   :  { %v1458_v37 = vld [vmem:[%s2025_s1 + $0x1e4] ss:$8 sps:$4 sm:$0xff]   ;;  %v1461_v39 = vld [vmem:[%s2025_s1 + $0x1e0] ss:$8 sps:$4 sm:$0xff]   ;;  %v1464_v41 = vld [vmem:[%s2025_s1 + $0x1d4] ss:$8 sps:$4 sm:$0xff]  }
   0xf   :  { %681 = vmatpush1.bf16.msra.mxu0 %v1424_v14  ;;  %v1466_v42 = vld [vmem:[%s2025_s1 + $0xd0] ss:$8 sps:$4 sm:$0xff]   ;;  %v1468_v44 = vld [vmem:[%s2025_s1 + $0xc4] ss:$8 sps:$4 sm:$0xff]   ;;  %v1472_v46 = vld [vmem:[%s2025_s1 + $0xc0] ss:$8 sps:$4 sm:$0xff]  }
  0x10   :  { %824 = vmatpush1.bf16.msra.mxu1 %v1425_v15  ;;  %682 = vmatprep.subr.bf16.mxu0 %v1426_v16  ;;  %v1467_v43 = vld [vmem:[%s2025_s1 + $0x1d0] ss:$8 sps:$4 sm:$0xff]   ;;  %v1470_v45 = vld [vmem:[%s2025_s1 + $0x1c4] ss:$8 sps:$4 sm:$0xff]   ;;  %v1473_v47 = vld [vmem:[%s2025_s1 + $0x1c0] ss:$8 sps:$4 sm:$0xff]  }
  0x11   :  { %825 = vmatprep.subr.bf16.mxu1 %v1428_v17  ;;  %v1474_v48 = vld [vmem:[%s2025_s1 + $0xb4] ss:$8 sps:$4 sm:$0xff]   ;;  %v1478_v52 = vld [vmem:[%s2025_s1 + $0xb0] ss:$8 sps:$4 sm:$0xff]   ;;  %v1480_v54 = vld [vmem:[%s2025_s1 + $0xa4] ss:$8 sps:$4 sm:$0xff]  }
  0x12   :  { %v1500_v49 = vld [vmem:[%s2026_s0 + $0x4] ss:$16 sps:$4 sm:$0xff]   ;;  %v1503_v51 = vld [vmem:[%s2026_s0 + $0xc] ss:$16 sps:$4 sm:$0xff]   ;;  %v1479_v53 = vld [vmem:[%s2025_s1 + $0x1b0] ss:$8 sps:$4 sm:$0xff]  }
  0x13   :  { %683 = vmatpush1.bf16.msra.mxu0 %v1430_v18  ;;  %v1476_v50 = vld [vmem:[%s2025_s1 + $0x1b4] ss:$8 sps:$4 sm:$0xff]   ;;  %706 = vmatprep.mubr.bf16.mxu0 %v1500_v49  ;;  %v1482_v55 = vld [vmem:[%s2025_s1 + $0x1a4] ss:$8 sps:$4 sm:$0xff]   ;;  %v1484_v56 = vld [vmem:[%s2025_s1 + $0xa0] ss:$8 sps:$4 sm:$0xff]  }
  0x14   :  { %826 = vmatpush1.bf16.msra.mxu1 %v1431_v19  ;;  %684 = vmatprep.subr.bf16.mxu0 %v1432_v20  ;;  %v1485_v57 = vld [vmem:[%s2025_s1 + $0x1a0] ss:$8 sps:$4 sm:$0xff]   ;;  %v1486_v58 = vld [vmem:[%s2025_s1 + $0x94] ss:$8 sps:$4 sm:$0xff]   ;;  %v1490_v60 = vld [vmem:[%s2025_s1 + $0x90] ss:$8 sps:$4 sm:$0xff]  }
  0x15   :  { %827 = vmatprep.subr.bf16.mxu1 %v1434_v21  ;;  %849 = vmatprep.mubr.bf16.mxu1 %v1503_v51  ;;  %v1488_v59 = vld [vmem:[%s2025_s1 + $0x194] ss:$8 sps:$4 sm:$0xff]   ;;  %v1491_v61 = vld [vmem:[%s2025_s1 + $0x190] ss:$8 sps:$4 sm:$0xff]   ;;  %v1492_v62 = vld [vmem:[%s2025_s1 + $0x84] ss:$8 sps:$4 sm:$0xff]  }
  0x16   :  { %v1494_v63 = vld [vmem:[%s2025_s1 + $0x184] ss:$8 sps:$4 sm:$0xff]   ;;  %v1496_v0 = vld [vmem:[%s2025_s1 + $0x80] ss:$8 sps:$4 sm:$0xff]  }
  0x17   :  { %685 = vmatpush1.bf16.msra.mxu0 %v1436_v22  ;;  %v1497_v1 = vld [vmem:[%s2025_s1 + $0x180] ss:$8 sps:$4 sm:$0xff]   ;;  %v1504_v4 = vld [vmem:[%s2026_s0 + $0x24] ss:$16 sps:$4 sm:$0xff]   ;;  %v1506_v5 = vld [vmem:[%s2026_s0 + $0x2c] ss:$16 sps:$4 sm:$0xff]  }
  0x18   :  { %828 = vmatpush1.bf16.msra.mxu1 %v1437_v23  ;;  %686 = vmatprep.subr.bf16.mxu0 %v1438_v24  ;;  %v1498_v2 = vld [vmem:[%s2026_s0] ss:$16 sps:$4 sm:$0xff]   ;;  %v1501_v3 = vld [vmem:[%s2026_s0 + $0x8] ss:$16 sps:$4 sm:$0xff]   ;;  %v1510_v8 = vld [vmem:[%s2026_s0 + $0x44] ss:$16 sps:$4 sm:$0xff]  }
  0x19   :  { %829 = vmatprep.subr.bf16.mxu1 %v1440_v25  ;;  %v1508_v6 = vld [vmem:[%s2026_s0 + $0x20] ss:$16 sps:$4 sm:$0xff]   ;;  %v1509_v7 = vld [vmem:[%s2026_s0 + $0x28] ss:$16 sps:$4 sm:$0xff]   ;;  %v1512_v9 = vld [vmem:[%s2026_s0 + $0x4c] ss:$16 sps:$4 sm:$0xff]  }
  0x1a   :  { %v1514_v10 = vld [vmem:[%s2026_s0 + $0x40] ss:$16 sps:$4 sm:$0xff]   ;;  %v1515_v11 = vld [vmem:[%s2026_s0 + $0x48] ss:$16 sps:$4 sm:$0xff]   ;;  %v1516_v12 = vld [vmem:[%s2026_s0 + $0x64] ss:$16 sps:$4 sm:$0xff]  }
  0x1b   :  { %687 = vmatpush1.bf16.msra.mxu0 %v1442_v26  ;;  %v1518_v13 = vld [vmem:[%s2026_s0 + $0x6c] ss:$16 sps:$4 sm:$0xff]   ;;  %v1520_v14 = vld [vmem:[%s2026_s0 + $0x60] ss:$16 sps:$4 sm:$0xff]   ;;  %v1521_v15 = vld [vmem:[%s2026_s0 + $0x68] ss:$16 sps:$4 sm:$0xff]  }
  0x1c   :  { %830 = vmatpush1.bf16.msra.mxu1 %v1443_v27  ;;  %688 = vmatprep.subr.bf16.mxu0 %v1444_v28  ;;  %v1522_v16 = vld [vmem:[%s2026_s0 + $0x84] ss:$16 sps:$4 sm:$0xff]   ;;  %v1524_v17 = vld [vmem:[%s2026_s0 + $0x8c] ss:$16 sps:$4 sm:$0xff]   ;;  %v1526_v18 = vld [vmem:[%s2026_s0 + $0x80] ss:$16 sps:$4 sm:$0xff]  }
  0x1d   :  { %831 = vmatprep.subr.bf16.mxu1 %v1446_v29  ;;  %v1527_v19 = vld [vmem:[%s2026_s0 + $0x88] ss:$16 sps:$4 sm:$0xff]   ;;  %v1528_v20 = vld [vmem:[%s2026_s0 + $0xa4] ss:$16 sps:$4 sm:$0xff]   ;;  %v1530_v21 = vld [vmem:[%s2026_s0 + $0xac] ss:$16 sps:$4 sm:$0xff]  }
  0x1e   :  { %v1532_v22 = vld [vmem:[%s2026_s0 + $0xa0] ss:$16 sps:$4 sm:$0xff]   ;;  %v1533_v23 = vld [vmem:[%s2026_s0 + $0xa8] ss:$16 sps:$4 sm:$0xff]   ;;  %v1534_v24 = vld [vmem:[%s2026_s0 + $0xc4] ss:$16 sps:$4 sm:$0xff]  }
  0x1f   :  { %689 = vmatpush1.bf16.msra.mxu0 %v1448_v30  ;;  %v1536_v25 = vld [vmem:[%s2026_s0 + $0xcc] ss:$16 sps:$4 sm:$0xff]   ;;  %v1538_v26 = vld [vmem:[%s2026_s0 + $0xc0] ss:$16 sps:$4 sm:$0xff]   ;;  %v1539_v27 = vld [vmem:[%s2026_s0 + $0xc8] ss:$16 sps:$4 sm:$0xff]  }
  0x20   :  { %832 = vmatpush1.bf16.msra.mxu1 %v1449_v31  ;;  %690 = vmatprep.subr.bf16.mxu0 %v1450_v32  ;;  %v1540_v28 = vld [vmem:[%s2026_s0 + $0xe4] ss:$16 sps:$4 sm:$0xff]   ;;  %v1542_v29 = vld [vmem:[%s2026_s0 + $0xec] ss:$16 sps:$4 sm:$0xff]   ;;  %v1544_v30 = vld [vmem:[%s2026_s0 + $0xe0] ss:$16 sps:$4 sm:$0xff]  }
  0x21   :  { %833 = vmatprep.subr.bf16.mxu1 %v1452_v33  ;;  %v1545_v31 = vld [vmem:[%s2026_s0 + $0xe8] ss:$16 sps:$4 sm:$0xff]   ;;  %v1546_v32 = vld [vmem:[%s2026_s0 + $0x104] ss:$16 sps:$4 sm:$0xff]   ;;  %v1548_v33 = vld [vmem:[%s2026_s0 + $0x10c] ss:$16 sps:$4 sm:$0xff]  }
  0x23   :  { %691 = vmatpush2.bf16.msra.mxu0 %v1454_v34  ;;  %v1550_v34 = vld [vmem:[%s2026_s0 + $0x100] ss:$16 sps:$4 sm:$0xff]  }
  0x24   :  { %834 = vmatpush2.bf16.msra.mxu1 %v1455_v35  ;;  %692 = vmatprep.subr.bf16.mxu0 %v1456_v36  ;;  %v1551_v35 = vld [vmem:[%s2026_s0 + $0x108] ss:$16 sps:$4 sm:$0xff]   ;;  %v1552_v36 = vld [vmem:[%s2026_s0 + $0x124] ss:$16 sps:$4 sm:$0xff]  }
  0x25   :  { %835 = vmatprep.subr.bf16.mxu1 %v1458_v37  ;;  %v1554_v37 = vld [vmem:[%s2026_s0 + $0x12c] ss:$16 sps:$4 sm:$0xff]  }
  0x27   :  { %693 = vmatpush2.bf16.msra.mxu0 %v1460_v38  ;;  %v1556_v38 = vld [vmem:[%s2026_s0 + $0x120] ss:$16 sps:$4 sm:$0xff]  }
  0x28   :  { %836 = vmatpush2.bf16.msra.mxu1 %v1461_v39  ;;  %694 = vmatprep.subr.bf16.mxu0 %v1462_v40  ;;  %v1557_v39 = vld [vmem:[%s2026_s0 + $0x128] ss:$16 sps:$4 sm:$0xff]   ;;  %v1558_v40 = vld [vmem:[%s2026_s0 + $0x144] ss:$16 sps:$4 sm:$0xff]  }
  0x29   :  { %837 = vmatprep.subr.bf16.mxu1 %v1464_v41  ;;  %v1560_v41 = vld [vmem:[%s2026_s0 + $0x14c] ss:$16 sps:$4 sm:$0xff]  }
  0x2b   :  { %695 = vmatpush2.bf16.msra.mxu0 %v1466_v42  ;;  %v1562_v42 = vld [vmem:[%s2026_s0 + $0x140] ss:$16 sps:$4 sm:$0xff]  }
  0x2c   :  { %838 = vmatpush2.bf16.msra.mxu1 %v1467_v43  ;;  %696 = vmatprep.subr.bf16.mxu0 %v1468_v44  ;;  %v1563_v43 = vld [vmem:[%s2026_s0 + $0x148] ss:$16 sps:$4 sm:$0xff]   ;;  %v124_v44 = vlaneseq }
  0x2d   :  { %839 = vmatprep.subr.bf16.mxu1 %v1470_v45 }
  0x2e   :  { %v125_v45 = vshrl.u32 %v124_v44, 7 }
  0x2f   :  { %697 = vmatpush2.bf16.msra.mxu0 %v1472_v46 }
  0x30   :  { %840 = vmatpush2.bf16.msra.mxu1 %v1473_v47  ;;  %698 = vmatprep.subr.bf16.mxu0 %v1474_v48  ;;  %v126_v46 = vsub.s32 0, %v125_v45  ;;  %v122_v47 = vld [vmem:[%s2027_s2] sm:$0x3]  ;;  %v130_v48 = vsub.s32 1, %v125_v45 }
  0x31   :  { %841 = vmatprep.subr.bf16.mxu1 %v1476_v50 }
  0x32   :  { %v1911_v49 = vrot.slane %v122_v47, %v126_v46  ;;  %v1913_v50 = vrot.slane %v122_v47, %v130_v48 }
  0x33   :  { %699 = vmatpush2.bf16.msra.mxu0 %v1478_v52 }
  0x34   :  { %842 = vmatpush2.bf16.msra.mxu1 %v1479_v53  ;;  %700 = vmatprep.subr.bf16.mxu0 %v1480_v54 }
  0x35   :  { %843 = vmatprep.subr.bf16.mxu1 %v1482_v55 }
  0x37   :  { %701 = vmatpush2.bf16.msra.mxu0 %v1484_v56 }
  0x38   :  { %844 = vmatpush2.bf16.msra.mxu1 %v1485_v57  ;;  %702 = vmatprep.subr.bf16.mxu0 %v1486_v58 }
  0x39   :  { %845 = vmatprep.subr.bf16.mxu1 %v1488_v59 }
  0x3b   :  { %703 = vmatpush2.bf16.msra.mxu0 %v1490_v60 }
  0x3c   :  { %846 = vmatpush2.bf16.msra.mxu1 %v1491_v61  ;;  %704 = vmatprep.subr.bf16.mxu0 %v1492_v62 }
  0x3d   :  { %847 = vmatprep.subr.bf16.mxu1 %v1494_v63 }
  0x3f   :  { %705 = vmatpush2.bf16.msra.mxu0 %v1496_v0 }
  0x40   :  { %848 = vmatpush2.bf16.msra.mxu1 %v1497_v1 }
  0x42   :  { %707 = vmatmul.mubr.bf16.vlgmr.msra.gmra.mxu0 %v1498_v2 }
  0x43   :  { %850 = vmatmul.mubr.bf16.vlgmr.msra.gmra.mxu1 %v1501_v3  ;;  %716 = vmatprep.mubr.bf16.mxu0 %v1504_v4 }
  0x44   :  { %859 = vmatprep.mubr.bf16.mxu1 %v1506_v5 }
  0x4a   :  { %717 = vmatmul.mubr.bf16.gmra.mxu0 %v1508_v6 }
  0x4b   :  { %860 = vmatmul.mubr.bf16.gmra.mxu1 %v1509_v7  ;;  %726 = vmatprep.mubr.bf16.mxu0 %v1510_v8 }
  0x4c   :  { %869 = vmatprep.mubr.bf16.mxu1 %v1512_v9 }
  0x52   :  { %727 = vmatmul.mubr.bf16.gmra.mxu0 %v1514_v10 }
  0x53   :  { %870 = vmatmul.mubr.bf16.gmra.mxu1 %v1515_v11  ;;  %736 = vmatprep.mubr.bf16.mxu0 %v1516_v12 }
  0x54   :  { %879 = vmatprep.mubr.bf16.mxu1 %v1518_v13 }
  0x5a   :  { %737 = vmatmul.mubr.bf16.gmra.mxu0 %v1520_v14 }
  0x5b   :  { %880 = vmatmul.mubr.bf16.gmra.mxu1 %v1521_v15  ;;  %746 = vmatprep.mubr.bf16.mxu0 %v1522_v16 }
  0x5c   :  { %889 = vmatprep.mubr.bf16.mxu1 %v1524_v17 }
  0x62   :  { %747 = vmatmul.mubr.bf16.gmra.mxu0 %v1526_v18 }
  0x63   :  { %890 = vmatmul.mubr.bf16.gmra.mxu1 %v1527_v19  ;;  %756 = vmatprep.mubr.bf16.mxu0 %v1528_v20 }
  0x64   :  { %899 = vmatprep.mubr.bf16.mxu1 %v1530_v21 }
  0x6a   :  { %757 = vmatmul.mubr.bf16.gmra.mxu0 %v1532_v22 }
  0x6b   :  { %900 = vmatmul.mubr.bf16.gmra.mxu1 %v1533_v23  ;;  %766 = vmatprep.mubr.bf16.mxu0 %v1534_v24 }
  0x6c   :  { %909 = vmatprep.mubr.bf16.mxu1 %v1536_v25 }
  0x72   :  { %767 = vmatmul.mubr.bf16.gmra.mxu0 %v1538_v26 }
  0x73   :  { %910 = vmatmul.mubr.bf16.gmra.mxu1 %v1539_v27  ;;  %776 = vmatprep.mubr.bf16.mxu0 %v1540_v28 }
  0x74   :  { %919 = vmatprep.mubr.bf16.mxu1 %v1542_v29 }
  0x7a   :  { %777 = vmatmul.mubr.bf16.gmra.mxu0 %v1544_v30 }
  0x7b   :  { %920 = vmatmul.mubr.bf16.gmra.mxu1 %v1545_v31  ;;  %786 = vmatprep.mubr.bf16.mxu0 %v1546_v32 }
  0x7c   :  { %929 = vmatprep.mubr.bf16.mxu1 %v1548_v33 }
  0x82   :  { %787 = vmatmul.mubr.bf16.gmra.mxu0 %v1550_v34 }
  0x83   :  { %930 = vmatmul.mubr.bf16.gmra.mxu1 %v1551_v35  ;;  %796 = vmatprep.mubr.bf16.mxu0 %v1552_v36 }
  0x84   :  { %939 = vmatprep.mubr.bf16.mxu1 %v1554_v37 }
  0x8a   :  { %797 = vmatmul.mubr.bf16.gmra.mxu0 %v1556_v38 }
  0x8b   :  { %940 = vmatmul.mubr.bf16.gmra.mxu1 %v1557_v39  ;;  %806 = vmatprep.mubr.bf16.mxu0 %v1558_v40 }
  0x8c   :  { %949 = vmatprep.mubr.bf16.mxu1 %v1560_v41 }
  0x92   :  { %807 = vmatmul.mubr.bf16.gmra.mxu0 %v1562_v42 }
  0x93   :  { %950 = vmatmul.mubr.bf16.gmra.mxu1 %v1563_v43 }
 0x102   :  { %v708_v51 = vpop.f32.mrf.mxu0 }
 0x103   :  { %v851_v52 = vpop.f32.mrf.mxu1  ;;  %v709_v53 = vadd.f32 %v708_v51, %v1911_v49 }
 0x104   :  { %v710_v54 = vpop.f32.mrf.mxu0 }
 0x105   :  { %v853_v55 = vpop.f32.mrf.mxu1  ;;  %v852_v56 = vadd.f32 %v851_v52, %v709_v53  ;;  %v711_v57 = vadd.f32 %v710_v54, %v1913_v50 }
 0x106   :  { %v712_v58 = vpop.f32.mrf.mxu0 }
 0x107   :  { %v855_v59 = vpop.f32.mrf.mxu1  ;;  %v1004_v60 = vmul.f32 0.2, %v852_v56  ;;  %v854_v61 = vadd.f32 %v853_v55, %v711_v57  ;;  %v713_v62 = vadd.f32 %v712_v58, %v1911_v49  ;;  %vm960_vm0 = vcmp.gt.f32.partialorder %v852_v56, 0.0 }
 0x108   :  { %v714_v63 = vpop.f32.mrf.mxu0 }
 0x109   :  { %v857_v0 = vpop.f32.mrf.mxu1  ;;  %vm961_vm1 = vcmp.gt.f32.partialorder %v854_v61, 0.0  ;;  %v1005_v1 = vmul.f32 0.2, %v854_v61  ;;  %v856_v2 = vadd.f32 %v855_v59, %v713_v62  ;;  %v715_v3 = vadd.f32 %v714_v63, %v1913_v50 }
 0x10a   :  { %v718_v4 = vpop.f32.mrf.mxu0  ;;  %v1048_v6 = vsel %vm960_vm0, %v852_v56, %v1004_v60 }
 0x10b   :  { %v861_v5 = vpop.f32.mrf.mxu1  ;;  %v1049_v7 = vsel %vm961_vm1, %v854_v61, %v1005_v1  ;;  %v719_v8 = vadd.f32 %v718_v4, %v1911_v49  ;;  %v1006_v10 = vmul.f32 0.2, %v856_v2  ;;  %v858_v11 = vadd.f32 %v857_v0, %v715_v3 }
 0x10c   :  { %v1380_v9 = vpack.c.bf16 %v1049_v7, %v1048_v6  ;;  %v720_v12 = vpop.f32.mrf.mxu0  ;;  %vm962_vm2 = vcmp.gt.f32.partialorder %v856_v2, 0.0 }
 0x10d   :  { %v863_v13 = vpop.f32.mrf.mxu1  ;;  %v862_v14 = vadd.f32 %v861_v5, %v719_v8  ;;  %v721_v15 = vadd.f32 %v720_v12, %v1913_v50  ;;  %vm963_vm3 = vcmp.gt.f32.partialorder %v858_v11, 0.0  ;;  %v1007_v16 = vmul.f32 0.2, %v858_v11 }
 0x10e   :  { %1224 = vst [vmem:[%s2028_s3] sm:$0xff] %v1380_v9  ;;  %v722_v17 = vpop.f32.mrf.mxu0  ;;  %v1050_v22 = vsel %vm962_vm2, %v856_v2, %v1006_v10 }
 0x10f   :  { %v865_v18 = vpop.f32.mrf.mxu1  ;;  %v1008_v19 = vmul.f32 0.2, %v862_v14  ;;  %v864_v20 = vadd.f32 %v863_v13, %v721_v15  ;;  %v723_v21 = vadd.f32 %v722_v17, %v1911_v49  ;;  %v1051_v23 = vsel %vm963_vm3, %v858_v11, %v1007_v16 }
 0x110   :  { %vm964_vm4 = vcmp.gt.f32.partialorder %v862_v14, 0.0  ;;  %v724_v24 = vpop.f32.mrf.mxu0  ;;  %v1381_v26 = vpack.c.bf16 %v1051_v23, %v1050_v22 }
 0x111   :  { %v867_v25 = vpop.f32.mrf.mxu1  ;;  %vm965_vm5 = vcmp.gt.f32.partialorder %v864_v20, 0.0  ;;  %v1009_v27 = vmul.f32 0.2, %v864_v20  ;;  %v866_v28 = vadd.f32 %v865_v18, %v723_v21  ;;  %v725_v29 = vadd.f32 %v724_v24, %v1913_v50 }
 0x112   :  { %v728_v30 = vpop.f32.mrf.mxu0  ;;  %1225 = vst [vmem:[%s2028_s3 + $0x8] sm:$0xff] %v1381_v26  ;;  %v1052_v32 = vsel %vm964_vm4, %v862_v14, %v1008_v19 }
 0x113   :  { %v871_v31 = vpop.f32.mrf.mxu1  ;;  %v1053_v33 = vsel %vm965_vm5, %v864_v20, %v1009_v27  ;;  %v729_v34 = vadd.f32 %v728_v30, %v1911_v49  ;;  %v1010_v36 = vmul.f32 0.2, %v866_v28  ;;  %v868_v37 = vadd.f32 %v867_v25, %v725_v29 }
 0x114   :  { %v1382_v35 = vpack.c.bf16 %v1053_v33, %v1052_v32  ;;  %v730_v38 = vpop.f32.mrf.mxu0  ;;  %vm966_vm6 = vcmp.gt.f32.partialorder %v866_v28, 0.0 }
 0x115   :  { %v873_v39 = vpop.f32.mrf.mxu1  ;;  %v872_v40 = vadd.f32 %v871_v31, %v729_v34  ;;  %v731_v41 = vadd.f32 %v730_v38, %v1913_v50  ;;  %vm967_vm7 = vcmp.gt.f32.partialorder %v868_v37, 0.0  ;;  %v1011_v42 = vmul.f32 0.2, %v868_v37 }
 0x116   :  { %1226 = vst [vmem:[%s2028_s3 + $0x10] sm:$0xff] %v1382_v35  ;;  %v732_v43 = vpop.f32.mrf.mxu0  ;;  %v1054_v48 = vsel %vm966_vm6, %v866_v28, %v1010_v36 }
 0x117   :  { %v875_v44 = vpop.f32.mrf.mxu1  ;;  %v1012_v45 = vmul.f32 0.2, %v872_v40  ;;  %v874_v46 = vadd.f32 %v873_v39, %v731_v41  ;;  %v733_v47 = vadd.f32 %v732_v43, %v1911_v49  ;;  %v1055_v51 = vsel %vm967_vm7, %v868_v37, %v1011_v42 }
 0x118   :  { %vm968_vm8 = vcmp.gt.f32.partialorder %v872_v40, 0.0  ;;  %v734_v52 = vpop.f32.mrf.mxu0  ;;  %v1383_v54 = vpack.c.bf16 %v1055_v51, %v1054_v48 }
 0x119   :  { %v877_v53 = vpop.f32.mrf.mxu1  ;;  %vm969_vm9 = vcmp.gt.f32.partialorder %v874_v46, 0.0  ;;  %v1013_v55 = vmul.f32 0.2, %v874_v46  ;;  %v876_v56 = vadd.f32 %v875_v44, %v733_v47  ;;  %v735_v57 = vadd.f32 %v734_v52, %v1913_v50 }
 0x11a   :  { %v738_v58 = vpop.f32.mrf.mxu0  ;;  %1227 = vst [vmem:[%s2028_s3 + $0x18] sm:$0xff] %v1383_v54  ;;  %v1056_v60 = vsel %vm968_vm8, %v872_v40, %v1012_v45 }
 0x11b   :  { %v881_v59 = vpop.f32.mrf.mxu1  ;;  %v1057_v61 = vsel %vm969_vm9, %v874_v46, %v1013_v55  ;;  %v739_v62 = vadd.f32 %v738_v58, %v1911_v49  ;;  %v1014_v0 = vmul.f32 0.2, %v876_v56  ;;  %v878_v1 = vadd.f32 %v877_v53, %v735_v57 }
 0x11c   :  { %v1384_v63 = vpack.c.bf16 %v1057_v61, %v1056_v60  ;;  %v740_v2 = vpop.f32.mrf.mxu0  ;;  %vm970_vm10 = vcmp.gt.f32.partialorder %v876_v56, 0.0 }
 0x11d   :  { %v883_v3 = vpop.f32.mrf.mxu1  ;;  %v882_v4 = vadd.f32 %v881_v59, %v739_v62  ;;  %v741_v5 = vadd.f32 %v740_v2, %v1913_v50  ;;  %vm971_vm11 = vcmp.gt.f32.partialorder %v878_v1, 0.0  ;;  %v1015_v6 = vmul.f32 0.2, %v878_v1 }
 0x11e   :  { %1228 = vst [vmem:[%s2028_s3 + $0x20] sm:$0xff] %v1384_v63  ;;  %v742_v7 = vpop.f32.mrf.mxu0  ;;  %v1058_v12 = vsel %vm970_vm10, %v876_v56, %v1014_v0 }
 0x11f   :  { %v885_v8 = vpop.f32.mrf.mxu1  ;;  %v1016_v9 = vmul.f32 0.2, %v882_v4  ;;  %v884_v10 = vadd.f32 %v883_v3, %v741_v5  ;;  %v743_v11 = vadd.f32 %v742_v7, %v1911_v49  ;;  %v1059_v13 = vsel %vm971_vm11, %v878_v1, %v1015_v6 }
 0x120   :  { %vm972_vm12 = vcmp.gt.f32.partialorder %v882_v4, 0.0  ;;  %v744_v14 = vpop.f32.mrf.mxu0  ;;  %v1385_v16 = vpack.c.bf16 %v1059_v13, %v1058_v12 }
 0x121   :  { %v887_v15 = vpop.f32.mrf.mxu1  ;;  %vm973_vm13 = vcmp.gt.f32.partialorder %v884_v10, 0.0  ;;  %v1017_v17 = vmul.f32 0.2, %v884_v10  ;;  %v886_v18 = vadd.f32 %v885_v8, %v743_v11  ;;  %v745_v19 = vadd.f32 %v744_v14, %v1913_v50 }
 0x122   :  { %v748_v20 = vpop.f32.mrf.mxu0  ;;  %1229 = vst [vmem:[%s2028_s3 + $0x28] sm:$0xff] %v1385_v16  ;;  %v1060_v22 = vsel %vm972_vm12, %v882_v4, %v1016_v9 }
 0x123   :  { %v891_v21 = vpop.f32.mrf.mxu1  ;;  %v1061_v23 = vsel %vm973_vm13, %v884_v10, %v1017_v17  ;;  %v749_v24 = vadd.f32 %v748_v20, %v1911_v49  ;;  %v1018_v26 = vmul.f32 0.2, %v886_v18  ;;  %v888_v27 = vadd.f32 %v887_v15, %v745_v19 }
 0x124   :  { %v1386_v25 = vpack.c.bf16 %v1061_v23, %v1060_v22  ;;  %v750_v28 = vpop.f32.mrf.mxu0  ;;  %vm974_vm14 = vcmp.gt.f32.partialorder %v886_v18, 0.0 }
 0x125   :  { %v893_v29 = vpop.f32.mrf.mxu1  ;;  %v892_v30 = vadd.f32 %v891_v21, %v749_v24  ;;  %v751_v31 = vadd.f32 %v750_v28, %v1913_v50  ;;  %vm975_vm15 = vcmp.gt.f32.partialorder %v888_v27, 0.0  ;;  %v1019_v32 = vmul.f32 0.2, %v888_v27 }
 0x126   :  { %1230 = vst [vmem:[%s2028_s3 + $0x30] sm:$0xff] %v1386_v25  ;;  %v752_v33 = vpop.f32.mrf.mxu0  ;;  %v1062_v38 = vsel %vm974_vm14, %v886_v18, %v1018_v26 }
 0x127   :  { %v895_v34 = vpop.f32.mrf.mxu1  ;;  %v1020_v35 = vmul.f32 0.2, %v892_v30  ;;  %v894_v36 = vadd.f32 %v893_v29, %v751_v31  ;;  %v753_v37 = vadd.f32 %v752_v33, %v1911_v49  ;;  %v1063_v39 = vsel %vm975_vm15, %v888_v27, %v1019_v32 }
 0x128   :  { %vm976_vm0 = vcmp.gt.f32.partialorder %v892_v30, 0.0  ;;  %v754_v40 = vpop.f32.mrf.mxu0  ;;  %v1387_v42 = vpack.c.bf16 %v1063_v39, %v1062_v38 }
 0x129   :  { %v897_v41 = vpop.f32.mrf.mxu1  ;;  %vm977_vm1 = vcmp.gt.f32.partialorder %v894_v36, 0.0  ;;  %v1021_v43 = vmul.f32 0.2, %v894_v36  ;;  %v896_v44 = vadd.f32 %v895_v34, %v753_v37  ;;  %v755_v45 = vadd.f32 %v754_v40, %v1913_v50 }
 0x12a   :  { %v758_v46 = vpop.f32.mrf.mxu0  ;;  %1231 = vst [vmem:[%s2028_s3 + $0x38] sm:$0xff] %v1387_v42  ;;  %v1064_v48 = vsel %vm976_vm0, %v892_v30, %v1020_v35 }
 0x12b   :  { %v901_v47 = vpop.f32.mrf.mxu1  ;;  %v1065_v51 = vsel %vm977_vm1, %v894_v36, %v1021_v43  ;;  %v759_v52 = vadd.f32 %v758_v46, %v1911_v49  ;;  %v1022_v54 = vmul.f32 0.2, %v896_v44  ;;  %v898_v55 = vadd.f32 %v897_v41, %v755_v45 }
 0x12c   :  { %v1388_v53 = vpack.c.bf16 %v1065_v51, %v1064_v48  ;;  %v760_v56 = vpop.f32.mrf.mxu0  ;;  %vm978_vm2 = vcmp.gt.f32.partialorder %v896_v44, 0.0 }
 0x12d   :  { %v903_v57 = vpop.f32.mrf.mxu1  ;;  %v902_v58 = vadd.f32 %v901_v47, %v759_v52  ;;  %v761_v59 = vadd.f32 %v760_v56, %v1913_v50  ;;  %vm979_vm3 = vcmp.gt.f32.partialorder %v898_v55, 0.0  ;;  %v1023_v60 = vmul.f32 0.2, %v898_v55 }
 0x12e   :  { %1232 = vst [vmem:[%s2028_s3 + $0x40] sm:$0xff] %v1388_v53  ;;  %v762_v61 = vpop.f32.mrf.mxu0  ;;  %v1066_v2 = vsel %vm978_vm2, %v896_v44, %v1022_v54 }
 0x12f   :  { %v905_v62 = vpop.f32.mrf.mxu1  ;;  %v1024_v63 = vmul.f32 0.2, %v902_v58  ;;  %v904_v0 = vadd.f32 %v903_v57, %v761_v59  ;;  %v763_v1 = vadd.f32 %v762_v61, %v1911_v49  ;;  %v1067_v3 = vsel %vm979_vm3, %v898_v55, %v1023_v60 }
 0x130   :  { %vm980_vm4 = vcmp.gt.f32.partialorder %v902_v58, 0.0  ;;  %v764_v4 = vpop.f32.mrf.mxu0  ;;  %v1389_v6 = vpack.c.bf16 %v1067_v3, %v1066_v2 }
 0x131   :  { %v907_v5 = vpop.f32.mrf.mxu1  ;;  %vm981_vm5 = vcmp.gt.f32.partialorder %v904_v0, 0.0  ;;  %v1025_v7 = vmul.f32 0.2, %v904_v0  ;;  %v906_v8 = vadd.f32 %v905_v62, %v763_v1  ;;  %v765_v9 = vadd.f32 %v764_v4, %v1913_v50 }
 0x132   :  { %v768_v10 = vpop.f32.mrf.mxu0  ;;  %1233 = vst [vmem:[%s2028_s3 + $0x48] sm:$0xff] %v1389_v6  ;;  %v1068_v12 = vsel %vm980_vm4, %v902_v58, %v1024_v63 }
 0x133   :  { %v911_v11 = vpop.f32.mrf.mxu1  ;;  %v1069_v13 = vsel %vm981_vm5, %v904_v0, %v1025_v7  ;;  %v769_v14 = vadd.f32 %v768_v10, %v1911_v49  ;;  %v1026_v16 = vmul.f32 0.2, %v906_v8  ;;  %v908_v17 = vadd.f32 %v907_v5, %v765_v9 }
 0x134   :  { %v1390_v15 = vpack.c.bf16 %v1069_v13, %v1068_v12  ;;  %v770_v18 = vpop.f32.mrf.mxu0  ;;  %vm982_vm6 = vcmp.gt.f32.partialorder %v906_v8, 0.0 }
 0x135   :  { %v913_v19 = vpop.f32.mrf.mxu1  ;;  %v912_v20 = vadd.f32 %v911_v11, %v769_v14  ;;  %v771_v21 = vadd.f32 %v770_v18, %v1913_v50  ;;  %vm983_vm7 = vcmp.gt.f32.partialorder %v908_v17, 0.0  ;;  %v1027_v22 = vmul.f32 0.2, %v908_v17 }
 0x136   :  { %1234 = vst [vmem:[%s2028_s3 + $0x50] sm:$0xff] %v1390_v15  ;;  %v772_v23 = vpop.f32.mrf.mxu0  ;;  %v1070_v28 = vsel %vm982_vm6, %v906_v8, %v1026_v16 }
 0x137   :  { %v915_v24 = vpop.f32.mrf.mxu1  ;;  %v1028_v25 = vmul.f32 0.2, %v912_v20  ;;  %v914_v26 = vadd.f32 %v913_v19, %v771_v21  ;;  %v773_v27 = vadd.f32 %v772_v23, %v1911_v49  ;;  %v1071_v29 = vsel %vm983_vm7, %v908_v17, %v1027_v22 }
 0x138   :  { %vm984_vm8 = vcmp.gt.f32.partialorder %v912_v20, 0.0  ;;  %v774_v30 = vpop.f32.mrf.mxu0  ;;  %v1391_v32 = vpack.c.bf16 %v1071_v29, %v1070_v28 }
 0x139   :  { %v917_v31 = vpop.f32.mrf.mxu1  ;;  %vm985_vm9 = vcmp.gt.f32.partialorder %v914_v26, 0.0  ;;  %v1029_v33 = vmul.f32 0.2, %v914_v26  ;;  %v916_v34 = vadd.f32 %v915_v24, %v773_v27  ;;  %v775_v35 = vadd.f32 %v774_v30, %v1913_v50 }
 0x13a   :  { %v778_v36 = vpop.f32.mrf.mxu0  ;;  %1235 = vst [vmem:[%s2028_s3 + $0x58] sm:$0xff] %v1391_v32  ;;  %v1072_v38 = vsel %vm984_vm8, %v912_v20, %v1028_v25 }
 0x13b   :  { %v921_v37 = vpop.f32.mrf.mxu1  ;;  %v1073_v39 = vsel %vm985_vm9, %v914_v26, %v1029_v33  ;;  %v779_v40 = vadd.f32 %v778_v36, %v1911_v49  ;;  %v1030_v42 = vmul.f32 0.2, %v916_v34  ;;  %v918_v43 = vadd.f32 %v917_v31, %v775_v35 }
 0x13c   :  { %v1392_v41 = vpack.c.bf16 %v1073_v39, %v1072_v38  ;;  %v780_v44 = vpop.f32.mrf.mxu0  ;;  %vm986_vm10 = vcmp.gt.f32.partialorder %v916_v34, 0.0 }
 0x13d   :  { %v923_v45 = vpop.f32.mrf.mxu1  ;;  %v922_v46 = vadd.f32 %v921_v37, %v779_v40  ;;  %v781_v47 = vadd.f32 %v780_v44, %v1913_v50  ;;  %vm987_vm11 = vcmp.gt.f32.partialorder %v918_v43, 0.0  ;;  %v1031_v48 = vmul.f32 0.2, %v918_v43 }
 0x13e   :  { %1236 = vst [vmem:[%s2028_s3 + $0x60] sm:$0xff] %v1392_v41  ;;  %v782_v51 = vpop.f32.mrf.mxu0  ;;  %v1074_v56 = vsel %vm986_vm10, %v916_v34, %v1030_v42 }
 0x13f   :  { %v925_v52 = vpop.f32.mrf.mxu1  ;;  %v1032_v53 = vmul.f32 0.2, %v922_v46  ;;  %v924_v54 = vadd.f32 %v923_v45, %v781_v47  ;;  %v783_v55 = vadd.f32 %v782_v51, %v1911_v49  ;;  %v1075_v57 = vsel %vm987_vm11, %v918_v43, %v1031_v48 }
 0x140   :  { %vm988_vm12 = vcmp.gt.f32.partialorder %v922_v46, 0.0  ;;  %v784_v58 = vpop.f32.mrf.mxu0  ;;  %v1393_v60 = vpack.c.bf16 %v1075_v57, %v1074_v56 }
 0x141   :  { %v927_v59 = vpop.f32.mrf.mxu1  ;;  %vm989_vm13 = vcmp.gt.f32.partialorder %v924_v54, 0.0  ;;  %v1033_v61 = vmul.f32 0.2, %v924_v54  ;;  %v926_v62 = vadd.f32 %v925_v52, %v783_v55  ;;  %v785_v63 = vadd.f32 %v784_v58, %v1913_v50 }
 0x142   :  { %v788_v0 = vpop.f32.mrf.mxu0  ;;  %1237 = vst [vmem:[%s2028_s3 + $0x68] sm:$0xff] %v1393_v60  ;;  %v1076_v2 = vsel %vm988_vm12, %v922_v46, %v1032_v53 }
 0x143   :  { %v931_v1 = vpop.f32.mrf.mxu1  ;;  %v1077_v3 = vsel %vm989_vm13, %v924_v54, %v1033_v61  ;;  %v789_v4 = vadd.f32 %v788_v0, %v1911_v49  ;;  %v1034_v6 = vmul.f32 0.2, %v926_v62  ;;  %v928_v7 = vadd.f32 %v927_v59, %v785_v63 }
 0x144   :  { %v1394_v5 = vpack.c.bf16 %v1077_v3, %v1076_v2  ;;  %v790_v8 = vpop.f32.mrf.mxu0  ;;  %vm990_vm14 = vcmp.gt.f32.partialorder %v926_v62, 0.0 }
 0x145   :  { %v933_v9 = vpop.f32.mrf.mxu1  ;;  %v932_v10 = vadd.f32 %v931_v1, %v789_v4  ;;  %v791_v11 = vadd.f32 %v790_v8, %v1913_v50  ;;  %vm991_vm15 = vcmp.gt.f32.partialorder %v928_v7, 0.0  ;;  %v1035_v12 = vmul.f32 0.2, %v928_v7 }
 0x146   :  { %1238 = vst [vmem:[%s2028_s3 + $0x70] sm:$0xff] %v1394_v5  ;;  %v792_v13 = vpop.f32.mrf.mxu0  ;;  %v1078_v18 = vsel %vm990_vm14, %v926_v62, %v1034_v6 }
 0x147   :  { %v935_v14 = vpop.f32.mrf.mxu1  ;;  %v1036_v15 = vmul.f32 0.2, %v932_v10  ;;  %v934_v16 = vadd.f32 %v933_v9, %v791_v11  ;;  %v793_v17 = vadd.f32 %v792_v13, %v1911_v49  ;;  %v1079_v19 = vsel %vm991_vm15, %v928_v7, %v1035_v12 }
 0x148   :  { %vm992_vm0 = vcmp.gt.f32.partialorder %v932_v10, 0.0  ;;  %v794_v20 = vpop.f32.mrf.mxu0  ;;  %v1395_v22 = vpack.c.bf16 %v1079_v19, %v1078_v18 }
 0x149   :  { %v937_v21 = vpop.f32.mrf.mxu1  ;;  %vm993_vm1 = vcmp.gt.f32.partialorder %v934_v16, 0.0  ;;  %v1037_v23 = vmul.f32 0.2, %v934_v16  ;;  %v936_v24 = vadd.f32 %v935_v14, %v793_v17  ;;  %v795_v25 = vadd.f32 %v794_v20, %v1913_v50 }
 0x14a   :  { %v798_v26 = vpop.f32.mrf.mxu0  ;;  %1239 = vst [vmem:[%s2028_s3 + $0x78] sm:$0xff] %v1395_v22  ;;  %v1080_v28 = vsel %vm992_vm0, %v932_v10, %v1036_v15 }
 0x14b   :  { %v941_v27 = vpop.f32.mrf.mxu1  ;;  %v1081_v29 = vsel %vm993_vm1, %v934_v16, %v1037_v23  ;;  %v799_v30 = vadd.f32 %v798_v26, %v1911_v49  ;;  %v1038_v32 = vmul.f32 0.2, %v936_v24  ;;  %v938_v33 = vadd.f32 %v937_v21, %v795_v25 }
 0x14c   :  { %v1396_v31 = vpack.c.bf16 %v1081_v29, %v1080_v28  ;;  %v800_v34 = vpop.f32.mrf.mxu0  ;;  %vm994_vm2 = vcmp.gt.f32.partialorder %v936_v24, 0.0 }
 0x14d   :  { %v943_v35 = vpop.f32.mrf.mxu1  ;;  %v942_v36 = vadd.f32 %v941_v27, %v799_v30  ;;  %v801_v37 = vadd.f32 %v800_v34, %v1913_v50  ;;  %vm995_vm3 = vcmp.gt.f32.partialorder %v938_v33, 0.0  ;;  %v1039_v38 = vmul.f32 0.2, %v938_v33 }
 0x14e   :  { %1240 = vst [vmem:[%s2028_s3 + $0x80] sm:$0xff] %v1396_v31  ;;  %v802_v39 = vpop.f32.mrf.mxu0  ;;  %v1082_v44 = vsel %vm994_vm2, %v936_v24, %v1038_v32 }
 0x14f   :  { %v945_v40 = vpop.f32.mrf.mxu1  ;;  %v1040_v41 = vmul.f32 0.2, %v942_v36  ;;  %v944_v42 = vadd.f32 %v943_v35, %v801_v37  ;;  %v803_v43 = vadd.f32 %v802_v39, %v1911_v49  ;;  %v1083_v45 = vsel %vm995_vm3, %v938_v33, %v1039_v38 }
 0x150   :  { %vm996_vm4 = vcmp.gt.f32.partialorder %v942_v36, 0.0  ;;  %v804_v46 = vpop.f32.mrf.mxu0  ;;  %v1397_v48 = vpack.c.bf16 %v1083_v45, %v1082_v44 }
 0x151   :  { %v947_v47 = vpop.f32.mrf.mxu1  ;;  %vm997_vm5 = vcmp.gt.f32.partialorder %v944_v42, 0.0  ;;  %v1041_v51 = vmul.f32 0.2, %v944_v42  ;;  %v946_v52 = vadd.f32 %v945_v40, %v803_v43  ;;  %v805_v53 = vadd.f32 %v804_v46, %v1913_v50 }
 0x152   :  { %v808_v54 = vpop.f32.mrf.mxu0  ;;  %1241 = vst [vmem:[%s2028_s3 + $0x88] sm:$0xff] %v1397_v48  ;;  %v1084_v56 = vsel %vm996_vm4, %v942_v36, %v1040_v41 }
 0x153   :  { %v951_v55 = vpop.f32.mrf.mxu1  ;;  %v1085_v57 = vsel %vm997_vm5, %v944_v42, %v1041_v51  ;;  %v809_v58 = vadd.f32 %v808_v54, %v1911_v49  ;;  %v1042_v60 = vmul.f32 0.2, %v946_v52  ;;  %v948_v61 = vadd.f32 %v947_v47, %v805_v53 }
 0x154   :  { %v1398_v59 = vpack.c.bf16 %v1085_v57, %v1084_v56  ;;  %v810_v62 = vpop.f32.mrf.mxu0  ;;  %vm998_vm6 = vcmp.gt.f32.partialorder %v946_v52, 0.0 }
 0x155   :  { %v953_v63 = vpop.f32.mrf.mxu1  ;;  %v952_v0 = vadd.f32 %v951_v55, %v809_v58  ;;  %v811_v1 = vadd.f32 %v810_v62, %v1913_v50  ;;  %vm999_vm7 = vcmp.gt.f32.partialorder %v948_v61, 0.0  ;;  %v1043_v2 = vmul.f32 0.2, %v948_v61 }
 0x156   :  { %1242 = vst [vmem:[%s2028_s3 + $0x90] sm:$0xff] %v1398_v59  ;;  %v812_v3 = vpop.f32.mrf.mxu0  ;;  %v1086_v8 = vsel %vm998_vm6, %v946_v52, %v1042_v60 }
 0x157   :  { %v1044_v4 = vmul.f32 0.2, %v952_v0  ;;  %v954_v5 = vadd.f32 %v953_v63, %v811_v1  ;;  %v813_v6 = vadd.f32 %v812_v3, %v1911_v49  ;;  %v955_v7 = vpop.f32.mrf.mxu1  ;;  %v1087_v9 = vsel %vm999_vm7, %v948_v61, %v1043_v2 }
 0x158   :  { %vm1000_vm8 = vcmp.gt.f32.partialorder %v952_v0, 0.0  ;;  %v814_v10 = vpop.f32.mrf.mxu0  ;;  %v1399_v11 = vpack.c.bf16 %v1087_v9, %v1086_v8 }
 0x159   :  { %vm1001_vm9 = vcmp.gt.f32.partialorder %v954_v5, 0.0  ;;  %v1045_v12 = vmul.f32 0.2, %v954_v5  ;;  %v956_v13 = vadd.f32 %v955_v7, %v813_v6  ;;  %v815_v14 = vadd.f32 %v814_v10, %v1913_v50  ;;  %v957_v17 = vpop.f32.mrf.mxu1 }
 0x15a   :  { %1243 = vst [vmem:[%s2028_s3 + $0x98] sm:$0xff] %v1399_v11  ;;  %v1088_v15 = vsel %vm1000_vm8, %v952_v0, %v1044_v4 }
 0x15b   :  { %v1089_v16 = vsel %vm1001_vm9, %v954_v5, %v1045_v12  ;;  %v1046_v49 = vmul.f32 0.2, %v956_v13  ;;  %v958_v19 = vadd.f32 %v957_v17, %v815_v14  ;;  %vm1002_vm10 = vcmp.gt.f32.partialorder %v956_v13, 0.0 }
 0x15c   :  { %v1400_v18 = vpack.c.bf16 %v1089_v16, %v1088_v15 }
 0x15d   :  { %vm1003_vm11 = vcmp.gt.f32.partialorder %v958_v19, 0.0  ;;  %v1047_v20 = vmul.f32 0.2, %v958_v19  ;;  %v1090_v21 = vsel %vm1002_vm10, %v956_v13, %v1046_v49 }
 0x15e   :  { %1244 = vst [vmem:[%s2028_s3 + $0xa0] sm:$0xff] %v1400_v18 }
 0x15f   :  { %v1091_v22 = vsel %vm1003_vm11, %v958_v19, %v1047_v20 }
 0x160   :  { %v1401_v50 = vpack.c.bf16 %v1091_v22, %v1090_v21 }
 0x162   :  { %1245 = vst [vmem:[%s2028_s3 + $0xa8] sm:$0xff] %v1401_v50 }

// kernel: generator_forward.13
= control target key start
LH: loop header
LB: loop body
LE: loop exit
PB: predicated region body
PF: predicated region fallthrough
CT: control target
= control target key end

     0   :  { %s1034_s12 = smov 0   ;;  %s1036_s13 = smov 0   ;;  %s1184_s0 = inlined_call_operand.vmem [shape: bf16[512,128], index: 0, kind: input, shape index: {}]   ;;  %s1185_s1 = inlined_call_operand.vmem [shape: bf16[128,128], index: 1, kind: input, shape index: {}]   ;;  %s1186_s2 = inlined_call_operand.vmem [shape: f32[1,128], index: 2, kind: input, shape index: {}]   ;;  %s1187_s3 = inlined_call_operand.vmem [shape: f32[512,128], index: 3, kind: output, shape index: {}]  }
   0x1   :  { %s1038_s14 = smov 0  }
   0x2 LB: > { %s25_s15 = sadd.s32 1, %s1008_s13  ;;  %p758_p0 = scmp.ge.s32.totalorder %s1012_s14, 1  ;;  %s1012_s14 = sphi %s1038_s14, %s13_s14   ;;  %s1008_s13 = sphi %s1036_s13, %s1189_s13   ;;  %s1004_s12 = sphi %s1034_s12, %s1188_s12  }
   0x3   : > { %p27_p1 = scmp.ge.s32.totalorder %s25_s15, 2  ;;  %p169_p2 = scmp.lt.s32.totalorder %s1012_s14, 3 }
   0x5   : > { %s1191_s15 = smov (%p27_p1, %s25_s15), 0  ;;  %p170_p3 = pnand %p758_p0, %p169_p2 }
   0x6   : > { %s759_s18 = sshll.u32 (!%p170_p3), %s1004_s12, 5 }
   0x7   : > { %173 = sbr.rel (%p170_p3) target bundleno = 286 (0x11e), region = 32  ;;  %p204_p4 = scmp.lt.s32.totalorder (!%p170_p3), %s759_s18, 63 }
   0xc   : > { %v902_v0 = vld [vmem:[%s1185_s1 + $0x38] sm:$0xff]   ;;  %v903_v1 = vld [vmem:[%s1185_s1 + $0x30] sm:$0xff]   ;;  %s1193_s18 = smov (!%p204_p4, %s759_s18), 63  ;;  %v904_v2 = vld [vmem:[%s1185_s1 + $0x28] sm:$0xff]  }
   0xd   : > { %814 = vmatprep.subr.bf16.mxu0 %v902_v0  ;;  %862 = vmatprep.subr.bf16.mxu1 %v902_v0  ;;  %s760_s23 = sshll.u32 %s1193_s18, 2  ;;  %v905_v3 = vld [vmem:[%s1185_s1 + $0x20] sm:$0xff]   ;;  %v906_v6 = vld [vmem:[%s1185_s1 + $0x18] sm:$0xff]   ;;  %v907_v7 = vld [vmem:[%s1185_s1 + $0x10] sm:$0xff]   ;;  %s762_s12 = sshll.u32 %s1193_s18, 3 }
   0xe   : > { %815 = vmatpush3.bf16.msra.mxu0 %v902_v0  ;;  %870 = vmatpush3.bf16.msra.mxu1 %v902_v0  ;;  %s1067_s26 = scalar_lea.vmem %s1184_s0, %s760_s23  ;;  %v908_v8 = vld [vmem:[%s1185_s1 + $0x8] sm:$0xff]   ;;  %v909_v9 = vld [vmem:[%s1185_s1] sm:$0xff]   ;;  %s1123_s19 = scalar_lea.vmem %s1187_s3, %s762_s12 }
   0xf   : > { %816 = vmatprep.subr.bf16.mxu0 %v903_v1  ;;  %863 = vmatprep.subr.bf16.mxu1 %v903_v1  ;;  %v910_v4 = vld [vmem:[%s1067_s26] sm:$0xff]   ;;  %v912_v10 = vld [vmem:[%s1067_s26 + $0x8] sm:$0xff]   ;;  %v914_v12 = vld [vmem:[%s1067_s26 + $0x10] sm:$0xff]  }
  0x10   : > { %v911_v5 = vld [vmem:[%s1067_s26 + $0x40] sm:$0xff]   ;;  %830 = vmatprep.mubr.bf16.mxu0 %v910_v4  ;;  %v913_v11 = vld [vmem:[%s1067_s26 + $0x48] sm:$0xff]   ;;  %v915_v13 = vld [vmem:[%s1067_s26 + $0x50] sm:$0xff]  }
  0x11   : > { %846 = vmatprep.mubr.bf16.mxu1 %v911_v5  ;;  %v916_v14 = vld [vmem:[%s1067_s26 + $0x18] sm:$0xff]   ;;  %v918_v16 = vld [vmem:[%s1067_s26 + $0x20] sm:$0xff]   ;;  %v920_v18 = vld [vmem:[%s1067_s26 + $0x28] sm:$0xff]  }
  0x12   : > { %817 = vmatpush3.bf16.msra.mxu0 %v903_v1  ;;  %871 = vmatpush3.bf16.msra.mxu1 %v903_v1  ;;  %v917_v15 = vld [vmem:[%s1067_s26 + $0x58] sm:$0xff]   ;;  %v919_v17 = vld [vmem:[%s1067_s26 + $0x60] sm:$0xff]   ;;  %v921_v19 = vld [vmem:[%s1067_s26 + $0x68] sm:$0xff]  }
  0x13   : > { %818 = vmatprep.subr.bf16.mxu0 %v904_v2  ;;  %864 = vmatprep.subr.bf16.mxu1 %v904_v2  ;;  %v922_v20 = vld [vmem:[%s1067_s26 + $0x30] sm:$0xff]   ;;  %v924_v22 = vld [vmem:[%s1067_s26 + $0x38] sm:$0xff]   ;;  %v1103_v24 = vld [vmem:[%s1186_s2] ss:$0 sm:$0xff] }
  0x14   : > { %v923_v21 = vld [vmem:[%s1067_s26 + $0x70] sm:$0xff]   ;;  %v925_v23 = vld [vmem:[%s1067_s26 + $0x78] sm:$0xff]  }
  0x16   : > { %819 = vmatpush3.bf16.msra.mxu0 %v904_v2  ;;  %872 = vmatpush3.bf16.msra.mxu1 %v904_v2 }
  0x17   : > { %820 = vmatprep.subr.bf16.mxu0 %v905_v3  ;;  %865 = vmatprep.subr.bf16.mxu1 %v905_v3 }
  0x1a   : > { %821 = vmatpush3.bf16.msra.mxu0 %v905_v3  ;;  %873 = vmatpush3.bf16.msra.mxu1 %v905_v3 }
  0x1b   : > { %822 = vmatprep.subr.bf16.mxu0 %v906_v6  ;;  %866 = vmatprep.subr.bf16.mxu1 %v906_v6 }
  0x1e   : > { %823 = vmatpush3.bf16.msra.mxu0 %v906_v6  ;;  %874 = vmatpush3.bf16.msra.mxu1 %v906_v6 }
  0x1f   : > { %824 = vmatprep.subr.bf16.mxu0 %v907_v7  ;;  %867 = vmatprep.subr.bf16.mxu1 %v907_v7 }
  0x22   : > { %825 = vmatpush3.bf16.msra.mxu0 %v907_v7  ;;  %875 = vmatpush3.bf16.msra.mxu1 %v907_v7 }
  0x23   : > { %826 = vmatprep.subr.bf16.mxu0 %v908_v8  ;;  %868 = vmatprep.subr.bf16.mxu1 %v908_v8 }
  0x26   : > { %827 = vmatpush3.bf16.msra.mxu0 %v908_v8  ;;  %876 = vmatpush3.bf16.msra.mxu1 %v908_v8 }
  0x27   : > { %828 = vmatprep.subr.bf16.mxu0 %v909_v9  ;;  %869 = vmatprep.subr.bf16.mxu1 %v909_v9 }
  0x2a   : > { %829 = vmatpush3.bf16.msra.mxu0 %v909_v9  ;;  %877 = vmatpush3.bf16.msra.mxu1 %v909_v9 }
  0x2d   : > { %831 = vmatmul.mubr.bf16.vlgmr.msra.gmra.mxu0 %v912_v10  ;;  %847 = vmatmul.mubr.bf16.vlgmr.msra.gmra.mxu1 %v913_v11 }
  0x2e   : > { %834 = vmatprep.mubr.bf16.mxu0 %v914_v12  ;;  %850 = vmatprep.mubr.bf16.mxu1 %v915_v13 }
  0x35   : > { %835 = vmatmul.mubr.bf16.gmra.mxu0 %v916_v14  ;;  %851 = vmatmul.mubr.bf16.gmra.mxu1 %v917_v15 }
  0x36   : > { %838 = vmatprep.mubr.bf16.mxu0 %v918_v16  ;;  %854 = vmatprep.mubr.bf16.mxu1 %v919_v17 }
  0x3d   : > { %839 = vmatmul.mubr.bf16.gmra.mxu0 %v920_v18  ;;  %855 = vmatmul.mubr.bf16.gmra.mxu1 %v921_v19 }
  0x3e   : > { %842 = vmatprep.mubr.bf16.mxu0 %v922_v20  ;;  %858 = vmatprep.mubr.bf16.mxu1 %v923_v21 }
  0x45   : > { %843 = vmatmul.mubr.bf16.gmra.mxu0 %v924_v22  ;;  %859 = vmatmul.mubr.bf16.gmra.mxu1 %v925_v23 }
  0xed   : > { %v832_v25 = vpop.f32.mrf.mxu0  ;;  %v848_v26 = vpop.f32.mrf.mxu1 }
  0xee   : > { %v468_v27 = vadd.f32 %v832_v25, %v1103_v24  ;;  %v532_v28 = vadd.f32 %v848_v26, %v1103_v24 }
  0xef   : > { %v459_v29 = vpop.f32.mrf.mxu0  ;;  %v523_v30 = vpop.f32.mrf.mxu1 }
  0xf0   : > { %926 = vtanh.f32 %v468_v27  ;;  %v460_v31 = vadd.f32 %v1103_v24, %v459_v29  ;;  %v524_v32 = vadd.f32 %v1103_v24, %v523_v30 }
  0xf1   : > { %928 = vtanh.f32 %v532_v28  ;;  %v833_v33 = vpop.f32.mrf.mxu0  ;;  %v849_v34 = vpop.f32.mrf.mxu1 }
  0xf2   : > { %930 = vtanh.f32 %v460_v31  ;;  %v471_v35 = vadd.f32 %v833_v33, %v1103_v24  ;;  %v535_v36 = vadd.f32 %v849_v34, %v1103_v24 }
  0xf3   : > { %932 = vtanh.f32 %v524_v32  ;;  %v462_v37 = vpop.f32.mrf.mxu0  ;;  %v526_v38 = vpop.f32.mrf.mxu1 }
  0xf4   : > { %934 = vtanh.f32 %v471_v35  ;;  %v463_v39 = vadd.f32 %v1103_v24, %v462_v37  ;;  %v527_v40 = vadd.f32 %v1103_v24, %v526_v38 }
  0xf5   : > { %936 = vtanh.f32 %v535_v36  ;;  %v836_v41 = vpop.f32.mrf.mxu0  ;;  %v852_v42 = vpop.f32.mrf.mxu1 }
  0xf6   : > { %938 = vtanh.f32 %v463_v39  ;;  %v484_v43 = vadd.f32 %v836_v41, %v1103_v24  ;;  %v548_v44 = vadd.f32 %v852_v42, %v1103_v24 }
  0xf7   : > { %940 = vtanh.f32 %v527_v40  ;;  %v475_v45 = vpop.f32.mrf.mxu0  ;;  %v539_v46 = vpop.f32.mrf.mxu1 }
  0xf8   : > { %942 = vtanh.f32 %v484_v43  ;;  %v476_v47 = vadd.f32 %v1103_v24, %v475_v45  ;;  %v540_v48 = vadd.f32 %v1103_v24, %v539_v46 }
  0xf9   : > { %944 = vtanh.f32 %v548_v44  ;;  %v837_v49 = vpop.f32.mrf.mxu0  ;;  %v853_v50 = vpop.f32.mrf.mxu1 }
  0xfa   : > { %946 = vtanh.f32 %v476_v47  ;;  %v487_v51 = vadd.f32 %v837_v49, %v1103_v24  ;;  %v551_v52 = vadd.f32 %v853_v50, %v1103_v24 }
  0xfb   : > { %948 = vtanh.f32 %v540_v48  ;;  %v478_v53 = vpop.f32.mrf.mxu0  ;;  %v542_v54 = vpop.f32.mrf.mxu1 }
  0xfc   : > { %950 = vtanh.f32 %v487_v51  ;;  %v479_v55 = vadd.f32 %v1103_v24, %v478_v53  ;;  %v543_v56 = vadd.f32 %v1103_v24, %v542_v54 }
  0xfd   : > { %v927_v57 = vpop.eup %926  ;;  %952 = vtanh.f32 %v551_v52  ;;  %v840_v58 = vpop.f32.mrf.mxu0 }
  0xfe   : > { %v856_v59 = vpop.f32.mrf.mxu1  ;;  %v929_v60 = vpop.eup %928  ;;  %620 = vst [vmem:[%s1123_s19 + $0x10] sm:$0xff] %v927_v57  ;;  %954 = vtanh.f32 %v479_v55  ;;  %v500_v61 = vadd.f32 %v840_v58, %v1103_v24 }
  0xff   : > { %v564_v62 = vadd.f32 %v856_v59, %v1103_v24  ;;  %v931_v63 = vpop.eup %930  ;;  %636 = vst [vmem:[%s1123_s19 + $0x90] sm:$0xff] %v929_v60  ;;  %956 = vtanh.f32 %v543_v56  ;;  %v491_v0 = vpop.f32.mrf.mxu0 }
 0x100   : > { %v555_v1 = vpop.f32.mrf.mxu1  ;;  %v933_v2 = vpop.eup %932  ;;  %618 = vst [vmem:[%s1123_s19] sm:$0xff] %v931_v63  ;;  %958 = vtanh.f32 %v500_v61  ;;  %v492_v3 = vadd.f32 %v1103_v24, %v491_v0 }
 0x101   : > { %v556_v4 = vadd.f32 %v1103_v24, %v555_v1  ;;  %v935_v5 = vpop.eup %934  ;;  %634 = vst [vmem:[%s1123_s19 + $0x80] sm:$0xff] %v933_v2  ;;  %960 = vtanh.f32 %v564_v62  ;;  %v841_v6 = vpop.f32.mrf.mxu0 }
 0x102   : > { %v857_v7 = vpop.f32.mrf.mxu1  ;;  %v937_v8 = vpop.eup %936  ;;  %621 = vst [vmem:[%s1123_s19 + $0x18] sm:$0xff] %v935_v5  ;;  %962 = vtanh.f32 %v492_v3  ;;  %v503_v9 = vadd.f32 %v841_v6, %v1103_v24 }
 0x103   : > { %v567_v10 = vadd.f32 %v857_v7, %v1103_v24  ;;  %v939_v11 = vpop.eup %938  ;;  %637 = vst [vmem:[%s1123_s19 + $0x98] sm:$0xff] %v937_v8  ;;  %964 = vtanh.f32 %v556_v4  ;;  %v494_v12 = vpop.f32.mrf.mxu0 }
 0x104   : > { %v558_v13 = vpop.f32.mrf.mxu1  ;;  %v941_v14 = vpop.eup %940  ;;  %619 = vst [vmem:[%s1123_s19 + $0x8] sm:$0xff] %v939_v11  ;;  %966 = vtanh.f32 %v503_v9  ;;  %v495_v15 = vadd.f32 %v1103_v24, %v494_v12 }
 0x105   : > { %v559_v16 = vadd.f32 %v1103_v24, %v558_v13  ;;  %v943_v17 = vpop.eup %942  ;;  %635 = vst [vmem:[%s1123_s19 + $0x88] sm:$0xff] %v941_v14  ;;  %968 = vtanh.f32 %v567_v10  ;;  %v844_v18 = vpop.f32.mrf.mxu0 }
 0x106   : > { %v860_v19 = vpop.f32.mrf.mxu1  ;;  %v945_v20 = vpop.eup %944  ;;  %624 = vst [vmem:[%s1123_s19 + $0x30] sm:$0xff] %v943_v17  ;;  %970 = vtanh.f32 %v495_v15  ;;  %v516_v21 = vadd.f32 %v844_v18, %v1103_v24 }
 0x107   : > { %v580_v22 = vadd.f32 %v860_v19, %v1103_v24  ;;  %v947_v23 = vpop.eup %946  ;;  %640 = vst [vmem:[%s1123_s19 + $0xb0] sm:$0xff] %v945_v20  ;;  %972 = vtanh.f32 %v559_v16  ;;  %v507_v25 = vpop.f32.mrf.mxu0 }
 0x108   : > { %v571_v26 = vpop.f32.mrf.mxu1  ;;  %v949_v27 = vpop.eup %948  ;;  %622 = vst [vmem:[%s1123_s19 + $0x20] sm:$0xff] %v947_v23  ;;  %974 = vtanh.f32 %v516_v21  ;;  %v508_v28 = vadd.f32 %v1103_v24, %v507_v25 }
 0x109   : > { %v572_v29 = vadd.f32 %v1103_v24, %v571_v26  ;;  %v951_v30 = vpop.eup %950  ;;  %638 = vst [vmem:[%s1123_s19 + $0xa0] sm:$0xff] %v949_v27  ;;  %976 = vtanh.f32 %v580_v22  ;;  %v845_v31 = vpop.f32.mrf.mxu0 }
 0x10a   : > { %v861_v32 = vpop.f32.mrf.mxu1  ;;  %v953_v33 = vpop.eup %952  ;;  %625 = vst [vmem:[%s1123_s19 + $0x38] sm:$0xff] %v951_v30  ;;  %978 = vtanh.f32 %v508_v28  ;;  %v519_v34 = vadd.f32 %v845_v31, %v1103_v24 }
 0x10b   : > { %v583_v35 = vadd.f32 %v861_v32, %v1103_v24  ;;  %v955_v36 = vpop.eup %954  ;;  %641 = vst [vmem:[%s1123_s19 + $0xb8] sm:$0xff] %v953_v33  ;;  %980 = vtanh.f32 %v572_v29  ;;  %v510_v37 = vpop.f32.mrf.mxu0 }
 0x10c   : > { %v574_v38 = vpop.f32.mrf.mxu1  ;;  %v957_v39 = vpop.eup %956  ;;  %623 = vst [vmem:[%s1123_s19 + $0x28] sm:$0xff] %v955_v36  ;;  %982 = vtanh.f32 %v519_v34  ;;  %v511_v40 = vadd.f32 %v1103_v24, %v510_v37 }
 0x10d   : > { %v575_v41 = vadd.f32 %v1103_v24, %v574_v38  ;;  %v959_v42 = vpop.eup %958  ;;  %639 = vst [vmem:[%s1123_s19 + $0xa8] sm:$0xff] %v957_v39  ;;  %984 = vtanh.f32 %v583_v35 }
 0x10e   : > { %v961_v43 = vpop.eup %960  ;;  %628 = vst [vmem:[%s1123_s19 + $0x50] sm:$0xff] %v959_v42  ;;  %986 = vtanh.f32 %v511_v40 }
 0x10f   : > { %v963_v44 = vpop.eup %962  ;;  %644 = vst [vmem:[%s1123_s19 + $0xd0] sm:$0xff] %v961_v43  ;;  %988 = vtanh.f32 %v575_v41 }
 0x110   : > { %v965_v45 = vpop.eup %964  ;;  %626 = vst [vmem:[%s1123_s19 + $0x40] sm:$0xff] %v963_v44 }
 0x111   : > { %v967_v46 = vpop.eup %966  ;;  %642 = vst [vmem:[%s1123_s19 + $0xc0] sm:$0xff] %v965_v45 }
 0x112   : > { %v969_v24 = vpop.eup %968  ;;  %629 = vst [vmem:[%s1123_s19 + $0x58] sm:$0xff] %v967_v46 }
 0x113   : > { %v971_v47 = vpop.eup %970  ;;  %645 = vst [vmem:[%s1123_s19 + $0xd8] sm:$0xff] %v969_v24 }
 0x114   : > { %v973_v48 = vpop.eup %972  ;;  %627 = vst [vmem:[%s1123_s19 + $0x48] sm:$0xff] %v971_v47 }
 0x115   : > { %v975_v49 = vpop.eup %974  ;;  %643 = vst [vmem:[%s1123_s19 + $0xc8] sm:$0xff] %v973_v48 }
 0x116   : > { %v977_v50 = vpop.eup %976  ;;  %632 = vst [vmem:[%s1123_s19 + $0x70] sm:$0xff] %v975_v49 }
 0x117   : > { %v979_v51 = vpop.eup %978  ;;  %648 = vst [vmem:[%s1123_s19 + $0xf0] sm:$0xff] %v977_v50 }
 0x118   : > { %v981_v52 = vpop.eup %980  ;;  %630 = vst [vmem:[%s1123_s19 + $0x60] sm:$0xff] %v979_v51 }
 0x119   : > { %v983_v53 = vpop.eup %982  ;;  %646 = vst [vmem:[%s1123_s19 + $0xe0] sm:$0xff] %v981_v52 }
 0x11a   : > { %v985_v54 = vpop.eup %984  ;;  %633 = vst [vmem:[%s1123_s19 + $0x78] sm:$0xff] %v983_v53 }
 0x11b   : > { %v987_v55 = vpop.eup %986  ;;  %649 = vst [vmem:[%s1123_s19 + $0xf8] sm:$0xff] %v985_v54 }
 0x11c   : > { %v989_v56 = vpop.eup %988  ;;  %631 = vst [vmem:[%s1123_s19 + $0x68] sm:$0xff] %v987_v55 }
 0x11d   : > { %647 = vst [vmem:[%s1123_s19 + $0xe8] sm:$0xff] %v989_v56 }
 0x11e PF: > { %s13_s14 = sadd.s32 1, %s1012_s14   ;;  %s1188_s12 = smov %s1008_s13 }
 0x11f   : > { %p10_p5 = scmp.ge.s32.totalorder %s13_s14, 4   ;;  %s1189_s13 = smov %s1191_s15 }
 0x121   :  { %12 = sbr.rel (!%p10_p5) target bundleno = 2 (0x2), region = 68 }

</bundles_post_ra>
